<compile_context>
chip_gen: v5e
topology: v5e:2x2
jax: 0.10.0
libtpu: 0.0.40
codegen_flags: <defaults>
</compile_context>

<pallas_src>
import functools

import jax
import jax.numpy as jnp
from jax.experimental import pallas as pl
from jax.experimental.pallas import tpu as pltpu


def _leaky_relu(x, slope=0.2):
    # Single VPU max instead of cmp+select.
    return jnp.maximum(x, slope * x)


def _batchnorm_train(h, gamma, beta, eps=1e-5):
    # PyTorch BatchNorm1d training mode: batch mean, biased batch variance.
    # One-pass variance (E[x^2] - E[x]^2) -> one cross-sublane reduction pair.
    mean = jnp.mean(h, axis=0, keepdims=True)
    mean_sq = jnp.mean(h * h, axis=0, keepdims=True)
    var = jnp.maximum(mean_sq - mean * mean, 0.0)
    return (h - mean) * jax.lax.rsqrt(var + eps) * gamma + beta


def _vector_offsets(nfc, n_classes):
    """Static, 128-aligned lane offsets into the packed (1, P) f32 vector."""
    offs = {
        "b1": 0,
        "g2": nfc,
        "be2": 2 * nfc,
        "s2": 3 * nfc,
        "g3": 4 * nfc,
        "be3": 4 * nfc + 512,
        "s3": 4 * nfc + 1024,
        "b4": 4 * nfc + 1536,
    }
    total = offs["b4"] + ((n_classes + 127) // 128) * 128  # pad to lane tile
    return offs, total


def encd_kernel(x_ref, w1_ref, w2q_ref, w3q_ref, w4_ref, vec_ref, o_ref,
                *, nfc, n_classes):
    offs, _ = _vector_offsets(nfc, n_classes)
    # Static slices of the packed parameter vector (zero-cost ref views).
    b1 = vec_ref[:, offs["b1"]:offs["b1"] + nfc]
    g2 = vec_ref[:, offs["g2"]:offs["g2"] + nfc]
    be2 = vec_ref[:, offs["be2"]:offs["be2"] + nfc]
    s2 = vec_ref[:, offs["s2"]:offs["s2"] + nfc]
    g3 = vec_ref[:, offs["g3"]:offs["g3"] + 512]
    be3 = vec_ref[:, offs["be3"]:offs["be3"] + 512]
    s3 = vec_ref[:, offs["s3"]:offs["s3"] + 512]
    b4 = vec_ref[:, offs["b4"]:offs["b4"] + n_classes]

    x = x_ref[...]  # (B, nlat) f32

    # Layer 1: Linear + LeakyReLU  (bf16 weights, f32 accumulation)
    h = jnp.dot(x.astype(jnp.bfloat16), w1_ref[...],
                preferred_element_type=jnp.float32) + b1
    h = _leaky_relu(h)

    # Layer 2: Linear(int8 W, per-channel scale) + BatchNorm1d + LeakyReLU.
    # Bias omitted: it is exactly cancelled by the BN batch-mean subtraction.
    h = jnp.dot(h.astype(jnp.bfloat16), w2q_ref[...].astype(jnp.bfloat16),
                preferred_element_type=jnp.float32) * s2
    h = _leaky_relu(_batchnorm_train(h, g2, be2))

    # Layer 3: Linear(int8 W, per-channel scale) + BatchNorm1d + LeakyReLU.
    h = jnp.dot(h.astype(jnp.bfloat16), w3q_ref[...].astype(jnp.bfloat16),
                preferred_element_type=jnp.float32) * s3
    h = _leaky_relu(_batchnorm_train(h, g3, be3))

    # Layer 4: Linear (logits)
    out = jnp.dot(h.astype(jnp.bfloat16), w4_ref[...],
                  preferred_element_type=jnp.float32) + b4
    o_ref[...] = out.astype(o_ref.dtype)


def encd_forward(x, params, *, nfc=1024):
    """x: (B, nlatentdim) f32.  params: dict from init_params."""
    B = x.shape[0]
    n_classes = params["w4"].shape[1]
    kernel = functools.partial(encd_kernel, nfc=nfc, n_classes=n_classes)
    args = (x, params["w1"], params["w2q"], params["w3q"], params["w4"],
            params["packed"])
    # Single ungridded call; everything (≈1.7 MiB of int8/bf16 weights, the
    # packed parameter vector and a few (B,1024) f32 activations) lives in
    # VMEM.  At GAN-training batch sizes this would need a batch grid with
    # accumulated BN stats and a "parallel" axis (2 TCs on v7x); not at B=8.
    return pl.pallas_call(
        kernel,
        out_shape=jax.ShapeDtypeStruct((B, n_classes), jnp.float32),
        in_specs=[pl.BlockSpec(memory_space=pltpu.MemorySpace.VMEM)] * len(args),
        out_specs=pl.BlockSpec(memory_space=pltpu.MemorySpace.VMEM),
        compiler_params=pltpu.CompilerParams(vmem_limit_bytes=16 << 20),
    )(*args)


def _quantize_per_out_channel(w):
    """Symmetric per-output-channel int8 quantization.  w: (in, out) f32."""
    amax = jnp.max(jnp.abs(w), axis=0, keepdims=True)          # (1, out)
    scale = jnp.where(amax > 0, amax / 127.0, 1.0)
    w_q = jnp.clip(jnp.round(w / scale), -127.0, 127.0).astype(jnp.int8)
    return w_q, scale.astype(jnp.float32)


def init_params(key, nlatentdim, n_classes, nfc=1024):
    """Deterministic synthetic init mirroring nn.Linear / BatchNorm1d defaults.

    Linear weights stored as (in, out).  W1/W4 in bf16; W2/W3 as int8 with
    per-output-channel f32 scales.  All (1,F) vectors packed into one f32 row.
    b2/b3 are not materialized at all: pre-BN biases are cancelled by the
    batch-mean subtraction in training-mode BatchNorm.
    """
    ks = jax.random.split(key, 8)

    def lin(k, fan_in, fan_out):
        bound = 1.0 / jnp.sqrt(fan_in)
        kw, kb = jax.random.split(k)
        w = jax.random.uniform(kw, (fan_in, fan_out), jnp.float32, -bound, bound)
        b = jax.random.uniform(kb, (1, fan_out), jnp.float32, -bound, bound)
        return w, b

    w1f, b1 = lin(ks[0], nlatentdim, nfc)
    w2f, _ = lin(ks[1], nfc, nfc)          # bias dropped (cancelled by BN)
    w3f, _ = lin(ks[2], nfc, 512)          # bias dropped (cancelled by BN)
    w4f, b4 = lin(ks[3], 512, n_classes)

    w2q, s2 = _quantize_per_out_channel(w2f)
    w3q, s3 = _quantize_per_out_channel(w3f)

    # BatchNorm affine params (PyTorch default gamma=1, beta=0, nudged so the
    # affine path is exercised).
    g2 = jnp.ones((1, nfc), jnp.float32) + 0.01 * jax.random.normal(ks[4], (1, nfc))
    be2 = 0.01 * jax.random.normal(ks[5], (1, nfc))
    g3 = jnp.ones((1, 512), jnp.float32) + 0.01 * jax.random.normal(ks[6], (1, 512))
    be3 = 0.01 * jax.random.normal(ks[7], (1, 512))

    # Pack all small (1,F) vectors into a single (1, P) f32 array -> one DMA.
    offs, total = _vector_offsets(nfc, n_classes)
    packed = jnp.zeros((1, total), jnp.float32)
    for name, vec in (("b1", b1), ("g2", g2), ("be2", be2), ("s2", s2),
                      ("g3", g3), ("be3", be3), ("s3", s3), ("b4", b4)):
        packed = jax.lax.dynamic_update_slice(packed, vec, (0, offs[name]))

    return dict(
        w1=w1f.astype(jnp.bfloat16), b1=b1,
        w2q=w2q, s2=s2, g2=g2, be2=be2,
        w3q=w3q, s3=s3, g3=g3, be3=be3,
        w4=w4f.astype(jnp.bfloat16), b4=b4,
        packed=packed,
    )


def encd_reference(x, p):
    """Pure-JAX reference performing the same bf16/int8-dequant computation."""
    def mm(h, w):
        return jnp.dot(h.astype(jnp.bfloat16), w.astype(jnp.bfloat16),
                       preferred_element_type=jnp.float32)

    h = _leaky_relu(mm(x, p["w1"]) + p["b1"])
    h = _leaky_relu(_batchnorm_train(mm(h, p["w2q"]) * p["s2"], p["g2"], p["be2"]))
    h = _leaky_relu(_batchnorm_train(mm(h, p["w3q"]) * p["s3"], p["g3"], p["be3"]))
    return mm(h, p["w4"]) + p["b4"]


if __name__ == "__main__":
    key = jax.random.PRNGKey(0)
    k_param, k_x = jax.random.split(key)

    B, nlatentdim, n_classes, nfc = 8, 16, 8, 1024
    params = init_params(k_param, nlatentdim, n_classes, nfc=nfc)
    x = jax.random.normal(k_x, (B, nlatentdim), jnp.float32)

    out = encd_forward(x, params, nfc=nfc)
    out = jax.block_until_ready(out)

    ref = encd_reference(x, params)
    assert out.shape == (B, n_classes)
    assert jnp.allclose(out, ref, atol=2e-3, rtol=2e-3), "mismatch vs reference"

    print("KERNEL_OK")
</pallas_src>

<mosaic_0001>
module attributes {stable_mosaic.version = 11 : i64} {
  func.func @encd_kernel(%arg0: memref<8x16xf32, #tpu.memory_space<vmem>>, %arg1: memref<16x1024xbf16, #tpu.memory_space<vmem>>, %arg2: memref<1024x1024xi8, #tpu.memory_space<vmem>>, %arg3: memref<1024x512xi8, #tpu.memory_space<vmem>>, %arg4: memref<512x8xbf16, #tpu.memory_space<vmem>>, %arg5: memref<1x5760xf32, #tpu.memory_space<vmem>>, %arg6: memref<8x8xf32, #tpu.memory_space<vmem>>) attributes {dimension_semantics = [], scalar_prefetch = 0 : i64, scratch_operands = 0 : i64, tpu.core_type = #tpu.core_type<tc>} {
    %c0 = arith.constant 0 : index
    %c0_0 = arith.constant 0 : index
    %0 = vector.load %arg5[%c0, %c0_0] : memref<1x5760xf32, #tpu.memory_space<vmem>>, vector<1x1024xf32>
    %c0_1 = arith.constant 0 : index
    %c1024 = arith.constant 1024 : index
    %1 = vector.load %arg5[%c0_1, %c1024] : memref<1x5760xf32, #tpu.memory_space<vmem>>, vector<1x1024xf32>
    %c0_2 = arith.constant 0 : index
    %c2048 = arith.constant 2048 : index
    %2 = vector.load %arg5[%c0_2, %c2048] : memref<1x5760xf32, #tpu.memory_space<vmem>>, vector<1x1024xf32>
    %c0_3 = arith.constant 0 : index
    %c3072 = arith.constant 3072 : index
    %3 = vector.load %arg5[%c0_3, %c3072] : memref<1x5760xf32, #tpu.memory_space<vmem>>, vector<1x1024xf32>
    %c0_4 = arith.constant 0 : index
    %c4096 = arith.constant 4096 : index
    %4 = vector.load %arg5[%c0_4, %c4096] : memref<1x5760xf32, #tpu.memory_space<vmem>>, vector<1x512xf32>
    %c0_5 = arith.constant 0 : index
    %c4608 = arith.constant 4608 : index
    %5 = vector.load %arg5[%c0_5, %c4608] : memref<1x5760xf32, #tpu.memory_space<vmem>>, vector<1x512xf32>
    %c0_6 = arith.constant 0 : index
    %c5120 = arith.constant 5120 : index
    %6 = vector.load %arg5[%c0_6, %c5120] : memref<1x5760xf32, #tpu.memory_space<vmem>>, vector<1x512xf32>
    %c0_7 = arith.constant 0 : index
    %c5632 = arith.constant 5632 : index
    %7 = vector.load %arg5[%c0_7, %c5632] : memref<1x5760xf32, #tpu.memory_space<vmem>>, vector<1x8xf32>
    %c0_8 = arith.constant 0 : index
    %c0_9 = arith.constant 0 : index
    %8 = vector.load %arg0[%c0_8, %c0_9] : memref<8x16xf32, #tpu.memory_space<vmem>>, vector<8x16xf32>
    %9 = arith.truncf %8 : vector<8x16xf32> to vector<8x16xbf16>
    %c0_10 = arith.constant 0 : index
    %c0_11 = arith.constant 0 : index
    %10 = vector.load %arg1[%c0_10, %c0_11] : memref<16x1024xbf16, #tpu.memory_space<vmem>>, vector<16x1024xbf16>
    %cst = arith.constant dense<0.000000e+00> : vector<8x1024xf32>
    %11 = tpu.matmul %9, %10, %cst {dimension_numbers = #tpu.dot_dimension_numbers<[1], [0], [0], [1], [0, 0, 1, 1], [], []>} : vector<8x16xbf16>, vector<16x1024xbf16>, vector<8x1024xf32> -> vector<8x1024xf32>
    %12 = vector.broadcast %0 : vector<1x1024xf32> to vector<8x1024xf32>
    %13 = arith.addf %11, %12 : vector<8x1024xf32>
    %cst_12 = arith.constant 2.000000e-01 : f32
    %14 = vector.broadcast %cst_12 : f32 to vector<8x1024xf32>
    %15 = arith.mulf %14, %13 : vector<8x1024xf32>
    %16 = arith.maximumf %13, %15 : vector<8x1024xf32>
    %17 = arith.truncf %16 : vector<8x1024xf32> to vector<8x1024xbf16>
    %c0_13 = arith.constant 0 : index
    %c0_14 = arith.constant 0 : index
    %18 = vector.load %arg2[%c0_13, %c0_14] : memref<1024x1024xi8, #tpu.memory_space<vmem>>, vector<1024x1024xi8>
    %19 = arith.sitofp %18 : vector<1024x1024xi8> to vector<1024x1024xbf16>
    %cst_15 = arith.constant dense<0.000000e+00> : vector<8x1024xf32>
    %20 = tpu.matmul %17, %19, %cst_15 {dimension_numbers = #tpu.dot_dimension_numbers<[1], [0], [0], [1], [0, 0, 1, 1], [], []>} : vector<8x1024xbf16>, vector<1024x1024xbf16>, vector<8x1024xf32> -> vector<8x1024xf32>
    %21 = vector.broadcast %3 : vector<1x1024xf32> to vector<8x1024xf32>
    %22 = arith.mulf %20, %21 : vector<8x1024xf32>
    %cst_16 = arith.constant dense<0.000000e+00> : vector<1024xf32>
    %23 = vector.multi_reduction <add>, %22, %cst_16 [0] : vector<8x1024xf32> to vector<1024xf32>
    %24 = vector.shape_cast %23 : vector<1024xf32> to vector<1x1024xf32>
    %cst_17 = arith.constant 8.000000e+00 : f32
    %25 = vector.broadcast %cst_17 : f32 to vector<1x1024xf32>
    %26 = arith.divf %24, %25 : vector<1x1024xf32>
    %27 = arith.mulf %22, %22 : vector<8x1024xf32>
    %cst_18 = arith.constant dense<0.000000e+00> : vector<1024xf32>
    %28 = vector.multi_reduction <add>, %27, %cst_18 [0] : vector<8x1024xf32> to vector<1024xf32>
    %29 = vector.shape_cast %28 : vector<1024xf32> to vector<1x1024xf32>
    %cst_19 = arith.constant 8.000000e+00 : f32
    %30 = vector.broadcast %cst_19 : f32 to vector<1x1024xf32>
    %31 = arith.divf %29, %30 : vector<1x1024xf32>
    %32 = arith.mulf %26, %26 : vector<1x1024xf32>
    %33 = arith.subf %31, %32 : vector<1x1024xf32>
    %cst_20 = arith.constant 0.000000e+00 : f32
    %34 = vector.broadcast %cst_20 : f32 to vector<1x1024xf32>
    %35 = arith.maximumf %33, %34 : vector<1x1024xf32>
    %36 = vector.broadcast %26 : vector<1x1024xf32> to vector<8x1024xf32>
    %37 = arith.subf %22, %36 : vector<8x1024xf32>
    %cst_21 = arith.constant 9.99999974E-6 : f32
    %38 = vector.broadcast %cst_21 : f32 to vector<1x1024xf32>
    %39 = arith.addf %35, %38 : vector<1x1024xf32>
    %40 = math.rsqrt %39 : vector<1x1024xf32>
    %41 = vector.broadcast %40 : vector<1x1024xf32> to vector<8x1024xf32>
    %42 = arith.mulf %37, %41 : vector<8x1024xf32>
    %43 = vector.broadcast %1 : vector<1x1024xf32> to vector<8x1024xf32>
    %44 = arith.mulf %42, %43 : vector<8x1024xf32>
    %45 = vector.broadcast %2 : vector<1x1024xf32> to vector<8x1024xf32>
    %46 = arith.addf %44, %45 : vector<8x1024xf32>
    %cst_22 = arith.constant 2.000000e-01 : f32
    %47 = vector.broadcast %cst_22 : f32 to vector<8x1024xf32>
    %48 = arith.mulf %47, %46 : vector<8x1024xf32>
    %49 = arith.maximumf %46, %48 : vector<8x1024xf32>
    %50 = arith.truncf %49 : vector<8x1024xf32> to vector<8x1024xbf16>
    %c0_23 = arith.constant 0 : index
    %c0_24 = arith.constant 0 : index
    %51 = vector.load %arg3[%c0_23, %c0_24] : memref<1024x512xi8, #tpu.memory_space<vmem>>, vector<1024x512xi8>
    %52 = arith.sitofp %51 : vector<1024x512xi8> to vector<1024x512xbf16>
    %cst_25 = arith.constant dense<0.000000e+00> : vector<8x512xf32>
    %53 = tpu.matmul %50, %52, %cst_25 {dimension_numbers = #tpu.dot_dimension_numbers<[1], [0], [0], [1], [0, 0, 1, 1], [], []>} : vector<8x1024xbf16>, vector<1024x512xbf16>, vector<8x512xf32> -> vector<8x512xf32>
    %54 = vector.broadcast %6 : vector<1x512xf32> to vector<8x512xf32>
    %55 = arith.mulf %53, %54 : vector<8x512xf32>
    %cst_26 = arith.constant dense<0.000000e+00> : vector<512xf32>
    %56 = vector.multi_reduction <add>, %55, %cst_26 [0] : vector<8x512xf32> to vector<512xf32>
    %57 = vector.shape_cast %56 : vector<512xf32> to vector<1x512xf32>
    %cst_27 = arith.constant 8.000000e+00 : f32
    %58 = vector.broadcast %cst_27 : f32 to vector<1x512xf32>
    %59 = arith.divf %57, %58 : vector<1x512xf32>
    %60 = arith.mulf %55, %55 : vector<8x512xf32>
    %cst_28 = arith.constant dense<0.000000e+00> : vector<512xf32>
    %61 = vector.multi_reduction <add>, %60, %cst_28 [0] : vector<8x512xf32> to vector<512xf32>
    %62 = vector.shape_cast %61 : vector<512xf32> to vector<1x512xf32>
    %cst_29 = arith.constant 8.000000e+00 : f32
    %63 = vector.broadcast %cst_29 : f32 to vector<1x512xf32>
    %64 = arith.divf %62, %63 : vector<1x512xf32>
    %65 = arith.mulf %59, %59 : vector<1x512xf32>
    %66 = arith.subf %64, %65 : vector<1x512xf32>
    %cst_30 = arith.constant 0.000000e+00 : f32
    %67 = vector.broadcast %cst_30 : f32 to vector<1x512xf32>
    %68 = arith.maximumf %66, %67 : vector<1x512xf32>
    %69 = vector.broadcast %59 : vector<1x512xf32> to vector<8x512xf32>
    %70 = arith.subf %55, %69 : vector<8x512xf32>
    %cst_31 = arith.constant 9.99999974E-6 : f32
    %71 = vector.broadcast %cst_31 : f32 to vector<1x512xf32>
    %72 = arith.addf %68, %71 : vector<1x512xf32>
    %73 = math.rsqrt %72 : vector<1x512xf32>
    %74 = vector.broadcast %73 : vector<1x512xf32> to vector<8x512xf32>
    %75 = arith.mulf %70, %74 : vector<8x512xf32>
    %76 = vector.broadcast %4 : vector<1x512xf32> to vector<8x512xf32>
    %77 = arith.mulf %75, %76 : vector<8x512xf32>
    %78 = vector.broadcast %5 : vector<1x512xf32> to vector<8x512xf32>
    %79 = arith.addf %77, %78 : vector<8x512xf32>
    %cst_32 = arith.constant 2.000000e-01 : f32
    %80 = vector.broadcast %cst_32 : f32 to vector<8x512xf32>
    %81 = arith.mulf %80, %79 : vector<8x512xf32>
    %82 = arith.maximumf %79, %81 : vector<8x512xf32>
    %83 = arith.truncf %82 : vector<8x512xf32> to vector<8x512xbf16>
    %c0_33 = arith.constant 0 : index
    %c0_34 = arith.constant 0 : index
    %84 = vector.load %arg4[%c0_33, %c0_34] : memref<512x8xbf16, #tpu.memory_space<vmem>>, vector<512x8xbf16>
    %cst_35 = arith.constant dense<0.000000e+00> : vector<8x8xf32>
    %85 = tpu.matmul %83, %84, %cst_35 {dimension_numbers = #tpu.dot_dimension_numbers<[1], [0], [0], [1], [0, 0, 1, 1], [], []>} : vector<8x512xbf16>, vector<512x8xbf16>, vector<8x8xf32> -> vector<8x8xf32>
    %86 = vector.broadcast %7 : vector<1x8xf32> to vector<8x8xf32>
    %87 = arith.addf %85, %86 : vector<8x8xf32>
    %c0_36 = arith.constant 0 : index
    %c0_37 = arith.constant 0 : index
    %88 = vector.load %arg6[%c0_36, %c0_37] : memref<8x8xf32, #tpu.memory_space<vmem>>, vector<8x8xf32>
    tpu.vector_store %arg6[%c0_36, %c0_37], %87 {strides = array<i32>} : memref<8x8xf32, #tpu.memory_space<vmem>>, vector<8x8xf32>,
    return
  }
}

</mosaic_0001>

<bundles_post_ra>
// kernel: tpu_custom_call.1
= control target key start
LH: loop header
LB: loop body
LE: loop exit
PB: predicated region body
PF: predicated region fallthrough
CT: control target
= control target key end

     0   :  { %11 = vsyncpa [#allocation3], 0  ;;  %s8701_s0 = inlined_call_operand.vmem [shape: f32[8,16], index: 0, kind: input, shape index: {}]   ;;  %s8702_s1 = inlined_call_operand.vmem [shape: bf16[16,1024], index: 1, kind: input, shape index: {}]   ;;  %s8703_s2 = inlined_call_operand.hbm [shape: s8[1024,1024], index: 2, kind: input, shape index: {}]   ;;  %s8704_s3 = inlined_call_operand.hbm [shape: s8[1024,512], index: 3, kind: input, shape index: {}]   ;;  %s8705_s4 = inlined_call_operand.vmem [shape: bf16[512,8], index: 4, kind: input, shape index: {}]   ;;  %s8706_s5 = inlined_call_operand.vmem [shape: f32[1,5760], index: 5, kind: input, shape index: {}]   ;;  %s8707_s6 = inlined_call_operand.hbm [shape: f32[8,8], index: 6, kind: output, shape index: {}]  }
   0x1   :  { %12 = vsyncpa [#allocation6], 0 }
   0x2   :  { %13 = vsyncpa [#allocation4], 0  ;;  %s22_s23 = sshll.u32 %s8703_s2, 4  ;;  %s6924_s24 = smov [#allocation2]   ;;  %s23_s23 = int_to_ptr.hbm [resolvable:$true] %s22_s23 }
   0x3   :  { %s24_s25 = sshll.u32 %s6924_s24, 4  ;;  %s35_s28 = sshll.u32 %s8704_s3, 4  ;;  %s25_s25 = int_to_ptr.vmem [resolvable:$true] %s24_s25  ;;  %s36_s28 = int_to_ptr.hbm [resolvable:$true] %s35_s28 }
   0x4   :  { %s6925_s29 = smov 1024   ;;  %s6926_s30 = smov 64  }
   0x5   :  { %30 = dma.hbm_to_vmem [thread:$0]  %s23_s23, 32768, %s25_s25, [#allocation3], %s6925_s29, %s6925_s29, %s6926_s30  }
   0x6   :  { %s6927_s7 = smov [#allocation5]   ;;  %s6928_s9 = smov 512  }
   0x7   :  { %s37_s8 = sshll.u32 %s6927_s7, 4  ;;  %s6929_s10 = smov 32   ;;  %s38_s8 = int_to_ptr.vmem [resolvable:$true] %s37_s8 }
   0x8   :  { %43 = dma.hbm_to_vmem [thread:$0]  %s36_s28, 16384, %s38_s8, [#allocation6], %s6928_s9, %s6928_s9, %s6929_s10  }
   0x9   :  { %6918 = dma.done.wait [#allocation3], 32768  }
   0xa   :  { %6919 = vsyncadd [#allocation3], 4294934528 }
   0xb   :  { %6920 = dma.done.wait [#allocation6], 16384  }
   0xc   :  { %6921 = vsyncadd [#allocation6], 4294950912  ;;  %v6598_v0 = vld [vmem:[%s8702_s1] sm:$0xf]  ;;  %v6764_v2 = vld [vmem:[%s8702_s1 + $0x4] sm:$0xf] }
   0xd   :  { %v6768_v1 = vld [vmem:[%s8702_s1 + $0x1c] sm:$0xf0]  ;;  %v6600_v4 = vld [vmem:[%s8702_s1 + $0x20] sm:$0xf0]  ;;  %v6606_v5 = vld [vmem:[%s8702_s1 + $0x8] sm:$0xf] }
   0xe   :  { %v6599_v3 = vor.u32 %v6768_v1, %v6598_v0  ;;  %v6769_v6 = vld [vmem:[%s8702_s1 + $0x24] sm:$0xf0]  ;;  %v6603_v7 = vor.u32 %v6764_v2, %v6600_v4  ;;  %v6765_v9 = vld [vmem:[%s8702_s1 + $0xc] sm:$0xf]  ;;  %v65_v11 = vld [vmem:[%s8701_s0] sm:$0xff]  ;;  %vm132_vm0 = vcmask 130048  }
   0xf   :  { %v6607_v8 = vor.u32 %v6769_v6, %v6606_v5  ;;  %v6608_v10 = vld [vmem:[%s8702_s1 + $0x28] sm:$0xf0]  ;;  %v7000_v13 = vpack.c.bf16 %v65_v11, %v65_v11  ;;  %v6614_v14 = vld [vmem:[%s8702_s1 + $0x10] sm:$0xf]  ;;  %v6766_v16 = vld [vmem:[%s8702_s1 + $0x14] sm:$0xf] }
  0x10   :  { %143 = vmatpush.bf16.msra.mxu0 %v6599_v3  ;;  %v6611_v12 = vor.u32 %v6765_v9, %v6608_v10  ;;  %v6770_v15 = vld [vmem:[%s8702_s1 + $0x2c] sm:$0xf0]  ;;  %156 = vmatpush.bf16.msra.mxu1 %v6603_v7  ;;  %v6616_v18 = vld [vmem:[%s8702_s1 + $0x30] sm:$0xf0]  ;;  %v6622_v19 = vld [vmem:[%s8702_s1 + $0x18] sm:$0xf] }
  0x11   :  { %169 = vmatpush.bf16.msra.mxu2 %v6607_v8  ;;  %v6615_v17 = vor.u32 %v6770_v15, %v6614_v14  ;;  %v6771_v20 = vld [vmem:[%s8702_s1 + $0x34] sm:$0xf0]  ;;  %v6619_v21 = vor.u32 %v6766_v16, %v6616_v18  ;;  %v6767_v23 = vld [vmem:[%s8702_s1 + $0x1c] sm:$0xf]  ;;  %v288_v25 = vld [vmem:[#allocation2 + $0xc0] sm:$0xff]  ;;  %s6931_s24 = smov [#allocation7]  }
  0x12   :  { %182 = vmatpush.bf16.msra.mxu3 %v6611_v12  ;;  %v6623_v22 = vor.u32 %v6771_v20, %v6622_v19  ;;  %v6624_v24 = vld [vmem:[%s8702_s1 + $0x38] sm:$0xf0]  ;;  %v632_v27 = vunpack.c.2.s8 %v288_v25  ;;  %v640_v28 = vunpack.c.3.s8 %v288_v25  ;;  %v320_v29 = vld [vmem:[#allocation2 + $0x1c0] sm:$0xff]  ;;  %v616_v30 = vunpack.c.0.s8 %v288_v25  ;;  %s6583_s25 = sshll.u32 %s6931_s24, 4  ;;  %s6585_s28 = sshll.u32 %s8707_s6, 4  ;;  %s6584_s25 = int_to_ptr.vmem [resolvable:$true] %s6583_s25  ;;  %s6586_s28 = int_to_ptr.hbm [resolvable:$true] %s6585_s28 }
  0x13   :  { %6628 = vmatmul.msk.bf16.vlgmr.msra.gmra.mxu0 %vm132_vm0, %v7000_v13  ;;  %v6627_v26 = vor.u32 %v6767_v23, %v6624_v24  ;;  %6629 = vmatmul.msk.bf16.vlgmr.msra.gmra.mxu1 %vm132_vm0, %v7000_v13  ;;  %v760_v31 = vunpack.c.2.s8 %v320_v29  ;;  %v768_v32 = vunpack.c.3.s8 %v320_v29  ;;  %v624_v33 = vunpack.c.1.s8 %v288_v25  ;;  %v352_v35 = vld [vmem:[#allocation2 + $0x2c0] sm:$0xff] }
  0x14   :  { %6630 = vmatmul.msk.bf16.vlgmr.msra.gmra.mxu2 %vm132_vm0, %v7000_v13  ;;  %v744_v34 = vunpack.c.0.s8 %v320_v29  ;;  %195 = vmatpush.bf16.msrb.mxu0 %v6615_v17  ;;  %v1656_v36 = vcvt.s32.f32 %v632_v27  ;;  %v1664_v37 = vcvt.s32.f32 %v640_v28  ;;  %v1640_v38 = vcvt.s32.f32 %v616_v30  ;;  %v384_v40 = vld [vmem:[#allocation2 + $0x3c0] sm:$0xff] }
  0x15   :  { %6631 = vmatmul.msk.bf16.vlgmr.msra.gmra.mxu3 %vm132_vm0, %v7000_v13  ;;  %v752_v39 = vunpack.c.1.s8 %v320_v29  ;;  %208 = vmatpush.bf16.msrb.mxu1 %v6619_v21  ;;  %v1784_v41 = vcvt.s32.f32 %v760_v31  ;;  %v1792_v42 = vcvt.s32.f32 %v768_v32  ;;  %v1648_v43 = vcvt.s32.f32 %v624_v33  ;;  %v280_v45 = vld [vmem:[#allocation2 + $0x80] sm:$0xff] }
  0x16   :  { %221 = vmatpush.bf16.msrb.mxu2 %v6623_v22  ;;  %v1768_v44 = vcvt.s32.f32 %v744_v34  ;;  %234 = vmatpush.bf16.msrb.mxu3 %v6627_v26  ;;  %v2624_v46 = vpack.c.bf16 %v1664_v37, %v1656_v36  ;;  %v888_v48 = vunpack.c.2.s8 %v352_v35  ;;  %v896_v49 = vunpack.c.3.s8 %v352_v35  ;;  %v312_v50 = vld [vmem:[#allocation2 + $0x180] sm:$0xff] }
  0x17   :  { %v1776_v47 = vcvt.s32.f32 %v752_v39  ;;  %v2688_v51 = vpack.c.bf16 %v1792_v42, %v1784_v41  ;;  %v2616_v52 = vpack.c.bf16 %v1648_v43, %v1640_v38  ;;  %v1016_v53 = vunpack.c.2.s8 %v384_v40  ;;  %v344_v16 = vld [vmem:[#allocation2 + $0x280] sm:$0xff] }
  0x18   :  { %v1024_v54 = vunpack.c.3.s8 %v384_v40  ;;  %3080 = vmatpush.bf16.msra.mxu0 %v2624_v46  ;;  %v1912_v56 = vcvt.s32.f32 %v888_v48  ;;  %v1920_v57 = vcvt.s32.f32 %v896_v49  ;;  %v600_v58 = vunpack.c.2.s8 %v280_v45  ;;  %v376_v21 = vld [vmem:[#allocation2 + $0x380] sm:$0xff] }
  0x19   :  { %v2680_v55 = vpack.c.bf16 %v1776_v47, %v1768_v44  ;;  %3093 = vmatpush.bf16.msra.mxu1 %v2688_v51  ;;  %v2040_v59 = vcvt.s32.f32 %v1016_v53  ;;  %v608_v61 = vunpack.c.3.s8 %v280_v45  ;;  %v728_v62 = vunpack.c.2.s8 %v312_v50  ;;  %v272_v26 = vld [vmem:[#allocation2 + $0x40] sm:$0xff] }
  0x1a   :  { %v2048_v60 = vcvt.s32.f32 %v1024_v54  ;;  %v2752_v63 = vpack.c.bf16 %v1920_v57, %v1912_v56  ;;  %v1624_v0 = vcvt.s32.f32 %v600_v58  ;;  %v736_v1 = vunpack.c.3.s8 %v312_v50  ;;  %v304_v31 = vld [vmem:[#allocation2 + $0x140] sm:$0xff] }
  0x1b   :  { %v872_v2 = vunpack.c.0.s8 %v352_v35  ;;  %v1632_v4 = vcvt.s32.f32 %v608_v61  ;;  %v1752_v5 = vcvt.s32.f32 %v728_v62  ;;  %v880_v6 = vunpack.c.1.s8 %v352_v35 }
  0x1c   :  { %v2816_v3 = vpack.c.bf16 %v2048_v60, %v2040_v59  ;;  %3081 = vmatpush.bf16.msra.mxu0 %v2616_v52  ;;  %3106 = vmatpush.bf16.msra.mxu2 %v2752_v63  ;;  %v1760_v7 = vcvt.s32.f32 %v736_v1  ;;  %v1000_v9 = vunpack.c.0.s8 %v384_v40  ;;  %v1008_v10 = vunpack.c.1.s8 %v384_v40  ;;  %v336_v59 = vld [vmem:[#allocation2 + $0x240] sm:$0xff] }
  0x1d   :  { %v1896_v8 = vcvt.s32.f32 %v872_v2  ;;  %3094 = vmatpush.bf16.msra.mxu1 %v2680_v55  ;;  %v2608_v11 = vpack.c.bf16 %v1632_v4, %v1624_v0  ;;  %v1904_v12 = vcvt.s32.f32 %v880_v6  ;;  %v584_v14 = vunpack.c.0.s8 %v280_v45  ;;  %v368_v0 = vld [vmem:[#allocation2 + $0x340] sm:$0xff] }
  0x1e   :  { %3119 = vmatpush.bf16.msra.mxu3 %v2816_v3  ;;  %v592_v15 = vunpack.c.1.s8 %v280_v45  ;;  %v2672_v17 = vpack.c.bf16 %v1760_v7, %v1752_v5  ;;  %v2024_v18 = vcvt.s32.f32 %v1000_v9  ;;  %v2032_v19 = vcvt.s32.f32 %v1008_v10  ;;  %v264_v5 = vld [vmem:[#allocation2] sm:$0xff] }
  0x1f   :  { %v712_v20 = vunpack.c.0.s8 %v312_v50  ;;  %v2744_v22 = vpack.c.bf16 %v1904_v12, %v1896_v8  ;;  %v1608_v23 = vcvt.s32.f32 %v584_v14  ;;  %v720_v25 = vunpack.c.1.s8 %v312_v50  ;;  %v296_v10 = vld [vmem:[#allocation2 + $0x100] sm:$0xff] }
  0x20   :  { %v1616_v24 = vcvt.s32.f32 %v592_v15  ;;  %3082 = vmatpush.bf16.msra.mxu0 %v2608_v11  ;;  %v2808_v27 = vpack.c.bf16 %v2032_v19, %v2024_v18  ;;  %v856_v29 = vunpack.c.2.s8 %v344_v16  ;;  %v864_v30 = vunpack.c.3.s8 %v344_v16 }
  0x21   :  { %v1736_v28 = vcvt.s32.f32 %v712_v20  ;;  %3095 = vmatpush.bf16.msra.mxu1 %v2672_v17  ;;  %3107 = vmatpush.bf16.msra.mxu2 %v2744_v22  ;;  %v1744_v33 = vcvt.s32.f32 %v720_v25  ;;  %v984_v34 = vunpack.c.2.s8 %v376_v21  ;;  %v992_v35 = vunpack.c.3.s8 %v376_v21 }
  0x22   :  { %v2600_v32 = vpack.c.bf16 %v1616_v24, %v1608_v23  ;;  %3120 = vmatpush.bf16.msra.mxu3 %v2808_v27  ;;  %v1880_v36 = vcvt.s32.f32 %v856_v29  ;;  %v1888_v37 = vcvt.s32.f32 %v864_v30  ;;  %v568_v38 = vunpack.c.2.s8 %v272_v26 }
  0x23   :  { %6632 = vmatmul.msk.bf16.vlgmr.msrb.gmra.mxu0 %vm132_vm0, %v7000_v13  ;;  %v576_v39 = vunpack.c.3.s8 %v272_v26  ;;  %6633 = vmatmul.msk.bf16.vlgmr.msrb.gmra.mxu1 %vm132_vm0, %v7000_v13  ;;  %v2664_v40 = vpack.c.bf16 %v1744_v33, %v1736_v28  ;;  %v2008_v41 = vcvt.s32.f32 %v984_v34  ;;  %v2016_v42 = vcvt.s32.f32 %v992_v35 }
  0x24   :  { %6634 = vmatmul.msk.bf16.vlgmr.msrb.gmra.mxu2 %vm132_vm0, %v7000_v13  ;;  %v696_v43 = vunpack.c.2.s8 %v304_v31  ;;  %3083 = vmatpush.bf16.msra.mxu0 %v2600_v32  ;;  %v2736_v44 = vpack.c.bf16 %v1888_v37, %v1880_v36  ;;  %v1592_v45 = vcvt.s32.f32 %v568_v38  ;;  %v704_v47 = vunpack.c.3.s8 %v304_v31 }
  0x25   :  { %6635 = vmatmul.msk.bf16.vlgmr.msrb.gmra.mxu3 %vm132_vm0, %v7000_v13  ;;  %v1600_v46 = vcvt.s32.f32 %v576_v39  ;;  %3096 = vmatpush.bf16.msra.mxu1 %v2664_v40  ;;  %v2800_v48 = vpack.c.bf16 %v2016_v42, %v2008_v41  ;;  %v840_v50 = vunpack.c.0.s8 %v344_v16  ;;  %v848_v51 = vunpack.c.1.s8 %v344_v16  ;;  %v416_v40 = vld [vmem:[#allocation2 + $0x4c0] sm:$0xff] }
  0x26   :  { %v1720_v49 = vcvt.s32.f32 %v696_v43  ;;  %3108 = vmatpush.bf16.msra.mxu2 %v2736_v44  ;;  %v1728_v53 = vcvt.s32.f32 %v704_v47  ;;  %v968_v54 = vunpack.c.0.s8 %v376_v21  ;;  %v976_v55 = vunpack.c.1.s8 %v376_v21 }
  0x27   :  { %v2592_v52 = vpack.c.bf16 %v1600_v46, %v1592_v45  ;;  %3121 = vmatpush.bf16.msra.mxu3 %v2800_v48  ;;  %v1864_v56 = vcvt.s32.f32 %v840_v50  ;;  %v1872_v57 = vcvt.s32.f32 %v848_v51  ;;  %v552_v58 = vunpack.c.0.s8 %v272_v26  ;;  %v448_v45 = vld [vmem:[#allocation2 + $0x5c0] sm:$0xff] }
  0x28   :  { %v560_v13 = vunpack.c.1.s8 %v272_v26  ;;  %v2656_v60 = vpack.c.bf16 %v1728_v53, %v1720_v49  ;;  %v1992_v61 = vcvt.s32.f32 %v968_v54  ;;  %v2000_v62 = vcvt.s32.f32 %v976_v55  ;;  %v328_v50 = vld [vmem:[#allocation2 + $0x200] sm:$0xff] }
  0x29   :  { %3084 = vmatpush.bf16.msra.mxu0 %v2592_v52  ;;  %v680_v63 = vunpack.c.0.s8 %v304_v31  ;;  %v2728_v1 = vpack.c.bf16 %v1872_v57, %v1864_v56  ;;  %v1576_v2 = vcvt.s32.f32 %v552_v58  ;;  %v688_v4 = vunpack.c.1.s8 %v304_v31  ;;  %v360_v55 = vld [vmem:[#allocation2 + $0x300] sm:$0xff] }
  0x2a   :  { %v1584_v3 = vcvt.s32.f32 %v560_v13  ;;  %3097 = vmatpush.bf16.msra.mxu1 %v2656_v60  ;;  %v2792_v6 = vpack.c.bf16 %v2000_v62, %v1992_v61  ;;  %v824_v8 = vunpack.c.2.s8 %v336_v59  ;;  %v832_v9 = vunpack.c.3.s8 %v336_v59 }
  0x2b   :  { %v1704_v7 = vcvt.s32.f32 %v680_v63  ;;  %3109 = vmatpush.bf16.msra.mxu2 %v2728_v1  ;;  %v1712_v12 = vcvt.s32.f32 %v688_v4  ;;  %v952_v14 = vunpack.c.2.s8 %v368_v0  ;;  %v960_v15 = vunpack.c.3.s8 %v368_v0 }
  0x2c   :  { %v2584_v11 = vpack.c.bf16 %v1584_v3, %v1576_v2  ;;  %3122 = vmatpush.bf16.msra.mxu3 %v2792_v6  ;;  %v1848_v16 = vcvt.s32.f32 %v824_v8  ;;  %v1856_v17 = vcvt.s32.f32 %v832_v9  ;;  %v536_v18 = vunpack.c.2.s8 %v264_v5 }
  0x2d   :  { %v544_v19 = vunpack.c.3.s8 %v264_v5  ;;  %v2648_v20 = vpack.c.bf16 %v1712_v12, %v1704_v7  ;;  %v1976_v21 = vcvt.s32.f32 %v952_v14  ;;  %v1984_v22 = vcvt.s32.f32 %v960_v15 }
  0x2e   :  { %3085 = vmatpush.bf16.msra.mxu0 %v2584_v11  ;;  %v664_v23 = vunpack.c.2.s8 %v296_v10  ;;  %v2720_v24 = vpack.c.bf16 %v1856_v17, %v1848_v16  ;;  %v1560_v25 = vcvt.s32.f32 %v536_v18  ;;  %v672_v27 = vunpack.c.3.s8 %v296_v10 }
  0x2f   :  { %v1568_v26 = vcvt.s32.f32 %v544_v19  ;;  %3098 = vmatpush.bf16.msra.mxu1 %v2648_v20  ;;  %v2784_v28 = vpack.c.bf16 %v1984_v22, %v1976_v21  ;;  %v808_v30 = vunpack.c.0.s8 %v336_v59  ;;  %v816_v31 = vunpack.c.1.s8 %v336_v59  ;;  %v480_v20 = vld [vmem:[#allocation2 + $0x6c0] sm:$0xff] }
  0x30   :  { %v1688_v29 = vcvt.s32.f32 %v664_v23  ;;  %3110 = vmatpush.bf16.msra.mxu2 %v2720_v24  ;;  %v1696_v33 = vcvt.s32.f32 %v672_v27  ;;  %v936_v34 = vunpack.c.0.s8 %v368_v0  ;;  %v944_v35 = vunpack.c.1.s8 %v368_v0 }
  0x31   :  { %v2576_v32 = vpack.c.bf16 %v1568_v26, %v1560_v25  ;;  %3123 = vmatpush.bf16.msra.mxu3 %v2784_v28  ;;  %v1832_v36 = vcvt.s32.f32 %v808_v30  ;;  %v1840_v37 = vcvt.s32.f32 %v816_v31  ;;  %v520_v38 = vunpack.c.0.s8 %v264_v5  ;;  %v512_v25 = vld [vmem:[#allocation2 + $0x7c0] sm:$0xff] }
  0x32   :  { %v528_v39 = vunpack.c.1.s8 %v264_v5  ;;  %v2640_v41 = vpack.c.bf16 %v1696_v33, %v1688_v29  ;;  %v1960_v42 = vcvt.s32.f32 %v936_v34  ;;  %v1968_v43 = vcvt.s32.f32 %v944_v35  ;;  %v408_v30 = vld [vmem:[#allocation2 + $0x480] sm:$0xff] }
  0x33   :  { %3086 = vmatpush.bf16.msra.mxu0 %v2576_v32  ;;  %v648_v44 = vunpack.c.0.s8 %v296_v10  ;;  %v2712_v46 = vpack.c.bf16 %v1840_v37, %v1832_v36  ;;  %v1544_v47 = vcvt.s32.f32 %v520_v38  ;;  %v656_v49 = vunpack.c.1.s8 %v296_v10  ;;  %v440_v35 = vld [vmem:[#allocation2 + $0x580] sm:$0xff] }
  0x34   :  { %v1552_v48 = vcvt.s32.f32 %v528_v39  ;;  %3099 = vmatpush.bf16.msra.mxu1 %v2640_v41  ;;  %v2776_v51 = vpack.c.bf16 %v1968_v43, %v1960_v42  ;;  %v1144_v53 = vunpack.c.2.s8 %v416_v40  ;;  %v1152_v54 = vunpack.c.3.s8 %v416_v40 }
  0x35   :  { %v1672_v52 = vcvt.s32.f32 %v648_v44  ;;  %3111 = vmatpush.bf16.msra.mxu2 %v2712_v46  ;;  %v1680_v57 = vcvt.s32.f32 %v656_v49  ;;  %v1272_v58 = vunpack.c.2.s8 %v448_v45  ;;  %v1280_v13 = vunpack.c.3.s8 %v448_v45 }
  0x36   :  { %v2568_v56 = vpack.c.bf16 %v1552_v48, %v1544_v47  ;;  %3124 = vmatpush.bf16.msra.mxu3 %v2776_v51  ;;  %v2168_v59 = vcvt.s32.f32 %v1144_v53  ;;  %v2176_v60 = vcvt.s32.f32 %v1152_v54  ;;  %v792_v61 = vunpack.c.2.s8 %v328_v50 }
  0x37   :  { %v800_v62 = vunpack.c.3.s8 %v328_v50  ;;  %v2632_v63 = vpack.c.bf16 %v1680_v57, %v1672_v52  ;;  %v2296_v0 = vcvt.s32.f32 %v1272_v58  ;;  %v2304_v1 = vcvt.s32.f32 %v1280_v13 }
  0x38   :  { %3087 = vmatpush.bf16.msra.mxu0 %v2568_v56  ;;  %v920_v2 = vunpack.c.2.s8 %v360_v55  ;;  %v2880_v3 = vpack.c.bf16 %v2176_v60, %v2168_v59  ;;  %v1816_v4 = vcvt.s32.f32 %v792_v61  ;;  %v928_v6 = vunpack.c.3.s8 %v360_v55 }
  0x39   :  { %v1824_v5 = vcvt.s32.f32 %v800_v62  ;;  %3100 = vmatpush.bf16.msra.mxu1 %v2632_v63  ;;  %v2944_v7 = vpack.c.bf16 %v2304_v1, %v2296_v0  ;;  %v1128_v9 = vunpack.c.0.s8 %v416_v40  ;;  %v1136_v10 = vunpack.c.1.s8 %v416_v40  ;;  %v472_v63 = vld [vmem:[#allocation2 + $0x680] sm:$0xff] }
  0x3a   :  { %v1944_v8 = vcvt.s32.f32 %v920_v2  ;;  %v1952_v12 = vcvt.s32.f32 %v928_v6  ;;  %v1256_v14 = vunpack.c.0.s8 %v448_v45  ;;  %v1264_v15 = vunpack.c.1.s8 %v448_v45 }
  0x3b   :  { %v2704_v11 = vpack.c.bf16 %v1824_v5, %v1816_v4  ;;  %v2152_v16 = vcvt.s32.f32 %v1128_v9  ;;  %v2160_v17 = vcvt.s32.f32 %v1136_v10  ;;  %v776_v18 = vunpack.c.0.s8 %v328_v50  ;;  %v504_v4 = vld [vmem:[#allocation2 + $0x780] sm:$0xff] }
  0x3c   :  { %3132 = vmatpush.bf16.msrb.mxu0 %v2880_v3  ;;  %v784_v19 = vunpack.c.1.s8 %v328_v50  ;;  %v2768_v21 = vpack.c.bf16 %v1952_v12, %v1944_v8  ;;  %v2280_v22 = vcvt.s32.f32 %v1256_v14  ;;  %v2288_v23 = vcvt.s32.f32 %v1264_v15  ;;  %v400_v9 = vld [vmem:[#allocation2 + $0x440] sm:$0xff] }
  0x3d   :  { %3145 = vmatpush.bf16.msrb.mxu1 %v2944_v7  ;;  %3112 = vmatpush.bf16.msra.mxu2 %v2704_v11  ;;  %v904_v24 = vunpack.c.0.s8 %v360_v55  ;;  %v2872_v26 = vpack.c.bf16 %v2160_v17, %v2152_v16  ;;  %v1800_v27 = vcvt.s32.f32 %v776_v18  ;;  %v912_v29 = vunpack.c.1.s8 %v360_v55  ;;  %v432_v15 = vld [vmem:[#allocation2 + $0x540] sm:$0xff] }
  0x3e   :  { %v1808_v28 = vcvt.s32.f32 %v784_v19  ;;  %3125 = vmatpush.bf16.msra.mxu3 %v2768_v21  ;;  %v2936_v31 = vpack.c.bf16 %v2288_v23, %v2280_v22  ;;  %v1400_v33 = vunpack.c.2.s8 %v480_v20  ;;  %v1408_v34 = vunpack.c.3.s8 %v480_v20 }
  0x3f   :  { %v1928_v32 = vcvt.s32.f32 %v904_v24  ;;  %v1936_v37 = vcvt.s32.f32 %v912_v29  ;;  %v1528_v38 = vunpack.c.2.s8 %v512_v25  ;;  %v1536_v39 = vunpack.c.3.s8 %v512_v25 }
  0x40   :  { %3133 = vmatpush.bf16.msrb.mxu0 %v2872_v26  ;;  %v2696_v36 = vpack.c.bf16 %v1808_v28, %v1800_v27  ;;  %v2424_v40 = vcvt.s32.f32 %v1400_v33  ;;  %v2432_v41 = vcvt.s32.f32 %v1408_v34  ;;  %v1112_v42 = vunpack.c.2.s8 %v408_v30 }
  0x41   :  { %3146 = vmatpush.bf16.msrb.mxu1 %v2936_v31  ;;  %v1120_v43 = vunpack.c.3.s8 %v408_v30  ;;  %v2760_v44 = vpack.c.bf16 %v1936_v37, %v1928_v32  ;;  %v2552_v45 = vcvt.s32.f32 %v1528_v38  ;;  %v2560_v46 = vcvt.s32.f32 %v1536_v39 }
  0x42   :  { %3113 = vmatpush.bf16.msra.mxu2 %v2696_v36  ;;  %v1240_v47 = vunpack.c.2.s8 %v440_v35  ;;  %v3008_v48 = vpack.c.bf16 %v2432_v41, %v2424_v40  ;;  %v2136_v49 = vcvt.s32.f32 %v1112_v42  ;;  %v1248_v51 = vunpack.c.3.s8 %v440_v35 }
  0x43   :  { %v2144_v50 = vcvt.s32.f32 %v1120_v43  ;;  %3126 = vmatpush.bf16.msra.mxu3 %v2760_v44  ;;  %v3072_v52 = vpack.c.bf16 %v2560_v46, %v2552_v45  ;;  %v1384_v54 = vunpack.c.0.s8 %v480_v20  ;;  %v1392_v55 = vunpack.c.1.s8 %v480_v20 }
  0x44   :  { %v2264_v53 = vcvt.s32.f32 %v1240_v47  ;;  %v2272_v57 = vcvt.s32.f32 %v1248_v51  ;;  %v1512_v58 = vunpack.c.0.s8 %v512_v25  ;;  %v1520_v13 = vunpack.c.1.s8 %v512_v25  ;;  %v7045_v47 = vld [vmem:[%s8706_s5] sm:$0xff] }
  0x45   :  { %v2864_v56 = vpack.c.bf16 %v2144_v50, %v2136_v49  ;;  %v2408_v59 = vcvt.s32.f32 %v1384_v54  ;;  %v2416_v60 = vcvt.s32.f32 %v1392_v55  ;;  %v1096_v61 = vunpack.c.0.s8 %v408_v30  ;;  %v496_v54 = vld [vmem:[#allocation2 + $0x740] sm:$0xff] }
  0x46   :  { %3158 = vmatpush.bf16.msrb.mxu2 %v3008_v48  ;;  %v1104_v62 = vunpack.c.1.s8 %v408_v30  ;;  %v2928_v0 = vpack.c.bf16 %v2272_v57, %v2264_v53  ;;  %v2536_v1 = vcvt.s32.f32 %v1512_v58  ;;  %v2544_v2 = vcvt.s32.f32 %v1520_v13  ;;  %v464_v53 = vld [vmem:[#allocation2 + $0x640] sm:$0xff] }
  0x47   :  { %3171 = vmatpush.bf16.msrb.mxu3 %v3072_v52  ;;  %3134 = vmatpush.bf16.msrb.mxu0 %v2864_v56  ;;  %v1224_v3 = vunpack.c.0.s8 %v440_v35  ;;  %v3000_v5 = vpack.c.bf16 %v2416_v60, %v2408_v59  ;;  %v2120_v6 = vcvt.s32.f32 %v1096_v61  ;;  %v1232_v8 = vunpack.c.1.s8 %v440_v35 }
  0x48   :  { %v2128_v7 = vcvt.s32.f32 %v1104_v62  ;;  %3147 = vmatpush.bf16.msrb.mxu1 %v2928_v0  ;;  %v3064_v10 = vpack.c.bf16 %v2544_v2, %v2536_v1  ;;  %v1368_v12 = vunpack.c.2.s8 %v472_v63  ;;  %v1376_v14 = vunpack.c.3.s8 %v472_v63  ;;  %v392_v62 = vld [vmem:[#allocation2 + $0x400] sm:$0xff] }
  0x49   :  { %v2248_v11 = vcvt.s32.f32 %v1224_v3  ;;  %v2256_v17 = vcvt.s32.f32 %v1232_v8  ;;  %v1496_v18 = vunpack.c.2.s8 %v504_v4  ;;  %v1504_v19 = vunpack.c.3.s8 %v504_v4 }
  0x4a   :  { %3159 = vmatpush.bf16.msrb.mxu2 %v3000_v5  ;;  %v2856_v16 = vpack.c.bf16 %v2128_v7, %v2120_v6  ;;  %v2392_v20 = vcvt.s32.f32 %v1368_v12  ;;  %v2400_v21 = vcvt.s32.f32 %v1376_v14  ;;  %v1080_v22 = vunpack.c.2.s8 %v400_v9 }
  0x4b   :  { %3172 = vmatpush.bf16.msrb.mxu3 %v3064_v10  ;;  %v1088_v23 = vunpack.c.3.s8 %v400_v9  ;;  %v2920_v24 = vpack.c.bf16 %v2256_v17, %v2248_v11  ;;  %v2520_v25 = vcvt.s32.f32 %v1496_v18  ;;  %v2528_v26 = vcvt.s32.f32 %v1504_v19 }
  0x4c   :  { %3135 = vmatpush.bf16.msrb.mxu0 %v2856_v16  ;;  %v1208_v27 = vunpack.c.2.s8 %v432_v15  ;;  %v2992_v28 = vpack.c.bf16 %v2400_v21, %v2392_v20  ;;  %v2104_v29 = vcvt.s32.f32 %v1080_v22  ;;  %v1216_v31 = vunpack.c.3.s8 %v432_v15 }
  0x4d   :  { %v2112_v30 = vcvt.s32.f32 %v1088_v23  ;;  %3148 = vmatpush.bf16.msrb.mxu1 %v2920_v24  ;;  %v3056_v32 = vpack.c.bf16 %v2528_v26, %v2520_v25  ;;  %v1352_v34 = vunpack.c.0.s8 %v472_v63  ;;  %v1360_v35 = vunpack.c.1.s8 %v472_v63  ;;  %v424_v63 = vld [vmem:[#allocation2 + $0x500] sm:$0xff] }
  0x4e   :  { %v2232_v33 = vcvt.s32.f32 %v1208_v27  ;;  %3160 = vmatpush.bf16.msrb.mxu2 %v2992_v28  ;;  %v2240_v37 = vcvt.s32.f32 %v1216_v31  ;;  %v1480_v38 = vunpack.c.0.s8 %v504_v4  ;;  %v1488_v39 = vunpack.c.1.s8 %v504_v4 }
  0x4f   :  { %v2848_v36 = vpack.c.bf16 %v2112_v30, %v2104_v29  ;;  %3173 = vmatpush.bf16.msrb.mxu3 %v3056_v32  ;;  %v2376_v40 = vcvt.s32.f32 %v1352_v34  ;;  %v2384_v41 = vcvt.s32.f32 %v1360_v35  ;;  %v1064_v48 = vunpack.c.0.s8 %v400_v9  ;;  %v289_v29 = vld [vmem:[#allocation2 + $0xc8] sm:$0xff] }
  0x50   :  { %v2912_v42 = vpack.c.bf16 %v2240_v37, %v2232_v33  ;;  %v2504_v43 = vcvt.s32.f32 %v1480_v38  ;;  %v2512_v44 = vcvt.s32.f32 %v1488_v39  ;;  %v1072_v49 = vunpack.c.1.s8 %v400_v9  ;;  %v321_v30 = vld [vmem:[#allocation2 + $0x1c8] sm:$0xff]  ;;  %v456_v39 = vld [vmem:[#allocation2 + $0x600] sm:$0xff] }
  0x51   :  { %3136 = vmatpush.bf16.msrb.mxu0 %v2848_v36  ;;  %v2984_v45 = vpack.c.bf16 %v2384_v41, %v2376_v40  ;;  %v1192_v50 = vunpack.c.0.s8 %v432_v15  ;;  %v1200_v51 = vunpack.c.1.s8 %v432_v15  ;;  %v76_v52 = vperm.slane %v7045_v47, 0 }
  0x52   :  { %3149 = vmatpush.bf16.msrb.mxu1 %v2912_v42  ;;  %v3048_v46 = vpack.c.bf16 %v2512_v44, %v2504_v43  ;;  %v2088_v55 = vcvt.s32.f32 %v1064_v48  ;;  %v2096_v56 = vcvt.s32.f32 %v1072_v49  ;;  %v1336_v13 = vunpack.c.2.s8 %v464_v53  ;;  %v488_v44 = vld [vmem:[#allocation2 + $0x700] sm:$0xff] }
  0x53   :  { %3161 = vmatpush.bf16.msrb.mxu2 %v2984_v45  ;;  %v2216_v57 = vcvt.s32.f32 %v1192_v50  ;;  %v2224_v58 = vcvt.s32.f32 %v1200_v51  ;;  %v1344_v59 = vunpack.c.3.s8 %v464_v53  ;;  %v1464_v60 = vunpack.c.2.s8 %v496_v54 }
  0x54   :  { %3174 = vmatpush.bf16.msrb.mxu3 %v3048_v46  ;;  %v1472_v61 = vunpack.c.3.s8 %v496_v54  ;;  %v2840_v0 = vpack.c.bf16 %v2096_v56, %v2088_v55  ;;  %v1048_v2 = vunpack.c.2.s8 %v392_v62  ;;  %v1056_v3 = vunpack.c.3.s8 %v392_v62 }
  0x55   :  { %v2904_v1 = vpack.c.bf16 %v2224_v58, %v2216_v57  ;;  %v77_v4 = vperm.slane %v7045_v47, 1  ;;  %v2360_v5 = vcvt.s32.f32 %v1336_v13  ;;  %v2368_v6 = vcvt.s32.f32 %v1344_v59 }
  0x56   :  { %v2488_v7 = vcvt.s32.f32 %v1464_v60  ;;  %3137 = vmatpush.bf16.msrb.mxu0 %v2840_v0  ;;  %v2496_v8 = vcvt.s32.f32 %v1472_v61  ;;  %v2072_v9 = vcvt.s32.f32 %v1048_v2  ;;  %v2080_v10 = vcvt.s32.f32 %v1056_v3 }
  0x57   :  { %3150 = vmatpush.bf16.msrb.mxu1 %v2904_v1  ;;  %v1176_v11 = vunpack.c.2.s8 %v424_v63  ;;  %v2976_v12 = vpack.c.bf16 %v2368_v6, %v2360_v5  ;;  %v1184_v14 = vunpack.c.3.s8 %v424_v63  ;;  %v1320_v15 = vunpack.c.0.s8 %v464_v53 }
  0x58   :  { %v1328_v16 = vunpack.c.1.s8 %v464_v53  ;;  %v3040_v17 = vpack.c.bf16 %v2496_v8, %v2488_v7  ;;  %v2832_v18 = vpack.c.bf16 %v2080_v10, %v2072_v9  ;;  %v1448_v20 = vunpack.c.0.s8 %v496_v54 }
  0x59   :  { %v2200_v19 = vcvt.s32.f32 %v1176_v11  ;;  %3162 = vmatpush.bf16.msrb.mxu2 %v2976_v12  ;;  %v2208_v21 = vcvt.s32.f32 %v1184_v14  ;;  %v2344_v22 = vcvt.s32.f32 %v1320_v15  ;;  %v1456_v24 = vunpack.c.1.s8 %v496_v54  ;;  %v353_v11 = vld [vmem:[#allocation2 + $0x2c8] sm:$0xff] }
  0x5a   :  { %v2352_v23 = vcvt.s32.f32 %v1328_v16  ;;  %3175 = vmatpush.bf16.msrb.mxu3 %v3040_v17  ;;  %3138 = vmatpush.bf16.msrb.mxu0 %v2832_v18  ;;  %v2472_v25 = vcvt.s32.f32 %v1448_v20  ;;  %v1032_v26 = vunpack.c.0.s8 %v392_v62  ;;  %v1040_v27 = vunpack.c.1.s8 %v392_v62  ;;  %v385_v17 = vld [vmem:[#allocation2 + $0x3c8] sm:$0xff] }
  0x5b   :  { %v1160_v28 = vunpack.c.0.s8 %v424_v63  ;;  %v2896_v31 = vpack.c.bf16 %v2208_v21, %v2200_v19  ;;  %v78_v32 = vperm.slane %v7045_v47, 2  ;;  %v79_v33 = vperm.slane %v7045_v47, 3 }
  0x5c   :  { %v2968_v34 = vpack.c.bf16 %v2352_v23, %v2344_v22  ;;  %v2480_v35 = vcvt.s32.f32 %v1456_v24  ;;  %v2056_v36 = vcvt.s32.f32 %v1032_v26  ;;  %v2064_v37 = vcvt.s32.f32 %v1040_v27  ;;  %v281_v26 = vld [vmem:[#allocation2 + $0x88] sm:$0xff] }
  0x5d   :  { %v1168_v38 = vunpack.c.1.s8 %v424_v63  ;;  %3151 = vmatpush.bf16.msrb.mxu1 %v2896_v31  ;;  %v2184_v40 = vcvt.s32.f32 %v1160_v28  ;;  %v633_v41 = vunpack.c.2.s8 %v289_v29  ;;  %v641_v42 = vunpack.c.3.s8 %v289_v29  ;;  %v313_v31 = vld [vmem:[#allocation2 + $0x188] sm:$0xff] }
  0x5e   :  { %3163 = vmatpush.bf16.msrb.mxu2 %v2968_v34  ;;  %v761_v43 = vunpack.c.2.s8 %v321_v30  ;;  %v3032_v45 = vpack.c.bf16 %v2480_v35, %v2472_v25  ;;  %v2824_v46 = vpack.c.bf16 %v2064_v37, %v2056_v36  ;;  %v769_v49 = vunpack.c.3.s8 %v321_v30 }
  0x5f   :  { %v2192_v48 = vcvt.s32.f32 %v1168_v38  ;;  %v7051_v50 = vcvt.s32.f32 %v633_v41  ;;  %v7053_v51 = vcvt.s32.f32 %v641_v42  ;;  %v1304_v54 = vunpack.c.2.s8 %v456_v39 }
  0x60   :  { %v7055_v53 = vcvt.s32.f32 %v761_v43  ;;  %3176 = vmatpush.bf16.msrb.mxu3 %v3032_v45  ;;  %3139 = vmatpush.bf16.msrb.mxu0 %v2824_v46  ;;  %v7057_v56 = vcvt.s32.f32 %v769_v49  ;;  %v1312_v57 = vunpack.c.3.s8 %v456_v39  ;;  %v1432_v58 = vunpack.c.2.s8 %v488_v44 }
  0x61   :  { %v2888_v55 = vpack.c.bf16 %v2192_v48, %v2184_v40  ;;  %v2625_v13 = vpack.c.bf16 %v7053_v51, %v7051_v50  ;;  %v2328_v59 = vcvt.s32.f32 %v1304_v54  ;;  %v1440_v60 = vunpack.c.3.s8 %v488_v44 }
  0x62   :  { %v617_v61 = vunpack.c.0.s8 %v289_v29  ;;  %v2689_v62 = vpack.c.bf16 %v7057_v56, %v7055_v53  ;;  %v2336_v63 = vcvt.s32.f32 %v1312_v57  ;;  %v2456_v0 = vcvt.s32.f32 %v1432_v58 }
  0x63   :  { %3152 = vmatpush.bf16.msrb.mxu1 %v2888_v55  ;;  %v625_v1 = vunpack.c.1.s8 %v289_v29  ;;  %v2464_v2 = vcvt.s32.f32 %v1440_v60  ;;  %v745_v5 = vunpack.c.0.s8 %v321_v30  ;;  %v753_v6 = vunpack.c.1.s8 %v321_v30 }
  0x64   :  { %v7063_v3 = vcvt.s32.f32 %v617_v61  ;;  %v2960_v7 = vpack.c.bf16 %v2336_v63, %v2328_v59  ;;  %v1288_v9 = vunpack.c.0.s8 %v456_v39  ;;  %v1296_v10 = vunpack.c.1.s8 %v456_v39 }
  0x65   :  { %v7065_v8 = vcvt.s32.f32 %v625_v1  ;;  %v3024_v12 = vpack.c.bf16 %v2464_v2, %v2456_v0  ;;  %v7067_v14 = vcvt.s32.f32 %v745_v5  ;;  %v7069_v15 = vcvt.s32.f32 %v753_v6 }
  0x66   :  { %v1416_v16 = vunpack.c.0.s8 %v488_v44  ;;  %3164 = vmatpush.bf16.msrb.mxu2 %v2960_v7  ;;  %v2312_v19 = vcvt.s32.f32 %v1288_v9  ;;  %v2320_v20 = vcvt.s32.f32 %v1296_v10  ;;  %v1424_v21 = vunpack.c.1.s8 %v488_v44  ;;  %v345_v7 = vld [vmem:[#allocation2 + $0x288] sm:$0xff] }
  0x67   :  { %v2617_v18 = vpack.c.bf16 %v7065_v8, %v7063_v3  ;;  %3177 = vmatpush.bf16.msrb.mxu3 %v3024_v12  ;;  %v2681_v22 = vpack.c.bf16 %v7069_v15, %v7067_v14  ;;  %v889_v24 = vunpack.c.2.s8 %v353_v11  ;;  %v897_v25 = vunpack.c.3.s8 %v353_v11 }
  0x68   :  { %v2440_v23 = vcvt.s32.f32 %v1416_v16  ;;  %v2952_v27 = vpack.c.bf16 %v2320_v20, %v2312_v19  ;;  %v2448_v28 = vcvt.s32.f32 %v1424_v21  ;;  %v1017_v29 = vunpack.c.2.s8 %v385_v17  ;;  %v377_v16 = vld [vmem:[#allocation2 + $0x388] sm:$0xff] }
  0x69   :  { %v1025_v30 = vunpack.c.3.s8 %v385_v17  ;;  %v7075_v34 = vcvt.s32.f32 %v889_v24  ;;  %v7077_v35 = vcvt.s32.f32 %v897_v25  ;;  %v80_v36 = vperm.slane %v7045_v47, 4 }
  0x6a   :  { %3165 = vmatpush.bf16.msrb.mxu2 %v2952_v27  ;;  %v3016_v38 = vpack.c.bf16 %v2448_v28, %v2440_v23  ;;  %v7081_v39 = vcvt.s32.f32 %v1017_v29  ;;  %v601_v41 = vunpack.c.2.s8 %v281_v26  ;;  %v609_v43 = vunpack.c.3.s8 %v281_v26  ;;  %v7117_v23 = vld [vmem:[#allocation2 + $0x48] sm:$0xff] }
  0x6b   :  { %v7083_v40 = vcvt.s32.f32 %v1025_v30  ;;  %v2753_v42 = vpack.c.bf16 %v7077_v35, %v7075_v34  ;;  %v729_v44 = vunpack.c.2.s8 %v313_v31  ;;  %v737_v45 = vunpack.c.3.s8 %v313_v31 }
  0x6c   :  { %3178 = vmatpush.bf16.msrb.mxu3 %v3016_v38  ;;  %v7089_v48 = vcvt.s32.f32 %v601_v41  ;;  %v873_v49 = vunpack.c.0.s8 %v353_v11  ;;  %v881_v54 = vunpack.c.1.s8 %v353_v11  ;;  %v7091_v55 = vcvt.s32.f32 %v609_v43 }
  0x6d   :  { %v2817_v46 = vpack.c.bf16 %v7083_v40, %v7081_v39  ;;  %v7093_v57 = vcvt.s32.f32 %v729_v44  ;;  %v7095_v58 = vcvt.s32.f32 %v737_v45  ;;  %v1001_v59 = vunpack.c.0.s8 %v385_v17 }
  0x6e   :  { %v7097_v60 = vcvt.s32.f32 %v873_v49  ;;  %v7099_v61 = vcvt.s32.f32 %v881_v54  ;;  %v1009_v63 = vunpack.c.1.s8 %v385_v17  ;;  %v585_v0 = vunpack.c.0.s8 %v281_v26  ;;  %v305_v49 = vld [vmem:[#allocation2 + $0x148] sm:$0xff] }
  0x6f   :  { %v7105_v5 = vcvt.s32.f32 %v1001_v59  ;;  %v593_v6 = vunpack.c.1.s8 %v281_v26  ;;  %v713_v12 = vunpack.c.0.s8 %v313_v31  ;;  %v721_v19 = vunpack.c.1.s8 %v313_v31 }
  0x70   :  { %v7109_v10 = vcvt.s32.f32 %v1009_v63  ;;  %v7111_v11 = vcvt.s32.f32 %v585_v0  ;;  %v857_v26 = vunpack.c.2.s8 %v345_v7  ;;  %v865_v27 = vunpack.c.3.s8 %v345_v7 }
  0x71   :  { %v7113_v17 = vcvt.s32.f32 %v593_v6  ;;  %v7121_v25 = vcvt.s32.f32 %v713_v12  ;;  %v7125_v29 = vcvt.s32.f32 %v721_v19  ;;  %v985_v30 = vunpack.c.2.s8 %v377_v16 }
  0x72   :  { %v993_v31 = vunpack.c.3.s8 %v377_v16  ;;  %v7127_v41 = vcvt.s32.f32 %v857_v26  ;;  %v7129_v43 = vcvt.s32.f32 %v865_v27  ;;  %v569_v44 = vunpack.c.2.s8 %v7117_v23 }
  0x73   :  { %v577_v45 = vunpack.c.3.s8 %v7117_v23  ;;  %v7137_v0 = vcvt.s32.f32 %v985_v30  ;;  %v705_v20 = vunpack.c.3.s8 %v305_v49  ;;  %v841_v63 = vunpack.c.0.s8 %v345_v7 }
  0x74   :  { %v7139_v6 = vcvt.s32.f32 %v993_v31  ;;  %v7145_v26 = vcvt.s32.f32 %v569_v44  ;;  %v849_v28 = vunpack.c.1.s8 %v345_v7  ;;  %v969_v44 = vunpack.c.0.s8 %v377_v16  ;;  %v7184_v31 = vld [vmem:[#allocation2 + $0x348] sm:$0xff] }
  0x75   :  { %v7147_v27 = vcvt.s32.f32 %v577_v45  ;;  %v7155_v19 = vcvt.s32.f32 %v705_v20  ;;  %v7157_v24 = vcvt.s32.f32 %v841_v63  ;;  %v553_v7 = vunpack.c.0.s8 %v7117_v23 }
  0x76   :  { %v7159_v9 = vcvt.s32.f32 %v849_v28  ;;  %v7165_v37 = vcvt.s32.f32 %v969_v44  ;;  %v8709_v34 = vpack.c.bf16 %v7091_v55, %v7089_v48 }
  0x77   :  { %v7182_v44 = vcvt.s32.f32 %v553_v7 }
  0x90   :  { %v145_v38 = vpop.f32.mrf.mxu0  ;;  %v158_v59 = vpop.f32.mrf.mxu1 }
  0x91   :  { %v146_v54 = vadd.f32 %v145_v38, %v76_v52  ;;  %v159_v12 = vadd.f32 %v158_v59, %v77_v4  ;;  %v697_v38 = vunpack.c.2.s8 %v305_v49  ;;  %v977_v52 = vunpack.c.1.s8 %v377_v16 }
  0x92   :  { %v2729_v16 = vpack.c.bf16 %v7159_v9, %v7157_v24 }
  0x93   :  { %v240_v21 = vmul.f32 0.2, %v146_v54  ;;  %v241_v30 = vmul.f32 0.2, %v159_v12  ;;  %v7153_v59 = vcvt.s32.f32 %v697_v38 }
  0x95   :  { %v248_v4 = vmax.f32 %v146_v54, %v240_v21  ;;  %v249_v45 = vmax.f32 %v159_v12, %v241_v30  ;;  %v7168_v21 = vld [vmem:[#allocation2 + $0x248] sm:$0xff]  ;;  %v7176_v12 = vcvt.s32.f32 %v977_v52 }
  0x96   :  { %v825_v52 = vunpack.c.2.s8 %v7168_v21  ;;  %v809_v14 = vunpack.c.0.s8 %v7168_v21 }
  0x97   :  { %v7161_v2 = vpack.c.bf16 %v248_v4, %v248_v4  ;;  %v171_v1 = vpop.f32.mrf.mxu2  ;;  %v7170_v20 = vpack.c.bf16 %v249_v45, %v249_v45  ;;  %v561_v4 = vunpack.c.1.s8 %v7117_v23  ;;  %v681_v45 = vunpack.c.0.s8 %v305_v49 }
  0x98   :  { %v172_v54 = vadd.f32 %v171_v1, %v78_v32  ;;  %v184_v28 = vpop.f32.mrf.mxu3  ;;  %v147_v63 = vpop.f32.mrf.mxu0  ;;  %v689_v1 = vunpack.c.1.s8 %v305_v49  ;;  %v953_v49 = vunpack.c.2.s8 %v7184_v31 }
  0x99   :  { %v185_v38 = vadd.f32 %v184_v28, %v79_v33  ;;  %v160_v30 = vpop.f32.mrf.mxu1  ;;  %3088 = vmatmul.bf16.vlgmr.msra.gmra.mxu0 %v7161_v2  ;;  %3101 = vmatmul.bf16.vlgmr.msra.gmra.mxu1 %v7170_v20  ;;  %v7196_v23 = vcvt.s32.f32 %v561_v4  ;;  %v7198_v7 = vcvt.s32.f32 %v681_v45  ;;  %v833_v63 = vunpack.c.3.s8 %v7168_v21  ;;  %v7213_v4 = vld [vmem:[#allocation2 + $0x108] sm:$0xff] }
  0x9a   :  { %v242_v32 = vmul.f32 0.2, %v172_v54  ;;  %3184 = vmatpush.bf16.msra.mxu0 %v2625_v13  ;;  %3197 = vmatpush.bf16.msra.mxu1 %v2689_v62  ;;  %v7201_v30 = vld [vmem:[#allocation2 + $0x8] sm:$0xff]  ;;  %v7203_v51 = vcvt.s32.f32 %v689_v1  ;;  %v7205_v13 = vcvt.s32.f32 %v825_v52  ;;  %v961_v62 = vunpack.c.3.s8 %v7184_v31 }
  0x9b   :  { %v243_v28 = vmul.f32 0.2, %v185_v38  ;;  %v2585_v53 = vpack.c.bf16 %v7196_v23, %v7182_v44  ;;  %v7210_v56 = vcvt.s32.f32 %v833_v63  ;;  %v545_v3 = vunpack.c.3.s8 %v7201_v30 }
  0x9c   :  { %v250_v50 = vmax.f32 %v172_v54, %v242_v32  ;;  %v2649_v54 = vpack.c.bf16 %v7203_v51, %v7198_v7  ;;  %v7222_v32 = vcvt.s32.f32 %v953_v49  ;;  %v7232_v63 = vcvt.s32.f32 %v961_v62 }
  0x9d   :  { %v251_v33 = vmax.f32 %v185_v38, %v243_v28  ;;  %v537_v38 = vunpack.c.2.s8 %v7201_v30  ;;  %v673_v49 = vunpack.c.3.s8 %v7213_v4  ;;  %v8722_v23 = vpack.c.bf16 %v7210_v56, %v7205_v13 }
  0x9e   :  { %v7215_v45 = vpack.c.bf16 %v250_v50, %v250_v50  ;;  %3185 = vmatpush.bf16.msra.mxu0 %v2617_v18  ;;  %3198 = vmatpush.bf16.msra.mxu1 %v2681_v22  ;;  %v2785_v62 = vpack.c.bf16 %v7232_v63, %v7222_v32 }
  0x9f   :  { %v7225_v1 = vpack.c.bf16 %v251_v33, %v251_v33  ;;  %v173_v52 = vpop.f32.mrf.mxu2  ;;  %v7236_v50 = vcvt.s32.f32 %v537_v38  ;;  %v665_v33 = vunpack.c.2.s8 %v7213_v4  ;;  %v7249_v38 = vcvt.s32.f32 %v545_v3 }
  0xa0   :  { %v186_v8 = vpop.f32.mrf.mxu3  ;;  %3114 = vmatmul.bf16.vlgmr.msra.gmra.mxu2 %v7215_v45  ;;  %v197_v18 = vpop.f32.mrf.mxu0  ;;  %v817_v52 = vunpack.c.1.s8 %v7168_v21  ;;  %v8710_v21 = vpack.c.bf16 %v7095_v58, %v7093_v57  ;;  %v8711_v57 = vpack.c.bf16 %v7099_v61, %v7097_v60  ;;  %v649_v61 = vunpack.c.0.s8 %v7213_v4 }
  0xa1   :  { %3127 = vmatmul.bf16.vlgmr.msra.gmra.mxu3 %v7225_v1  ;;  %3210 = vmatpush.bf16.msra.mxu2 %v2753_v42  ;;  %v198_v15 = vadd.f32 %v197_v18, %v80_v36  ;;  %v210_v22 = vpop.f32.mrf.mxu1  ;;  %v8708_v8 = vperm.slane %v7045_v47, 5  ;;  %v7260_v35 = vcvt.s32.f32 %v665_v33  ;;  %v7262_v36 = vcvt.s32.f32 %v673_v49  ;;  %v7278_v49 = vld [vmem:[#allocation2 + $0x4c8] sm:$0xff] }
  0xa2   :  { %3223 = vmatpush.bf16.msra.mxu3 %v2817_v46  ;;  %3186 = vmatpush.bf16.msra.mxu0 %v8709_v34  ;;  %v7264_v42 = vcvt.s32.f32 %v809_v14  ;;  %v2577_v39 = vpack.c.bf16 %v7249_v38, %v7236_v50  ;;  %v7271_v40 = vcvt.s32.f32 %v817_v52  ;;  %v937_v46 = vunpack.c.0.s8 %v7184_v31 }
  0xa3   :  { %v211_v28 = vadd.f32 %v210_v22, %v8708_v8  ;;  %v244_v3 = vmul.f32 0.2, %v198_v15  ;;  %3199 = vmatpush.bf16.msra.mxu1 %v8710_v21  ;;  %v2641_v55 = vpack.c.bf16 %v7262_v36, %v7260_v35  ;;  %v945_v18 = vunpack.c.1.s8 %v7184_v31 }
  0xa4   :  { %v521_v33 = vunpack.c.0.s8 %v7201_v30  ;;  %v2713_v58 = vpack.c.bf16 %v7271_v40, %v7264_v42  ;;  %v7285_v22 = vcvt.s32.f32 %v937_v46  ;;  %v529_v52 = vunpack.c.1.s8 %v7201_v30 }
  0xa5   :  { %v245_v48 = vmul.f32 0.2, %v211_v28  ;;  %v252_v14 = vmax.f32 %v198_v15, %v244_v3  ;;  %3211 = vmatpush.bf16.msra.mxu2 %v8711_v57  ;;  %v8712_v31 = vpack.c.bf16 %v7109_v10, %v7105_v5  ;;  %v8713_v34 = vpack.c.bf16 %v7113_v17, %v7111_v11  ;;  %v7308_v11 = vld [vmem:[#allocation2 + $0x5c8] sm:$0xff] }
  0xa6   :  { %v7294_v15 = vcvt.s32.f32 %v945_v18  ;;  %v7296_v60 = vcvt.s32.f32 %v521_v33  ;;  %v8714_v30 = vpack.c.bf16 %v7125_v29, %v7121_v25  ;;  %v7304_v21 = vcvt.s32.f32 %v529_v52 }
  0xa7   :  { %v253_v8 = vmax.f32 %v211_v28, %v245_v48  ;;  %3224 = vmatpush.bf16.msra.mxu3 %v8712_v31  ;;  %3187 = vmatpush.bf16.msra.mxu0 %v8713_v34  ;;  %v7299_v3 = vpack.c.bf16 %v252_v14, %v252_v14  ;;  %v223_v28 = vpop.f32.mrf.mxu2  ;;  %v657_v5 = vunpack.c.1.s8 %v7213_v4  ;;  %v1145_v10 = vunpack.c.2.s8 %v7278_v49  ;;  %v7318_v14 = vld [vmem:[#allocation2 + $0x208] sm:$0xff] }
  0xa8   :  { %3200 = vmatpush.bf16.msra.mxu1 %v8714_v30  ;;  %v8715_v46 = vperm.slane %v7045_v47, 6  ;;  %v236_v18 = vpop.f32.mrf.mxu3  ;;  %v2777_v33 = vpack.c.bf16 %v7294_v15, %v7285_v22  ;;  %v199_v25 = vpop.f32.mrf.mxu0  ;;  %v7316_v29 = vcvt.s32.f32 %v649_v61  ;;  %v8716_v4 = vperm.slane %v7045_v47, 7 }
  0xa9   :  { %v7310_v17 = vpack.c.bf16 %v253_v8, %v253_v8  ;;  %v8717_v52 = vpack.c.bf16 %v7129_v43, %v7127_v41  ;;  %3140 = vmatmul.bf16.vlgmr.msrb.gmra.mxu0 %v7299_v3  ;;  %v2569_v8 = vpack.c.bf16 %v7304_v21, %v7296_v60  ;;  %v7328_v31 = vcvt.s32.f32 %v657_v5  ;;  %v212_v61 = vpop.f32.mrf.mxu1 }
  0xaa   :  { %v224_v48 = vadd.f32 %v223_v28, %v8715_v46  ;;  %v237_v57 = vadd.f32 %v236_v18, %v8716_v4  ;;  %v1153_v34 = vunpack.c.3.s8 %v7278_v49  ;;  %v8718_v28 = vpack.c.bf16 %v7139_v6, %v7137_v0  ;;  %v361_v46 = vld [vmem:[#allocation2 + $0x308] sm:$0xff] }
  0xab   :  { %3212 = vmatpush.bf16.msra.mxu2 %v8717_v52  ;;  %3153 = vmatmul.bf16.vlgmr.msrb.gmra.mxu1 %v7310_v17  ;;  %v7335_v47 = vcvt.s32.f32 %v1145_v10  ;;  %v1273_v41 = vunpack.c.2.s8 %v7308_v11  ;;  %v1281_v43 = vunpack.c.3.s8 %v7308_v11  ;;  %v8719_v5 = vpack.c.bf16 %v7147_v27, %v7145_v26 }
  0xac   :  { %v246_v30 = vmul.f32 0.2, %v224_v48  ;;  %3225 = vmatpush.bf16.msra.mxu3 %v8718_v28  ;;  %v247_v18 = vmul.f32 0.2, %v237_v57  ;;  %v8720_v25 = vpack.c.bf16 %v7155_v19, %v7153_v59  ;;  %v2633_v0 = vpack.c.bf16 %v7328_v31, %v7316_v29 }
  0xad   :  { %3188 = vmatpush.bf16.msra.mxu0 %v8719_v5  ;;  %v7347_v6 = vcvt.s32.f32 %v1153_v34  ;;  %v793_v10 = vunpack.c.2.s8 %v7318_v14  ;;  %v7350_v52 = vcvt.s32.f32 %v1273_v41  ;;  %v7352_v61 = vcvt.s32.f32 %v1281_v43 }
  0xae   :  { %3201 = vmatpush.bf16.msra.mxu1 %v8720_v25  ;;  %v254_v4 = vmax.f32 %v224_v48, %v246_v30  ;;  %v801_v28 = vunpack.c.3.s8 %v7318_v14  ;;  %v255_v26 = vmax.f32 %v237_v57, %v247_v18  ;;  %v921_v59 = vunpack.c.2.s8 %v361_v46 }
  0xaf   :  { %3213 = vmatpush.bf16.msra.mxu2 %v2729_v16  ;;  %v2881_v19 = vpack.c.bf16 %v7347_v6, %v7335_v47  ;;  %v7360_v27 = vcvt.s32.f32 %v793_v10  ;;  %v8721_v48 = vpack.c.bf16 %v7176_v12, %v7165_v37  ;;  %v2945_v30 = vpack.c.bf16 %v7352_v61, %v7350_v52  ;;  %v225_v9 = vpop.f32.mrf.mxu2  ;;  %v409_v61 = vld [vmem:[#allocation2 + $0x488] sm:$0xff] }
  0xb0   :  { %v7362_v34 = vpack.c.bf16 %v254_v4, %v254_v4  ;;  %v1825_v57 = vcvt.s32.f32 %v801_v28  ;;  %v929_v41 = vunpack.c.3.s8 %v361_v46  ;;  %v7369_v43 = vpack.c.bf16 %v255_v26, %v255_v26  ;;  %v238_v12 = vpop.f32.mrf.mxu3  ;;  %v513_v4 = vld [vmem:[#allocation2 + $0x7c8] sm:$0xff] }
  0xb1   :  { %3226 = vmatpush.bf16.msra.mxu3 %v8721_v48  ;;  %3189 = vmatpush.bf16.msra.mxu0 %v2585_v53  ;;  %v1945_v24 = vcvt.s32.f32 %v921_v59  ;;  %v1129_v37 = vunpack.c.0.s8 %v7278_v49  ;;  %v1137_v16 = vunpack.c.1.s8 %v7278_v49  ;;  %v1257_v5 = vunpack.c.0.s8 %v7308_v11  ;;  %v481_v49 = vld [vmem:[#allocation2 + $0x6c8] sm:$0xff] }
  0xb2   :  { %3202 = vmatpush.bf16.msra.mxu1 %v2649_v54  ;;  %3166 = vmatmul.bf16.vlgmr.msrb.gmra.mxu2 %v7362_v34  ;;  %v2705_v47 = vpack.c.bf16 %v1825_v57, %v7360_v27  ;;  %v1953_v18 = vcvt.s32.f32 %v929_v41  ;;  %v1265_v44 = vunpack.c.1.s8 %v7308_v11  ;;  %v777_v53 = vunpack.c.0.s8 %v7318_v14  ;;  %v441_v26 = vld [vmem:[#allocation2 + $0x588] sm:$0xff] }
  0xb3   :  { %3179 = vmatmul.bf16.vlgmr.msrb.gmra.mxu3 %v7369_v43  ;;  %3214 = vmatpush.bf16.msra.mxu2 %v8722_v23  ;;  %v2153_v7 = vcvt.s32.f32 %v1129_v37  ;;  %v2161_v51 = vcvt.s32.f32 %v1137_v16  ;;  %v785_v54 = vunpack.c.1.s8 %v7318_v14  ;;  %v2281_v6 = vcvt.s32.f32 %v1257_v5  ;;  %v473_v37 = vld [vmem:[#allocation2 + $0x688] sm:$0xff] }
  0xb4   :  { %v2769_v25 = vpack.c.bf16 %v1953_v18, %v1945_v24  ;;  %v2289_v11 = vcvt.s32.f32 %v1265_v44  ;;  %v905_v10 = vunpack.c.0.s8 %v361_v46  ;;  %v1801_v56 = vcvt.s32.f32 %v777_v53  ;;  %v505_v5 = vld [vmem:[#allocation2 + $0x788] sm:$0xff] }
  0xb5   :  { %3227 = vmatpush.bf16.msra.mxu3 %v2785_v62  ;;  %3190 = vmatpush.bf16.msra.mxu0 %v2577_v39  ;;  %v2873_v13 = vpack.c.bf16 %v2161_v51, %v2153_v7  ;;  %v1809_v14 = vcvt.s32.f32 %v785_v54  ;;  %v913_v52 = vunpack.c.1.s8 %v361_v46  ;;  %v1401_v62 = vunpack.c.2.s8 %v481_v49  ;;  %v401_v53 = vld [vmem:[#allocation2 + $0x448] sm:$0xff] }
  0xb6   :  { %3203 = vmatpush.bf16.msra.mxu1 %v2641_v55  ;;  %v2937_v32 = vpack.c.bf16 %v2289_v11, %v2281_v6  ;;  %v1929_v63 = vcvt.s32.f32 %v905_v10  ;;  %v1409_v28 = vunpack.c.3.s8 %v481_v49  ;;  %v1529_v39 = vunpack.c.2.s8 %v513_v4  ;;  %v433_v11 = vld [vmem:[#allocation2 + $0x548] sm:$0xff] }
  0xb7   :  { %3215 = vmatpush.bf16.msra.mxu2 %v2713_v58  ;;  %v2697_v50 = vpack.c.bf16 %v1809_v14, %v1801_v56  ;;  %v1937_v38 = vcvt.s32.f32 %v913_v52  ;;  %v1537_v27 = vunpack.c.3.s8 %v513_v4  ;;  %v2425_v35 = vcvt.s32.f32 %v1401_v62 }
  0xb8   :  { %v2433_v36 = vcvt.s32.f32 %v1409_v28  ;;  %v1113_v55 = vunpack.c.2.s8 %v409_v61  ;;  %v1121_v46 = vunpack.c.3.s8 %v409_v61  ;;  %v2553_v40 = vcvt.s32.f32 %v1529_v39 }
  0xb9   :  { %3228 = vmatpush.bf16.msra.mxu3 %v2777_v33  ;;  %3191 = vmatpush.bf16.msra.mxu0 %v2569_v8  ;;  %v2761_v42 = vpack.c.bf16 %v1937_v38, %v1929_v63  ;;  %v2561_v58 = vcvt.s32.f32 %v1537_v27  ;;  %v1241_v59 = vunpack.c.2.s8 %v441_v26  ;;  %v1249_v48 = vunpack.c.3.s8 %v441_v26 }
  0xba   :  { %3204 = vmatpush.bf16.msra.mxu1 %v2633_v0  ;;  %v3009_v22 = vpack.c.bf16 %v2433_v36, %v2425_v35  ;;  %v2137_v15 = vcvt.s32.f32 %v1113_v55  ;;  %v2145_v33 = vcvt.s32.f32 %v1121_v46  ;;  %v1385_v9 = vunpack.c.0.s8 %v481_v49 }
  0xbb   :  { %3216 = vmatpush.bf16.msra.mxu2 %v2705_v47  ;;  %v3073_v57 = vpack.c.bf16 %v2561_v58, %v2553_v40  ;;  %v2265_v41 = vcvt.s32.f32 %v1241_v59  ;;  %v1393_v60 = vunpack.c.1.s8 %v481_v49  ;;  %v2273_v29 = vcvt.s32.f32 %v1249_v48 }
  0xbc   :  { %3192 = vmatmul.bf16.vlgmr.msra.gmra.mxu0 %v7161_v2  ;;  %v2865_v21 = vpack.c.bf16 %v2145_v33, %v2137_v15  ;;  %v1513_v8 = vunpack.c.0.s8 %v513_v4  ;;  %v1521_v31 = vunpack.c.1.s8 %v513_v4  ;;  %v2409_v0 = vcvt.s32.f32 %v1385_v9 }
  0xbd   :  { %3236 = vmatpush.bf16.msrb.mxu0 %v2881_v19  ;;  %3229 = vmatpush.bf16.msra.mxu3 %v2769_v25  ;;  %v2417_v19 = vcvt.s32.f32 %v1393_v60  ;;  %v1105_v24 = vunpack.c.1.s8 %v409_v61  ;;  %v2929_v16 = vpack.c.bf16 %v2273_v29, %v2265_v41  ;;  %v1225_v18 = vunpack.c.0.s8 %v441_v26  ;;  %v497_v29 = vld [vmem:[#allocation2 + $0x748] sm:$0xff] }
  0xbe   :  { %3249 = vmatpush.bf16.msrb.mxu1 %v2945_v30  ;;  %v1097_v30 = vunpack.c.0.s8 %v409_v61  ;;  %v2537_v12 = vcvt.s32.f32 %v1513_v8  ;;  %v2545_v47 = vcvt.s32.f32 %v1521_v31  ;;  %v1233_v51 = vunpack.c.1.s8 %v441_v26 }
  0xbf   :  { %3205 = vmatmul.bf16.vlgmr.msra.gmra.mxu1 %v7170_v20  ;;  %3217 = vmatpush.bf16.msra.mxu2 %v2697_v50  ;;  %v3001_v44 = vpack.c.bf16 %v2417_v19, %v2409_v0  ;;  %v2129_v7 = vcvt.s32.f32 %v1105_v24  ;;  %v2249_v49 = vcvt.s32.f32 %v1225_v18  ;;  %v1369_v25 = vunpack.c.2.s8 %v473_v37 }
  0xc0   :  { %v2121_v23 = vcvt.s32.f32 %v1097_v30  ;;  %v3065_v54 = vpack.c.bf16 %v2545_v47, %v2537_v12  ;;  %v1377_v6 = vunpack.c.3.s8 %v473_v37  ;;  %v2257_v4 = vcvt.s32.f32 %v1233_v51  ;;  %v393_v30 = vld [vmem:[#allocation2 + $0x408] sm:$0xff] }
  0xc1   :  { %3237 = vmatpush.bf16.msrb.mxu0 %v2873_v13  ;;  %3230 = vmatpush.bf16.msra.mxu3 %v2761_v42  ;;  %v1497_v13 = vunpack.c.2.s8 %v505_v5  ;;  %v1505_v56 = vunpack.c.3.s8 %v505_v5  ;;  %v2393_v14 = vcvt.s32.f32 %v1369_v25  ;;  %v1081_v61 = vunpack.c.2.s8 %v401_v53  ;;  %v425_v47 = vld [vmem:[#allocation2 + $0x508] sm:$0xff] }
  0xc2   :  { %3250 = vmatpush.bf16.msrb.mxu1 %v2937_v32  ;;  %v2857_v10 = vpack.c.bf16 %v2129_v7, %v2121_v23  ;;  %v2401_v52 = vcvt.s32.f32 %v1377_v6  ;;  %v1089_v32 = vunpack.c.3.s8 %v401_v53  ;;  %3218 = vmatmul.bf16.vlgmr.msra.gmra.mxu2 %v7215_v45  ;;  %v2921_v63 = vpack.c.bf16 %v2257_v4, %v2249_v49 }
  0xc3   :  { %3262 = vmatpush.bf16.msrb.mxu2 %v3009_v22  ;;  %v2521_v62 = vcvt.s32.f32 %v1497_v13  ;;  %v2529_v28 = vcvt.s32.f32 %v1505_v56  ;;  %v1209_v26 = vunpack.c.2.s8 %v433_v11  ;;  %v2105_v38 = vcvt.s32.f32 %v1081_v61 }
  0xc4   :  { %3231 = vmatmul.bf16.vlgmr.msra.gmra.mxu3 %v7225_v1  ;;  %v2993_v50 = vpack.c.bf16 %v2401_v52, %v2393_v14  ;;  %v2113_v39 = vcvt.s32.f32 %v1089_v32  ;;  %v1217_v27 = vunpack.c.3.s8 %v433_v11  ;;  %v1353_v55 = vunpack.c.0.s8 %v473_v37 }
  0xc5   :  { %3275 = vmatpush.bf16.msrb.mxu3 %v3073_v57  ;;  %3238 = vmatpush.bf16.msrb.mxu0 %v2865_v21  ;;  %v3057_v35 = vpack.c.bf16 %v2529_v28, %v2521_v62  ;;  %v2233_v36 = vcvt.s32.f32 %v1209_v26  ;;  %v1361_v46 = vunpack.c.1.s8 %v473_v37  ;;  %v1481_v58 = vunpack.c.0.s8 %v505_v5  ;;  %v465_v57 = vld [vmem:[#allocation2 + $0x648] sm:$0xff] }
  0xc6   :  { %3251 = vmatpush.bf16.msrb.mxu1 %v2929_v16  ;;  %v2849_v42 = vpack.c.bf16 %v2113_v39, %v2105_v38  ;;  %v2241_v40 = vcvt.s32.f32 %v1217_v27  ;;  %v1489_v59 = vunpack.c.1.s8 %v505_v5  ;;  %v2377_v22 = vcvt.s32.f32 %v1353_v55 }
  0xc7   :  { %3263 = vmatpush.bf16.msrb.mxu2 %v3001_v44  ;;  %v2385_v15 = vcvt.s32.f32 %v1361_v46  ;;  %v1065_v33 = vunpack.c.0.s8 %v401_v53  ;;  %v1073_v48 = vunpack.c.1.s8 %v401_v53  ;;  %v2505_v9 = vcvt.s32.f32 %v1481_v58 }
  0xc8   :  { %v2913_v41 = vpack.c.bf16 %v2241_v40, %v2233_v36  ;;  %v2513_v60 = vcvt.s32.f32 %v1489_v59  ;;  %v1193_v21 = vunpack.c.0.s8 %v433_v11  ;;  %v1201_v19 = vunpack.c.1.s8 %v433_v11  ;;  %v322_v40 = vld [vmem:[#allocation2 + $0x1d0] sm:$0xff] }
  0xc9   :  { %3276 = vmatpush.bf16.msrb.mxu3 %v3065_v54  ;;  %3239 = vmatpush.bf16.msrb.mxu0 %v2857_v10  ;;  %v2985_v8 = vpack.c.bf16 %v2385_v15, %v2377_v22  ;;  %v2089_v31 = vcvt.s32.f32 %v1065_v33  ;;  %v2097_v0 = vcvt.s32.f32 %v1073_v48  ;;  %v1337_v16 = vunpack.c.2.s8 %v465_v57  ;;  %v457_v33 = vld [vmem:[#allocation2 + $0x608] sm:$0xff] }
  0xca   :  { %3252 = vmatpush.bf16.msrb.mxu1 %v2921_v63  ;;  %v3049_v24 = vpack.c.bf16 %v2513_v60, %v2505_v9  ;;  %v2217_v37 = vcvt.s32.f32 %v1193_v21  ;;  %v1345_v12 = vunpack.c.3.s8 %v465_v57  ;;  %v2225_v5 = vcvt.s32.f32 %v1201_v19  ;;  %v489_v60 = vld [vmem:[#allocation2 + $0x708] sm:$0xff] }
  0xcb   :  { %3264 = vmatpush.bf16.msrb.mxu2 %v2993_v50  ;;  %v2841_v18 = vpack.c.bf16 %v2097_v0, %v2089_v31  ;;  %v1465_v44 = vunpack.c.2.s8 %v497_v29  ;;  %v1473_v23 = vunpack.c.3.s8 %v497_v29  ;;  %v2361_v7 = vcvt.s32.f32 %v1337_v16 }
  0xcc   :  { %v2369_v51 = vcvt.s32.f32 %v1345_v12  ;;  %v1049_v53 = vunpack.c.2.s8 %v393_v30  ;;  %v1057_v54 = vunpack.c.3.s8 %v393_v30  ;;  %v2905_v49 = vpack.c.bf16 %v2225_v5, %v2217_v37 }
  0xcd   :  { %3277 = vmatpush.bf16.msrb.mxu3 %v3057_v35  ;;  %3240 = vmatpush.bf16.msrb.mxu0 %v2849_v42  ;;  %v2489_v25 = vcvt.s32.f32 %v1465_v44  ;;  %v2497_v6 = vcvt.s32.f32 %v1473_v23  ;;  %v1177_v11 = vunpack.c.2.s8 %v425_v47  ;;  %v1185_v56 = vunpack.c.3.s8 %v425_v47  ;;  %v290_v35 = vld [vmem:[#allocation2 + $0xd0] sm:$0xff] }
  0xce   :  { %3253 = vmatpush.bf16.msrb.mxu1 %v2913_v41  ;;  %v2977_v10 = vpack.c.bf16 %v2369_v51, %v2361_v7  ;;  %v2073_v4 = vcvt.s32.f32 %v1049_v53  ;;  %v2081_v13 = vcvt.s32.f32 %v1057_v54  ;;  %v1321_v61 = vunpack.c.0.s8 %v465_v57 }
  0xcf   :  { %3265 = vmatpush.bf16.msrb.mxu2 %v2985_v8  ;;  %v3041_v14 = vpack.c.bf16 %v2497_v6, %v2489_v25  ;;  %v2201_v52 = vcvt.s32.f32 %v1177_v11  ;;  %v1329_v32 = vunpack.c.1.s8 %v465_v57  ;;  %v2209_v62 = vcvt.s32.f32 %v1185_v56 }
  0xd0   :  { %v2833_v63 = vpack.c.bf16 %v2081_v13, %v2073_v4  ;;  %v1449_v28 = vunpack.c.0.s8 %v497_v29  ;;  %v1457_v26 = vunpack.c.1.s8 %v497_v29  ;;  %v2345_v50 = vcvt.s32.f32 %v1321_v61 }
  0xd1   :  { %3278 = vmatpush.bf16.msrb.mxu3 %v3049_v24  ;;  %3241 = vmatpush.bf16.msrb.mxu0 %v2841_v18  ;;  %v2353_v38 = vcvt.s32.f32 %v1329_v32  ;;  %v1033_v39 = vunpack.c.0.s8 %v393_v30  ;;  %v1041_v27 = vunpack.c.1.s8 %v393_v30  ;;  %v2897_v36 = vpack.c.bf16 %v2209_v62, %v2201_v52  ;;  %v386_v62 = vld [vmem:[#allocation2 + $0x3d0] sm:$0xff] }
  0xd2   :  { %3254 = vmatpush.bf16.msrb.mxu1 %v2905_v49  ;;  %v2473_v55 = vcvt.s32.f32 %v1449_v28  ;;  %v2481_v46 = vcvt.s32.f32 %v1457_v26  ;;  %v1161_v42 = vunpack.c.0.s8 %v425_v47  ;;  %v1169_v15 = vunpack.c.1.s8 %v425_v47 }
  0xd3   :  { %3266 = vmatpush.bf16.msrb.mxu2 %v2977_v10  ;;  %v2969_v58 = vpack.c.bf16 %v2353_v38, %v2345_v50  ;;  %v2057_v59 = vcvt.s32.f32 %v1033_v39  ;;  %v2065_v22 = vcvt.s32.f32 %v1041_v27  ;;  %v634_v41 = vunpack.c.2.s8 %v290_v35  ;;  %v282_v39 = vld [vmem:[#allocation2 + $0x90] sm:$0xff] }
  0xd4   :  { %v3033_v48 = vpack.c.bf16 %v2481_v46, %v2473_v55  ;;  %v2185_v57 = vcvt.s32.f32 %v1161_v42  ;;  %v642_v9 = vunpack.c.3.s8 %v290_v35  ;;  %v2193_v29 = vcvt.s32.f32 %v1169_v15  ;;  %v314_v46 = vld [vmem:[#allocation2 + $0x190] sm:$0xff] }
  0xd5   :  { %3279 = vmatpush.bf16.msrb.mxu3 %v3041_v14  ;;  %3242 = vmatpush.bf16.msrb.mxu0 %v2833_v63  ;;  %v2825_v21 = vpack.c.bf16 %v2065_v22, %v2057_v59  ;;  %v762_v8 = vunpack.c.2.s8 %v322_v40  ;;  %v770_v31 = vunpack.c.3.s8 %v322_v40  ;;  %v1658_v0 = vcvt.s32.f32 %v634_v41  ;;  %v354_v14 = vld [vmem:[#allocation2 + $0x2d0] sm:$0xff] }
  0xd6   :  { %3255 = vmatpush.bf16.msrb.mxu1 %v2897_v36  ;;  %v1666_v19 = vcvt.s32.f32 %v642_v9  ;;  %v1305_v30 = vunpack.c.2.s8 %v457_v33  ;;  %v1313_v24 = vunpack.c.3.s8 %v457_v33  ;;  %v2889_v37 = vpack.c.bf16 %v2193_v29, %v2185_v57 }
  0xd7   :  { %3267 = vmatpush.bf16.msrb.mxu2 %v2969_v58  ;;  %v1786_v16 = vcvt.s32.f32 %v762_v8  ;;  %v1794_v12 = vcvt.s32.f32 %v770_v31  ;;  %v1433_v47 = vunpack.c.2.s8 %v489_v60  ;;  %v1441_v23 = vunpack.c.3.s8 %v489_v60 }
  0xd8   :  { %v2626_v18 = vpack.c.bf16 %v1666_v19, %v1658_v0  ;;  %v2329_v5 = vcvt.s32.f32 %v1305_v30  ;;  %v2337_v44 = vcvt.s32.f32 %v1313_v24  ;;  %v618_v53 = vunpack.c.0.s8 %v290_v35 }
  0xd9   :  { %3280 = vmatpush.bf16.msrb.mxu3 %v3033_v48  ;;  %3243 = vmatpush.bf16.msrb.mxu0 %v2825_v21  ;;  %v2690_v7 = vpack.c.bf16 %v1794_v12, %v1786_v16  ;;  %v2457_v51 = vcvt.s32.f32 %v1433_v47  ;;  %v626_v54 = vunpack.c.1.s8 %v290_v35  ;;  %v2465_v25 = vcvt.s32.f32 %v1441_v23 }
  0xda   :  { %3256 = vmatpush.bf16.msrb.mxu1 %v2889_v37  ;;  %v2961_v49 = vpack.c.bf16 %v2337_v44, %v2329_v5  ;;  %v746_v6 = vunpack.c.0.s8 %v322_v40  ;;  %v754_v11 = vunpack.c.1.s8 %v322_v40  ;;  %v1642_v10 = vcvt.s32.f32 %v618_v53 }
  0xdb   :  { %v1650_v4 = vcvt.s32.f32 %v626_v54  ;;  %v1289_v13 = vunpack.c.0.s8 %v457_v33  ;;  %v1297_v56 = vunpack.c.1.s8 %v457_v33  ;;  %v3025_v52 = vpack.c.bf16 %v2465_v25, %v2457_v51  ;;  %v378_v25 = vld [vmem:[#allocation2 + $0x390] sm:$0xff] }
  0xdc   :  { %3244 = vmatmul.bf16.vlgmr.msrb.gmra.mxu0 %v7299_v3  ;;  %3268 = vmatpush.bf16.msrb.mxu2 %v2961_v49  ;;  %v1770_v61 = vcvt.s32.f32 %v746_v6  ;;  %v1778_v32 = vcvt.s32.f32 %v754_v11  ;;  %v1417_v63 = vunpack.c.0.s8 %v489_v60  ;;  %v1425_v38 = vunpack.c.1.s8 %v489_v60 }
  0xdd   :  { %3288 = vmatpush.bf16.msra.mxu0 %v2626_v18  ;;  %3257 = vmatmul.bf16.vlgmr.msrb.gmra.mxu1 %v7310_v17  ;;  %v2618_v28 = vpack.c.bf16 %v1650_v4, %v1642_v10  ;;  %v2313_v26 = vcvt.s32.f32 %v1289_v13  ;;  %v2321_v50 = vcvt.s32.f32 %v1297_v56  ;;  %v890_v36 = vunpack.c.2.s8 %v354_v14  ;;  %v274_v13 = vld [vmem:[#allocation2 + $0x50] sm:$0xff] }
  0xde   :  { %3301 = vmatpush.bf16.msra.mxu1 %v2690_v7  ;;  %3281 = vmatpush.bf16.msrb.mxu3 %v3025_v52  ;;  %v2682_v27 = vpack.c.bf16 %v1778_v32, %v1770_v61  ;;  %v2441_v35 = vcvt.s32.f32 %v1417_v63  ;;  %v898_v55 = vunpack.c.3.s8 %v354_v14  ;;  %v2449_v40 = vcvt.s32.f32 %v1425_v38  ;;  %v346_v7 = vld [vmem:[#allocation2 + $0x290] sm:$0xff] }
  0xdf   :  { %v2953_v42 = vpack.c.bf16 %v2321_v50, %v2313_v26  ;;  %v1018_v58 = vunpack.c.2.s8 %v386_v62  ;;  %v1026_v59 = vunpack.c.3.s8 %v386_v62  ;;  %v1914_v22 = vcvt.s32.f32 %v890_v36  ;;  %v306_v32 = vld [vmem:[#allocation2 + $0x150] sm:$0xff] }
  0xe0   :  { %v1922_v15 = vcvt.s32.f32 %v898_v55  ;;  %v602_v33 = vunpack.c.2.s8 %v282_v39  ;;  %v610_v48 = vunpack.c.3.s8 %v282_v39  ;;  %v3017_v57 = vpack.c.bf16 %v2449_v40, %v2441_v35 }
  0xe1   :  { %3289 = vmatpush.bf16.msra.mxu0 %v2618_v28  ;;  %3269 = vmatpush.bf16.msrb.mxu2 %v2953_v42  ;;  %v2042_v41 = vcvt.s32.f32 %v1018_v58  ;;  %v2050_v9 = vcvt.s32.f32 %v1026_v59  ;;  %v730_v60 = vunpack.c.2.s8 %v314_v46  ;;  %v738_v31 = vunpack.c.3.s8 %v314_v46 }
  0xe2   :  { %3302 = vmatpush.bf16.msra.mxu1 %v2682_v27  ;;  %v2754_v21 = vpack.c.bf16 %v1922_v15, %v1914_v22  ;;  %v1626_v29 = vcvt.s32.f32 %v602_v33  ;;  %v1634_v8 = vcvt.s32.f32 %v610_v48  ;;  %3282 = vmatpush.bf16.msrb.mxu3 %v3017_v57  ;;  %v874_v30 = vunpack.c.0.s8 %v354_v14 }
  0xe3   :  { %v2818_v0 = vpack.c.bf16 %v2050_v9, %v2042_v41  ;;  %v1754_v19 = vcvt.s32.f32 %v730_v60  ;;  %v882_v24 = vunpack.c.1.s8 %v354_v14  ;;  %v1762_v16 = vcvt.s32.f32 %v738_v31 }
  0xe4   :  { %v2610_v37 = vpack.c.bf16 %v1634_v8, %v1626_v29  ;;  %v1002_v12 = vunpack.c.0.s8 %v386_v62  ;;  %v1010_v47 = vunpack.c.1.s8 %v386_v62  ;;  %3270 = vmatmul.bf16.vlgmr.msrb.gmra.mxu2 %v7362_v34  ;;  %v1898_v18 = vcvt.s32.f32 %v874_v30 }
  0xe5   :  { %3314 = vmatpush.bf16.msra.mxu2 %v2754_v21  ;;  %v1906_v5 = vcvt.s32.f32 %v882_v24  ;;  %v586_v44 = vunpack.c.0.s8 %v282_v39  ;;  %v594_v23 = vunpack.c.1.s8 %v282_v39  ;;  %3283 = vmatmul.bf16.vlgmr.msrb.gmra.mxu3 %v7369_v43  ;;  %v2674_v51 = vpack.c.bf16 %v1762_v16, %v1754_v19  ;;  %v370_v16 = vld [vmem:[#allocation2 + $0x350] sm:$0xff] }
  0xe6   :  { %3327 = vmatpush.bf16.msra.mxu3 %v2818_v0  ;;  %3290 = vmatpush.bf16.msra.mxu0 %v2610_v37  ;;  %v2026_v53 = vcvt.s32.f32 %v1002_v12  ;;  %v2034_v54 = vcvt.s32.f32 %v1010_v47  ;;  %v714_v49 = vunpack.c.0.s8 %v314_v46  ;;  %v722_v4 = vunpack.c.1.s8 %v314_v46  ;;  %v338_v0 = vld [vmem:[#allocation2 + $0x250] sm:$0xff] }
  0xe7   :  { %v2746_v6 = vpack.c.bf16 %v1906_v5, %v1898_v18  ;;  %v1610_v11 = vcvt.s32.f32 %v586_v44  ;;  %v1618_v10 = vcvt.s32.f32 %v594_v23  ;;  %3303 = vmatpush.bf16.msra.mxu1 %v2674_v51  ;;  %v858_v52 = vunpack.c.2.s8 %v346_v7  ;;  %v266_v44 = vld [vmem:[#allocation2 + $0x10] sm:$0xff] }
  0xe8   :  { %v2810_v56 = vpack.c.bf16 %v2034_v54, %v2026_v53  ;;  %v1738_v14 = vcvt.s32.f32 %v714_v49  ;;  %v866_v61 = vunpack.c.3.s8 %v346_v7  ;;  %v1746_v62 = vcvt.s32.f32 %v722_v4  ;;  %v298_v54 = vld [vmem:[#allocation2 + $0x110] sm:$0xff] }
  0xe9   :  { %3315 = vmatpush.bf16.msra.mxu2 %v2746_v6  ;;  %v2602_v63 = vpack.c.bf16 %v1618_v10, %v1610_v11  ;;  %v986_v28 = vunpack.c.2.s8 %v378_v25  ;;  %v994_v26 = vunpack.c.3.s8 %v378_v25  ;;  %v1882_v50 = vcvt.s32.f32 %v858_v52 }
  0xea   :  { %3328 = vmatpush.bf16.msra.mxu3 %v2810_v56  ;;  %v1890_v38 = vcvt.s32.f32 %v866_v61  ;;  %v570_v39 = vunpack.c.2.s8 %v274_v13  ;;  %v578_v27 = vunpack.c.3.s8 %v274_v13  ;;  %v2666_v35 = vpack.c.bf16 %v1746_v62, %v1738_v14 }
  0xeb   :  { %3291 = vmatpush.bf16.msra.mxu0 %v2602_v63  ;;  %v2010_v36 = vcvt.s32.f32 %v986_v28  ;;  %v2018_v55 = vcvt.s32.f32 %v994_v26  ;;  %v698_v46 = vunpack.c.2.s8 %v306_v32  ;;  %v706_v59 = vunpack.c.3.s8 %v306_v32 }
  0xec   :  { %v2738_v42 = vpack.c.bf16 %v1890_v38, %v1882_v50  ;;  %v1594_v40 = vcvt.s32.f32 %v570_v39  ;;  %v1602_v58 = vcvt.s32.f32 %v578_v27  ;;  %3304 = vmatpush.bf16.msra.mxu1 %v2666_v35  ;;  %v842_v33 = vunpack.c.0.s8 %v346_v7 }
  0xed   :  { %v2802_v22 = vpack.c.bf16 %v2018_v55, %v2010_v36  ;;  %v1722_v15 = vcvt.s32.f32 %v698_v46  ;;  %v850_v48 = vunpack.c.1.s8 %v346_v7  ;;  %v1730_v41 = vcvt.s32.f32 %v706_v59 }
  0xee   :  { %3316 = vmatpush.bf16.msra.mxu2 %v2738_v42  ;;  %v2594_v57 = vpack.c.bf16 %v1602_v58, %v1594_v40  ;;  %v970_v9 = vunpack.c.0.s8 %v378_v25  ;;  %v978_v60 = vunpack.c.1.s8 %v378_v25  ;;  %v1866_v21 = vcvt.s32.f32 %v842_v33 }
  0xef   :  { %3329 = vmatpush.bf16.msra.mxu3 %v2802_v22  ;;  %v1874_v29 = vcvt.s32.f32 %v850_v48  ;;  %v554_v8 = vunpack.c.0.s8 %v274_v13  ;;  %v562_v31 = vunpack.c.1.s8 %v274_v13  ;;  %v2658_v19 = vpack.c.bf16 %v1730_v41, %v1722_v15  ;;  %v418_v22 = vld [vmem:[#allocation2 + $0x4d0] sm:$0xff] }
  0xf0   :  { %3292 = vmatpush.bf16.msra.mxu0 %v2594_v57  ;;  %v1994_v30 = vcvt.s32.f32 %v970_v9  ;;  %v2002_v24 = vcvt.s32.f32 %v978_v60  ;;  %v682_v37 = vunpack.c.0.s8 %v306_v32  ;;  %v690_v5 = vunpack.c.1.s8 %v306_v32  ;;  %v450_v41 = vld [vmem:[#allocation2 + $0x5d0] sm:$0xff] }
  0xf1   :  { %v2730_v12 = vpack.c.bf16 %v1874_v29, %v1866_v21  ;;  %v1578_v47 = vcvt.s32.f32 %v554_v8  ;;  %v1586_v18 = vcvt.s32.f32 %v562_v31  ;;  %3305 = vmatpush.bf16.msra.mxu1 %v2658_v19  ;;  %v826_v51 = vunpack.c.2.s8 %v338_v0  ;;  %v330_v8 = vld [vmem:[#allocation2 + $0x210] sm:$0xff] }
  0xf2   :  { %v2794_v23 = vpack.c.bf16 %v2002_v24, %v1994_v30  ;;  %v1706_v7 = vcvt.s32.f32 %v682_v37  ;;  %v834_v53 = vunpack.c.3.s8 %v338_v0  ;;  %v1714_v25 = vcvt.s32.f32 %v690_v5  ;;  %v362_v24 = vld [vmem:[#allocation2 + $0x310] sm:$0xff] }
  0xf3   :  { %3317 = vmatpush.bf16.msra.mxu2 %v2730_v12  ;;  %v2586_v49 = vpack.c.bf16 %v1586_v18, %v1578_v47  ;;  %v954_v6 = vunpack.c.2.s8 %v370_v16  ;;  %v962_v11 = vunpack.c.3.s8 %v370_v16  ;;  %v1850_v10 = vcvt.s32.f32 %v826_v51 }
  0xf4   :  { %3330 = vmatpush.bf16.msra.mxu3 %v2794_v23  ;;  %v1858_v4 = vcvt.s32.f32 %v834_v53  ;;  %v538_v13 = vunpack.c.2.s8 %v266_v44  ;;  %v546_v56 = vunpack.c.3.s8 %v266_v44  ;;  %v2650_v14 = vpack.c.bf16 %v1714_v25, %v1706_v7 }
  0xf5   :  { %3293 = vmatpush.bf16.msra.mxu0 %v2586_v49  ;;  %v1978_v52 = vcvt.s32.f32 %v954_v6  ;;  %v1986_v61 = vcvt.s32.f32 %v962_v11  ;;  %v666_v32 = vunpack.c.2.s8 %v298_v54  ;;  %v674_v26 = vunpack.c.3.s8 %v298_v54 }
  0xf6   :  { %v2722_v63 = vpack.c.bf16 %v1858_v4, %v1850_v10  ;;  %v1562_v62 = vcvt.s32.f32 %v538_v13  ;;  %v1570_v28 = vcvt.s32.f32 %v546_v56  ;;  %3306 = vmatpush.bf16.msra.mxu1 %v2650_v14  ;;  %v810_v39 = vunpack.c.0.s8 %v338_v0 }
  0xf7   :  { %v2786_v50 = vpack.c.bf16 %v1986_v61, %v1978_v52  ;;  %v1690_v38 = vcvt.s32.f32 %v666_v32  ;;  %v818_v27 = vunpack.c.1.s8 %v338_v0  ;;  %v1698_v36 = vcvt.s32.f32 %v674_v26 }
  0xf8   :  { %3318 = vmatpush.bf16.msra.mxu2 %v2722_v63  ;;  %v2578_v35 = vpack.c.bf16 %v1570_v28, %v1562_v62  ;;  %v938_v55 = vunpack.c.0.s8 %v370_v16  ;;  %v946_v46 = vunpack.c.1.s8 %v370_v16  ;;  %v1834_v42 = vcvt.s32.f32 %v810_v39 }
  0xf9   :  { %3331 = vmatpush.bf16.msra.mxu3 %v2786_v50  ;;  %v1842_v40 = vcvt.s32.f32 %v818_v27  ;;  %v522_v58 = vunpack.c.0.s8 %v266_v44  ;;  %v530_v59 = vunpack.c.1.s8 %v266_v44  ;;  %v2642_v15 = vpack.c.bf16 %v1698_v36, %v1690_v38  ;;  %v482_v50 = vld [vmem:[#allocation2 + $0x6d0] sm:$0xff] }
  0xfa   :  { %3294 = vmatpush.bf16.msra.mxu0 %v2578_v35  ;;  %v1962_v33 = vcvt.s32.f32 %v938_v55  ;;  %v1970_v48 = vcvt.s32.f32 %v946_v46  ;;  %v650_v57 = vunpack.c.0.s8 %v298_v54  ;;  %v658_v29 = vunpack.c.1.s8 %v298_v54  ;;  %v514_v36 = vld [vmem:[#allocation2 + $0x7d0] sm:$0xff] }
  0xfb   :  { %v2714_v9 = vpack.c.bf16 %v1842_v40, %v1834_v42  ;;  %v1546_v60 = vcvt.s32.f32 %v522_v58  ;;  %v1554_v21 = vcvt.s32.f32 %v530_v59  ;;  %3307 = vmatpush.bf16.msra.mxu1 %v2642_v15  ;;  %v1146_v19 = vunpack.c.2.s8 %v418_v22  ;;  %v410_v58 = vld [vmem:[#allocation2 + $0x490] sm:$0xff] }
  0xfc   :  { %v2778_v31 = vpack.c.bf16 %v1970_v48, %v1962_v33  ;;  %v1674_v0 = vcvt.s32.f32 %v650_v57  ;;  %v1154_v30 = vunpack.c.3.s8 %v418_v22  ;;  %v1682_v16 = vcvt.s32.f32 %v658_v29  ;;  %v442_v48 = vld [vmem:[#allocation2 + $0x590] sm:$0xff] }
  0xfd   :  { %3319 = vmatpush.bf16.msra.mxu2 %v2714_v9  ;;  %v2570_v37 = vpack.c.bf16 %v1554_v21, %v1546_v60  ;;  %v1274_v12 = vunpack.c.2.s8 %v450_v41  ;;  %v1282_v47 = vunpack.c.3.s8 %v450_v41  ;;  %v2170_v18 = vcvt.s32.f32 %v1146_v19 }
  0xfe   :  { %3332 = vmatpush.bf16.msra.mxu3 %v2778_v31  ;;  %v2178_v5 = vcvt.s32.f32 %v1154_v30  ;;  %v794_v44 = vunpack.c.2.s8 %v330_v8  ;;  %v802_v23 = vunpack.c.3.s8 %v330_v8  ;;  %v2634_v7 = vpack.c.bf16 %v1682_v16, %v1674_v0 }
  0xff   :  { %3295 = vmatpush.bf16.msra.mxu0 %v2570_v37  ;;  %v2298_v51 = vcvt.s32.f32 %v1274_v12  ;;  %v2306_v53 = vcvt.s32.f32 %v1282_v47  ;;  %v922_v54 = vunpack.c.2.s8 %v362_v24  ;;  %v930_v11 = vunpack.c.3.s8 %v362_v24 }
 0x100   :  { %v2882_v49 = vpack.c.bf16 %v2178_v5, %v2170_v18  ;;  %v1818_v25 = vcvt.s32.f32 %v794_v44  ;;  %v1826_v6 = vcvt.s32.f32 %v802_v23  ;;  %3308 = vmatpush.bf16.msra.mxu1 %v2634_v7  ;;  %v1130_v13 = vunpack.c.0.s8 %v418_v22 }
 0x101   :  { %v2946_v10 = vpack.c.bf16 %v2306_v53, %v2298_v51  ;;  %v1946_v4 = vcvt.s32.f32 %v922_v54  ;;  %v1138_v56 = vunpack.c.1.s8 %v418_v22  ;;  %v1954_v52 = vcvt.s32.f32 %v930_v11 }
 0x102   :  { %v2706_v14 = vpack.c.bf16 %v1826_v6, %v1818_v25  ;;  %v1258_v61 = vunpack.c.0.s8 %v450_v41  ;;  %v1266_v32 = vunpack.c.1.s8 %v450_v41  ;;  %3296 = vmatmul.bf16.vlgmr.msra.gmra.mxu0 %v7161_v2  ;;  %v2154_v63 = vcvt.s32.f32 %v1130_v13 }
 0x103   :  { %3340 = vmatpush.bf16.msrb.mxu0 %v2882_v49  ;;  %v2162_v62 = vcvt.s32.f32 %v1138_v56  ;;  %v778_v28 = vunpack.c.0.s8 %v330_v8  ;;  %v786_v26 = vunpack.c.1.s8 %v330_v8  ;;  %v2770_v38 = vpack.c.bf16 %v1954_v52, %v1946_v4  ;;  %3309 = vmatmul.bf16.vlgmr.msra.gmra.mxu1 %v7170_v20  ;;  %v506_v52 = vld [vmem:[#allocation2 + $0x790] sm:$0xff] }
 0x104   :  { %3353 = vmatpush.bf16.msrb.mxu1 %v2946_v10  ;;  %3320 = vmatpush.bf16.msra.mxu2 %v2706_v14  ;;  %v2282_v39 = vcvt.s32.f32 %v1258_v61  ;;  %v2290_v27 = vcvt.s32.f32 %v1266_v32  ;;  %v906_v35 = vunpack.c.0.s8 %v362_v24  ;;  %v914_v40 = vunpack.c.1.s8 %v362_v24  ;;  %v474_v10 = vld [vmem:[#allocation2 + $0x690] sm:$0xff] }
 0x105   :  { %v2874_v55 = vpack.c.bf16 %v2162_v62, %v2154_v63  ;;  %v1802_v46 = vcvt.s32.f32 %v778_v28  ;;  %v1810_v42 = vcvt.s32.f32 %v786_v26  ;;  %3333 = vmatpush.bf16.msra.mxu3 %v2770_v38  ;;  %v1402_v15 = vunpack.c.2.s8 %v482_v50  ;;  %v402_v28 = vld [vmem:[#allocation2 + $0x450] sm:$0xff] }
 0x106   :  { %v2938_v59 = vpack.c.bf16 %v2290_v27, %v2282_v39  ;;  %v1930_v22 = vcvt.s32.f32 %v906_v35  ;;  %v1410_v33 = vunpack.c.3.s8 %v482_v50  ;;  %v1938_v41 = vcvt.s32.f32 %v914_v40  ;;  %v434_v27 = vld [vmem:[#allocation2 + $0x550] sm:$0xff] }
 0x107   :  { %3341 = vmatpush.bf16.msrb.mxu0 %v2874_v55  ;;  %v2698_v57 = vpack.c.bf16 %v1810_v42, %v1802_v46  ;;  %v1530_v9 = vunpack.c.2.s8 %v514_v36  ;;  %v1538_v60 = vunpack.c.3.s8 %v514_v36  ;;  %v2426_v21 = vcvt.s32.f32 %v1402_v15 }
 0x108   :  { %3354 = vmatpush.bf16.msrb.mxu1 %v2938_v59  ;;  %v2434_v29 = vcvt.s32.f32 %v1410_v33  ;;  %v1114_v8 = vunpack.c.2.s8 %v410_v58  ;;  %v1122_v31 = vunpack.c.3.s8 %v410_v58  ;;  %v2762_v0 = vpack.c.bf16 %v1938_v41, %v1930_v22 }
 0x109   :  { %3321 = vmatpush.bf16.msra.mxu2 %v2698_v57  ;;  %v2554_v19 = vcvt.s32.f32 %v1530_v9  ;;  %v2562_v30 = vcvt.s32.f32 %v1538_v60  ;;  %v1242_v24 = vunpack.c.2.s8 %v442_v48  ;;  %v1250_v47 = vunpack.c.3.s8 %v442_v48 }
 0x10a   :  { %v3010_v37 = vpack.c.bf16 %v2434_v29, %v2426_v21  ;;  %v2138_v16 = vcvt.s32.f32 %v1114_v8  ;;  %v2146_v12 = vcvt.s32.f32 %v1122_v31  ;;  %3334 = vmatpush.bf16.msra.mxu3 %v2762_v0  ;;  %v1386_v44 = vunpack.c.0.s8 %v482_v50 }
 0x10b   :  { %v3074_v18 = vpack.c.bf16 %v2562_v30, %v2554_v19  ;;  %v2266_v5 = vcvt.s32.f32 %v1242_v24  ;;  %v1394_v23 = vunpack.c.1.s8 %v482_v50  ;;  %v2274_v51 = vcvt.s32.f32 %v1250_v47 }
 0x10c   :  { %v2866_v7 = vpack.c.bf16 %v2146_v12, %v2138_v16  ;;  %v1514_v53 = vunpack.c.0.s8 %v514_v36  ;;  %v1522_v54 = vunpack.c.1.s8 %v514_v36  ;;  %3322 = vmatmul.bf16.vlgmr.msra.gmra.mxu2 %v7215_v45  ;;  %v2410_v49 = vcvt.s32.f32 %v1386_v44 }
 0x10d   :  { %3366 = vmatpush.bf16.msrb.mxu2 %v3010_v37  ;;  %v2418_v25 = vcvt.s32.f32 %v1394_v23  ;;  %v1098_v6 = vunpack.c.0.s8 %v410_v58  ;;  %v1106_v11 = vunpack.c.1.s8 %v410_v58  ;;  %3335 = vmatmul.bf16.vlgmr.msra.gmra.mxu3 %v7225_v1  ;;  %v2930_v4 = vpack.c.bf16 %v2274_v51, %v2266_v5  ;;  %v498_v51 = vld [vmem:[#allocation2 + $0x750] sm:$0xff] }
 0x10e   :  { %3379 = vmatpush.bf16.msrb.mxu3 %v3074_v18  ;;  %3342 = vmatpush.bf16.msrb.mxu0 %v2866_v7  ;;  %v2538_v13 = vcvt.s32.f32 %v1514_v53  ;;  %v2546_v56 = vcvt.s32.f32 %v1522_v54  ;;  %v1226_v14 = vunpack.c.0.s8 %v442_v48  ;;  %v1234_v62 = vunpack.c.1.s8 %v442_v48  ;;  %v466_v18 = vld [vmem:[#allocation2 + $0x650] sm:$0xff] }
 0x10f   :  { %v3002_v61 = vpack.c.bf16 %v2418_v25, %v2410_v49  ;;  %v2122_v32 = vcvt.s32.f32 %v1098_v6  ;;  %v2130_v63 = vcvt.s32.f32 %v1106_v11  ;;  %3355 = vmatpush.bf16.msrb.mxu1 %v2930_v4  ;;  %v1370_v38 = vunpack.c.2.s8 %v474_v10  ;;  %v394_v11 = vld [vmem:[#allocation2 + $0x410] sm:$0xff] }
 0x110   :  { %v3066_v26 = vpack.c.bf16 %v2546_v56, %v2538_v13  ;;  %v2250_v50 = vcvt.s32.f32 %v1226_v14  ;;  %v1378_v39 = vunpack.c.3.s8 %v474_v10  ;;  %v2258_v36 = vcvt.s32.f32 %v1234_v62 }
 0x111   :  { %3367 = vmatpush.bf16.msrb.mxu2 %v3002_v61  ;;  %v2858_v35 = vpack.c.bf16 %v2130_v63, %v2122_v32  ;;  %v1498_v55 = vunpack.c.2.s8 %v506_v52  ;;  %v1506_v46 = vunpack.c.3.s8 %v506_v52  ;;  %v2394_v42 = vcvt.s32.f32 %v1370_v38 }
 0x112   :  { %3380 = vmatpush.bf16.msrb.mxu3 %v3066_v26  ;;  %v2402_v40 = vcvt.s32.f32 %v1378_v39  ;;  %v1082_v58 = vunpack.c.2.s8 %v402_v28  ;;  %v1090_v59 = vunpack.c.3.s8 %v402_v28  ;;  %v2922_v22 = vpack.c.bf16 %v2258_v36, %v2250_v50 }
 0x113   :  { %3343 = vmatpush.bf16.msrb.mxu0 %v2858_v35  ;;  %v2522_v15 = vcvt.s32.f32 %v1498_v55  ;;  %v2530_v33 = vcvt.s32.f32 %v1506_v46  ;;  %v1210_v48 = vunpack.c.2.s8 %v434_v27  ;;  %v1218_v60 = vunpack.c.3.s8 %v434_v27 }
 0x114   :  { %v2994_v57 = vpack.c.bf16 %v2402_v40, %v2394_v42  ;;  %v2106_v41 = vcvt.s32.f32 %v1082_v58  ;;  %v2114_v9 = vcvt.s32.f32 %v1090_v59  ;;  %3356 = vmatpush.bf16.msrb.mxu1 %v2922_v22  ;;  %v1354_v8 = vunpack.c.0.s8 %v474_v10 }
 0x115   :  { %v3058_v21 = vpack.c.bf16 %v2530_v33, %v2522_v15  ;;  %v2234_v29 = vcvt.s32.f32 %v1210_v48  ;;  %v1362_v31 = vunpack.c.1.s8 %v474_v10  ;;  %v2242_v19 = vcvt.s32.f32 %v1218_v60 }
 0x116   :  { %3368 = vmatpush.bf16.msrb.mxu2 %v2994_v57  ;;  %v2850_v0 = vpack.c.bf16 %v2114_v9, %v2106_v41  ;;  %v1482_v30 = vunpack.c.0.s8 %v506_v52  ;;  %v1490_v24 = vunpack.c.1.s8 %v506_v52  ;;  %v2378_v37 = vcvt.s32.f32 %v1354_v8  ;;  %v7422_v53 = vpop.f32.mrf.mxu0  ;;  %v7424_v10 = vpop.f32.mrf.mxu1  ;;  %v426_v52 = vld [vmem:[#allocation2 + $0x510] sm:$0xff] }
 0x117   :  { %3381 = vmatpush.bf16.msrb.mxu3 %v3058_v21  ;;  %v2386_v16 = vcvt.s32.f32 %v1362_v31  ;;  %v1066_v12 = vunpack.c.0.s8 %v402_v28  ;;  %v1074_v47 = vunpack.c.1.s8 %v402_v28  ;;  %v2914_v5 = vpack.c.bf16 %v2242_v19, %v2234_v29  ;;  %v291_v31 = vld [vmem:[#allocation2 + $0xd8] sm:$0xff] }
 0x118   :  { %3344 = vmatpush.bf16.msrb.mxu0 %v2850_v0  ;;  %v2506_v44 = vcvt.s32.f32 %v1482_v30  ;;  %v2514_v23 = vcvt.s32.f32 %v1490_v24  ;;  %v1194_v7 = vunpack.c.0.s8 %v434_v27  ;;  %v1202_v6 = vunpack.c.1.s8 %v434_v27 }
 0x119   :  { %v2986_v54 = vpack.c.bf16 %v2386_v16, %v2378_v37  ;;  %v2090_v49 = vcvt.s32.f32 %v1066_v12  ;;  %v2098_v25 = vcvt.s32.f32 %v1074_v47  ;;  %3357 = vmatpush.bf16.msrb.mxu1 %v2914_v5  ;;  %v1338_v56 = vunpack.c.2.s8 %v466_v18  ;;  %v323_v16 = vld [vmem:[#allocation2 + $0x1d8] sm:$0xff] }
 0x11a   :  { %v3050_v4 = vpack.c.bf16 %v2514_v23, %v2506_v44  ;;  %v2218_v13 = vcvt.s32.f32 %v1194_v7  ;;  %v1346_v14 = vunpack.c.3.s8 %v466_v18  ;;  %v2226_v32 = vcvt.s32.f32 %v1202_v6  ;;  %v458_v44 = vld [vmem:[#allocation2 + $0x610] sm:$0xff] }
 0x11b   :  { %3369 = vmatpush.bf16.msrb.mxu2 %v2986_v54  ;;  %v2842_v61 = vpack.c.bf16 %v2098_v25, %v2090_v49  ;;  %v1466_v63 = vunpack.c.2.s8 %v498_v51  ;;  %v1474_v62 = vunpack.c.3.s8 %v498_v51  ;;  %v2362_v28 = vcvt.s32.f32 %v1338_v56  ;;  %v490_v49 = vld [vmem:[#allocation2 + $0x710] sm:$0xff] }
 0x11c   :  { %3382 = vmatpush.bf16.msrb.mxu3 %v3050_v4  ;;  %v2370_v26 = vcvt.s32.f32 %v1346_v14  ;;  %v1050_v50 = vunpack.c.2.s8 %v394_v11  ;;  %v1058_v38 = vunpack.c.3.s8 %v394_v11  ;;  %v2906_v39 = vpack.c.bf16 %v2226_v32, %v2218_v13 }
 0x11d   :  { %3345 = vmatpush.bf16.msrb.mxu0 %v2842_v61  ;;  %v2490_v27 = vcvt.s32.f32 %v1466_v63  ;;  %v2498_v35 = vcvt.s32.f32 %v1474_v62  ;;  %v1178_v36 = vunpack.c.2.s8 %v426_v52  ;;  %v1186_v40 = vunpack.c.3.s8 %v426_v52 }
 0x11e   :  { %v2978_v55 = vpack.c.bf16 %v2370_v26, %v2362_v28  ;;  %v2074_v46 = vcvt.s32.f32 %v1050_v50  ;;  %v2082_v42 = vcvt.s32.f32 %v1058_v38  ;;  %3358 = vmatpush.bf16.msrb.mxu1 %v2906_v39  ;;  %v1322_v22 = vunpack.c.0.s8 %v466_v18  ;;  %v3091_v9 = vpop.f32.mrf.mxu0  ;;  %v3104_v0 = vpop.f32.mrf.mxu1 }
 0x11f   :  { %v3042_v58 = vpack.c.bf16 %v2498_v35, %v2490_v27  ;;  %v2202_v59 = vcvt.s32.f32 %v1178_v36  ;;  %v1330_v15 = vunpack.c.1.s8 %v466_v18  ;;  %v2210_v48 = vcvt.s32.f32 %v1186_v40 }
 0x120   :  { %3370 = vmatpush.bf16.msrb.mxu2 %v2978_v55  ;;  %v2834_v33 = vpack.c.bf16 %v2082_v42, %v2074_v46  ;;  %v1450_v57 = vunpack.c.0.s8 %v498_v51  ;;  %v1458_v41 = vunpack.c.1.s8 %v498_v51  ;;  %v2346_v60 = vcvt.s32.f32 %v1322_v22 }
 0x121   :  { %3383 = vmatpush.bf16.msrb.mxu3 %v3042_v58  ;;  %v2354_v21 = vcvt.s32.f32 %v1330_v15  ;;  %v1034_v29 = vunpack.c.0.s8 %v394_v11  ;;  %v1042_v8 = vunpack.c.1.s8 %v394_v11  ;;  %v2898_v19 = vpack.c.bf16 %v2210_v48, %v2202_v59 }
 0x122   :  { %3346 = vmatpush.bf16.msrb.mxu0 %v2834_v33  ;;  %v2474_v30 = vcvt.s32.f32 %v1450_v57  ;;  %v2482_v24 = vcvt.s32.f32 %v1458_v41  ;;  %v1162_v37 = vunpack.c.0.s8 %v426_v52  ;;  %v1170_v5 = vunpack.c.1.s8 %v426_v52  ;;  %v7431_v57 = vld [vmem:[#allocation2 + $0x2d8] sm:$0xff] }
 0x123   :  { %v2970_v12 = vpack.c.bf16 %v2354_v21, %v2346_v60  ;;  %v2058_v47 = vcvt.s32.f32 %v1034_v29  ;;  %v2066_v18 = vcvt.s32.f32 %v1042_v8  ;;  %3359 = vmatpush.bf16.msrb.mxu1 %v2898_v19  ;;  %v635_v51 = vunpack.c.2.s8 %v291_v31  ;;  %v7426_v28 = vpop.f32.mrf.mxu2  ;;  %v387_v29 = vld [vmem:[#allocation2 + $0x3d8] sm:$0xff] }
 0x124   :  { %v3034_v23 = vpack.c.bf16 %v2482_v24, %v2474_v30  ;;  %v2186_v7 = vcvt.s32.f32 %v1162_v37  ;;  %v643_v54 = vunpack.c.3.s8 %v291_v31  ;;  %v2194_v6 = vcvt.s32.f32 %v1170_v5  ;;  %v7428_v26 = vpop.f32.mrf.mxu3  ;;  %v283_v37 = vld [vmem:[#allocation2 + $0x98] sm:$0xff] }
 0x125   :  { %3371 = vmatpush.bf16.msrb.mxu2 %v2970_v12  ;;  %v2826_v25 = vpack.c.bf16 %v2066_v18, %v2058_v47  ;;  %v763_v11 = vunpack.c.2.s8 %v323_v16  ;;  %v771_v4 = vunpack.c.3.s8 %v323_v16  ;;  %v1659_v13 = vcvt.s32.f32 %v635_v51  ;;  %v315_v5 = vld [vmem:[#allocation2 + $0x198] sm:$0xff] }
 0x126   :  { %3384 = vmatpush.bf16.msrb.mxu3 %v3034_v23  ;;  %v1667_v56 = vcvt.s32.f32 %v643_v54  ;;  %v1306_v14 = vunpack.c.2.s8 %v458_v44  ;;  %v1314_v61 = vunpack.c.3.s8 %v458_v44  ;;  %v2890_v32 = vpack.c.bf16 %v2194_v6, %v2186_v7  ;;  %v7434_v8 = vpop.f32.mrf.mxu0 }
 0x127   :  { %3347 = vmatpush.bf16.msrb.mxu0 %v2826_v25  ;;  %v1787_v52 = vcvt.s32.f32 %v763_v11  ;;  %v1795_v63 = vcvt.s32.f32 %v771_v4  ;;  %v1434_v62 = vunpack.c.2.s8 %v490_v49  ;;  %v1442_v27 = vunpack.c.3.s8 %v490_v49 }
 0x128   :  { %v2627_v50 = vpack.c.bf16 %v1667_v56, %v1659_v13  ;;  %v2330_v38 = vcvt.s32.f32 %v1306_v14  ;;  %v2338_v39 = vcvt.s32.f32 %v1314_v61  ;;  %3360 = vmatpush.bf16.msrb.mxu1 %v2890_v32  ;;  %v619_v55 = vunpack.c.0.s8 %v291_v31 }
 0x129   :  { %v2691_v35 = vpack.c.bf16 %v1795_v63, %v1787_v52  ;;  %v2458_v36 = vcvt.s32.f32 %v1434_v62  ;;  %v627_v46 = vunpack.c.1.s8 %v291_v31  ;;  %v2466_v40 = vcvt.s32.f32 %v1442_v27  ;;  %v7436_v31 = vpop.f32.mrf.mxu1 }
 0x12a   :  { %v2962_v42 = vpack.c.bf16 %v2338_v39, %v2330_v38  ;;  %v747_v58 = vunpack.c.0.s8 %v323_v16  ;;  %v755_v59 = vunpack.c.1.s8 %v323_v16  ;;  %3348 = vmatmul.bf16.vlgmr.msrb.gmra.mxu0 %v7299_v3  ;;  %v1643_v22 = vcvt.s32.f32 %v619_v55 }
 0x12b   :  { %3392 = vmatpush.bf16.msra.mxu0 %v2627_v50  ;;  %v1651_v15 = vcvt.s32.f32 %v627_v46  ;;  %v1290_v33 = vunpack.c.0.s8 %v458_v44  ;;  %v1298_v48 = vunpack.c.1.s8 %v458_v44  ;;  %v3026_v41 = vpack.c.bf16 %v2466_v40, %v2458_v36  ;;  %3361 = vmatmul.bf16.vlgmr.msrb.gmra.mxu1 %v7310_v17  ;;  %v3117_v54 = vpop.f32.mrf.mxu2 }
 0x12c   :  { %3405 = vmatpush.bf16.msra.mxu1 %v2691_v35  ;;  %3372 = vmatpush.bf16.msrb.mxu2 %v2962_v42  ;;  %v1771_v9 = vcvt.s32.f32 %v747_v58  ;;  %v1779_v60 = vcvt.s32.f32 %v755_v59  ;;  %v1418_v21 = vunpack.c.0.s8 %v490_v49  ;;  %v1426_v24 = vunpack.c.1.s8 %v490_v49  ;;  %v3130_v25 = vpop.f32.mrf.mxu3 }
 0x12d   :  { %v2619_v0 = vpack.c.bf16 %v1651_v15, %v1643_v22  ;;  %v2314_v19 = vcvt.s32.f32 %v1290_v33  ;;  %v2322_v30 = vcvt.s32.f32 %v1298_v48  ;;  %3385 = vmatpush.bf16.msrb.mxu3 %v3026_v41  ;;  %v891_v47 = vunpack.c.2.s8 %v7431_v57  ;;  %v347_v33 = vld [vmem:[#allocation2 + $0x298] sm:$0xff] }
 0x12e   :  { %v2683_v16 = vpack.c.bf16 %v1779_v60, %v1771_v9  ;;  %v2442_v12 = vcvt.s32.f32 %v1418_v21  ;;  %v899_v18 = vunpack.c.3.s8 %v7431_v57  ;;  %v2450_v23 = vcvt.s32.f32 %v1426_v24  ;;  %v3143_v42 = vpop.f32.mrf.mxu0  ;;  %v379_v9 = vld [vmem:[#allocation2 + $0x398] sm:$0xff] }
 0x12f   :  { %3393 = vmatpush.bf16.msra.mxu0 %v2619_v0  ;;  %v2954_v44 = vpack.c.bf16 %v2322_v30, %v2314_v19  ;;  %v1019_v7 = vunpack.c.2.s8 %v387_v29  ;;  %v1027_v51 = vunpack.c.3.s8 %v387_v29  ;;  %v1915_v6 = vcvt.s32.f32 %v891_v47  ;;  %v275_v19 = vld [vmem:[#allocation2 + $0x58] sm:$0xff] }
 0x130   :  { %3406 = vmatpush.bf16.msra.mxu1 %v2683_v16  ;;  %v1923_v11 = vcvt.s32.f32 %v899_v18  ;;  %v603_v49 = vunpack.c.2.s8 %v283_v37  ;;  %v611_v4 = vunpack.c.3.s8 %v283_v37  ;;  %v3018_v13 = vpack.c.bf16 %v2450_v23, %v2442_v12 }
 0x131   :  { %3373 = vmatpush.bf16.msrb.mxu2 %v2954_v44  ;;  %v2043_v56 = vcvt.s32.f32 %v1019_v7  ;;  %v2051_v14 = vcvt.s32.f32 %v1027_v51  ;;  %v731_v61 = vunpack.c.2.s8 %v315_v5  ;;  %v739_v62 = vunpack.c.3.s8 %v315_v5  ;;  %v3156_v40 = vpop.f32.mrf.mxu1 }
 0x132   :  { %v2755_v32 = vpack.c.bf16 %v1923_v11, %v1915_v6  ;;  %v1627_v52 = vcvt.s32.f32 %v603_v49  ;;  %v1635_v63 = vcvt.s32.f32 %v611_v4  ;;  %3386 = vmatpush.bf16.msrb.mxu3 %v3018_v13  ;;  %v7442_v39 = vadd.f32 %v7424_v10, %v7422_v53  ;;  %v339_v40 = vld [vmem:[#allocation2 + $0x258] sm:$0xff] }
 0x133   :  { %v2819_v50 = vpack.c.bf16 %v2051_v14, %v2043_v56  ;;  %v1755_v38 = vcvt.s32.f32 %v731_v61  ;;  %v875_v27 = vunpack.c.0.s8 %v7431_v57  ;;  %v1763_v36 = vcvt.s32.f32 %v739_v62 }
 0x134   :  { %v2611_v35 = vpack.c.bf16 %v1635_v63, %v1627_v52  ;;  %v883_v55 = vunpack.c.1.s8 %v7431_v57  ;;  %v1003_v46 = vunpack.c.0.s8 %v387_v29  ;;  %3374 = vmatmul.bf16.vlgmr.msrb.gmra.mxu2 %v7362_v34  ;;  %v1011_v59 = vunpack.c.1.s8 %v387_v29 }
 0x135   :  { %3418 = vmatpush.bf16.msra.mxu2 %v2755_v32  ;;  %v1899_v58 = vcvt.s32.f32 %v875_v27  ;;  %v587_v22 = vunpack.c.0.s8 %v283_v37  ;;  %v595_v15 = vunpack.c.1.s8 %v283_v37  ;;  %3387 = vmatmul.bf16.vlgmr.msrb.gmra.mxu3 %v7369_v43  ;;  %v2675_v53 = vpack.c.bf16 %v1763_v36, %v1755_v38  ;;  %v307_v37 = vld [vmem:[#allocation2 + $0x158] sm:$0xff]  ;;  %v7448_v27 = vpop.f32.mrf.mxu2 }
 0x136   :  { %3431 = vmatpush.bf16.msra.mxu3 %v2819_v50  ;;  %3394 = vmatpush.bf16.msra.mxu0 %v2611_v35  ;;  %v1907_v10 = vcvt.s32.f32 %v883_v55  ;;  %v2027_v48 = vcvt.s32.f32 %v1003_v46  ;;  %v715_v41 = vunpack.c.0.s8 %v315_v5  ;;  %v2035_v57 = vcvt.s32.f32 %v1011_v59  ;;  %v7450_v35 = vpop.f32.mrf.mxu3 }
 0x137   :  { %v1611_v60 = vcvt.s32.f32 %v587_v22  ;;  %v1619_v21 = vcvt.s32.f32 %v595_v15  ;;  %v723_v0 = vunpack.c.1.s8 %v315_v5  ;;  %3407 = vmatpush.bf16.msra.mxu1 %v2675_v53  ;;  %v859_v29 = vunpack.c.2.s8 %v347_v33 }
 0x138   :  { %v2747_v30 = vpack.c.bf16 %v1907_v10, %v1899_v58  ;;  %v1739_v24 = vcvt.s32.f32 %v715_v41  ;;  %v867_v16 = vunpack.c.3.s8 %v347_v33  ;;  %v2811_v12 = vpack.c.bf16 %v2035_v57, %v2027_v48 }
 0x139   :  { %v2603_v47 = vpack.c.bf16 %v1619_v21, %v1611_v60  ;;  %v1747_v18 = vcvt.s32.f32 %v723_v0  ;;  %v987_v44 = vunpack.c.2.s8 %v379_v9  ;;  %v1883_v23 = vcvt.s32.f32 %v859_v29  ;;  %v267_v0 = vld [vmem:[#allocation2 + $0x18] sm:$0xff] }
 0x13a   :  { %3419 = vmatpush.bf16.msra.mxu2 %v2747_v30  ;;  %v1891_v7 = vcvt.s32.f32 %v867_v16  ;;  %v995_v51 = vunpack.c.3.s8 %v379_v9  ;;  %v571_v54 = vunpack.c.2.s8 %v275_v19  ;;  %3432 = vmatpush.bf16.msra.mxu3 %v2811_v12  ;;  %v579_v6 = vunpack.c.3.s8 %v275_v19  ;;  %v299_v16 = vld [vmem:[#allocation2 + $0x118] sm:$0xff] }
 0x13b   :  { %3395 = vmatpush.bf16.msra.mxu0 %v2603_v47  ;;  %v2667_v25 = vpack.c.bf16 %v1747_v18, %v1739_v24  ;;  %v2011_v5 = vcvt.s32.f32 %v987_v44  ;;  %v699_v11 = vunpack.c.2.s8 %v307_v37  ;;  %v707_v56 = vunpack.c.3.s8 %v307_v37 }
 0x13c   :  { %v2739_v49 = vpack.c.bf16 %v1891_v7, %v1883_v23  ;;  %v2019_v4 = vcvt.s32.f32 %v995_v51  ;;  %v1595_v13 = vcvt.s32.f32 %v571_v54  ;;  %v1603_v14 = vcvt.s32.f32 %v579_v6 }
 0x13d   :  { %3408 = vmatpush.bf16.msra.mxu1 %v2667_v25  ;;  %v1723_v61 = vcvt.s32.f32 %v699_v11  ;;  %v843_v32 = vunpack.c.0.s8 %v347_v33  ;;  %v851_v52 = vunpack.c.1.s8 %v347_v33  ;;  %v1731_v62 = vcvt.s32.f32 %v707_v56  ;;  %v7452_v33 = vld [vmem:[#allocation2 + $0x358] sm:$0xff] }
 0x13e   :  { %3420 = vmatpush.bf16.msra.mxu2 %v2739_v49  ;;  %v2803_v63 = vpack.c.bf16 %v2019_v4, %v2011_v5  ;;  %v971_v50 = vunpack.c.0.s8 %v379_v9  ;;  %v979_v38 = vunpack.c.1.s8 %v379_v9  ;;  %v2595_v36 = vpack.c.bf16 %v1603_v14, %v1595_v13  ;;  %v3169_v5 = vpop.f32.mrf.mxu2  ;;  %v3182_v6 = vpop.f32.mrf.mxu3 }
 0x13f   :  { %v1867_v55 = vcvt.s32.f32 %v843_v32  ;;  %v1875_v46 = vcvt.s32.f32 %v851_v52  ;;  %v555_v42 = vunpack.c.0.s8 %v275_v19  ;;  %v2659_v58 = vpack.c.bf16 %v1731_v62, %v1723_v61  ;;  %v7460_v32 = vpop.f32.mrf.mxu0  ;;  %v7462_v52 = vpop.f32.mrf.mxu1 }
 0x140   :  { %3433 = vmatpush.bf16.msra.mxu3 %v2803_v63  ;;  %v1995_v59 = vcvt.s32.f32 %v971_v50  ;;  %v2003_v22 = vcvt.s32.f32 %v979_v38  ;;  %v563_v15 = vunpack.c.1.s8 %v275_v19  ;;  %3396 = vmatpush.bf16.msra.mxu0 %v2595_v36  ;;  %v683_v48 = vunpack.c.0.s8 %v307_v37  ;;  %v419_v36 = vld [vmem:[#allocation2 + $0x4d8] sm:$0xff] }
 0x141   :  { %v2731_v53 = vpack.c.bf16 %v1875_v46, %v1867_v55  ;;  %v1579_v10 = vcvt.s32.f32 %v555_v42  ;;  %v691_v41 = vunpack.c.1.s8 %v307_v37  ;;  %3409 = vmatpush.bf16.msra.mxu1 %v2659_v58  ;;  %v3116_v60 = vadd.f32 %v7426_v28, %v7442_v39 }
 0x142   :  { %v2795_v9 = vpack.c.bf16 %v2003_v22, %v1995_v59  ;;  %v1587_v57 = vcvt.s32.f32 %v563_v15  ;;  %v827_v21 = vunpack.c.2.s8 %v339_v40  ;;  %v1707_v30 = vcvt.s32.f32 %v683_v48 }
 0x143   :  { %3421 = vmatpush.bf16.msra.mxu2 %v2731_v53  ;;  %v1715_v24 = vcvt.s32.f32 %v691_v41  ;;  %v835_v29 = vunpack.c.3.s8 %v339_v40  ;;  %v955_v19 = vunpack.c.2.s8 %v7452_v33  ;;  %v3129_v47 = vadd.f32 %v7428_v26, %v3116_v60  ;;  %v451_v53 = vld [vmem:[#allocation2 + $0x5d8] sm:$0xff] }
 0x144   :  { %3434 = vmatpush.bf16.msra.mxu3 %v2795_v9  ;;  %v2587_v12 = vpack.c.bf16 %v1587_v57, %v1579_v10  ;;  %v1851_v37 = vcvt.s32.f32 %v827_v21  ;;  %v963_v18 = vunpack.c.3.s8 %v7452_v33  ;;  %v539_v28 = vunpack.c.2.s8 %v267_v0  ;;  %v331_v41 = vld [vmem:[#allocation2 + $0x218] sm:$0xff] }
 0x145   :  { %v2651_v44 = vpack.c.bf16 %v1715_v24, %v1707_v30  ;;  %v1859_v23 = vcvt.s32.f32 %v835_v29  ;;  %v1979_v7 = vcvt.s32.f32 %v955_v19  ;;  %v547_v51 = vunpack.c.3.s8 %v267_v0  ;;  %v363_v30 = vld [vmem:[#allocation2 + $0x318] sm:$0xff] }
 0x146   :  { %3397 = vmatpush.bf16.msra.mxu0 %v2587_v12  ;;  %v1987_v39 = vcvt.s32.f32 %v963_v18  ;;  %v667_v54 = vunpack.c.2.s8 %v299_v16  ;;  %v675_v25 = vunpack.c.3.s8 %v299_v16  ;;  %v1563_v49 = vcvt.s32.f32 %v539_v28 }
 0x147   :  { %3410 = vmatpush.bf16.msra.mxu1 %v2651_v44  ;;  %v2723_v11 = vpack.c.bf16 %v1859_v23, %v1851_v37  ;;  %v3142_v4 = vadd.f32 %v7434_v8, %v3129_v47  ;;  %v811_v26 = vunpack.c.0.s8 %v339_v40  ;;  %v1571_v56 = vcvt.s32.f32 %v547_v51  ;;  %v3208_v28 = vpop.f32.mrf.mxu1 }
 0x148   :  { %v2787_v13 = vpack.c.bf16 %v1987_v39, %v1979_v7  ;;  %v1691_v14 = vcvt.s32.f32 %v667_v54  ;;  %v1699_v61 = vcvt.s32.f32 %v675_v25  ;;  %v819_v62 = vunpack.c.1.s8 %v339_v40  ;;  %v3195_v7 = vpop.f32.mrf.mxu0 }
 0x149   :  { %3422 = vmatpush.bf16.msra.mxu2 %v2723_v11  ;;  %v7465_v63 = vadd.f32 %v7436_v31, %v3142_v4  ;;  %v1835_v50 = vcvt.s32.f32 %v811_v26  ;;  %v939_v38 = vunpack.c.0.s8 %v7452_v33  ;;  %v2579_v8 = vpack.c.bf16 %v1571_v56, %v1563_v49 }
 0x14a   :  { %3435 = vmatpush.bf16.msra.mxu3 %v2787_v13  ;;  %v2643_v55 = vpack.c.bf16 %v1699_v61, %v1691_v14  ;;  %v947_v46 = vunpack.c.1.s8 %v7452_v33  ;;  %v523_v42 = vunpack.c.0.s8 %v267_v0  ;;  %v1843_v58 = vcvt.s32.f32 %v819_v62 }
 0x14b   :  { %v1963_v59 = vcvt.s32.f32 %v939_v38  ;;  %v531_v22 = vunpack.c.1.s8 %v267_v0  ;;  %v651_v15 = vunpack.c.0.s8 %v299_v16  ;;  %3398 = vmatpush.bf16.msra.mxu0 %v2579_v8  ;;  %v659_v40 = vunpack.c.1.s8 %v299_v16  ;;  %v7470_v38 = vld [vmem:[#allocation2 + $0x6d8] sm:$0xff] }
 0x14c   :  { %3411 = vmatpush.bf16.msra.mxu1 %v2643_v55  ;;  %v1971_v31 = vcvt.s32.f32 %v947_v46  ;;  %v1547_v10 = vcvt.s32.f32 %v523_v42  ;;  %v1147_v48 = vunpack.c.2.s8 %v419_v36  ;;  %v2715_v9 = vpack.c.bf16 %v1843_v58, %v1835_v50  ;;  %v7472_v58 = vld [vmem:[#allocation2 + $0x7d8] sm:$0xff] }
 0x14d   :  { %v1555_v57 = vcvt.s32.f32 %v531_v22  ;;  %v1675_v60 = vcvt.s32.f32 %v651_v15  ;;  %v1155_v21 = vunpack.c.3.s8 %v419_v36  ;;  %v1683_v33 = vcvt.s32.f32 %v659_v40 }
 0x14e   :  { %v2779_v24 = vpack.c.bf16 %v1971_v31, %v1963_v59  ;;  %v2171_v29 = vcvt.s32.f32 %v1147_v48  ;;  %v1275_v19 = vunpack.c.2.s8 %v451_v53  ;;  %3423 = vmatpush.bf16.msra.mxu2 %v2715_v9  ;;  %v1283_v47 = vunpack.c.3.s8 %v451_v53  ;;  %v7480_v48 = vld [vmem:[%s8706_s5 + $0x18] sm:$0xff] }
 0x14f   :  { %v2571_v0 = vpack.c.bf16 %v1555_v57, %v1547_v10  ;;  %v2179_v12 = vcvt.s32.f32 %v1155_v21  ;;  %v795_v37 = vunpack.c.2.s8 %v331_v41  ;;  %v2635_v18 = vpack.c.bf16 %v1683_v33, %v1675_v60  ;;  %v411_v21 = vld [vmem:[#allocation2 + $0x498] sm:$0xff] }
 0x150   :  { %3436 = vmatpush.bf16.msra.mxu3 %v2779_v24  ;;  %v2299_v44 = vcvt.s32.f32 %v1275_v19  ;;  %v803_v16 = vunpack.c.3.s8 %v331_v41  ;;  %v923_v23 = vunpack.c.2.s8 %v363_v30  ;;  %v2307_v51 = vcvt.s32.f32 %v1283_v47  ;;  %v7486_v19 = vld [vmem:[#allocation2 + $0x598] sm:$0xff] }
 0x151   :  { %3399 = vmatpush.bf16.msra.mxu0 %v2571_v0  ;;  %v2883_v39 = vpack.c.bf16 %v2179_v12, %v2171_v29  ;;  %v1819_v54 = vcvt.s32.f32 %v795_v37  ;;  %v931_v25 = vunpack.c.3.s8 %v363_v30  ;;  %3412 = vmatpush.bf16.msra.mxu1 %v2635_v18  ;;  %v1131_v11 = vunpack.c.0.s8 %v419_v36 }
 0x152   :  { %v1827_v5 = vcvt.s32.f32 %v803_v16  ;;  %v1947_v6 = vcvt.s32.f32 %v923_v23  ;;  %v1139_v49 = vunpack.c.1.s8 %v419_v36  ;;  %v2947_v4 = vpack.c.bf16 %v2307_v51, %v2299_v44 }
 0x153   :  { %v1955_v26 = vcvt.s32.f32 %v931_v25  ;;  %v1259_v13 = vunpack.c.0.s8 %v451_v53  ;;  %v1267_v56 = vunpack.c.1.s8 %v451_v53  ;;  %v2155_v61 = vcvt.s32.f32 %v1131_v11  ;;  %v7495_v25 = vpop.f32.mrf.mxu2 }
 0x154   :  { %v2707_v14 = vpack.c.bf16 %v1827_v5, %v1819_v54  ;;  %3400 = vmatmul.bf16.vlgmr.msra.gmra.mxu0 %v7161_v2  ;;  %v2163_v62 = vcvt.s32.f32 %v1139_v49  ;;  %v779_v50 = vunpack.c.0.s8 %v331_v41  ;;  %v787_v42 = vunpack.c.1.s8 %v331_v41  ;;  %3413 = vmatmul.bf16.vlgmr.msra.gmra.mxu1 %v7170_v20  ;;  %v7497_v5 = vpop.f32.mrf.mxu3 }
 0x155   :  { %3444 = vmatpush.bf16.msrb.mxu0 %v2883_v39  ;;  %3457 = vmatpush.bf16.msrb.mxu1 %v2947_v4  ;;  %v2771_v8 = vpack.c.bf16 %v1955_v26, %v1947_v6  ;;  %v2283_v55 = vcvt.s32.f32 %v1259_v13  ;;  %v2291_v46 = vcvt.s32.f32 %v1267_v56  ;;  %v907_v22 = vunpack.c.0.s8 %v363_v30 }
 0x156   :  { %3424 = vmatpush.bf16.msra.mxu2 %v2707_v14  ;;  %v2875_v36 = vpack.c.bf16 %v2163_v62, %v2155_v61  ;;  %v1803_v59 = vcvt.s32.f32 %v779_v50  ;;  %v915_v15 = vunpack.c.1.s8 %v363_v30  ;;  %v1811_v31 = vcvt.s32.f32 %v787_v42 }
 0x157   :  { %3437 = vmatpush.bf16.msra.mxu3 %v2771_v8  ;;  %v2939_v53 = vpack.c.bf16 %v2291_v46, %v2283_v55  ;;  %v1403_v10 = vunpack.c.2.s8 %v7470_v38  ;;  %v1411_v40 = vunpack.c.3.s8 %v7470_v38  ;;  %v1931_v41 = vcvt.s32.f32 %v907_v22 }
 0x158   :  { %v1939_v9 = vcvt.s32.f32 %v915_v15  ;;  %v1531_v57 = vunpack.c.2.s8 %v7472_v58  ;;  %v1539_v60 = vunpack.c.3.s8 %v7472_v58  ;;  %v2699_v30 = vpack.c.bf16 %v1811_v31, %v1803_v59 }
 0x159   :  { %3445 = vmatpush.bf16.msrb.mxu0 %v2875_v36  ;;  %3458 = vmatpush.bf16.msrb.mxu1 %v2939_v53  ;;  %v2427_v24 = vcvt.s32.f32 %v1403_v10  ;;  %v2435_v33 = vcvt.s32.f32 %v1411_v40  ;;  %v3168_v29 = vadd.f32 %v7448_v27, %v7465_v63  ;;  %v3913_v37 = vperm.slane %v7480_v48, 0 }
 0x15a   :  { %v2763_v0 = vpack.c.bf16 %v1939_v9, %v1931_v41  ;;  %v2555_v12 = vcvt.s32.f32 %v1531_v57  ;;  %v2563_v47 = vcvt.s32.f32 %v1539_v60  ;;  %3425 = vmatpush.bf16.msra.mxu2 %v2699_v30  ;;  %v1115_v16 = vunpack.c.2.s8 %v411_v21 }
 0x15b   :  { %v3011_v18 = vpack.c.bf16 %v2435_v33, %v2427_v24  ;;  %v3181_v44 = vadd.f32 %v7450_v35, %v3168_v29  ;;  %v6930_v7 = vmov 8.0   ;;  %v1123_v28 = vunpack.c.3.s8 %v411_v21  ;;  %v507_v24 = vld [vmem:[#allocation2 + $0x798] sm:$0xff]  ;;  %v3221_v33 = vpop.f32.mrf.mxu2 }
 0x15c   :  { %3438 = vmatpush.bf16.msra.mxu3 %v2763_v0  ;;  %v3075_v23 = vpack.c.bf16 %v2563_v47, %v2555_v12  ;;  %6813 = vrcp.f32 %v6930_v7  ;;  %v1243_v39 = vunpack.c.2.s8 %v7486_v19  ;;  %v2139_v63 = vcvt.s32.f32 %v1115_v16 }
 0x15d   :  { %v7491_v27 = vmul.f32 %v3913_v37, %v3181_v44  ;;  %v1251_v51 = vunpack.c.3.s8 %v7486_v19  ;;  %v1387_v54 = vunpack.c.0.s8 %v7470_v38  ;;  %3426 = vmatmul.bf16.vlgmr.msra.gmra.mxu2 %v7215_v45  ;;  %v2147_v35 = vcvt.s32.f32 %v1123_v28 }
 0x15e   :  { %3470 = vmatpush.bf16.msrb.mxu2 %v3011_v18  ;;  %v2267_v6 = vcvt.s32.f32 %v1243_v39  ;;  %v1395_v11 = vunpack.c.1.s8 %v7470_v38  ;;  %v1515_v49 = vunpack.c.0.s8 %v7472_v58  ;;  %v1523_v62 = vunpack.c.1.s8 %v7472_v58  ;;  %v7512_v58 = vld [vmem:[#allocation2 + $0x698] sm:$0xff] }
 0x15f   :  { %v3937_v4 = vrot.slane %v7491_v27, 4  ;;  %v4000_v26 = vmul.f32 %v7491_v27, %v7491_v27  ;;  %3439 = vmatmul.bf16.vlgmr.msra.gmra.mxu3 %v7225_v1  ;;  %v2275_v13 = vcvt.s32.f32 %v1251_v51  ;;  %v2411_v56 = vcvt.s32.f32 %v1387_v54  ;;  %v435_v39 = vld [vmem:[#allocation2 + $0x558] sm:$0xff] }
 0x160   :  { %3483 = vmatpush.bf16.msrb.mxu3 %v3075_v23  ;;  %v2867_v14 = vpack.c.bf16 %v2147_v35, %v2139_v63  ;;  %v2419_v61 = vcvt.s32.f32 %v1395_v11  ;;  %v2539_v50 = vcvt.s32.f32 %v1515_v49  ;;  %v7510_v46 = vadd.f32 %v7462_v52, %v7460_v32  ;;  %v403_v23 = vld [vmem:[#allocation2 + $0x458] sm:$0xff] }
 0x161   :  { %v3938_v8 = vadd.f32 %v3937_v4, %v7491_v27  ;;  %v4008_v55 = vrot.slane %v4000_v26, 4  ;;  %v2931_v38 = vpack.c.bf16 %v2275_v13, %v2267_v6  ;;  %v2547_v59 = vcvt.s32.f32 %v1523_v62 }
 0x162   :  { %v6814_v42 = vpop.eup %6813  ;;  %3446 = vmatpush.bf16.msrb.mxu0 %v2867_v14  ;;  %v3003_v36 = vpack.c.bf16 %v2419_v61, %v2411_v56  ;;  %v1099_v22 = vunpack.c.0.s8 %v411_v21  ;;  %v1107_v15 = vunpack.c.1.s8 %v411_v21  ;;  %v1227_v57 = vunpack.c.0.s8 %v7486_v19  ;;  %v3234_v21 = vpop.f32.mrf.mxu3 }
 0x163   :  { %v3939_v53 = vrot.slane %v3938_v8, 2  ;;  %v3986_v31 = vmul.f32 8.0, %v6814_v42  ;;  %v4009_v10 = vadd.f32 %v4008_v55, %v4000_v26  ;;  %3459 = vmatpush.bf16.msrb.mxu1 %v2931_v38  ;;  %v3067_v40 = vpack.c.bf16 %v2547_v59, %v2539_v50 }
 0x164   :  { %3471 = vmatpush.bf16.msrb.mxu2 %v3003_v36  ;;  %v2123_v41 = vcvt.s32.f32 %v1099_v22  ;;  %v2131_v9 = vcvt.s32.f32 %v1107_v15  ;;  %v1235_v30 = vunpack.c.1.s8 %v7486_v19  ;;  %v2251_v0 = vcvt.s32.f32 %v1227_v57 }
 0x165   :  { %v3940_v32 = vadd.f32 %v3939_v53, %v3938_v8  ;;  %v3987_v52 = vsub.f32 1.0, %v3986_v31  ;;  %v4010_v60 = vrot.slane %v4009_v10, 2  ;;  %3484 = vmatpush.bf16.msrb.mxu3 %v3067_v40  ;;  %v1371_v12 = vunpack.c.2.s8 %v7512_v58 }
 0x166   :  { %v2859_v29 = vpack.c.bf16 %v2131_v9, %v2123_v41  ;;  %v1379_v47 = vunpack.c.3.s8 %v7512_v58  ;;  %v2259_v16 = vcvt.s32.f32 %v1235_v30  ;;  %vm3990_vm1 = vweird.f32 %v6814_v42 }
 0x167   :  { %v3941_v37 = vrot.slane %v3940_v32, 1  ;;  %v3988_v18 = vmul.f32 %v6814_v42, %v3987_v52  ;;  %v4011_v44 = vadd.f32 %v4010_v60, %v4009_v10  ;;  %v2395_v7 = vcvt.s32.f32 %v1371_v12 }
 0x168   :  { %3447 = vmatpush.bf16.msrb.mxu0 %v2859_v29  ;;  %v2403_v28 = vcvt.s32.f32 %v1379_v47  ;;  %v1499_v19 = vunpack.c.2.s8 %v507_v24  ;;  %v2923_v35 = vpack.c.bf16 %v2259_v16, %v2251_v0  ;;  %v1507_v11 = vunpack.c.3.s8 %v507_v24  ;;  %v499_v47 = vld [vmem:[#allocation2 + $0x758] sm:$0xff] }
 0x169   :  { %v3942_v63 = vadd.f32 %v3941_v37, %v3940_v32  ;;  %v3989_v51 = vadd.f32 %v6814_v42, %v3988_v18  ;;  %v4012_v54 = vrot.slane %v4011_v44, 1  ;;  %v1083_v4 = vunpack.c.2.s8 %v403_v23  ;;  %v467_v32 = vld [vmem:[#allocation2 + $0x658] sm:$0xff] }
 0x16a   :  { %v2995_v6 = vpack.c.bf16 %v2403_v28, %v2395_v7  ;;  %v2523_v49 = vcvt.s32.f32 %v1499_v19  ;;  %3460 = vmatpush.bf16.msrb.mxu1 %v2923_v35  ;;  %v1091_v56 = vunpack.c.3.s8 %v403_v23  ;;  %v1211_v14 = vunpack.c.2.s8 %v435_v39  ;;  %v395_v28 = vld [vmem:[#allocation2 + $0x418] sm:$0xff] }
 0x16b   :  { %v7518_v26 = vsel %vm3990_vm1, %v6814_v42, %v3989_v51  ;;  %v4013_v13 = vadd.f32 %v4012_v54, %v4011_v44  ;;  %v2531_v62 = vcvt.s32.f32 %v1507_v11  ;;  %v2107_v50 = vcvt.s32.f32 %v1083_v4  ;;  %v427_v54 = vld [vmem:[#allocation2 + $0x518] sm:$0xff] }
 0x16c   :  { %v7521_v61 = vmul.f32 %v7518_v26, %v3942_v63  ;;  %3472 = vmatpush.bf16.msrb.mxu2 %v2995_v6  ;;  %v1219_v8 = vunpack.c.3.s8 %v435_v39  ;;  %v2115_v55 = vcvt.s32.f32 %v1091_v56  ;;  %v2235_v38 = vcvt.s32.f32 %v1211_v14  ;;  %v7530_v56 = vpop.f32.mrf.mxu0  ;;  %v7532_v14 = vpop.f32.mrf.mxu1 }
 0x16d   :  { %v1355_v36 = vunpack.c.0.s8 %v7512_v58  ;;  %v4056_v59 = vmul.f32 %v4013_v13, %v7518_v26  ;;  %v3059_v22 = vpack.c.bf16 %v2531_v62, %v2523_v49  ;;  %v1363_v31 = vunpack.c.1.s8 %v7512_v58 }
 0x16e   :  { %v4064_v42 = vmul.f32 %v7521_v61, %v7521_v61  ;;  %v2243_v15 = vcvt.s32.f32 %v1219_v8  ;;  %v2851_v53 = vpack.c.bf16 %v2115_v55, %v2107_v50  ;;  %v1483_v40 = vunpack.c.0.s8 %v507_v24 }
 0x16f   :  { %v2379_v10 = vcvt.s32.f32 %v1355_v36  ;;  %3485 = vmatpush.bf16.msrb.mxu3 %v3059_v22  ;;  %v1491_v9 = vunpack.c.1.s8 %v507_v24  ;;  %v1067_v57 = vunpack.c.0.s8 %v403_v23  ;;  %v2387_v52 = vcvt.s32.f32 %v1363_v31 }
 0x170   :  { %v2915_v41 = vpack.c.bf16 %v2243_v15, %v2235_v38  ;;  %3448 = vmatpush.bf16.msrb.mxu0 %v2851_v53  ;;  %v2507_v60 = vcvt.s32.f32 %v1483_v40  ;;  %v1075_v30 = vunpack.c.1.s8 %v403_v23  ;;  %v1195_v33 = vunpack.c.0.s8 %v435_v39 }
 0x171   :  { %v4072_v21 = vsub.f32 %v4056_v59, %v4064_v42  ;;  %v2515_v29 = vcvt.s32.f32 %v1491_v9  ;;  %v2091_v0 = vcvt.s32.f32 %v1067_v57  ;;  %v1203_v12 = vunpack.c.1.s8 %v435_v39 }
 0x172   :  { %3461 = vmatpush.bf16.msrb.mxu1 %v2915_v41  ;;  %v2987_v37 = vpack.c.bf16 %v2387_v52, %v2379_v10  ;;  %v2099_v58 = vcvt.s32.f32 %v1075_v30  ;;  %v2219_v18 = vcvt.s32.f32 %v1195_v33  ;;  %v1339_v44 = vunpack.c.2.s8 %v467_v32 }
 0x173   :  { %v3051_v16 = vpack.c.bf16 %v2515_v29, %v2507_v60  ;;  %v2227_v7 = vcvt.s32.f32 %v1203_v12  ;;  %v1347_v24 = vunpack.c.3.s8 %v467_v32  ;;  %v1467_v51 = vunpack.c.2.s8 %v499_v47  ;;  %v7537_v60 = vld [vmem:[#allocation2 + $0xe0] sm:$0xff] }
 0x174   :  { %3473 = vmatpush.bf16.msrb.mxu2 %v2987_v37  ;;  %v2843_v19 = vpack.c.bf16 %v2099_v58, %v2091_v0  ;;  %v2363_v63 = vcvt.s32.f32 %v1339_v44  ;;  %v1475_v23 = vunpack.c.3.s8 %v499_v47  ;;  %v4080_v35 = vmax.f32 %v4072_v21, 0.0  ;;  %v324_v21 = vld [vmem:[#allocation2 + $0x1e0] sm:$0xff]  ;;  %v3247_v44 = vpop.f32.mrf.mxu0 }
 0x175   :  { %3486 = vmatpush.bf16.msrb.mxu3 %v3051_v16  ;;  %v2907_v6 = vpack.c.bf16 %v2227_v7, %v2219_v18  ;;  %v2371_v11 = vcvt.s32.f32 %v1347_v24  ;;  %v2491_v39 = vcvt.s32.f32 %v1467_v51  ;;  %v3220_v4 = vadd.f32 %v7495_v25, %v7510_v46  ;;  %v7542_v18 = vld [vmem:[#allocation2 + $0x618] sm:$0xff]  ;;  %v3260_v16 = vpop.f32.mrf.mxu1 }
 0x176   :  { %3449 = vmatpush.bf16.msrb.mxu0 %v2843_v19  ;;  %v2499_v49 = vcvt.s32.f32 %v1475_v23  ;;  %v1051_v13 = vunpack.c.2.s8 %v395_v28  ;;  %v1059_v50 = vunpack.c.3.s8 %v395_v28  ;;  %v1179_v8 = vunpack.c.2.s8 %v427_v54 }
 0x177   :  { %3462 = vmatpush.bf16.msrb.mxu1 %v2907_v6  ;;  %v2979_v62 = vpack.c.bf16 %v2371_v11, %v2363_v63  ;;  %v1187_v55 = vunpack.c.3.s8 %v427_v54  ;;  %v7535_v36 = vadd.f32 %v7497_v5, %v3220_v4  ;;  %v1323_v42 = vunpack.c.0.s8 %v467_v32  ;;  %v491_v63 = vld [vmem:[#allocation2 + $0x718] sm:$0xff] }
 0x178   :  { %v3043_v38 = vpack.c.bf16 %v2499_v49, %v2491_v39  ;;  %v2075_v59 = vcvt.s32.f32 %v1051_v13  ;;  %v2083_v22 = vcvt.s32.f32 %v1059_v50  ;;  %v2203_v15 = vcvt.s32.f32 %v1179_v8 }
 0x179   :  { %3474 = vmatpush.bf16.msrb.mxu2 %v2979_v62  ;;  %v2211_v25 = vcvt.s32.f32 %v1187_v55  ;;  %v1331_v46 = vunpack.c.1.s8 %v467_v32  ;;  %v2347_v53 = vcvt.s32.f32 %v1323_v42  ;;  %v1451_v31 = vunpack.c.0.s8 %v499_v47 }
 0x17a   :  { %3487 = vmatpush.bf16.msrb.mxu3 %v3043_v38  ;;  %v1459_v10 = vunpack.c.1.s8 %v499_v47  ;;  %v1035_v40 = vunpack.c.0.s8 %v395_v28  ;;  %v2835_v41 = vpack.c.bf16 %v2083_v22, %v2075_v59  ;;  %v1043_v52 = vunpack.c.1.s8 %v395_v28  ;;  %v7551_v38 = vld [vmem:[%s8706_s5 + $0x8] sm:$0xff] }
 0x17b   :  { %v2899_v9 = vpack.c.bf16 %v2211_v25, %v2203_v15  ;;  %v2355_v57 = vcvt.s32.f32 %v1331_v46  ;;  %v7539_v5 = vadd.f32 1e-05, %v4080_v35  ;;  %v2475_v30 = vcvt.s32.f32 %v1451_v31 }
 0x17c   :  { %v2483_v33 = vcvt.s32.f32 %v1459_v10  ;;  %3450 = vmatpush.bf16.msrb.mxu0 %v2835_v41  ;;  %v2059_v32 = vcvt.s32.f32 %v1035_v40  ;;  %v2067_v0 = vcvt.s32.f32 %v1043_v52  ;;  %v1163_v12 = vunpack.c.0.s8 %v427_v54  ;;  %v7561_v52 = vpop.f32.mrf.mxu3 }
 0x17d   :  { %3463 = vmatpush.bf16.msrb.mxu1 %v2899_v9  ;;  %v2971_v29 = vpack.c.bf16 %v2355_v57, %v2347_v53  ;;  %v1171_v47 = vunpack.c.1.s8 %v427_v54  ;;  %v636_v58 = vunpack.c.2.s8 %v7537_v60  ;;  %v644_v28 = vunpack.c.3.s8 %v7537_v60  ;;  %v356_v9 = vld [vmem:[#allocation2 + $0x2e0] sm:$0xff]  ;;  %v7559_v57 = vpop.f32.mrf.mxu2 }
 0x17e   :  { %v3035_v37 = vpack.c.bf16 %v2483_v33, %v2475_v30  ;;  %v2827_v7 = vpack.c.bf16 %v2067_v0, %v2059_v32  ;;  %v2187_v24 = vcvt.s32.f32 %v1163_v12  ;;  %v764_v19 = vunpack.c.2.s8 %v324_v21 }
 0x17f   :  { %3475 = vmatpush.bf16.msrb.mxu2 %v2971_v29  ;;  %6815 = vrsqrt.f32 %v7539_v5  ;;  %v2195_v51 = vcvt.s32.f32 %v1171_v47  ;;  %v1660_v23 = vcvt.s32.f32 %v636_v58  ;;  %v772_v35 = vunpack.c.3.s8 %v324_v21 }
 0x180   :  { %3488 = vmatpush.bf16.msrb.mxu3 %v3035_v37  ;;  %3451 = vmatpush.bf16.msrb.mxu0 %v2827_v7  ;;  %v1668_v54 = vcvt.s32.f32 %v644_v28  ;;  %v1788_v6 = vcvt.s32.f32 %v764_v19  ;;  %v1307_v11 = vunpack.c.2.s8 %v7542_v18  ;;  %v1315_v39 = vunpack.c.3.s8 %v7542_v18  ;;  %v388_v37 = vld [vmem:[#allocation2 + $0x3e0] sm:$0xff] }
 0x181   :  { %v2891_v49 = vpack.c.bf16 %v2195_v51, %v2187_v24  ;;  %v1796_v4 = vcvt.s32.f32 %v772_v35  ;;  %v1435_v13 = vunpack.c.2.s8 %v491_v63  ;;  %v1443_v55 = vunpack.c.3.s8 %v491_v63  ;;  %v284_v7 = vld [vmem:[#allocation2 + $0xa0] sm:$0xff] }
 0x182   :  { %v2628_v62 = vpack.c.bf16 %v1668_v54, %v1660_v23  ;;  %v2331_v50 = vcvt.s32.f32 %v1307_v11  ;;  %v2339_v8 = vcvt.s32.f32 %v1315_v39  ;;  %v620_v22 = vunpack.c.0.s8 %v7537_v60  ;;  %v7570_v23 = vld [vmem:[#allocation2 + $0x1a0] sm:$0xff] }
 0x183   :  { %3464 = vmatpush.bf16.msrb.mxu1 %v2891_v49  ;;  %v2692_v59 = vpack.c.bf16 %v1796_v4, %v1788_v6  ;;  %v2459_v42 = vcvt.s32.f32 %v1435_v13  ;;  %3452 = vmatmul.bf16.vlgmr.msrb.gmra.mxu0 %v7299_v3  ;;  %v2467_v25 = vcvt.s32.f32 %v1443_v55  ;;  %v628_v46 = vunpack.c.1.s8 %v7537_v60 }
 0x184   :  { %3496 = vmatpush.bf16.msra.mxu0 %v2628_v62  ;;  %v2963_v15 = vpack.c.bf16 %v2339_v8, %v2331_v50  ;;  %v748_v53 = vunpack.c.0.s8 %v324_v21  ;;  %v1644_v10 = vcvt.s32.f32 %v620_v22  ;;  %v756_v40 = vunpack.c.1.s8 %v324_v21 }
 0x185   :  { %v7556_v31 = vpop.eup %6815  ;;  %v1291_v41 = vunpack.c.0.s8 %v7542_v18  ;;  %v4193_v30 = vperm.slane %v7551_v38, 0  ;;  %v3027_v33 = vpack.c.bf16 %v2467_v25, %v2459_v42  ;;  %v1652_v60 = vcvt.s32.f32 %v628_v46  ;;  %v3273_v22 = vpop.f32.mrf.mxu2 }
 0x186   :  { %3476 = vmatpush.bf16.msrb.mxu2 %v2963_v15  ;;  %3465 = vmatmul.bf16.vlgmr.msrb.gmra.mxu1 %v7310_v17  ;;  %v1772_v29 = vcvt.s32.f32 %v748_v53  ;;  %v1780_v32 = vcvt.s32.f32 %v756_v40  ;;  %v1299_v0 = vunpack.c.1.s8 %v7542_v18  ;;  %v1419_v21 = vunpack.c.0.s8 %v491_v63  ;;  %v3286_v15 = vpop.f32.mrf.mxu3 }
 0x187   :  { %3509 = vmatpush.bf16.msra.mxu1 %v2692_v59  ;;  %v2315_v12 = vcvt.s32.f32 %v1291_v41  ;;  %v7568_v47 = vmul.f32 %v7556_v31, %v7539_v5  ;;  %3489 = vmatpush.bf16.msrb.mxu3 %v3027_v33  ;;  %v2620_v58 = vpack.c.bf16 %v1652_v60, %v1644_v10  ;;  %v1427_v44 = vunpack.c.1.s8 %v491_v63 }
 0x188   :  { %v892_v16 = vunpack.c.2.s8 %v356_v9  ;;  %v2684_v24 = vpack.c.bf16 %v1780_v32, %v1772_v29  ;;  %v2323_v28 = vcvt.s32.f32 %v1299_v0  ;;  %v2443_v19 = vcvt.s32.f32 %v1419_v21  ;;  %v348_v21 = vld [vmem:[#allocation2 + $0x2a0] sm:$0xff] }
 0x189   :  { %v900_v51 = vunpack.c.3.s8 %v356_v9  ;;  %3497 = vmatpush.bf16.msra.mxu0 %v2620_v58  ;;  %v2451_v18 = vcvt.s32.f32 %v1427_v44  ;;  %v1020_v54 = vunpack.c.2.s8 %v388_v37  ;;  %v1028_v6 = vunpack.c.3.s8 %v388_v37 }
 0x18a   :  { %v1916_v35 = vcvt.s32.f32 %v892_v16  ;;  %v2955_v11 = vpack.c.bf16 %v2323_v28, %v2315_v12  ;;  %v604_v49 = vunpack.c.2.s8 %v284_v7  ;;  %v612_v4 = vunpack.c.3.s8 %v284_v7 }
 0x18b   :  { %3510 = vmatpush.bf16.msra.mxu1 %v2684_v24  ;;  %v1924_v39 = vcvt.s32.f32 %v900_v51  ;;  %v3019_v13 = vpack.c.bf16 %v2451_v18, %v2443_v19  ;;  %v2044_v63 = vcvt.s32.f32 %v1020_v54  ;;  %v2052_v62 = vcvt.s32.f32 %v1028_v6  ;;  %v380_v24 = vld [vmem:[#allocation2 + $0x3a0] sm:$0xff] }
 0x18c   :  { %v732_v50 = vunpack.c.2.s8 %v7570_v23  ;;  %3477 = vmatpush.bf16.msrb.mxu2 %v2955_v11  ;;  %v1628_v55 = vcvt.s32.f32 %v604_v49  ;;  %v1636_v59 = vcvt.s32.f32 %v612_v4  ;;  %v740_v42 = vunpack.c.3.s8 %v7570_v23  ;;  %v276_v18 = vld [vmem:[#allocation2 + $0x60] sm:$0xff] }
 0x18d   :  { %v2756_v8 = vpack.c.bf16 %v1924_v39, %v1916_v35  ;;  %3490 = vmatpush.bf16.msrb.mxu3 %v3019_v13  ;;  %v2820_v25 = vpack.c.bf16 %v2052_v62, %v2044_v63  ;;  %v876_v53 = vunpack.c.0.s8 %v356_v9  ;;  %v884_v10 = vunpack.c.1.s8 %v356_v9  ;;  %v308_v49 = vld [vmem:[#allocation2 + $0x160] sm:$0xff] }
 0x18e   :  { %v1756_v46 = vcvt.s32.f32 %v732_v50  ;;  %v2612_v40 = vpack.c.bf16 %v1636_v59, %v1628_v55  ;;  %v1764_v41 = vcvt.s32.f32 %v740_v42  ;;  %v1004_v33 = vunpack.c.0.s8 %v388_v37 }
 0x18f   :  { %v1012_v60 = vunpack.c.1.s8 %v388_v37  ;;  %3478 = vmatmul.bf16.vlgmr.msrb.gmra.mxu2 %v7362_v34  ;;  %v1900_v29 = vcvt.s32.f32 %v876_v53  ;;  %v1908_v32 = vcvt.s32.f32 %v884_v10  ;;  %v3246_v0 = vadd.f32 %v7530_v56, %v7535_v36 }
 0x190   :  { %3522 = vmatpush.bf16.msra.mxu2 %v2756_v8  ;;  %v588_v12 = vunpack.c.0.s8 %v284_v7  ;;  %3491 = vmatmul.bf16.vlgmr.msrb.gmra.mxu3 %v7369_v43  ;;  %v2676_v58 = vpack.c.bf16 %v1764_v41, %v1756_v46  ;;  %v2028_v9 = vcvt.s32.f32 %v1004_v33  ;;  %v596_v16 = vunpack.c.1.s8 %v284_v7 }
 0x191   :  { %3535 = vmatpush.bf16.msra.mxu3 %v2820_v25  ;;  %3498 = vmatpush.bf16.msra.mxu0 %v2612_v40  ;;  %v2036_v44 = vcvt.s32.f32 %v1012_v60  ;;  %v2748_v28 = vpack.c.bf16 %v1908_v32, %v1900_v29  ;;  %v7579_v37 = vadd.f32 %v7532_v14, %v3246_v0  ;;  %v716_v51 = vunpack.c.0.s8 %v7570_v23 }
 0x192   :  { %v1612_v19 = vcvt.s32.f32 %v588_v12  ;;  %3511 = vmatpush.bf16.msra.mxu1 %v2676_v58  ;;  %v1620_v36 = vcvt.s32.f32 %v596_v16  ;;  %v724_v35 = vunpack.c.1.s8 %v7570_v23  ;;  %v860_v54 = vunpack.c.2.s8 %v348_v21  ;;  %v340_v12 = vld [vmem:[#allocation2 + $0x260] sm:$0xff] }
 0x193   :  { %v2812_v56 = vpack.c.bf16 %v2036_v44, %v2028_v9  ;;  %v1740_v6 = vcvt.s32.f32 %v716_v51  ;;  %v868_v11 = vunpack.c.3.s8 %v348_v21  ;;  %v988_v39 = vunpack.c.2.s8 %v380_v24 }
 0x194   :  { %3523 = vmatpush.bf16.msra.mxu2 %v2748_v28  ;;  %v996_v7 = vunpack.c.3.s8 %v380_v24  ;;  %v2604_v4 = vpack.c.bf16 %v1620_v36, %v1612_v19  ;;  %v1748_v14 = vcvt.s32.f32 %v724_v35  ;;  %v1884_v13 = vcvt.s32.f32 %v860_v54  ;;  %v372_v28 = vld [vmem:[#allocation2 + $0x360] sm:$0xff] }
 0x195   :  { %3536 = vmatpush.bf16.msra.mxu3 %v2812_v56  ;;  %v572_v63 = vunpack.c.2.s8 %v276_v18  ;;  %v1892_v62 = vcvt.s32.f32 %v868_v11  ;;  %v2012_v50 = vcvt.s32.f32 %v988_v39  ;;  %v580_v55 = vunpack.c.3.s8 %v276_v18 }
 0x196   :  { %v2020_v8 = vcvt.s32.f32 %v996_v7  ;;  %3499 = vmatpush.bf16.msra.mxu0 %v2604_v4  ;;  %v2668_v59 = vpack.c.bf16 %v1748_v14, %v1740_v6  ;;  %v700_v23 = vunpack.c.2.s8 %v308_v49  ;;  %v708_v22 = vunpack.c.3.s8 %v308_v49  ;;  %v268_v4 = vld [vmem:[#allocation2 + $0x20] sm:$0xff] }
 0x197   :  { %v1596_v42 = vcvt.s32.f32 %v572_v63  ;;  %v2740_v15 = vpack.c.bf16 %v1892_v62, %v1884_v13  ;;  %v1604_v46 = vcvt.s32.f32 %v580_v55  ;;  %v844_v53 = vunpack.c.0.s8 %v348_v21  ;;  %v300_v62 = vld [vmem:[#allocation2 + $0x120] sm:$0xff] }
 0x198   :  { %v2804_v25 = vpack.c.bf16 %v2020_v8, %v2012_v50  ;;  %3512 = vmatpush.bf16.msra.mxu1 %v2668_v59  ;;  %v1724_v10 = vcvt.s32.f32 %v700_v23  ;;  %v1732_v40 = vcvt.s32.f32 %v708_v22  ;;  %v852_v41 = vunpack.c.1.s8 %v348_v21 }
 0x199   :  { %v972_v33 = vunpack.c.0.s8 %v380_v24  ;;  %3524 = vmatpush.bf16.msra.mxu2 %v2740_v15  ;;  %v2596_v60 = vpack.c.bf16 %v1604_v46, %v1596_v42  ;;  %v1868_v29 = vcvt.s32.f32 %v844_v53  ;;  %v980_v32 = vunpack.c.1.s8 %v380_v24 }
 0x19a   :  { %3537 = vmatpush.bf16.msra.mxu3 %v2804_v25  ;;  %v556_v0 = vunpack.c.0.s8 %v276_v18  ;;  %v2660_v58 = vpack.c.bf16 %v1732_v40, %v1724_v10  ;;  %v1876_v9 = vcvt.s32.f32 %v852_v41  ;;  %v564_v16 = vunpack.c.1.s8 %v276_v18 }
 0x19b   :  { %v1996_v44 = vcvt.s32.f32 %v972_v33  ;;  %3500 = vmatpush.bf16.msra.mxu0 %v2596_v60  ;;  %v2004_v19 = vcvt.s32.f32 %v980_v32  ;;  %v684_v56 = vunpack.c.0.s8 %v308_v49  ;;  %v692_v36 = vunpack.c.1.s8 %v308_v49 }
 0x19c   :  { %v1580_v51 = vcvt.s32.f32 %v556_v0  ;;  %3513 = vmatpush.bf16.msra.mxu1 %v2660_v58  ;;  %v2732_v21 = vpack.c.bf16 %v1876_v9, %v1868_v29  ;;  %v1588_v35 = vcvt.s32.f32 %v564_v16  ;;  %v828_v54 = vunpack.c.2.s8 %v340_v12  ;;  %v7589_v9 = vpop.f32.mrf.mxu0 }
 0x19d   :  { %v836_v6 = vunpack.c.3.s8 %v340_v12  ;;  %v2796_v11 = vpack.c.bf16 %v2004_v19, %v1996_v44  ;;  %v1708_v39 = vcvt.s32.f32 %v684_v56  ;;  %v1716_v24 = vcvt.s32.f32 %v692_v36 }
 0x19e   :  { %v956_v7 = vunpack.c.2.s8 %v372_v28  ;;  %3525 = vmatpush.bf16.msra.mxu2 %v2732_v21  ;;  %v2588_v14 = vpack.c.bf16 %v1588_v35, %v1580_v51  ;;  %v1852_v13 = vcvt.s32.f32 %v828_v54  ;;  %v964_v63 = vunpack.c.3.s8 %v372_v28  ;;  %v7596_v51 = vld [vmem:[#allocation2 + $0x4e0] sm:$0xff] }
 0x19f   :  { %v1860_v18 = vcvt.s32.f32 %v836_v6  ;;  %3538 = vmatpush.bf16.msra.mxu3 %v2796_v11  ;;  %v2652_v50 = vpack.c.bf16 %v1716_v24, %v1708_v39  ;;  %v3272_v49 = vadd.f32 %v7559_v57, %v7579_v37  ;;  %v3914_v55 = vperm.slane %v7480_v48, 1  ;;  %v7599_v39 = vld [vmem:[#allocation2 + $0x5e0] sm:$0xff] }
 0x1a0   :  { %v1980_v8 = vcvt.s32.f32 %v956_v7  ;;  %3501 = vmatpush.bf16.msra.mxu0 %v2588_v14  ;;  %v1988_v42 = vcvt.s32.f32 %v964_v63  ;;  %v540_v23 = vunpack.c.2.s8 %v268_v4  ;;  %v548_v22 = vunpack.c.3.s8 %v268_v4 }
 0x1a1   :  { %v2724_v59 = vpack.c.bf16 %v1860_v18, %v1852_v13  ;;  %3514 = vmatpush.bf16.msra.mxu1 %v2652_v50  ;;  %v3285_v15 = vadd.f32 %v7561_v52, %v3272_v49  ;;  %v668_v25 = vunpack.c.2.s8 %v300_v62  ;;  %v676_v46 = vunpack.c.3.s8 %v300_v62  ;;  %v7591_v52 = vpop.f32.mrf.mxu1 }
 0x1a2   :  { %v812_v53 = vunpack.c.0.s8 %v340_v12  ;;  %v2788_v10 = vpack.c.bf16 %v1988_v42, %v1980_v8  ;;  %v1564_v40 = vcvt.s32.f32 %v540_v23  ;;  %v1572_v41 = vcvt.s32.f32 %v548_v22 }
 0x1a3   :  { %3526 = vmatpush.bf16.msra.mxu2 %v2724_v59  ;;  %v820_v33 = vunpack.c.1.s8 %v340_v12  ;;  %v7587_v60 = vmul.f32 %v3914_v55, %v3285_v15  ;;  %v1692_v57 = vcvt.s32.f32 %v668_v25  ;;  %v1700_v48 = vcvt.s32.f32 %v676_v46  ;;  %v7607_v25 = vld [vmem:[#allocation2 + $0x320] sm:$0xff] }
 0x1a4   :  { %v1836_v37 = vcvt.s32.f32 %v812_v53  ;;  %3539 = vmatpush.bf16.msra.mxu3 %v2788_v10  ;;  %v2580_v29 = vpack.c.bf16 %v1572_v41, %v1564_v40  ;;  %v940_v0 = vunpack.c.0.s8 %v372_v28  ;;  %v948_v58 = vunpack.c.1.s8 %v372_v28  ;;  %v3299_v41 = vpop.f32.mrf.mxu0 }
 0x1a5   :  { %v1844_v32 = vcvt.s32.f32 %v820_v33  ;;  %v3943_v44 = vrot.slane %v7587_v60, 4  ;;  %v4001_v16 = vmul.f32 %v7587_v60, %v7587_v60  ;;  %v2644_v12 = vpack.c.bf16 %v1700_v48, %v1692_v57 }
 0x1a6   :  { %v524_v19 = vunpack.c.0.s8 %v268_v4  ;;  %3502 = vmatpush.bf16.msra.mxu0 %v2580_v29  ;;  %v1964_v36 = vcvt.s32.f32 %v940_v0  ;;  %v1972_v21 = vcvt.s32.f32 %v948_v58  ;;  %v532_v35 = vunpack.c.1.s8 %v268_v4  ;;  %v7603_v4 = vld [vmem:[#allocation2 + $0x220] sm:$0xff] }
 0x1a7   :  { %v2716_v56 = vpack.c.bf16 %v1844_v32, %v1836_v37  ;;  %v3944_v28 = vadd.f32 %v3943_v44, %v7587_v60  ;;  %v4014_v54 = vrot.slane %v4001_v16, 4  ;;  %3515 = vmatpush.bf16.msra.mxu1 %v2644_v12  ;;  %v652_v11 = vunpack.c.0.s8 %v300_v62 }
 0x1a8   :  { %v1548_v6 = vcvt.s32.f32 %v524_v19  ;;  %v2780_v24 = vpack.c.bf16 %v1972_v21, %v1964_v36  ;;  %v1556_v7 = vcvt.s32.f32 %v532_v35  ;;  %v660_v14 = vunpack.c.1.s8 %v300_v62 }
 0x1a9   :  { %3527 = vmatpush.bf16.msra.mxu2 %v2716_v56  ;;  %v1148_v13 = vunpack.c.2.s8 %v7596_v51  ;;  %v3945_v18 = vrot.slane %v3944_v28, 2  ;;  %v4015_v63 = vadd.f32 %v4014_v54, %v4001_v16  ;;  %v1676_v50 = vcvt.s32.f32 %v652_v11  ;;  %v3312_v33 = vpop.f32.mrf.mxu1 }
 0x1aa   :  { %v1156_v8 = vunpack.c.3.s8 %v7596_v51  ;;  %3540 = vmatpush.bf16.msra.mxu3 %v2780_v24  ;;  %v2572_v49 = vpack.c.bf16 %v1556_v7, %v1548_v6  ;;  %v1684_v55 = vcvt.s32.f32 %v660_v14  ;;  %v1276_v42 = vunpack.c.2.s8 %v7599_v39 }
 0x1ab   :  { %v2172_v59 = vcvt.s32.f32 %v1148_v13  ;;  %v3946_v23 = vadd.f32 %v3945_v18, %v3944_v28  ;;  %v4016_v22 = vrot.slane %v4015_v63, 2  ;;  %v1284_v62 = vunpack.c.3.s8 %v7599_v39 }
 0x1ac   :  { %v2180_v15 = vcvt.s32.f32 %v1156_v8  ;;  %3503 = vmatpush.bf16.msra.mxu0 %v2572_v49  ;;  %v2636_v46 = vpack.c.bf16 %v1684_v55, %v1676_v50  ;;  %v2300_v53 = vcvt.s32.f32 %v1276_v42  ;;  %v796_v10 = vunpack.c.2.s8 %v7603_v4  ;;  %v7630_v8 = vld [vmem:[#allocation2 + $0x6e0] sm:$0xff] }
 0x1ad   :  { %v804_v40 = vunpack.c.3.s8 %v7603_v4  ;;  %v4106_v57 = vmul.f32 %v7556_v31, %v7568_v47  ;;  %v3947_v48 = vrot.slane %v3946_v23, 1  ;;  %v4017_v37 = vadd.f32 %v4016_v22, %v4015_v63 }
 0x1ae   :  { %v2884_v29 = vpack.c.bf16 %v2180_v15, %v2172_v59  ;;  %3516 = vmatpush.bf16.msra.mxu1 %v2636_v46  ;;  %v2308_v32 = vcvt.s32.f32 %v1284_v62  ;;  %v1820_v0 = vcvt.s32.f32 %v796_v10  ;;  %v924_v44 = vunpack.c.2.s8 %v7607_v25  ;;  %v7635_v46 = vpop.f32.mrf.mxu2 }
 0x1af   :  { %v1828_v58 = vcvt.s32.f32 %v804_v40  ;;  %v3948_v16 = vadd.f32 %v3947_v48, %v3946_v23  ;;  %v4018_v12 = vrot.slane %v4017_v37, 1  ;;  %v932_v19 = vunpack.c.3.s8 %v7607_v25  ;;  %3504 = vmatmul.bf16.vlgmr.msra.gmra.mxu0 %v7161_v2  ;;  %v516_v23 = vld [vmem:[#allocation2 + $0x7e0] sm:$0xff] }
 0x1b0   :  { %3548 = vmatpush.bf16.msrb.mxu0 %v2884_v29  ;;  %v1132_v56 = vunpack.c.0.s8 %v7596_v51  ;;  %v2948_v36 = vpack.c.bf16 %v2308_v32, %v2300_v53  ;;  %v1948_v35 = vcvt.s32.f32 %v924_v44  ;;  %v1140_v47 = vunpack.c.1.s8 %v7596_v51  ;;  %v7637_v53 = vpop.f32.mrf.mxu3  ;;  %v444_v32 = vld [vmem:[#allocation2 + $0x5a0] sm:$0xff] }
 0x1b1   :  { %v2708_v21 = vpack.c.bf16 %v1828_v58, %v1820_v0  ;;  %v7619_v28 = vmul.f32 %v7518_v26, %v3948_v16  ;;  %v4019_v54 = vadd.f32 %v4018_v12, %v4017_v37  ;;  %v1956_v6 = vcvt.s32.f32 %v932_v19  ;;  %3517 = vmatmul.bf16.vlgmr.msra.gmra.mxu1 %v7170_v20 }
 0x1b2   :  { %v2156_v11 = vcvt.s32.f32 %v1132_v56  ;;  %3561 = vmatpush.bf16.msrb.mxu1 %v2948_v36  ;;  %v2164_v24 = vcvt.s32.f32 %v1140_v47  ;;  %v1260_v7 = vunpack.c.0.s8 %v7599_v39  ;;  %v1268_v14 = vunpack.c.1.s8 %v7599_v39 }
 0x1b3   :  { %3528 = vmatpush.bf16.msra.mxu2 %v2708_v21  ;;  %v780_v13 = vunpack.c.0.s8 %v7603_v4  ;;  %v7625_v18 = vmul.f32 0.5, %v4106_v57  ;;  %v4057_v51 = vmul.f32 %v4019_v54, %v7518_v26  ;;  %v4065_v63 = vmul.f32 %v7619_v28, %v7619_v28 }
 0x1b4   :  { %v2772_v50 = vpack.c.bf16 %v1956_v6, %v1948_v35  ;;  %v2876_v49 = vpack.c.bf16 %v2164_v24, %v2156_v11  ;;  %v2284_v55 = vcvt.s32.f32 %v1260_v7  ;;  %v2292_v59 = vcvt.s32.f32 %v1268_v14 }
 0x1b5   :  { %v788_v42 = vunpack.c.1.s8 %v7603_v4  ;;  %v4073_v22 = vsub.f32 %v4057_v51, %v4065_v63  ;;  %v1804_v39 = vcvt.s32.f32 %v780_v13  ;;  %v908_v15 = vunpack.c.0.s8 %v7607_v25  ;;  %v7641_v4 = vld [vmem:[#allocation2 + $0x4a0] sm:$0xff] }
 0x1b6   :  { %3541 = vmatpush.bf16.msra.mxu3 %v2772_v50  ;;  %v916_v62 = vunpack.c.1.s8 %v7607_v25  ;;  %3549 = vmatpush.bf16.msrb.mxu0 %v2876_v49  ;;  %v2940_v10 = vpack.c.bf16 %v2292_v59, %v2284_v55  ;;  %v1404_v41 = vunpack.c.2.s8 %v7630_v8  ;;  %v1412_v33 = vunpack.c.3.s8 %v7630_v8  ;;  %v3325_v55 = vpop.f32.mrf.mxu2 }
 0x1b7   :  { %v1812_v40 = vcvt.s32.f32 %v788_v42  ;;  %v4081_v57 = vmax.f32 %v4073_v22, 0.0  ;;  %v1932_v48 = vcvt.s32.f32 %v908_v15  ;;  %v1532_v29 = vunpack.c.2.s8 %v516_v23  ;;  %v476_v15 = vld [vmem:[#allocation2 + $0x6a0] sm:$0xff] }
 0x1b8   :  { %v1940_v37 = vcvt.s32.f32 %v916_v62  ;;  %3562 = vmatpush.bf16.msrb.mxu1 %v2940_v10  ;;  %v2428_v0 = vcvt.s32.f32 %v1404_v41  ;;  %v2436_v58 = vcvt.s32.f32 %v1412_v33  ;;  %v1540_v44 = vunpack.c.3.s8 %v516_v23 }
 0x1b9   :  { %v2700_v25 = vpack.c.bf16 %v1812_v40, %v1804_v39  ;;  %v7643_v16 = vadd.f32 1e-05, %v4081_v57  ;;  %v2556_v19 = vcvt.s32.f32 %v1532_v29  ;;  %v1116_v56 = vunpack.c.2.s8 %v7641_v4 }
 0x1ba   :  { %v2764_v12 = vpack.c.bf16 %v1940_v37, %v1932_v48  ;;  %v3012_v36 = vpack.c.bf16 %v2436_v58, %v2428_v0  ;;  %v2564_v21 = vcvt.s32.f32 %v1540_v44  ;;  %v1124_v35 = vunpack.c.3.s8 %v7641_v4  ;;  %v508_v48 = vld [vmem:[#allocation2 + $0x7a0] sm:$0xff] }
 0x1bb   :  { %3529 = vmatpush.bf16.msra.mxu2 %v2700_v25  ;;  %v1244_v47 = vunpack.c.2.s8 %v444_v32  ;;  %v4108_v54 = vsub.f32 1.5, %v7625_v18  ;;  %6817 = vrsqrt.f32 %v7643_v16  ;;  %v2140_v6 = vcvt.s32.f32 %v1116_v56  ;;  %v3338_v18 = vpop.f32.mrf.mxu3  ;;  %v404_v0 = vld [vmem:[#allocation2 + $0x460] sm:$0xff] }
 0x1bc   :  { %3542 = vmatpush.bf16.msra.mxu3 %v2764_v12  ;;  %v1252_v11 = vunpack.c.3.s8 %v444_v32  ;;  %v3076_v24 = vpack.c.bf16 %v2564_v21, %v2556_v19  ;;  %v2148_v7 = vcvt.s32.f32 %v1124_v35  ;;  %v1388_v13 = vunpack.c.0.s8 %v7630_v8 }
 0x1bd   :  { %v2268_v14 = vcvt.s32.f32 %v1244_v47  ;;  %v1396_v63 = vunpack.c.1.s8 %v7630_v8  ;;  %v1516_v50 = vunpack.c.0.s8 %v516_v23  ;;  %v1524_v49 = vunpack.c.1.s8 %v516_v23 }
 0x1be   :  { %3530 = vmatmul.bf16.vlgmr.msra.gmra.mxu2 %v7215_v45  ;;  %v2276_v51 = vcvt.s32.f32 %v1252_v11  ;;  %v2868_v59 = vpack.c.bf16 %v2148_v7, %v2140_v6  ;;  %v2412_v42 = vcvt.s32.f32 %v1388_v13  ;;  %v7654_v22 = vadd.f32 %v7591_v52, %v7589_v9 }
 0x1bf   :  { %3574 = vmatpush.bf16.msrb.mxu2 %v3012_v36  ;;  %v1100_v39 = vunpack.c.0.s8 %v7641_v4  ;;  %3543 = vmatmul.bf16.vlgmr.msra.gmra.mxu3 %v7225_v1  ;;  %v2420_v10 = vcvt.s32.f32 %v1396_v63  ;;  %v2540_v40 = vcvt.s32.f32 %v1516_v50  ;;  %v2548_v8 = vcvt.s32.f32 %v1524_v49  ;;  %v436_v36 = vld [vmem:[#allocation2 + $0x560] sm:$0xff] }
 0x1c0   :  { %3587 = vmatpush.bf16.msrb.mxu3 %v3076_v24  ;;  %v2932_v62 = vpack.c.bf16 %v2276_v51, %v2268_v14  ;;  %3550 = vmatpush.bf16.msrb.mxu0 %v2868_v59  ;;  %v1108_v23 = vunpack.c.1.s8 %v7641_v4  ;;  %v1228_v33 = vunpack.c.0.s8 %v444_v32  ;;  %v1236_v57 = vunpack.c.1.s8 %v444_v32 }
 0x1c1   :  { %v2124_v41 = vcvt.s32.f32 %v1100_v39  ;;  %v7659_v37 = vpop.eup %6817  ;;  %v3004_v9 = vpack.c.bf16 %v2420_v10, %v2412_v42  ;;  %v3068_v52 = vpack.c.bf16 %v2548_v8, %v2540_v40  ;;  %v1372_v29 = vunpack.c.2.s8 %v476_v15 }
 0x1c2   :  { %3563 = vmatpush.bf16.msrb.mxu1 %v2932_v62  ;;  %v1380_v25 = vunpack.c.3.s8 %v476_v15  ;;  %v4088_v58 = vsub.f32 %v7491_v27, %v7521_v61  ;;  %vm4111_vm2 = vweird.f32 %v7556_v31  ;;  %v2132_v44 = vcvt.s32.f32 %v1108_v23 }
 0x1c3   :  { %v2252_v12 = vcvt.s32.f32 %v1228_v33  ;;  %3575 = vmatpush.bf16.msrb.mxu2 %v3004_v9  ;;  %v2260_v4 = vcvt.s32.f32 %v1236_v57  ;;  %v2396_v32 = vcvt.s32.f32 %v1372_v29  ;;  %v1500_v56 = vunpack.c.2.s8 %v508_v48  ;;  %v468_v33 = vld [vmem:[#allocation2 + $0x660] sm:$0xff] }
 0x1c4   :  { %3588 = vmatpush.bf16.msrb.mxu3 %v3068_v52  ;;  %v2404_v19 = vcvt.s32.f32 %v1380_v25  ;;  %v4109_v21 = vmul.f32 %v7556_v31, %v4108_v54  ;;  %v2860_v35 = vpack.c.bf16 %v2132_v44, %v2124_v41  ;;  %v1508_v47 = vunpack.c.3.s8 %v508_v48  ;;  %v500_v52 = vld [vmem:[#allocation2 + $0x760] sm:$0xff] }
 0x1c5   :  { %v1084_v6 = vunpack.c.2.s8 %v404_v0  ;;  %v2924_v11 = vpack.c.bf16 %v2260_v4, %v2252_v12  ;;  %v2524_v7 = vcvt.s32.f32 %v1500_v56  ;;  %v1092_v27 = vunpack.c.3.s8 %v404_v0 }
 0x1c6   :  { %v2996_v24 = vpack.c.bf16 %v2404_v19, %v2396_v32  ;;  %vm4110_vm3 = vweird.f32 %v7539_v5  ;;  %3551 = vmatpush.bf16.msrb.mxu0 %v2860_v35  ;;  %v2532_v61 = vcvt.s32.f32 %v1508_v47  ;;  %v1212_v13 = vunpack.c.2.s8 %v436_v36 }
 0x1c7   :  { %v2108_v14 = vcvt.s32.f32 %v1084_v6  ;;  %vm7668_vm4 = vmor %vm4110_vm3, %vm4111_vm2  ;;  %3564 = vmatpush.bf16.msrb.mxu1 %v2924_v11  ;;  %v2116_v54 = vcvt.s32.f32 %v1092_v27  ;;  %v1220_v63 = vunpack.c.3.s8 %v436_v36  ;;  %v1356_v50 = vunpack.c.0.s8 %v476_v15  ;;  %v396_v6 = vld [vmem:[#allocation2 + $0x420] sm:$0xff]  ;;  %v7680_v11 = vpop.f32.mrf.mxu0 }
 0x1c8   :  { %3576 = vmatpush.bf16.msrb.mxu2 %v2996_v24  ;;  %v1364_v49 = vunpack.c.1.s8 %v476_v15  ;;  %v4113_v5 = vsel %vm7668_vm4, %v7556_v31, %v4109_v21  ;;  %v3060_v55 = vpack.c.bf16 %v2532_v61, %v2524_v7  ;;  %v2236_v18 = vcvt.s32.f32 %v1212_v13 }
 0x1c9   :  { %v1484_v59 = vunpack.c.0.s8 %v508_v48  ;;  %v2852_v42 = vpack.c.bf16 %v2116_v54, %v2108_v14  ;;  %v2244_v39 = vcvt.s32.f32 %v1220_v63  ;;  %v2380_v62 = vcvt.s32.f32 %v1356_v50 }
 0x1ca   :  { %v2388_v10 = vcvt.s32.f32 %v1364_v49  ;;  %v4115_v40 = vmul.f32 %v7659_v37, %v7643_v16  ;;  %3589 = vmatpush.bf16.msrb.mxu3 %v3060_v55  ;;  %v1492_v8 = vunpack.c.1.s8 %v508_v48  ;;  %v1068_v41 = vunpack.c.0.s8 %v404_v0 }
 0x1cb   :  { %v2508_v23 = vcvt.s32.f32 %v1484_v59  ;;  %3552 = vmatpush.bf16.msrb.mxu0 %v2852_v42  ;;  %v2916_v15 = vpack.c.bf16 %v2244_v39, %v2236_v18  ;;  %v1076_v9 = vunpack.c.1.s8 %v404_v0  ;;  %v1196_v31 = vunpack.c.0.s8 %v436_v36  ;;  %v428_v0 = vld [vmem:[#allocation2 + $0x520] sm:$0xff] }
 0x1cc   :  { %v2988_v57 = vpack.c.bf16 %v2388_v10, %v2380_v62  ;;  %v7677_v29 = vmul.f32 %v4113_v5, %v4088_v58  ;;  %v2516_v25 = vcvt.s32.f32 %v1492_v8  ;;  %v2092_v44 = vcvt.s32.f32 %v1068_v41  ;;  %v7682_v58 = vpop.f32.mrf.mxu1 }
 0x1cd   :  { %v1204_v12 = vunpack.c.1.s8 %v436_v36  ;;  %v4194_v4 = vperm.slane %v7551_v38, 1  ;;  %3565 = vmatpush.bf16.msrb.mxu1 %v2916_v15  ;;  %v2100_v32 = vcvt.s32.f32 %v1076_v9  ;;  %v2220_v48 = vcvt.s32.f32 %v1196_v31  ;;  %v293_v9 = vld [vmem:[#allocation2 + $0xe8] sm:$0xff] }
 0x1ce   :  { %3577 = vmatpush.bf16.msrb.mxu2 %v2988_v57  ;;  %v1340_v19 = vunpack.c.2.s8 %v468_v33  ;;  %v3052_v56 = vpack.c.bf16 %v2516_v25, %v2508_v23  ;;  %v1348_v35 = vunpack.c.3.s8 %v468_v33  ;;  %v1468_v47 = vunpack.c.2.s8 %v500_v52  ;;  %v429_v38 = vld [vmem:[#allocation2 + $0x528] sm:$0xff] }
 0x1cf   :  { %v2228_v21 = vcvt.s32.f32 %v1204_v12  ;;  %v7685_v24 = vmul.f32 %v7659_v37, %v4115_v40  ;;  %v2844_v36 = vpack.c.bf16 %v2100_v32, %v2092_v44  ;;  %v1476_v27 = vunpack.c.3.s8 %v500_v52  ;;  %v325_v12 = vld [vmem:[#allocation2 + $0x1e8] sm:$0xff]  ;;  %v3351_v32 = vpop.f32.mrf.mxu0 }
 0x1d0   :  { %v2364_v7 = vcvt.s32.f32 %v1340_v19  ;;  %3590 = vmatpush.bf16.msrb.mxu3 %v3052_v56  ;;  %v2372_v14 = vcvt.s32.f32 %v1348_v35  ;;  %v2492_v13 = vcvt.s32.f32 %v1468_v47  ;;  %v3324_v51 = vadd.f32 %v7635_v46, %v7654_v22  ;;  %v460_v35 = vld [vmem:[#allocation2 + $0x620] sm:$0xff] }
 0x1d1   :  { %v2908_v61 = vpack.c.bf16 %v2228_v21, %v2220_v48  ;;  %3553 = vmatpush.bf16.msrb.mxu0 %v2844_v36  ;;  %v2500_v54 = vcvt.s32.f32 %v1476_v27  ;;  %v1052_v63 = vunpack.c.2.s8 %v396_v6  ;;  %v1060_v50 = vunpack.c.3.s8 %v396_v6 }
 0x1d2   :  { %v1180_v49 = vunpack.c.2.s8 %v428_v0  ;;  %v2980_v5 = vpack.c.bf16 %v2372_v14, %v2364_v7  ;;  %v7690_v55 = vadd.f32 %v7637_v53, %v3324_v51  ;;  %v1188_v18 = vunpack.c.3.s8 %v428_v0 }
 0x1d3   :  { %3566 = vmatpush.bf16.msrb.mxu1 %v2908_v61  ;;  %v1324_v59 = vunpack.c.0.s8 %v468_v33  ;;  %v3044_v42 = vpack.c.bf16 %v2500_v54, %v2492_v13  ;;  %v2076_v39 = vcvt.s32.f32 %v1052_v63  ;;  %v2084_v62 = vcvt.s32.f32 %v1060_v50 }
 0x1d4   :  { %v2204_v10 = vcvt.s32.f32 %v1180_v49  ;;  %3578 = vmatpush.bf16.msrb.mxu2 %v2980_v5  ;;  %v2212_v40 = vcvt.s32.f32 %v1188_v18  ;;  %v1332_v8 = vunpack.c.1.s8 %v468_v33  ;;  %v1452_v22 = vunpack.c.0.s8 %v500_v52  ;;  %v3364_v48 = vpop.f32.mrf.mxu1 }
 0x1d5   :  { %v2348_v46 = vcvt.s32.f32 %v1324_v59  ;;  %3591 = vmatpush.bf16.msrb.mxu3 %v3044_v42  ;;  %v2836_v23 = vpack.c.bf16 %v2084_v62, %v2076_v39  ;;  %v1460_v41 = vunpack.c.1.s8 %v500_v52  ;;  %v1036_v15 = vunpack.c.0.s8 %v396_v6  ;;  %v357_v48 = vld [vmem:[#allocation2 + $0x2e8] sm:$0xff] }
 0x1d6   :  { %v1044_v57 = vunpack.c.1.s8 %v396_v6  ;;  %v2900_v31 = vpack.c.bf16 %v2212_v40, %v2204_v10  ;;  %v2356_v53 = vcvt.s32.f32 %v1332_v8  ;;  %v2476_v25 = vcvt.s32.f32 %v1452_v22  ;;  %v492_v6 = vld [vmem:[#allocation2 + $0x720] sm:$0xff] }
 0x1d7   :  { %v1164_v44 = vunpack.c.0.s8 %v428_v0  ;;  %3554 = vmatpush.bf16.msrb.mxu0 %v2836_v23  ;;  %v2484_v19 = vcvt.s32.f32 %v1460_v41  ;;  %v2060_v56 = vcvt.s32.f32 %v1036_v15  ;;  %v1172_v33 = vunpack.c.1.s8 %v428_v0 }
 0x1d8   :  { %v2068_v21 = vcvt.s32.f32 %v1044_v57  ;;  %3567 = vmatpush.bf16.msrb.mxu1 %v2900_v31  ;;  %v2972_v47 = vpack.c.bf16 %v2356_v53, %v2348_v46  ;;  %v637_v52 = vunpack.c.2.s8 %v293_v9  ;;  %v645_v7 = vunpack.c.3.s8 %v293_v9  ;;  %v7692_v57 = vpop.f32.mrf.mxu2  ;;  %v7694_v31 = vpop.f32.mrf.mxu3 }
 0x1d9   :  { %v2188_v36 = vcvt.s32.f32 %v1164_v44  ;;  %v3036_v27 = vpack.c.bf16 %v2484_v19, %v2476_v25  ;;  %v2196_v14 = vcvt.s32.f32 %v1172_v33  ;;  %v765_v13 = vunpack.c.2.s8 %v325_v12  ;;  %v389_v33 = vld [vmem:[#allocation2 + $0x3e8] sm:$0xff] }
 0x1da   :  { %v2828_v61 = vpack.c.bf16 %v2068_v21, %v2060_v56  ;;  %3579 = vmatpush.bf16.msrb.mxu2 %v2972_v47  ;;  %v1661_v51 = vcvt.s32.f32 %v637_v52  ;;  %v1669_v54 = vcvt.s32.f32 %v645_v7  ;;  %v773_v63 = vunpack.c.3.s8 %v325_v12  ;;  %v7698_v7 = vld [vmem:[#allocation2 + $0xa8] sm:$0xff] }
 0x1db   :  { %v1308_v50 = vunpack.c.2.s8 %v460_v35  ;;  %3592 = vmatpush.bf16.msrb.mxu3 %v3036_v27  ;;  %v2892_v49 = vpack.c.bf16 %v2196_v14, %v2188_v36  ;;  %v1789_v0 = vcvt.s32.f32 %v765_v13  ;;  %v1316_v5 = vunpack.c.3.s8 %v460_v35 }
 0x1dc   :  { %3555 = vmatpush.bf16.msrb.mxu0 %v2828_v61  ;;  %v1436_v18 = vunpack.c.2.s8 %v492_v6  ;;  %v2629_v59 = vpack.c.bf16 %v1669_v54, %v1661_v51  ;;  %v1797_v42 = vcvt.s32.f32 %v773_v63  ;;  %v1444_v62 = vunpack.c.3.s8 %v492_v6 }
 0x1dd   :  { %v2332_v39 = vcvt.s32.f32 %v1308_v50  ;;  %3568 = vmatpush.bf16.msrb.mxu1 %v2892_v49  ;;  %v2340_v10 = vcvt.s32.f32 %v1316_v5  ;;  %v621_v8 = vunpack.c.0.s8 %v293_v9  ;;  %v629_v46 = vunpack.c.1.s8 %v293_v9  ;;  %v317_v50 = vld [vmem:[#allocation2 + $0x1a8] sm:$0xff] }
 0x1de   :  { %v2460_v40 = vcvt.s32.f32 %v1436_v18  ;;  %v2693_v22 = vpack.c.bf16 %v1797_v42, %v1789_v0  ;;  %v2468_v23 = vcvt.s32.f32 %v1444_v62  ;;  %v749_v41 = vunpack.c.0.s8 %v325_v12 }
 0x1df   :  { %v757_v15 = vunpack.c.1.s8 %v325_v12  ;;  %v2964_v53 = vpack.c.bf16 %v2340_v10, %v2332_v39  ;;  %3556 = vmatmul.bf16.vlgmr.msrb.gmra.mxu0 %v7299_v3  ;;  %v1645_v25 = vcvt.s32.f32 %v621_v8  ;;  %v1653_v44 = vcvt.s32.f32 %v629_v46 }
 0x1e0   :  { %3600 = vmatpush.bf16.msra.mxu0 %v2629_v59  ;;  %v1292_v32 = vunpack.c.0.s8 %v460_v35  ;;  %v3028_v19 = vpack.c.bf16 %v2468_v23, %v2460_v40  ;;  %v1773_v56 = vcvt.s32.f32 %v749_v41  ;;  %v1300_v21 = vunpack.c.1.s8 %v460_v35  ;;  %3569 = vmatmul.bf16.vlgmr.msrb.gmra.mxu1 %v7310_v17  ;;  %v3377_v46 = vpop.f32.mrf.mxu2 }
 0x1e1   :  { %3613 = vmatpush.bf16.msra.mxu1 %v2693_v22  ;;  %v1781_v9 = vcvt.s32.f32 %v757_v15  ;;  %3580 = vmatpush.bf16.msrb.mxu2 %v2964_v53  ;;  %v2621_v12 = vpack.c.bf16 %v1653_v44, %v1645_v25  ;;  %v1420_v36 = vunpack.c.0.s8 %v492_v6  ;;  %v1428_v52 = vunpack.c.1.s8 %v492_v6  ;;  %v3390_v22 = vpop.f32.mrf.mxu3 }
 0x1e2   :  { %v2316_v47 = vcvt.s32.f32 %v1292_v32  ;;  %3593 = vmatpush.bf16.msrb.mxu3 %v3028_v19  ;;  %v2324_v61 = vcvt.s32.f32 %v1300_v21  ;;  %v893_v14 = vunpack.c.2.s8 %v357_v48  ;;  %v901_v13 = vunpack.c.3.s8 %v357_v48 }
 0x1e3   :  { %v2685_v27 = vpack.c.bf16 %v1781_v9, %v1773_v56  ;;  %v2444_v51 = vcvt.s32.f32 %v1420_v36  ;;  %v2452_v54 = vcvt.s32.f32 %v1428_v52  ;;  %v1021_v63 = vunpack.c.2.s8 %v389_v33 }
 0x1e4   :  { %3601 = vmatpush.bf16.msra.mxu0 %v2621_v12  ;;  %v1029_v35 = vunpack.c.3.s8 %v389_v33  ;;  %v2956_v49 = vpack.c.bf16 %v2324_v61, %v2316_v47  ;;  %v1917_v0 = vcvt.s32.f32 %v893_v14  ;;  %v1925_v5 = vcvt.s32.f32 %v901_v13  ;;  %v349_v47 = vld [vmem:[#allocation2 + $0x2a8] sm:$0xff] }
 0x1e5   :  { %3614 = vmatpush.bf16.msra.mxu1 %v2685_v27  ;;  %v605_v18 = vunpack.c.2.s8 %v7698_v7  ;;  %v3020_v6 = vpack.c.bf16 %v2452_v54, %v2444_v51  ;;  %v2045_v59 = vcvt.s32.f32 %v1021_v63  ;;  %v613_v39 = vunpack.c.3.s8 %v7698_v7  ;;  %v381_v61 = vld [vmem:[#allocation2 + $0x3a8] sm:$0xff] }
 0x1e6   :  { %v2053_v42 = vcvt.s32.f32 %v1029_v35  ;;  %3581 = vmatpush.bf16.msrb.mxu2 %v2956_v49  ;;  %v2757_v62 = vpack.c.bf16 %v1925_v5, %v1917_v0  ;;  %v733_v40 = vunpack.c.2.s8 %v317_v50  ;;  %v741_v8 = vunpack.c.3.s8 %v317_v50  ;;  %v277_v54 = vld [vmem:[#allocation2 + $0x68] sm:$0xff] }
 0x1e7   :  { %v1629_v10 = vcvt.s32.f32 %v605_v18  ;;  %3594 = vmatpush.bf16.msrb.mxu3 %v3020_v6  ;;  %v1637_v41 = vcvt.s32.f32 %v613_v39  ;;  %v877_v15 = vunpack.c.0.s8 %v357_v48  ;;  %v885_v53 = vunpack.c.1.s8 %v357_v48  ;;  %v309_v6 = vld [vmem:[#allocation2 + $0x168] sm:$0xff] }
 0x1e8   :  { %v2821_v23 = vpack.c.bf16 %v2053_v42, %v2045_v59  ;;  %v1757_v25 = vcvt.s32.f32 %v733_v40  ;;  %v1765_v44 = vcvt.s32.f32 %v741_v8  ;;  %v1005_v32 = vunpack.c.0.s8 %v389_v33 }
 0x1e9   :  { %v1013_v19 = vunpack.c.1.s8 %v389_v33  ;;  %3582 = vmatmul.bf16.vlgmr.msrb.gmra.mxu2 %v7362_v34  ;;  %v2613_v56 = vpack.c.bf16 %v1637_v41, %v1629_v10  ;;  %v1901_v9 = vcvt.s32.f32 %v877_v15  ;;  %v1909_v21 = vcvt.s32.f32 %v885_v53 }
 0x1ea   :  { %3626 = vmatpush.bf16.msra.mxu2 %v2757_v62  ;;  %v3350_v12 = vadd.f32 %v7680_v11, %v7690_v55  ;;  %3595 = vmatmul.bf16.vlgmr.msrb.gmra.mxu3 %v7369_v43  ;;  %v2677_v36 = vpack.c.bf16 %v1765_v44, %v1757_v25  ;;  %v2029_v52 = vcvt.s32.f32 %v1005_v32  ;;  %v589_v27 = vunpack.c.0.s8 %v7698_v7 }
 0x1eb   :  { %3639 = vmatpush.bf16.msra.mxu3 %v2821_v23  ;;  %v2037_v48 = vcvt.s32.f32 %v1013_v19  ;;  %3602 = vmatpush.bf16.msra.mxu0 %v2613_v56  ;;  %v2749_v33 = vpack.c.bf16 %v1909_v21, %v1901_v9  ;;  %v597_v13 = vunpack.c.1.s8 %v7698_v7  ;;  %v717_v51 = vunpack.c.0.s8 %v317_v50 }
 0x1ec   :  { %v7708_v14 = vadd.f32 %v7682_v58, %v3350_v12  ;;  %3615 = vmatpush.bf16.msra.mxu1 %v2677_v36  ;;  %v1613_v55 = vcvt.s32.f32 %v589_v27  ;;  %v725_v63 = vunpack.c.1.s8 %v317_v50  ;;  %v861_v35 = vunpack.c.2.s8 %v349_v47  ;;  %v341_v36 = vld [vmem:[#allocation2 + $0x268] sm:$0xff] }
 0x1ed   :  { %v2813_v11 = vpack.c.bf16 %v2037_v48, %v2029_v52  ;;  %v1621_v49 = vcvt.s32.f32 %v597_v13  ;;  %v1741_v0 = vcvt.s32.f32 %v717_v51  ;;  %v869_v5 = vunpack.c.3.s8 %v349_v47 }
 0x1ee   :  { %3627 = vmatpush.bf16.msra.mxu2 %v2749_v33  ;;  %v989_v18 = vunpack.c.2.s8 %v381_v61  ;;  %v1749_v59 = vcvt.s32.f32 %v725_v63  ;;  %v1885_v42 = vcvt.s32.f32 %v861_v35  ;;  %v997_v58 = vunpack.c.3.s8 %v381_v61  ;;  %v373_v63 = vld [vmem:[#allocation2 + $0x368] sm:$0xff] }
 0x1ef   :  { %3640 = vmatpush.bf16.msra.mxu3 %v2813_v11  ;;  %v573_v39 = vunpack.c.2.s8 %v277_v54  ;;  %v2605_v62 = vpack.c.bf16 %v1621_v49, %v1613_v55  ;;  %v1893_v7 = vcvt.s32.f32 %v869_v5  ;;  %v581_v40 = vunpack.c.3.s8 %v277_v54 }
 0x1f0   :  { %v2013_v10 = vcvt.s32.f32 %v989_v18  ;;  %v2669_v8 = vpack.c.bf16 %v1749_v59, %v1741_v0  ;;  %v2021_v46 = vcvt.s32.f32 %v997_v58  ;;  %v701_v50 = vunpack.c.2.s8 %v309_v6 }
 0x1f1   :  { %v1597_v22 = vcvt.s32.f32 %v573_v39  ;;  %3603 = vmatpush.bf16.msra.mxu0 %v2605_v62  ;;  %v2741_v23 = vpack.c.bf16 %v1893_v7, %v1885_v42  ;;  %v1605_v41 = vcvt.s32.f32 %v581_v40  ;;  %v709_v15 = vunpack.c.3.s8 %v309_v6  ;;  %v269_v42 = vld [vmem:[#allocation2 + $0x28] sm:$0xff] }
 0x1f2   :  { %v845_v53 = vunpack.c.0.s8 %v349_v47  ;;  %3616 = vmatpush.bf16.msra.mxu1 %v2669_v8  ;;  %v2805_v25 = vpack.c.bf16 %v2021_v46, %v2013_v10  ;;  %v1725_v44 = vcvt.s32.f32 %v701_v50  ;;  %v853_v32 = vunpack.c.1.s8 %v349_v47  ;;  %v301_v7 = vld [vmem:[#allocation2 + $0x128] sm:$0xff]  ;;  %v7716_v8 = vld [vmem:[%s8706_s5 + $0x18] sm:$0xff] }
 0x1f3   :  { %v973_v19 = vunpack.c.0.s8 %v381_v61  ;;  %3628 = vmatpush.bf16.msra.mxu2 %v2741_v23  ;;  %v2597_v56 = vpack.c.bf16 %v1605_v41, %v1597_v22  ;;  %v1733_v9 = vcvt.s32.f32 %v709_v15  ;;  %v981_v12 = vunpack.c.1.s8 %v381_v61 }
 0x1f4   :  { %v1869_v21 = vcvt.s32.f32 %v845_v53  ;;  %3641 = vmatpush.bf16.msra.mxu3 %v2805_v25  ;;  %v1877_v52 = vcvt.s32.f32 %v853_v32  ;;  %v557_v27 = vunpack.c.0.s8 %v277_v54  ;;  %v565_v33 = vunpack.c.1.s8 %v277_v54 }
 0x1f5   :  { %v1997_v48 = vcvt.s32.f32 %v973_v19  ;;  %3604 = vmatpush.bf16.msra.mxu0 %v2597_v56  ;;  %v2661_v13 = vpack.c.bf16 %v1733_v9, %v1725_v44  ;;  %v2005_v51 = vcvt.s32.f32 %v981_v12  ;;  %v685_v11 = vunpack.c.0.s8 %v309_v6 }
 0x1f6   :  { %v693_v55 = vunpack.c.1.s8 %v309_v6  ;;  %v2733_v35 = vpack.c.bf16 %v1877_v52, %v1869_v21  ;;  %v1581_v47 = vcvt.s32.f32 %v557_v27  ;;  %v1589_v49 = vcvt.s32.f32 %v565_v33 }
 0x1f7   :  { %v829_v0 = vunpack.c.2.s8 %v341_v36  ;;  %3617 = vmatpush.bf16.msra.mxu1 %v2661_v13  ;;  %v2797_v5 = vpack.c.bf16 %v2005_v51, %v1997_v48  ;;  %v1709_v18 = vcvt.s32.f32 %v685_v11  ;;  %v837_v59 = vunpack.c.3.s8 %v341_v36 }
 0x1f8   :  { %v1717_v61 = vcvt.s32.f32 %v693_v55  ;;  %3629 = vmatpush.bf16.msra.mxu2 %v2733_v35  ;;  %v2589_v58 = vpack.c.bf16 %v1589_v49, %v1581_v47  ;;  %v957_v54 = vunpack.c.2.s8 %v373_v63  ;;  %v965_v62 = vunpack.c.3.s8 %v373_v63  ;;  %v7725_v55 = vpop.f32.mrf.mxu0  ;;  %v7727_v35 = vpop.f32.mrf.mxu1 }
 0x1f9   :  { %v1853_v39 = vcvt.s32.f32 %v829_v0  ;;  %3642 = vmatpush.bf16.msra.mxu3 %v2797_v5  ;;  %v1861_v6 = vcvt.s32.f32 %v837_v59  ;;  %v3376_v40 = vadd.f32 %v7692_v57, %v7708_v14  ;;  %v3915_v46 = vperm.slane %v7716_v8, 2  ;;  %v421_v5 = vld [vmem:[#allocation2 + $0x4e8] sm:$0xff] }
 0x1fa   :  { %v2653_v10 = vpack.c.bf16 %v1717_v61, %v1709_v18  ;;  %3605 = vmatpush.bf16.msra.mxu0 %v2589_v58  ;;  %v1981_v22 = vcvt.s32.f32 %v957_v54  ;;  %v1989_v50 = vcvt.s32.f32 %v965_v62  ;;  %v541_v23 = vunpack.c.2.s8 %v269_v42  ;;  %v7730_v58 = vld [vmem:[#allocation2 + $0x5e8] sm:$0xff] }
 0x1fb   :  { %v549_v41 = vunpack.c.3.s8 %v269_v42  ;;  %v2725_v15 = vpack.c.bf16 %v1861_v6, %v1853_v39  ;;  %v3389_v53 = vadd.f32 %v7694_v31, %v3376_v40  ;;  %v669_v25 = vunpack.c.2.s8 %v301_v7 }
 0x1fc   :  { %3618 = vmatpush.bf16.msra.mxu1 %v2653_v10  ;;  %v677_v44 = vunpack.c.3.s8 %v301_v7  ;;  %v2789_v32 = vpack.c.bf16 %v1989_v50, %v1981_v22  ;;  %v1565_v57 = vcvt.s32.f32 %v541_v23  ;;  %v813_v19 = vunpack.c.0.s8 %v341_v36  ;;  %v7732_v50 = vld [vmem:[#allocation2 + $0x228] sm:$0xff] }
 0x1fd   :  { %v1573_v14 = vcvt.s32.f32 %v549_v41  ;;  %3630 = vmatpush.bf16.msra.mxu2 %v2725_v15  ;;  %v7720_v56 = vmul.f32 %v3915_v46, %v3389_v53  ;;  %v1693_v9 = vcvt.s32.f32 %v669_v25  ;;  %v821_v12 = vunpack.c.1.s8 %v341_v36 }
 0x1fe   :  { %v1701_v21 = vcvt.s32.f32 %v677_v44  ;;  %3643 = vmatpush.bf16.msra.mxu3 %v2789_v32  ;;  %v1837_v48 = vcvt.s32.f32 %v813_v19  ;;  %v941_v27 = vunpack.c.0.s8 %v373_v63  ;;  %v949_v33 = vunpack.c.1.s8 %v373_v63 }
 0x1ff   :  { %v2581_v52 = vpack.c.bf16 %v1573_v14, %v1565_v57  ;;  %v3949_v13 = vrot.slane %v7720_v56, 4  ;;  %v4002_v31 = vmul.f32 %v7720_v56, %v7720_v56  ;;  %v1845_v11 = vcvt.s32.f32 %v821_v12  ;;  %v7736_v57 = vld [vmem:[#allocation2 + $0x328] sm:$0xff] }
 0x200   :  { %v2645_v51 = vpack.c.bf16 %v1701_v21, %v1693_v9  ;;  %v1965_v47 = vcvt.s32.f32 %v941_v27  ;;  %v1973_v49 = vcvt.s32.f32 %v949_v33  ;;  %v525_v36 = vunpack.c.0.s8 %v269_v42  ;;  %v3403_v27 = vpop.f32.mrf.mxu0  ;;  %v3416_v33 = vpop.f32.mrf.mxu1 }
 0x201   :  { %3606 = vmatpush.bf16.msra.mxu0 %v2581_v52  ;;  %v533_v0 = vunpack.c.1.s8 %v269_v42  ;;  %v3950_v18 = vadd.f32 %v3949_v13, %v7720_v56  ;;  %v4020_v63 = vrot.slane %v4002_v31, 4  ;;  %v2717_v61 = vpack.c.bf16 %v1845_v11, %v1837_v48 }
 0x202   :  { %3619 = vmatpush.bf16.msra.mxu1 %v2645_v51  ;;  %v653_v59 = vunpack.c.0.s8 %v301_v7  ;;  %v2781_v39 = vpack.c.bf16 %v1973_v49, %v1965_v47  ;;  %v1549_v54 = vcvt.s32.f32 %v525_v36  ;;  %v661_v10 = vunpack.c.1.s8 %v301_v7 }
 0x203   :  { %v1557_v62 = vcvt.s32.f32 %v533_v0  ;;  %v3951_v6 = vrot.slane %v3950_v18, 2  ;;  %v4021_v40 = vadd.f32 %v4020_v63, %v4002_v31  ;;  %3631 = vmatpush.bf16.msra.mxu2 %v2717_v61  ;;  %v1149_v22 = vunpack.c.2.s8 %v421_v5 }
 0x204   :  { %v1677_v46 = vcvt.s32.f32 %v653_v59  ;;  %3644 = vmatpush.bf16.msra.mxu3 %v2781_v39  ;;  %v1685_v23 = vcvt.s32.f32 %v661_v10  ;;  %v1157_v41 = vunpack.c.3.s8 %v421_v5  ;;  %v1277_v15 = vunpack.c.2.s8 %v7730_v58 }
 0x205   :  { %v2573_v42 = vpack.c.bf16 %v1557_v62, %v1549_v54  ;;  %v3952_v53 = vadd.f32 %v3951_v6, %v3950_v18  ;;  %v4022_v25 = vrot.slane %v4021_v40, 2  ;;  %v2173_v44 = vcvt.s32.f32 %v1149_v22 }
 0x206   :  { %v1285_v32 = vunpack.c.3.s8 %v7730_v58  ;;  %v2637_v7 = vpack.c.bf16 %v1685_v23, %v1677_v46  ;;  %v2181_v14 = vcvt.s32.f32 %v1157_v41  ;;  %v2301_v19 = vcvt.s32.f32 %v1277_v15  ;;  %v7757_v41 = vld [vmem:[#allocation2 + $0x6e8] sm:$0xff] }
 0x207   :  { %3607 = vmatpush.bf16.msra.mxu0 %v2573_v42  ;;  %v797_v9 = vunpack.c.2.s8 %v7732_v50  ;;  %v7740_v21 = vmul.f32 0.5, %v7685_v24  ;;  %v3953_v12 = vrot.slane %v3952_v53, 1  ;;  %v4023_v52 = vadd.f32 %v4022_v25, %v4021_v40 }
 0x208   :  { %v2309_v48 = vcvt.s32.f32 %v1285_v32  ;;  %3620 = vmatpush.bf16.msra.mxu1 %v2637_v7  ;;  %v2885_v13 = vpack.c.bf16 %v2181_v14, %v2173_v44  ;;  %v805_v31 = vunpack.c.3.s8 %v7732_v50  ;;  %v925_v11 = vunpack.c.2.s8 %v7736_v57 }
 0x209   :  { %v1821_v51 = vcvt.s32.f32 %v797_v9  ;;  %v3954_v47 = vadd.f32 %v3953_v12, %v3952_v53  ;;  %v4024_v49 = vrot.slane %v4023_v52, 1  ;;  %v933_v0 = vunpack.c.3.s8 %v7736_v57  ;;  %v7764_v9 = vpop.f32.mrf.mxu2  ;;  %v7766_v12 = vpop.f32.mrf.mxu3 }
 0x20a   :  { %v2949_v36 = vpack.c.bf16 %v2309_v48, %v2301_v19  ;;  %3608 = vmatmul.bf16.vlgmr.msra.gmra.mxu0 %v7161_v2  ;;  %v1829_v24 = vcvt.s32.f32 %v805_v31  ;;  %v1949_v18 = vcvt.s32.f32 %v925_v11  ;;  %v1133_v63 = vunpack.c.0.s8 %v421_v5  ;;  %v517_v19 = vld [vmem:[#allocation2 + $0x7e8] sm:$0xff] }
 0x20b   :  { %3652 = vmatpush.bf16.msrb.mxu0 %v2885_v13  ;;  %v1141_v61 = vunpack.c.1.s8 %v421_v5  ;;  %v7747_v59 = vmul.f32 %v7518_v26, %v3954_v47  ;;  %v4025_v39 = vadd.f32 %v4024_v49, %v4023_v52  ;;  %v1957_v54 = vcvt.s32.f32 %v933_v0  ;;  %3621 = vmatmul.bf16.vlgmr.msra.gmra.mxu1 %v7170_v20 }
 0x20c   :  { %3665 = vmatpush.bf16.msrb.mxu1 %v2949_v36  ;;  %v1261_v62 = vunpack.c.0.s8 %v7730_v58  ;;  %v2709_v10 = vpack.c.bf16 %v1829_v24, %v1821_v51  ;;  %v2157_v6 = vcvt.s32.f32 %v1133_v63  ;;  %v1269_v46 = vunpack.c.1.s8 %v7730_v58  ;;  %v445_v36 = vld [vmem:[#allocation2 + $0x5a8] sm:$0xff] }
 0x20d   :  { %v2165_v40 = vcvt.s32.f32 %v1141_v61  ;;  %v4089_v22 = vsub.f32 %v7587_v60, %v7619_v28  ;;  %v4058_v5 = vmul.f32 %v4025_v39, %v7518_v26  ;;  %v4066_v42 = vmul.f32 %v7747_v59, %v7747_v59  ;;  %v501_v60 = vld [vmem:[#allocation2 + $0x768] sm:$0xff] }
 0x20e   :  { %v2773_v23 = vpack.c.bf16 %v1957_v54, %v1949_v18  ;;  %3632 = vmatpush.bf16.msra.mxu2 %v2709_v10  ;;  %v2285_v53 = vcvt.s32.f32 %v1261_v62  ;;  %v2293_v25 = vcvt.s32.f32 %v1269_v46  ;;  %v781_v44 = vunpack.c.0.s8 %v7732_v50 }
 0x20f   :  { %v2877_v15 = vpack.c.bf16 %v2165_v40, %v2157_v6  ;;  %v4118_v32 = vsub.f32 1.5, %v7740_v21  ;;  %v789_v58 = vunpack.c.1.s8 %v7732_v50  ;;  %v909_v7 = vunpack.c.0.s8 %v7736_v57  ;;  %v413_v21 = vld [vmem:[#allocation2 + $0x4a8] sm:$0xff] }
 0x210   :  { %3645 = vmatpush.bf16.msra.mxu3 %v2773_v23  ;;  %v917_v14 = vunpack.c.1.s8 %v7736_v57  ;;  %v2941_v52 = vpack.c.bf16 %v2293_v25, %v2285_v53  ;;  %v1805_v48 = vcvt.s32.f32 %v781_v44  ;;  %v1405_v27 = vunpack.c.2.s8 %v7757_v41 }
 0x211   :  { %3653 = vmatpush.bf16.msrb.mxu0 %v2877_v15  ;;  %v1413_v33 = vunpack.c.3.s8 %v7757_v41  ;;  %v4074_v13 = vsub.f32 %v4058_v5, %v4066_v42  ;;  %v1813_v31 = vcvt.s32.f32 %v789_v58  ;;  %v1933_v50 = vcvt.s32.f32 %v909_v7  ;;  %v3429_v58 = vpop.f32.mrf.mxu2  ;;  %v3442_v7 = vpop.f32.mrf.mxu3 }
 0x212   :  { %v1941_v51 = vcvt.s32.f32 %v917_v14  ;;  %3666 = vmatpush.bf16.msrb.mxu1 %v2941_v52  ;;  %v2429_v11 = vcvt.s32.f32 %v1405_v27  ;;  %v1533_v47 = vunpack.c.2.s8 %v517_v19  ;;  %v1541_v49 = vunpack.c.3.s8 %v517_v19  ;;  %v477_v27 = vld [vmem:[#allocation2 + $0x6a8] sm:$0xff] }
 0x213   :  { %v2437_v57 = vcvt.s32.f32 %v1413_v33  ;;  %vm4121_vm5 = vweird.f32 %v7659_v37  ;;  %v2701_v0 = vpack.c.bf16 %v1813_v31, %v1805_v48  ;;  %v1117_v18 = vunpack.c.2.s8 %v413_v21 }
 0x214   :  { %v2765_v24 = vpack.c.bf16 %v1941_v51, %v1933_v50  ;;  %v2557_v61 = vcvt.s32.f32 %v1533_v47  ;;  %v2565_v39 = vcvt.s32.f32 %v1541_v49  ;;  %v1125_v54 = vunpack.c.3.s8 %v413_v21 }
 0x215   :  { %v3013_v63 = vpack.c.bf16 %v2437_v57, %v2429_v11  ;;  %v7772_v62 = vmul.f32 %v7659_v37, %v4118_v32  ;;  %v4082_v10 = vmax.f32 %v4074_v13, 0.0  ;;  %3633 = vmatpush.bf16.msra.mxu2 %v2701_v0  ;;  %v2141_v6 = vcvt.s32.f32 %v1117_v18  ;;  %v509_v57 = vld [vmem:[#allocation2 + $0x7a8] sm:$0xff] }
 0x216   :  { %3646 = vmatpush.bf16.msra.mxu3 %v2765_v24  ;;  %v1245_v40 = vunpack.c.2.s8 %v445_v36  ;;  %v3077_v46 = vpack.c.bf16 %v2565_v39, %v2557_v61  ;;  %v2149_v5 = vcvt.s32.f32 %v1125_v54  ;;  %v1253_v42 = vunpack.c.3.s8 %v445_v36  ;;  %v405_v18 = vld [vmem:[#allocation2 + $0x468] sm:$0xff] }
 0x217   :  { %v1389_v23 = vunpack.c.0.s8 %v7757_v41  ;;  %v1397_v53 = vunpack.c.1.s8 %v7757_v41  ;;  %v1517_v25 = vunpack.c.0.s8 %v517_v19  ;;  %v1525_v44 = vunpack.c.1.s8 %v517_v19 }
 0x218   :  { %v2269_v15 = vcvt.s32.f32 %v1245_v40  ;;  %3634 = vmatmul.bf16.vlgmr.msra.gmra.mxu2 %v7215_v45  ;;  %v2869_v32 = vpack.c.bf16 %v2149_v5, %v2141_v6  ;;  %v2277_v14 = vcvt.s32.f32 %v1253_v42  ;;  %v7779_v48 = vadd.f32 %v7727_v35, %v7725_v55  ;;  %v437_v6 = vld [vmem:[#allocation2 + $0x568] sm:$0xff] }
 0x219   :  { %3678 = vmatpush.bf16.msrb.mxu2 %v3013_v63  ;;  %v2413_v52 = vcvt.s32.f32 %v1389_v23  ;;  %3647 = vmatmul.bf16.vlgmr.msra.gmra.mxu3 %v7225_v1  ;;  %v2421_v33 = vcvt.s32.f32 %v1397_v53  ;;  %v2541_v13 = vcvt.s32.f32 %v1517_v25  ;;  %v2549_v41 = vcvt.s32.f32 %v1525_v44 }
 0x21a   :  { %3691 = vmatpush.bf16.msrb.mxu3 %v3077_v46  ;;  %v1101_v31 = vunpack.c.0.s8 %v413_v21  ;;  %3654 = vmatpush.bf16.msrb.mxu0 %v2869_v32  ;;  %v2933_v19 = vpack.c.bf16 %v2277_v14, %v2269_v15  ;;  %v1109_v50 = vunpack.c.1.s8 %v413_v21  ;;  %v1229_v51 = vunpack.c.0.s8 %v445_v36 }
 0x21b   :  { %v1237_v11 = vunpack.c.1.s8 %v445_v36  ;;  %v3005_v47 = vpack.c.bf16 %v2421_v33, %v2413_v52  ;;  %v3069_v49 = vpack.c.bf16 %v2549_v41, %v2541_v13  ;;  %v1373_v24 = vunpack.c.2.s8 %v477_v27 }
 0x21c   :  { %v2125_v0 = vcvt.s32.f32 %v1101_v31  ;;  %vm4120_vm6 = vweird.f32 %v7643_v16  ;;  %v7783_v55 = vadd.f32 1e-05, %v4082_v10  ;;  %3667 = vmatpush.bf16.msrb.mxu1 %v2933_v19  ;;  %v2133_v35 = vcvt.s32.f32 %v1109_v50 }
 0x21d   :  { %v2253_v63 = vcvt.s32.f32 %v1229_v51  ;;  %vm7787_vm7 = vmor %vm4120_vm6, %vm4121_vm5  ;;  %3679 = vmatpush.bf16.msrb.mxu2 %v3005_v47  ;;  %v2261_v21 = vcvt.s32.f32 %v1237_v11  ;;  %v1381_v36 = vunpack.c.3.s8 %v477_v27  ;;  %v2397_v39 = vcvt.s32.f32 %v1373_v24 }
 0x21e   :  { %3692 = vmatpush.bf16.msrb.mxu3 %v3069_v49  ;;  %v1501_v54 = vunpack.c.2.s8 %v509_v57  ;;  %v4123_v16 = vsel %vm7787_vm7, %v7659_v37, %v7772_v62  ;;  %v2861_v10 = vpack.c.bf16 %v2133_v35, %v2125_v0  ;;  %v1509_v40 = vunpack.c.3.s8 %v509_v57  ;;  %v469_v35 = vld [vmem:[#allocation2 + $0x668] sm:$0xff] }
 0x21f   :  { %v1085_v46 = vunpack.c.2.s8 %v405_v18  ;;  %v2925_v5 = vpack.c.bf16 %v2261_v21, %v2253_v63  ;;  %v2405_v42 = vcvt.s32.f32 %v1381_v36  ;;  %v1093_v15 = vunpack.c.3.s8 %v405_v18 }
 0x220   :  { %v2525_v23 = vcvt.s32.f32 %v1501_v54  ;;  %6819 = vrsqrt.f32 %v7783_v55  ;;  %3655 = vmatpush.bf16.msrb.mxu0 %v2861_v10  ;;  %v2533_v53 = vcvt.s32.f32 %v1509_v40  ;;  %v1213_v44 = vunpack.c.2.s8 %v437_v6  ;;  %v397_v40 = vld [vmem:[#allocation2 + $0x428] sm:$0xff] }
 0x221   :  { %v2109_v25 = vcvt.s32.f32 %v1085_v46  ;;  %3668 = vmatpush.bf16.msrb.mxu1 %v2925_v5  ;;  %v2997_v58 = vpack.c.bf16 %v2405_v42, %v2397_v39  ;;  %v2117_v7 = vcvt.s32.f32 %v1093_v15  ;;  %v1221_v32 = vunpack.c.3.s8 %v437_v6  ;;  %v7816_v42 = vpop.f32.mrf.mxu1 }
 0x222   :  { %v1357_v14 = vunpack.c.0.s8 %v477_v27  ;;  %v4185_v37 = vmul.f32 %v4123_v16, %v4089_v22  ;;  %v3061_v62 = vpack.c.bf16 %v2533_v53, %v2525_v23  ;;  %v2237_v52 = vcvt.s32.f32 %v1213_v44 }
 0x223   :  { %v1365_v33 = vunpack.c.1.s8 %v477_v27  ;;  %3680 = vmatpush.bf16.msrb.mxu2 %v2997_v58  ;;  %v2853_v13 = vpack.c.bf16 %v2117_v7, %v2109_v25  ;;  %v2245_v41 = vcvt.s32.f32 %v1221_v32  ;;  %v1485_v19 = vunpack.c.0.s8 %v509_v57 }
 0x224   :  { %v2381_v31 = vcvt.s32.f32 %v1357_v14  ;;  %3693 = vmatpush.bf16.msrb.mxu3 %v3061_v62  ;;  %v1493_v51 = vunpack.c.1.s8 %v509_v57  ;;  %v1069_v11 = vunpack.c.0.s8 %v405_v18  ;;  %v1077_v0 = vunpack.c.1.s8 %v405_v18 }
 0x225   :  { %v2389_v50 = vcvt.s32.f32 %v1365_v33  ;;  %3656 = vmatpush.bf16.msrb.mxu0 %v2853_v13  ;;  %v2917_v47 = vpack.c.bf16 %v2245_v41, %v2237_v52  ;;  %v2509_v49 = vcvt.s32.f32 %v1485_v19  ;;  %v1197_v24 = vunpack.c.0.s8 %v437_v6 }
 0x226   :  { %v7799_v28 = vpop.eup %6819  ;;  %v7804_v22 = vmul.f32 %v4193_v30, %v7677_v29  ;;  %v2517_v63 = vcvt.s32.f32 %v1493_v51  ;;  %v2093_v61 = vcvt.s32.f32 %v1069_v11  ;;  %v7808_v57 = vmul.f32 %v4194_v4, %v4185_v37  ;;  %v7814_v4 = vpop.f32.mrf.mxu0 }
 0x227   :  { %v2989_v27 = vpack.c.bf16 %v2389_v50, %v2381_v31  ;;  %3669 = vmatpush.bf16.msrb.mxu1 %v2917_v47  ;;  %v2101_v21 = vcvt.s32.f32 %v1077_v0  ;;  %v1205_v18 = vunpack.c.1.s8 %v437_v6  ;;  %v2221_v36 = vcvt.s32.f32 %v1197_v24 }
 0x228   :  { %v3053_v39 = vpack.c.bf16 %v2517_v63, %v2509_v49  ;;  %v1341_v54 = vunpack.c.2.s8 %v469_v35  ;;  %v1349_v16 = vunpack.c.3.s8 %v469_v35  ;;  %v1469_v10 = vunpack.c.2.s8 %v501_v60  ;;  %v294_v49 = vld [vmem:[#allocation2 + $0xf0] sm:$0xff] }
 0x229   :  { %3681 = vmatpush.bf16.msrb.mxu2 %v2989_v27  ;;  %v7812_v30 = vmul.f32 %v7799_v28, %v7783_v55  ;;  %v2845_v29 = vpack.c.bf16 %v2101_v21, %v2093_v61  ;;  %v2229_v46 = vcvt.s32.f32 %v1205_v18  ;;  %v1477_v5 = vunpack.c.3.s8 %v501_v60  ;;  %v326_v63 = vld [vmem:[#allocation2 + $0x1f0] sm:$0xff] }
 0x22a   :  { %3694 = vmatpush.bf16.msrb.mxu3 %v3053_v39  ;;  %v2365_v6 = vcvt.s32.f32 %v1341_v54  ;;  %v2373_v23 = vcvt.s32.f32 %v1349_v16  ;;  %v2493_v15 = vcvt.s32.f32 %v1469_v10  ;;  %v3428_v53 = vadd.f32 %v7764_v9, %v7779_v48  ;;  %v3468_v54 = vpop.f32.mrf.mxu1 }
 0x22b   :  { %3657 = vmatpush.bf16.msrb.mxu0 %v2845_v29  ;;  %v2909_v25 = vpack.c.bf16 %v2229_v46, %v2221_v36  ;;  %v2501_v44 = vcvt.s32.f32 %v1477_v5  ;;  %v1053_v58 = vunpack.c.2.s8 %v397_v40  ;;  %v1061_v7 = vunpack.c.3.s8 %v397_v40 }
 0x22c   :  { %v2981_v32 = vpack.c.bf16 %v2373_v23, %v2365_v6  ;;  %v7821_v14 = vadd.f32 %v7766_v12, %v3428_v53  ;;  %v1181_v37 = vunpack.c.2.s8 %v429_v38  ;;  %v1189_v62 = vunpack.c.3.s8 %v429_v38 }
 0x22d   :  { %3670 = vmatpush.bf16.msrb.mxu1 %v2909_v25  ;;  %v3045_v52 = vpack.c.bf16 %v2501_v44, %v2493_v15  ;;  %v2077_v33 = vcvt.s32.f32 %v1053_v58  ;;  %v2085_v13 = vcvt.s32.f32 %v1061_v7  ;;  %v1325_v41 = vunpack.c.0.s8 %v469_v35  ;;  %v493_v15 = vld [vmem:[#allocation2 + $0x728] sm:$0xff] }
 0x22e   :  { %3682 = vmatpush.bf16.msrb.mxu2 %v2981_v32  ;;  %v2205_v31 = vcvt.s32.f32 %v1181_v37  ;;  %v2213_v19 = vcvt.s32.f32 %v1189_v62  ;;  %v1333_v9 = vunpack.c.1.s8 %v469_v35  ;;  %v1453_v48 = vunpack.c.0.s8 %v501_v60  ;;  %v3455_v39 = vpop.f32.mrf.mxu0 }
 0x22f   :  { %3695 = vmatpush.bf16.msrb.mxu3 %v3045_v52  ;;  %v2837_v50 = vpack.c.bf16 %v2085_v13, %v2077_v33  ;;  %v2349_v51 = vcvt.s32.f32 %v1325_v41  ;;  %v1461_v11 = vunpack.c.1.s8 %v501_v60  ;;  %v1037_v47 = vunpack.c.0.s8 %v397_v40  ;;  %v461_v60 = vld [vmem:[#allocation2 + $0x628] sm:$0xff]  ;;  %v390_v39 = vld [vmem:[#allocation2 + $0x3f0] sm:$0xff] }
 0x230   :  { %v2901_v12 = vpack.c.bf16 %v2213_v19, %v2205_v31  ;;  %v2357_v0 = vcvt.s32.f32 %v1333_v9  ;;  %v2477_v24 = vcvt.s32.f32 %v1453_v48  ;;  %v1045_v27 = vunpack.c.1.s8 %v397_v40 }
 0x231   :  { %3658 = vmatpush.bf16.msrb.mxu0 %v2837_v50  ;;  %v2485_v61 = vcvt.s32.f32 %v1461_v11  ;;  %v2061_v21 = vcvt.s32.f32 %v1037_v47  ;;  %v1165_v18 = vunpack.c.0.s8 %v429_v38  ;;  %v1173_v36 = vunpack.c.1.s8 %v429_v38  ;;  %v7823_v11 = vpop.f32.mrf.mxu2  ;;  %v7825_v47 = vpop.f32.mrf.mxu3 }
 0x232   :  { %3671 = vmatpush.bf16.msrb.mxu1 %v2901_v12  ;;  %v2973_v35 = vpack.c.bf16 %v2357_v0, %v2349_v51  ;;  %v2069_v16 = vcvt.s32.f32 %v1045_v27  ;;  %v638_v10 = vunpack.c.2.s8 %v294_v49  ;;  %v646_v29 = vunpack.c.3.s8 %v294_v49 }
 0x233   :  { %v3037_v46 = vpack.c.bf16 %v2485_v61, %v2477_v24  ;;  %v2189_v5 = vcvt.s32.f32 %v1165_v18  ;;  %v2197_v6 = vcvt.s32.f32 %v1173_v36  ;;  %v766_v23 = vunpack.c.2.s8 %v326_v63  ;;  %v358_v61 = vld [vmem:[#allocation2 + $0x2f0] sm:$0xff] }
 0x234   :  { %3683 = vmatpush.bf16.msrb.mxu2 %v2973_v35  ;;  %v2829_v40 = vpack.c.bf16 %v2069_v16, %v2061_v21  ;;  %v1662_v53 = vcvt.s32.f32 %v638_v10  ;;  %v1670_v25 = vcvt.s32.f32 %v646_v29  ;;  %v774_v44 = vunpack.c.3.s8 %v326_v63 }
 0x235   :  { %3696 = vmatpush.bf16.msrb.mxu3 %v3037_v46  ;;  %v2893_v38 = vpack.c.bf16 %v2197_v6, %v2189_v5  ;;  %v1790_v58 = vcvt.s32.f32 %v766_v23  ;;  %v1309_v7 = vunpack.c.2.s8 %v461_v60  ;;  %v1317_v32 = vunpack.c.3.s8 %v461_v60 }
 0x236   :  { %3659 = vmatpush.bf16.msrb.mxu0 %v2829_v40  ;;  %v2630_v37 = vpack.c.bf16 %v1670_v25, %v1662_v53  ;;  %v1798_v62 = vcvt.s32.f32 %v774_v44  ;;  %v1437_v52 = vunpack.c.2.s8 %v493_v15  ;;  %v1445_v33 = vunpack.c.3.s8 %v493_v15 }
 0x237   :  { %3672 = vmatpush.bf16.msrb.mxu1 %v2893_v38  ;;  %v2333_v13 = vcvt.s32.f32 %v1309_v7  ;;  %v2341_v41 = vcvt.s32.f32 %v1317_v32  ;;  %v622_v31 = vunpack.c.0.s8 %v294_v49  ;;  %v630_v19 = vunpack.c.1.s8 %v294_v49 }
 0x238   :  { %v2694_v9 = vpack.c.bf16 %v1798_v62, %v1790_v58  ;;  %v2461_v48 = vcvt.s32.f32 %v1437_v52  ;;  %v2469_v50 = vcvt.s32.f32 %v1445_v33  ;;  %v750_v51 = vunpack.c.0.s8 %v326_v63 }
 0x239   :  { %v2965_v12 = vpack.c.bf16 %v2341_v41, %v2333_v13  ;;  %3660 = vmatmul.bf16.vlgmr.msrb.gmra.mxu0 %v7299_v3  ;;  %v1646_v0 = vcvt.s32.f32 %v622_v31  ;;  %v1654_v24 = vcvt.s32.f32 %v630_v19  ;;  %v758_v27 = vunpack.c.1.s8 %v326_v63  ;;  %v286_v63 = vld [vmem:[#allocation2 + $0xb0] sm:$0xff]  ;;  %v3481_v31 = vpop.f32.mrf.mxu2  ;;  %v3494_v19 = vpop.f32.mrf.mxu3 }
 0x23a   :  { %3704 = vmatpush.bf16.msra.mxu0 %v2630_v37  ;;  %v3029_v21 = vpack.c.bf16 %v2469_v50, %v2461_v48  ;;  %v1774_v18 = vcvt.s32.f32 %v750_v51  ;;  %v1293_v49 = vunpack.c.0.s8 %v461_v60  ;;  %v1301_v36 = vunpack.c.1.s8 %v461_v60  ;;  %3673 = vmatmul.bf16.vlgmr.msrb.gmra.mxu1 %v7310_v17  ;;  %v318_v60 = vld [vmem:[#allocation2 + $0x1b0] sm:$0xff] }
 0x23b   :  { %3717 = vmatpush.bf16.msra.mxu1 %v2694_v9  ;;  %3684 = vmatpush.bf16.msrb.mxu2 %v2965_v12  ;;  %v2622_v54 = vpack.c.bf16 %v1654_v24, %v1646_v0  ;;  %v1782_v35 = vcvt.s32.f32 %v758_v27  ;;  %v1421_v16 = vunpack.c.0.s8 %v493_v15  ;;  %v1429_v10 = vunpack.c.1.s8 %v493_v15 }
 0x23c   :  { %3697 = vmatpush.bf16.msrb.mxu3 %v3029_v21  ;;  %v2317_v29 = vcvt.s32.f32 %v1293_v49  ;;  %v2325_v46 = vcvt.s32.f32 %v1301_v36  ;;  %v894_v5 = vunpack.c.2.s8 %v358_v61  ;;  %v902_v6 = vunpack.c.3.s8 %v358_v61 }
 0x23d   :  { %v2686_v23 = vpack.c.bf16 %v1782_v35, %v1774_v18  ;;  %v2445_v40 = vcvt.s32.f32 %v1421_v16  ;;  %v2453_v53 = vcvt.s32.f32 %v1429_v10  ;;  %v1022_v25 = vunpack.c.2.s8 %v390_v39 }
 0x23e   :  { %3705 = vmatpush.bf16.msra.mxu0 %v2622_v54  ;;  %v2957_v44 = vpack.c.bf16 %v2325_v46, %v2317_v29  ;;  %v1918_v38 = vcvt.s32.f32 %v894_v5  ;;  %v1926_v58 = vcvt.s32.f32 %v902_v6  ;;  %v1030_v7 = vunpack.c.3.s8 %v390_v39  ;;  %v350_v54 = vld [vmem:[#allocation2 + $0x2b0] sm:$0xff] }
 0x23f   :  { %3718 = vmatpush.bf16.msra.mxu1 %v2686_v23  ;;  %v3021_v32 = vpack.c.bf16 %v2453_v53, %v2445_v40  ;;  %v2046_v37 = vcvt.s32.f32 %v1022_v25  ;;  %v606_v15 = vunpack.c.2.s8 %v286_v63  ;;  %v614_v62 = vunpack.c.3.s8 %v286_v63  ;;  %v382_v23 = vld [vmem:[#allocation2 + $0x3b0] sm:$0xff] }
 0x240   :  { %3685 = vmatpush.bf16.msrb.mxu2 %v2957_v44  ;;  %v2758_v52 = vpack.c.bf16 %v1926_v58, %v1918_v38  ;;  %v2054_v33 = vcvt.s32.f32 %v1030_v7  ;;  %v734_v13 = vunpack.c.2.s8 %v318_v60  ;;  %v742_v41 = vunpack.c.3.s8 %v318_v60  ;;  %v278_v44 = vld [vmem:[#allocation2 + $0x70] sm:$0xff] }
 0x241   :  { %3698 = vmatpush.bf16.msrb.mxu3 %v3021_v32  ;;  %v1630_v9 = vcvt.s32.f32 %v606_v15  ;;  %v1638_v48 = vcvt.s32.f32 %v614_v62  ;;  %v878_v50 = vunpack.c.0.s8 %v358_v61  ;;  %v886_v51 = vunpack.c.1.s8 %v358_v61  ;;  %v310_v7 = vld [vmem:[#allocation2 + $0x170] sm:$0xff] }
 0x242   :  { %v2822_v12 = vpack.c.bf16 %v2054_v33, %v2046_v37  ;;  %v1758_v0 = vcvt.s32.f32 %v734_v13  ;;  %v1766_v24 = vcvt.s32.f32 %v742_v41  ;;  %v1006_v27 = vunpack.c.0.s8 %v390_v39 }
 0x243   :  { %3686 = vmatmul.bf16.vlgmr.msrb.gmra.mxu2 %v7362_v34  ;;  %v2614_v21 = vpack.c.bf16 %v1638_v48, %v1630_v9  ;;  %v1902_v18 = vcvt.s32.f32 %v878_v50  ;;  %v1910_v49 = vcvt.s32.f32 %v886_v51  ;;  %v1014_v36 = vunpack.c.1.s8 %v390_v39 }
 0x244   :  { %3730 = vmatpush.bf16.msra.mxu2 %v2758_v52  ;;  %v2678_v35 = vpack.c.bf16 %v1766_v24, %v1758_v0  ;;  %v2030_v16 = vcvt.s32.f32 %v1006_v27  ;;  %v3454_v10 = vadd.f32 %v7814_v4, %v7821_v14  ;;  %v590_v29 = vunpack.c.0.s8 %v286_v63  ;;  %3699 = vmatmul.bf16.vlgmr.msrb.gmra.mxu3 %v7369_v43 }
 0x245   :  { %3743 = vmatpush.bf16.msra.mxu3 %v2822_v12  ;;  %3706 = vmatpush.bf16.msra.mxu0 %v2614_v21  ;;  %v2750_v61 = vpack.c.bf16 %v1910_v49, %v1902_v18  ;;  %v2038_v46 = vcvt.s32.f32 %v1014_v36  ;;  %v598_v5 = vunpack.c.1.s8 %v286_v63  ;;  %v718_v6 = vunpack.c.0.s8 %v318_v60 }
 0x246   :  { %3719 = vmatpush.bf16.msra.mxu1 %v2678_v35  ;;  %v7834_v40 = vadd.f32 %v7816_v42, %v3454_v10  ;;  %v1614_v39 = vcvt.s32.f32 %v590_v29  ;;  %v726_v53 = vunpack.c.1.s8 %v318_v60  ;;  %v862_v25 = vunpack.c.2.s8 %v350_v54  ;;  %v342_v29 = vld [vmem:[#allocation2 + $0x270] sm:$0xff] }
 0x247   :  { %v2814_v38 = vpack.c.bf16 %v2038_v46, %v2030_v16  ;;  %v1622_v4 = vcvt.s32.f32 %v598_v5  ;;  %v1742_v14 = vcvt.s32.f32 %v718_v6  ;;  %v870_v58 = vunpack.c.3.s8 %v350_v54 }
 0x248   :  { %3731 = vmatpush.bf16.msra.mxu2 %v2750_v61  ;;  %v1750_v32 = vcvt.s32.f32 %v726_v53  ;;  %v1886_v37 = vcvt.s32.f32 %v862_v25  ;;  %v990_v15 = vunpack.c.2.s8 %v382_v23  ;;  %v998_v63 = vunpack.c.3.s8 %v382_v23 }
 0x249   :  { %3744 = vmatpush.bf16.msra.mxu3 %v2814_v38  ;;  %v2606_v62 = vpack.c.bf16 %v1622_v4, %v1614_v39  ;;  %v1894_v52 = vcvt.s32.f32 %v870_v58  ;;  %v574_v33 = vunpack.c.2.s8 %v278_v44  ;;  %v582_v42 = vunpack.c.3.s8 %v278_v44  ;;  %v374_v39 = vld [vmem:[#allocation2 + $0x370] sm:$0xff] }
 0x24a   :  { %v2670_v13 = vpack.c.bf16 %v1750_v32, %v1742_v14  ;;  %v2014_v41 = vcvt.s32.f32 %v990_v15  ;;  %v2022_v60 = vcvt.s32.f32 %v998_v63  ;;  %v702_v31 = vunpack.c.2.s8 %v310_v7  ;;  %v270_v32 = vld [vmem:[#allocation2 + $0x30] sm:$0xff] }
 0x24b   :  { %3707 = vmatpush.bf16.msra.mxu0 %v2606_v62  ;;  %v2742_v19 = vpack.c.bf16 %v1894_v52, %v1886_v37  ;;  %v1598_v9 = vcvt.s32.f32 %v574_v33  ;;  %v1606_v48 = vcvt.s32.f32 %v582_v42  ;;  %v710_v50 = vunpack.c.3.s8 %v310_v7  ;;  %v302_v62 = vld [vmem:[#allocation2 + $0x130] sm:$0xff] }
 0x24c   :  { %3720 = vmatpush.bf16.msra.mxu1 %v2670_v13  ;;  %v2806_v51 = vpack.c.bf16 %v2022_v60, %v2014_v41  ;;  %v1726_v12 = vcvt.s32.f32 %v702_v31  ;;  %v846_v0 = vunpack.c.0.s8 %v350_v54  ;;  %v854_v24 = vunpack.c.1.s8 %v350_v54 }
 0x24d   :  { %3732 = vmatpush.bf16.msra.mxu2 %v2742_v19  ;;  %v2598_v27 = vpack.c.bf16 %v1606_v48, %v1598_v9  ;;  %v1734_v21 = vcvt.s32.f32 %v710_v50  ;;  %v974_v18 = vunpack.c.0.s8 %v382_v23  ;;  %v982_v49 = vunpack.c.1.s8 %v382_v23 }
 0x24e   :  { %3745 = vmatpush.bf16.msra.mxu3 %v2806_v51  ;;  %v1870_v36 = vcvt.s32.f32 %v846_v0  ;;  %v1878_v35 = vcvt.s32.f32 %v854_v24  ;;  %v558_v16 = vunpack.c.0.s8 %v278_v44  ;;  %v566_v10 = vunpack.c.1.s8 %v278_v44 }
 0x24f   :  { %3708 = vmatpush.bf16.msra.mxu0 %v2598_v27  ;;  %v2662_v61 = vpack.c.bf16 %v1734_v21, %v1726_v12  ;;  %v1998_v46 = vcvt.s32.f32 %v974_v18  ;;  %v2006_v5 = vcvt.s32.f32 %v982_v49  ;;  %v686_v6 = vunpack.c.0.s8 %v310_v7 }
 0x250   :  { %v2734_v53 = vpack.c.bf16 %v1878_v35, %v1870_v36  ;;  %v1582_v25 = vcvt.s32.f32 %v558_v16  ;;  %v1590_v54 = vcvt.s32.f32 %v566_v10  ;;  %v694_v38 = vunpack.c.1.s8 %v310_v7 }
 0x251   :  { %3721 = vmatpush.bf16.msra.mxu1 %v2662_v61  ;;  %v2798_v4 = vpack.c.bf16 %v2006_v5, %v1998_v46  ;;  %v1710_v14 = vcvt.s32.f32 %v686_v6  ;;  %v830_v23 = vunpack.c.2.s8 %v342_v29  ;;  %v838_v58 = vunpack.c.3.s8 %v342_v29  ;;  %v7845_v61 = vpop.f32.mrf.mxu0  ;;  %v7847_v46 = vpop.f32.mrf.mxu1 }
 0x252   :  { %3733 = vmatpush.bf16.msra.mxu2 %v2734_v53  ;;  %v2590_v37 = vpack.c.bf16 %v1590_v54, %v1582_v25  ;;  %v1718_v44 = vcvt.s32.f32 %v694_v38  ;;  %v958_v15 = vunpack.c.2.s8 %v374_v39  ;;  %v966_v63 = vunpack.c.3.s8 %v374_v39  ;;  %v7849_v25 = vld [vmem:[#allocation2 + $0x4f0] sm:$0xff] }
 0x253   :  { %3746 = vmatpush.bf16.msra.mxu3 %v2798_v4  ;;  %v1854_v52 = vcvt.s32.f32 %v830_v23  ;;  %v1862_v33 = vcvt.s32.f32 %v838_v58  ;;  %v3480_v42 = vadd.f32 %v7823_v11, %v7834_v40  ;;  %v3916_v7 = vperm.slane %v7716_v8, 3 }
 0x254   :  { %3709 = vmatpush.bf16.msra.mxu0 %v2590_v37  ;;  %v2654_v13 = vpack.c.bf16 %v1718_v44, %v1710_v14  ;;  %v1982_v41 = vcvt.s32.f32 %v958_v15  ;;  %v1990_v60 = vcvt.s32.f32 %v966_v63  ;;  %v542_v31 = vunpack.c.2.s8 %v270_v32  ;;  %v7852_v14 = vld [vmem:[#allocation2 + $0x5f0] sm:$0xff] }
 0x255   :  { %v2726_v19 = vpack.c.bf16 %v1862_v33, %v1854_v52  ;;  %v3493_v9 = vadd.f32 %v7825_v47, %v3480_v42  ;;  %v550_v48 = vunpack.c.3.s8 %v270_v32  ;;  %v670_v50 = vunpack.c.2.s8 %v302_v62 }
 0x256   :  { %3722 = vmatpush.bf16.msra.mxu1 %v2654_v13  ;;  %v2790_v51 = vpack.c.bf16 %v1990_v60, %v1982_v41  ;;  %v1566_v12 = vcvt.s32.f32 %v542_v31  ;;  %v678_v0 = vunpack.c.3.s8 %v302_v62  ;;  %v814_v24 = vunpack.c.0.s8 %v342_v29  ;;  %v7857_v41 = vld [vmem:[#allocation2 + $0x230] sm:$0xff] }
 0x257   :  { %3734 = vmatpush.bf16.msra.mxu2 %v2726_v19  ;;  %v7840_v27 = vmul.f32 %v3916_v7, %v3493_v9  ;;  %v1574_v11 = vcvt.s32.f32 %v550_v48  ;;  %v1694_v8 = vcvt.s32.f32 %v670_v50  ;;  %v822_v40 = vunpack.c.1.s8 %v342_v29 }
 0x258   :  { %3747 = vmatpush.bf16.msra.mxu3 %v2790_v51  ;;  %v1702_v21 = vcvt.s32.f32 %v678_v0  ;;  %v1838_v18 = vcvt.s32.f32 %v814_v24  ;;  %v942_v49 = vunpack.c.0.s8 %v374_v39  ;;  %v950_v36 = vunpack.c.1.s8 %v374_v39 }
 0x259   :  { %v3955_v47 = vrot.slane %v7840_v27, 4  ;;  %v4003_v35 = vmul.f32 %v7840_v27, %v7840_v27  ;;  %v2582_v16 = vpack.c.bf16 %v1574_v11, %v1566_v12  ;;  %v1846_v10 = vcvt.s32.f32 %v822_v40  ;;  %v3507_v40 = vpop.f32.mrf.mxu0 }
 0x25a   :  { %v2646_v5 = vpack.c.bf16 %v1702_v21, %v1694_v8  ;;  %v1966_v6 = vcvt.s32.f32 %v942_v49  ;;  %v1974_v53 = vcvt.s32.f32 %v950_v36  ;;  %v526_v29 = vunpack.c.0.s8 %v270_v32  ;;  %v3520_v21 = vpop.f32.mrf.mxu1 }
 0x25b   :  { %v3956_v54 = vadd.f32 %v3955_v47, %v7840_v27  ;;  %v4026_v39 = vrot.slane %v4003_v35, 4  ;;  %3710 = vmatpush.bf16.msra.mxu0 %v2582_v16  ;;  %v2718_v38 = vpack.c.bf16 %v1846_v10, %v1838_v18  ;;  %v534_v4 = vunpack.c.1.s8 %v270_v32 }
 0x25c   :  { %3723 = vmatpush.bf16.msra.mxu1 %v2646_v5  ;;  %v2782_v23 = vpack.c.bf16 %v1974_v53, %v1966_v6  ;;  %v1550_v58 = vcvt.s32.f32 %v526_v29  ;;  %v654_v37 = vunpack.c.0.s8 %v302_v62  ;;  %v662_v44 = vunpack.c.1.s8 %v302_v62  ;;  %v7859_v62 = vld [vmem:[#allocation2 + $0x330] sm:$0xff] }
 0x25d   :  { %v3957_v15 = vrot.slane %v3956_v54, 2  ;;  %v4027_v63 = vadd.f32 %v4026_v39, %v4003_v35  ;;  %3735 = vmatpush.bf16.msra.mxu2 %v2718_v38  ;;  %v1558_v52 = vcvt.s32.f32 %v534_v4  ;;  %v1150_v33 = vunpack.c.2.s8 %v7849_v25 }
 0x25e   :  { %3748 = vmatpush.bf16.msra.mxu3 %v2782_v23  ;;  %v1678_v42 = vcvt.s32.f32 %v654_v37  ;;  %v1686_v7 = vcvt.s32.f32 %v662_v44  ;;  %v1158_v13 = vunpack.c.3.s8 %v7849_v25  ;;  %v1278_v32 = vunpack.c.2.s8 %v7852_v14 }
 0x25f   :  { %v3958_v60 = vadd.f32 %v3957_v15, %v3956_v54  ;;  %v4028_v31 = vrot.slane %v4027_v63, 2  ;;  %v2574_v19 = vpack.c.bf16 %v1558_v52, %v1550_v58  ;;  %v2174_v9 = vcvt.s32.f32 %v1150_v33 }
 0x260   :  { %v2638_v48 = vpack.c.bf16 %v1686_v7, %v1678_v42  ;;  %v2182_v50 = vcvt.s32.f32 %v1158_v13  ;;  %v1286_v51 = vunpack.c.3.s8 %v7852_v14  ;;  %v2302_v12 = vcvt.s32.f32 %v1278_v32  ;;  %v7882_v42 = vld [vmem:[#allocation2 + $0x6f0] sm:$0xff] }
 0x261   :  { %v4126_v0 = vmul.f32 %v7799_v28, %v7812_v30  ;;  %v3959_v24 = vrot.slane %v3958_v60, 1  ;;  %v4029_v11 = vadd.f32 %v4028_v31, %v4027_v63  ;;  %3711 = vmatpush.bf16.msra.mxu0 %v2574_v19  ;;  %v798_v8 = vunpack.c.2.s8 %v7857_v41 }
 0x262   :  { %3724 = vmatpush.bf16.msra.mxu1 %v2638_v48  ;;  %v2886_v18 = vpack.c.bf16 %v2182_v50, %v2174_v9  ;;  %v2310_v49 = vcvt.s32.f32 %v1286_v51  ;;  %v806_v36 = vunpack.c.3.s8 %v7857_v41  ;;  %v926_v47 = vunpack.c.2.s8 %v7859_v62  ;;  %v518_v9 = vld [vmem:[#allocation2 + $0x7f0] sm:$0xff] }
 0x263   :  { %v3960_v35 = vadd.f32 %v3959_v24, %v3958_v60  ;;  %v4030_v16 = vrot.slane %v4029_v11, 1  ;;  %v1822_v10 = vcvt.s32.f32 %v798_v8  ;;  %v934_v5 = vunpack.c.3.s8 %v7859_v62  ;;  %v7891_v24 = vpop.f32.mrf.mxu2 }
 0x264   :  { %v2950_v30 = vpack.c.bf16 %v2310_v49, %v2302_v12  ;;  %v1830_v6 = vcvt.s32.f32 %v806_v36  ;;  %v1950_v53 = vcvt.s32.f32 %v926_v47  ;;  %v1134_v29 = vunpack.c.0.s8 %v7849_v25  ;;  %3712 = vmatmul.bf16.vlgmr.msra.gmra.mxu0 %v7161_v2  ;;  %v446_v47 = vld [vmem:[#allocation2 + $0x5b0] sm:$0xff] }
 0x265   :  { %3756 = vmatpush.bf16.msrb.mxu0 %v2886_v18  ;;  %v7870_v54 = vmul.f32 %v7518_v26, %v3960_v35  ;;  %v4031_v39 = vadd.f32 %v4030_v16, %v4029_v11  ;;  %v1958_v38 = vcvt.s32.f32 %v934_v5  ;;  %3725 = vmatmul.bf16.vlgmr.msra.gmra.mxu1 %v7170_v20  ;;  %v1142_v4 = vunpack.c.1.s8 %v7849_v25  ;;  %v7893_v11 = vpop.f32.mrf.mxu3 }
 0x266   :  { %3769 = vmatpush.bf16.msrb.mxu1 %v2950_v30  ;;  %v2710_v23 = vpack.c.bf16 %v1830_v6, %v1822_v10  ;;  %v2158_v58 = vcvt.s32.f32 %v1134_v29  ;;  %v1262_v37 = vunpack.c.0.s8 %v7852_v14  ;;  %v1270_v44 = vunpack.c.1.s8 %v7852_v14 }
 0x267   :  { %v7877_v15 = vmul.f32 0.5, %v4126_v0  ;;  %v4059_v63 = vmul.f32 %v4031_v39, %v7518_v26  ;;  %v4067_v52 = vmul.f32 %v7870_v54, %v7870_v54  ;;  %v2774_v33 = vpack.c.bf16 %v1958_v38, %v1950_v53  ;;  %v7889_v0 = vld [vmem:[#allocation2 + $0x4b0] sm:$0xff] }
 0x268   :  { %3736 = vmatpush.bf16.msra.mxu2 %v2710_v23  ;;  %v2166_v7 = vcvt.s32.f32 %v1142_v4  ;;  %v2286_v25 = vcvt.s32.f32 %v1262_v37  ;;  %v2294_v13 = vcvt.s32.f32 %v1270_v44  ;;  %v782_v32 = vunpack.c.0.s8 %v7857_v41 }
 0x269   :  { %v4075_v60 = vsub.f32 %v4059_v63, %v4067_v52  ;;  %3749 = vmatpush.bf16.msra.mxu3 %v2774_v33  ;;  %v790_v14 = vunpack.c.1.s8 %v7857_v41  ;;  %v910_v31 = vunpack.c.0.s8 %v7859_v62  ;;  %v918_v19 = vunpack.c.1.s8 %v7859_v62 }
 0x26a   :  { %v2878_v48 = vpack.c.bf16 %v2166_v7, %v2158_v58  ;;  %v2942_v50 = vpack.c.bf16 %v2294_v13, %v2286_v25  ;;  %v1806_v51 = vcvt.s32.f32 %v782_v32  ;;  %v1406_v12 = vunpack.c.2.s8 %v7882_v42 }
 0x26b   :  { %v4083_v8 = vmax.f32 %v4075_v60, 0.0  ;;  %v1814_v40 = vcvt.s32.f32 %v790_v14  ;;  %v1934_v21 = vcvt.s32.f32 %v910_v31  ;;  %v1942_v41 = vcvt.s32.f32 %v918_v19  ;;  %v7908_v60 = vld [vmem:[#allocation2 + $0x6b0] sm:$0xff]  ;;  %v3533_v14 = vpop.f32.mrf.mxu2 }
 0x26c   :  { %3757 = vmatpush.bf16.msrb.mxu0 %v2878_v48  ;;  %3770 = vmatpush.bf16.msrb.mxu1 %v2942_v50  ;;  %v1414_v62 = vunpack.c.3.s8 %v7882_v42  ;;  %v2430_v18 = vcvt.s32.f32 %v1406_v12  ;;  %v1534_v49 = vunpack.c.2.s8 %v518_v9  ;;  %v1542_v36 = vunpack.c.3.s8 %v518_v9 }
 0x26d   :  { %v7896_v35 = vadd.f32 1e-05, %v4083_v8  ;;  %v2702_v16 = vpack.c.bf16 %v1814_v40, %v1806_v51  ;;  %v2766_v10 = vpack.c.bf16 %v1942_v41, %v1934_v21  ;;  %v1118_v5 = vunpack.c.2.s8 %v7889_v0  ;;  %v3546_v31 = vpop.f32.mrf.mxu3 }
 0x26e   :  { %v2438_v30 = vcvt.s32.f32 %v1414_v62  ;;  %v2558_v6 = vcvt.s32.f32 %v1534_v49  ;;  %v2566_v53 = vcvt.s32.f32 %v1542_v36  ;;  %v1126_v29 = vunpack.c.3.s8 %v7889_v0  ;;  %v510_v62 = vld [vmem:[#allocation2 + $0x7b0] sm:$0xff] }
 0x26f   :  { %v4128_v39 = vsub.f32 1.5, %v7877_v15  ;;  %6821 = vrsqrt.f32 %v7896_v35  ;;  %3737 = vmatpush.bf16.msra.mxu2 %v2702_v16  ;;  %3750 = vmatpush.bf16.msra.mxu3 %v2766_v10  ;;  %v2142_v38 = vcvt.s32.f32 %v1118_v5  ;;  %v1246_v4 = vunpack.c.2.s8 %v446_v47  ;;  %v406_v16 = vld [vmem:[#allocation2 + $0x470] sm:$0xff] }
 0x270   :  { %v3014_v23 = vpack.c.bf16 %v2438_v30, %v2430_v18  ;;  %v3078_v58 = vpack.c.bf16 %v2566_v53, %v2558_v6  ;;  %v2150_v37 = vcvt.s32.f32 %v1126_v29  ;;  %v1254_v44 = vunpack.c.3.s8 %v446_v47  ;;  %v438_v6 = vld [vmem:[#allocation2 + $0x570] sm:$0xff] }
 0x271   :  { %v2270_v63 = vcvt.s32.f32 %v1246_v4  ;;  %v1390_v52 = vunpack.c.0.s8 %v7882_v42  ;;  %v1398_v33 = vunpack.c.1.s8 %v7882_v42  ;;  %v1518_v7 = vunpack.c.0.s8 %v518_v9 }
 0x272   :  { %v2870_v25 = vpack.c.bf16 %v2150_v37, %v2142_v38  ;;  %v2278_v15 = vcvt.s32.f32 %v1254_v44  ;;  %v1526_v13 = vunpack.c.1.s8 %v518_v9  ;;  %v7906_v32 = vadd.f32 %v7847_v46, %v7845_v61  ;;  %3738 = vmatmul.bf16.vlgmr.msra.gmra.mxu2 %v7215_v45  ;;  %3751 = vmatmul.bf16.vlgmr.msra.gmra.mxu3 %v7225_v1 }
 0x273   :  { %3782 = vmatpush.bf16.msrb.mxu2 %v3014_v23  ;;  %3795 = vmatpush.bf16.msrb.mxu3 %v3078_v58  ;;  %v2414_v19 = vcvt.s32.f32 %v1390_v52  ;;  %v2422_v42 = vcvt.s32.f32 %v1398_v33  ;;  %v2542_v48 = vcvt.s32.f32 %v1518_v7  ;;  %v1102_v50 = vunpack.c.0.s8 %v7889_v0 }
 0x274   :  { %3758 = vmatpush.bf16.msrb.mxu0 %v2870_v25  ;;  %v2934_v51 = vpack.c.bf16 %v2278_v15, %v2270_v63  ;;  %v2550_v9 = vcvt.s32.f32 %v1526_v13  ;;  %v1110_v12 = vunpack.c.1.s8 %v7889_v0  ;;  %v1230_v61 = vunpack.c.0.s8 %v446_v47 }
 0x275   :  { %v7914_v46 = vpop.eup %6821  ;;  %v3006_v8 = vpack.c.bf16 %v2422_v42, %v2414_v19  ;;  %v2126_v40 = vcvt.s32.f32 %v1102_v50  ;;  %v1238_v21 = vunpack.c.1.s8 %v446_v47  ;;  %v1374_v41 = vunpack.c.2.s8 %v7908_v60 }
 0x276   :  { %v4090_v18 = vsub.f32 %v7720_v56, %v7747_v59  ;;  %vm4131_vm8 = vweird.f32 %v7799_v28  ;;  %3771 = vmatpush.bf16.msrb.mxu1 %v2934_v51  ;;  %v3070_v49 = vpack.c.bf16 %v2550_v9, %v2542_v48  ;;  %v2134_v36 = vcvt.s32.f32 %v1110_v12 }
 0x277   :  { %3783 = vmatpush.bf16.msrb.mxu2 %v3006_v8  ;;  %v2254_v0 = vcvt.s32.f32 %v1230_v61  ;;  %v2262_v10 = vcvt.s32.f32 %v1238_v21  ;;  %v1382_v5 = vunpack.c.3.s8 %v7908_v60  ;;  %v2398_v30 = vcvt.s32.f32 %v1374_v41  ;;  %v7939_v21 = vld [vmem:[%s8706_s5 + $0x8] sm:$0xff] }
 0x278   :  { %v4129_v47 = vmul.f32 %v7799_v28, %v4128_v39  ;;  %3796 = vmatpush.bf16.msrb.mxu3 %v3070_v49  ;;  %v2862_v53 = vpack.c.bf16 %v2134_v36, %v2126_v40  ;;  %v1502_v29 = vunpack.c.2.s8 %v510_v62  ;;  %v1510_v38 = vunpack.c.3.s8 %v510_v62  ;;  %v470_v40 = vld [vmem:[#allocation2 + $0x670] sm:$0xff] }
 0x279   :  { %v2926_v56 = vpack.c.bf16 %v2262_v10, %v2254_v0  ;;  %v2406_v59 = vcvt.s32.f32 %v1382_v5  ;;  %v1086_v4 = vunpack.c.2.s8 %v406_v16  ;;  %v1094_v23 = vunpack.c.3.s8 %v406_v16  ;;  %v502_v0 = vld [vmem:[#allocation2 + $0x770] sm:$0xff] }
 0x27a   :  { %vm4130_vm9 = vweird.f32 %v7783_v55  ;;  %3759 = vmatpush.bf16.msrb.mxu0 %v2862_v53  ;;  %v2526_v58 = vcvt.s32.f32 %v1502_v29  ;;  %v2534_v37 = vcvt.s32.f32 %v1510_v38  ;;  %v1214_v44 = vunpack.c.2.s8 %v438_v6  ;;  %v398_v38 = vld [vmem:[#allocation2 + $0x430] sm:$0xff] }
 0x27b   :  { %vm7925_vm10 = vmor %vm4130_vm9, %vm4131_vm8  ;;  %3772 = vmatpush.bf16.msrb.mxu1 %v2926_v56  ;;  %v2998_v39 = vpack.c.bf16 %v2406_v59, %v2398_v30  ;;  %v2110_v52 = vcvt.s32.f32 %v1086_v4  ;;  %v2118_v33 = vcvt.s32.f32 %v1094_v23  ;;  %v1222_v7 = vunpack.c.3.s8 %v438_v6 }
 0x27c   :  { %v4133_v25 = vsel %vm7925_vm10, %v7799_v28, %v4129_v47  ;;  %v3062_v55 = vpack.c.bf16 %v2534_v37, %v2526_v58  ;;  %v2238_v15 = vcvt.s32.f32 %v1214_v44  ;;  %v1358_v13 = vunpack.c.0.s8 %v7908_v60  ;;  %v430_v58 = vld [vmem:[#allocation2 + $0x530] sm:$0xff]  ;;  %v7947_v37 = vpop.f32.mrf.mxu0 }
 0x27d   :  { %3784 = vmatpush.bf16.msrb.mxu2 %v2998_v39  ;;  %v2854_v14 = vpack.c.bf16 %v2118_v33, %v2110_v52  ;;  %v2246_v31 = vcvt.s32.f32 %v1222_v7  ;;  %v1366_v19 = vunpack.c.1.s8 %v7908_v60  ;;  %v1486_v42 = vunpack.c.0.s8 %v510_v62 }
 0x27e   :  { %v4135_v48 = vmul.f32 %v7914_v46, %v7896_v35  ;;  %3797 = vmatpush.bf16.msrb.mxu3 %v3062_v55  ;;  %v2382_v50 = vcvt.s32.f32 %v1358_v13  ;;  %v1494_v51 = vunpack.c.1.s8 %v510_v62  ;;  %v1070_v9 = vunpack.c.0.s8 %v406_v16 }
 0x27f   :  { %3760 = vmatpush.bf16.msrb.mxu0 %v2854_v14  ;;  %v2918_v12 = vpack.c.bf16 %v2246_v31, %v2238_v15  ;;  %v2390_v28 = vcvt.s32.f32 %v1366_v19  ;;  %v2510_v61 = vcvt.s32.f32 %v1486_v42  ;;  %v1078_v8 = vunpack.c.1.s8 %v406_v16 }
 0x280   :  { %v4195_v60 = vperm.slane %v7939_v21, 2  ;;  %v2518_v41 = vcvt.s32.f32 %v1494_v51  ;;  %v2094_v49 = vcvt.s32.f32 %v1070_v9  ;;  %v1198_v36 = vunpack.c.0.s8 %v438_v6 }
 0x281   :  { %v7942_v10 = vmul.f32 %v4133_v25, %v4090_v18  ;;  %3773 = vmatpush.bf16.msrb.mxu1 %v2918_v12  ;;  %v2990_v62 = vpack.c.bf16 %v2390_v28, %v2382_v50  ;;  %v2102_v5 = vcvt.s32.f32 %v1078_v8  ;;  %v1206_v30 = vunpack.c.1.s8 %v438_v6  ;;  %v7949_v18 = vpop.f32.mrf.mxu1  ;;  %v295_v8 = vld [vmem:[#allocation2 + $0xf8] sm:$0xff] }
 0x282   :  { %v3054_v47 = vpack.c.bf16 %v2518_v41, %v2510_v61  ;;  %v2222_v16 = vcvt.s32.f32 %v1198_v36  ;;  %v1342_v53 = vunpack.c.2.s8 %v470_v40  ;;  %v1350_v29 = vunpack.c.3.s8 %v470_v40 }
 0x283   :  { %v7945_v56 = vmul.f32 %v7914_v46, %v4135_v48  ;;  %3785 = vmatpush.bf16.msrb.mxu2 %v2990_v62  ;;  %v2846_v59 = vpack.c.bf16 %v2102_v5, %v2094_v49  ;;  %v2230_v4 = vcvt.s32.f32 %v1206_v30  ;;  %v1470_v23 = vunpack.c.2.s8 %v502_v0 }
 0x284   :  { %3798 = vmatpush.bf16.msrb.mxu3 %v3054_v47  ;;  %v2366_v44 = vcvt.s32.f32 %v1342_v53  ;;  %v2374_v6 = vcvt.s32.f32 %v1350_v29  ;;  %v1478_v63 = vunpack.c.3.s8 %v502_v0  ;;  %v3532_v39 = vadd.f32 %v7891_v24, %v7906_v32  ;;  %v3559_v53 = vpop.f32.mrf.mxu0 }
 0x285   :  { %3761 = vmatpush.bf16.msrb.mxu0 %v2846_v59  ;;  %v2910_v52 = vpack.c.bf16 %v2230_v4, %v2222_v16  ;;  %v2494_v33 = vcvt.s32.f32 %v1470_v23  ;;  %v1054_v7 = vunpack.c.2.s8 %v398_v38  ;;  %v1062_v25 = vunpack.c.3.s8 %v398_v38  ;;  %v327_v16 = vld [vmem:[#allocation2 + $0x1f8] sm:$0xff] }
 0x286   :  { %v2982_v55 = vpack.c.bf16 %v2374_v6, %v2366_v44  ;;  %v2502_v15 = vcvt.s32.f32 %v1478_v63  ;;  %v7954_v13 = vadd.f32 %v7893_v11, %v3532_v39  ;;  %v1182_v14 = vunpack.c.2.s8 %v430_v58  ;;  %v462_v44 = vld [vmem:[#allocation2 + $0x630] sm:$0xff] }
 0x287   :  { %3774 = vmatpush.bf16.msrb.mxu1 %v2910_v52  ;;  %v2078_v31 = vcvt.s32.f32 %v1054_v7  ;;  %v2086_v19 = vcvt.s32.f32 %v1062_v25  ;;  %v1190_v42 = vunpack.c.3.s8 %v430_v58  ;;  %v1326_v48 = vunpack.c.0.s8 %v470_v40  ;;  %v494_v52 = vld [vmem:[#allocation2 + $0x730] sm:$0xff] }
 0x288   :  { %3786 = vmatpush.bf16.msrb.mxu2 %v2982_v55  ;;  %v3046_v50 = vpack.c.bf16 %v2502_v15, %v2494_v33  ;;  %v2206_v51 = vcvt.s32.f32 %v1182_v14  ;;  %v1334_v24 = vunpack.c.1.s8 %v470_v40  ;;  %v1454_v32 = vunpack.c.0.s8 %v502_v0 }
 0x289   :  { %v2838_v9 = vpack.c.bf16 %v2086_v19, %v2078_v31  ;;  %v2214_v12 = vcvt.s32.f32 %v1190_v42  ;;  %v2350_v28 = vcvt.s32.f32 %v1326_v48  ;;  %v1462_v61 = vunpack.c.1.s8 %v502_v0  ;;  %v3572_v29 = vpop.f32.mrf.mxu1 }
 0x28a   :  { %3799 = vmatpush.bf16.msrb.mxu3 %v3046_v50  ;;  %v2358_v41 = vcvt.s32.f32 %v1334_v24  ;;  %v2478_v11 = vcvt.s32.f32 %v1454_v32  ;;  %v1038_v49 = vunpack.c.0.s8 %v398_v38  ;;  %v1046_v36 = vunpack.c.1.s8 %v398_v38 }
 0x28b   :  { %3762 = vmatpush.bf16.msrb.mxu0 %v2838_v9  ;;  %v2902_v62 = vpack.c.bf16 %v2214_v12, %v2206_v51  ;;  %v2486_v5 = vcvt.s32.f32 %v1462_v61  ;;  %v1166_v30 = vunpack.c.0.s8 %v430_v58  ;;  %v1174_v47 = vunpack.c.1.s8 %v430_v58 }
 0x28c   :  { %v2974_v40 = vpack.c.bf16 %v2358_v41, %v2350_v28  ;;  %v2062_v59 = vcvt.s32.f32 %v1038_v49  ;;  %v2070_v4 = vcvt.s32.f32 %v1046_v36  ;;  %v639_v23 = vunpack.c.2.s8 %v295_v8  ;;  %v7956_v41 = vpop.f32.mrf.mxu2 }
 0x28d   :  { %3775 = vmatpush.bf16.msrb.mxu1 %v2902_v62  ;;  %v3038_v0 = vpack.c.bf16 %v2486_v5, %v2478_v11  ;;  %v2190_v6 = vcvt.s32.f32 %v1166_v30  ;;  %v2198_v63 = vcvt.s32.f32 %v1174_v47  ;;  %v647_v39 = vunpack.c.3.s8 %v295_v8  ;;  %v7958_v11 = vpop.f32.mrf.mxu3  ;;  %v359_v30 = vld [vmem:[#allocation2 + $0x2f8] sm:$0xff] }
 0x28e   :  { %3787 = vmatpush.bf16.msrb.mxu2 %v2974_v40  ;;  %v2830_v38 = vpack.c.bf16 %v2070_v4, %v2062_v59  ;;  %v1663_v33 = vcvt.s32.f32 %v639_v23  ;;  %v767_v7 = vunpack.c.2.s8 %v327_v16  ;;  %v775_v25 = vunpack.c.3.s8 %v327_v16 }
 0x28f   :  { %3800 = vmatpush.bf16.msrb.mxu3 %v3038_v0  ;;  %v2894_v58 = vpack.c.bf16 %v2198_v63, %v2190_v6  ;;  %v1671_v55 = vcvt.s32.f32 %v647_v39  ;;  %v1310_v15 = vunpack.c.2.s8 %v462_v44  ;;  %v1318_v14 = vunpack.c.3.s8 %v462_v44  ;;  %v391_v0 = vld [vmem:[#allocation2 + $0x3f8] sm:$0xff] }
 0x290   :  { %3763 = vmatpush.bf16.msrb.mxu0 %v2830_v38  ;;  %v1791_v31 = vcvt.s32.f32 %v767_v7  ;;  %v1799_v19 = vcvt.s32.f32 %v775_v25  ;;  %v1438_v42 = vunpack.c.2.s8 %v494_v52  ;;  %v1446_v48 = vunpack.c.3.s8 %v494_v52  ;;  %v287_v38 = vld [vmem:[#allocation2 + $0xb8] sm:$0xff] }
 0x291   :  { %3776 = vmatpush.bf16.msrb.mxu1 %v2894_v58  ;;  %v2631_v50 = vpack.c.bf16 %v1671_v55, %v1663_v33  ;;  %v2334_v51 = vcvt.s32.f32 %v1310_v15  ;;  %v2342_v24 = vcvt.s32.f32 %v1318_v14  ;;  %v623_v32 = vunpack.c.0.s8 %v295_v8  ;;  %v319_v55 = vld [vmem:[#allocation2 + $0x1b8] sm:$0xff] }
 0x292   :  { %v2695_v9 = vpack.c.bf16 %v1799_v19, %v1791_v31  ;;  %v2462_v12 = vcvt.s32.f32 %v1438_v42  ;;  %v2470_v28 = vcvt.s32.f32 %v1446_v48  ;;  %v631_v61 = vunpack.c.1.s8 %v295_v8 }
 0x293   :  { %v2966_v49 = vpack.c.bf16 %v2342_v24, %v2334_v51  ;;  %v1647_v36 = vcvt.s32.f32 %v623_v32  ;;  %v751_v62 = vunpack.c.0.s8 %v327_v16  ;;  %v759_v5 = vunpack.c.1.s8 %v327_v16  ;;  %3764 = vmatmul.bf16.vlgmr.msrb.gmra.mxu0 %v7299_v3 }
 0x294   :  { %3808 = vmatpush.bf16.msra.mxu0 %v2631_v50  ;;  %v3030_v47 = vpack.c.bf16 %v2470_v28, %v2462_v12  ;;  %v1655_v53 = vcvt.s32.f32 %v631_v61  ;;  %v1294_v29 = vunpack.c.0.s8 %v462_v44  ;;  %v1302_v40 = vunpack.c.1.s8 %v462_v44  ;;  %3777 = vmatmul.bf16.vlgmr.msrb.gmra.mxu1 %v7310_v17 }
 0x295   :  { %3821 = vmatpush.bf16.msra.mxu1 %v2695_v9  ;;  %3788 = vmatpush.bf16.msrb.mxu2 %v2966_v49  ;;  %v1775_v8 = vcvt.s32.f32 %v751_v62  ;;  %v1783_v59 = vcvt.s32.f32 %v759_v5  ;;  %v1422_v4 = vunpack.c.0.s8 %v494_v52  ;;  %v1430_v23 = vunpack.c.1.s8 %v494_v52  ;;  %v3585_v9 = vpop.f32.mrf.mxu2  ;;  %v3598_v12 = vpop.f32.mrf.mxu3 }
 0x296   :  { %3801 = vmatpush.bf16.msrb.mxu3 %v3030_v47  ;;  %v2623_v6 = vpack.c.bf16 %v1655_v53, %v1647_v36  ;;  %v2318_v63 = vcvt.s32.f32 %v1294_v29  ;;  %v2326_v16 = vcvt.s32.f32 %v1302_v40  ;;  %v895_v39 = vunpack.c.2.s8 %v359_v30 }
 0x297   :  { %v2687_v33 = vpack.c.bf16 %v1783_v59, %v1775_v8  ;;  %v2446_v7 = vcvt.s32.f32 %v1422_v4  ;;  %v2454_v25 = vcvt.s32.f32 %v1430_v23  ;;  %v903_v58 = vunpack.c.3.s8 %v359_v30 }
 0x298   :  { %3809 = vmatpush.bf16.msra.mxu0 %v2623_v6  ;;  %v2958_v44 = vpack.c.bf16 %v2326_v16, %v2318_v63  ;;  %v1919_v15 = vcvt.s32.f32 %v895_v39  ;;  %v1023_v14 = vunpack.c.2.s8 %v391_v0  ;;  %v1031_v31 = vunpack.c.3.s8 %v391_v0  ;;  %v351_v16 = vld [vmem:[#allocation2 + $0x2b8] sm:$0xff] }
 0x299   :  { %3822 = vmatpush.bf16.msra.mxu1 %v2687_v33  ;;  %v3022_v19 = vpack.c.bf16 %v2454_v25, %v2446_v7  ;;  %v1927_v52 = vcvt.s32.f32 %v903_v58  ;;  %v607_v42 = vunpack.c.2.s8 %v287_v38  ;;  %v615_v48 = vunpack.c.3.s8 %v287_v38  ;;  %v383_v25 = vld [vmem:[#allocation2 + $0x3b8] sm:$0xff] }
 0x29a   :  { %3789 = vmatpush.bf16.msrb.mxu2 %v2958_v44  ;;  %v2047_v50 = vcvt.s32.f32 %v1023_v14  ;;  %v2055_v51 = vcvt.s32.f32 %v1031_v31  ;;  %v735_v24 = vunpack.c.2.s8 %v319_v55  ;;  %v743_v32 = vunpack.c.3.s8 %v319_v55  ;;  %v279_v14 = vld [vmem:[#allocation2 + $0x78] sm:$0xff] }
 0x29b   :  { %3802 = vmatpush.bf16.msrb.mxu3 %v3022_v19  ;;  %v2759_v28 = vpack.c.bf16 %v1927_v52, %v1919_v15  ;;  %v1631_v61 = vcvt.s32.f32 %v607_v42  ;;  %v1639_v49 = vcvt.s32.f32 %v615_v48  ;;  %v879_v36 = vunpack.c.0.s8 %v359_v30 }
 0x29c   :  { %v2823_v62 = vpack.c.bf16 %v2055_v51, %v2047_v50  ;;  %v1759_v5 = vcvt.s32.f32 %v735_v24  ;;  %v1767_v47 = vcvt.s32.f32 %v743_v32  ;;  %v887_v53 = vunpack.c.1.s8 %v359_v30 }
 0x29d   :  { %v2615_v29 = vpack.c.bf16 %v1639_v49, %v1631_v61  ;;  %v1903_v40 = vcvt.s32.f32 %v879_v36  ;;  %v1007_v8 = vunpack.c.0.s8 %v391_v0  ;;  %v1015_v59 = vunpack.c.1.s8 %v391_v0  ;;  %3790 = vmatmul.bf16.vlgmr.msrb.gmra.mxu2 %v7362_v34 }
 0x29e   :  { %3834 = vmatpush.bf16.msra.mxu2 %v2759_v28  ;;  %v2679_v4 = vpack.c.bf16 %v1767_v47, %v1759_v5  ;;  %v1911_v23 = vcvt.s32.f32 %v887_v53  ;;  %v3558_v6 = vadd.f32 %v7947_v37, %v7954_v13  ;;  %v591_v63 = vunpack.c.0.s8 %v287_v38  ;;  %3803 = vmatmul.bf16.vlgmr.msrb.gmra.mxu3 %v7369_v43 }
 0x29f   :  { %3847 = vmatpush.bf16.msra.mxu3 %v2823_v62  ;;  %3810 = vmatpush.bf16.msra.mxu0 %v2615_v29  ;;  %v2031_v39 = vcvt.s32.f32 %v1007_v8  ;;  %v2039_v30 = vcvt.s32.f32 %v1015_v59  ;;  %v599_v33 = vunpack.c.1.s8 %v287_v38  ;;  %v719_v7 = vunpack.c.0.s8 %v319_v55  ;;  %v311_v38 = vld [vmem:[#allocation2 + $0x178] sm:$0xff] }
 0x2a0   :  { %3823 = vmatpush.bf16.msra.mxu1 %v2679_v4  ;;  %v2751_v0 = vpack.c.bf16 %v1911_v23, %v1903_v40  ;;  %v7967_v58 = vadd.f32 %v7949_v18, %v3558_v6  ;;  %v1615_v44 = vcvt.s32.f32 %v591_v63  ;;  %v727_v15 = vunpack.c.1.s8 %v319_v55 }
 0x2a1   :  { %v2815_v31 = vpack.c.bf16 %v2039_v30, %v2031_v39  ;;  %v1623_v37 = vcvt.s32.f32 %v599_v33  ;;  %v1743_v13 = vcvt.s32.f32 %v719_v7  ;;  %v863_v19 = vunpack.c.2.s8 %v351_v16  ;;  %v343_v30 = vld [vmem:[#allocation2 + $0x278] sm:$0xff] }
 0x2a2   :  { %3835 = vmatpush.bf16.msra.mxu2 %v2751_v0  ;;  %v1751_v52 = vcvt.s32.f32 %v727_v15  ;;  %v871_v42 = vunpack.c.3.s8 %v351_v16  ;;  %v991_v48 = vunpack.c.2.s8 %v383_v25  ;;  %v999_v50 = vunpack.c.3.s8 %v383_v25  ;;  %v7969_v15 = vld [vmem:[#allocation2 + $0x378] sm:$0xff] }
 0x2a3   :  { %3848 = vmatpush.bf16.msra.mxu3 %v2815_v31  ;;  %v2607_v51 = vpack.c.bf16 %v1623_v37, %v1615_v44  ;;  %v1887_v24 = vcvt.s32.f32 %v863_v19  ;;  %v575_v32 = vunpack.c.2.s8 %v279_v14  ;;  %v583_v9 = vunpack.c.3.s8 %v279_v14 }
 0x2a4   :  { %v2671_v18 = vpack.c.bf16 %v1751_v52, %v1743_v13  ;;  %v1895_v12 = vcvt.s32.f32 %v871_v42  ;;  %v2015_v28 = vcvt.s32.f32 %v991_v48  ;;  %v2023_v55 = vcvt.s32.f32 %v999_v50 }
 0x2a5   :  { %3811 = vmatpush.bf16.msra.mxu0 %v2607_v51  ;;  %v1599_v61 = vcvt.s32.f32 %v575_v32  ;;  %v1607_v49 = vcvt.s32.f32 %v583_v9  ;;  %v703_v36 = vunpack.c.2.s8 %v311_v38  ;;  %v711_v62 = vunpack.c.3.s8 %v311_v38 }
 0x2a6   :  { %3824 = vmatpush.bf16.msra.mxu1 %v2671_v18  ;;  %v2743_v5 = vpack.c.bf16 %v1895_v12, %v1887_v24  ;;  %v2807_v47 = vpack.c.bf16 %v2023_v55, %v2015_v28  ;;  %v847_v53 = vunpack.c.0.s8 %v351_v16  ;;  %v855_v29 = vunpack.c.1.s8 %v351_v16 }
 0x2a7   :  { %v2599_v40 = vpack.c.bf16 %v1607_v49, %v1599_v61  ;;  %v1727_v8 = vcvt.s32.f32 %v703_v36  ;;  %v1735_v59 = vcvt.s32.f32 %v711_v62  ;;  %v975_v4 = vunpack.c.0.s8 %v383_v25  ;;  %v7978_v49 = vld [vmem:[%s8706_s5 + $0x18] sm:$0xff] }
 0x2a8   :  { %3836 = vmatpush.bf16.msra.mxu2 %v2743_v5  ;;  %3849 = vmatpush.bf16.msra.mxu3 %v2807_v47  ;;  %v1871_v23 = vcvt.s32.f32 %v847_v53  ;;  %v1879_v6 = vcvt.s32.f32 %v855_v29  ;;  %v983_v63 = vunpack.c.1.s8 %v383_v25  ;;  %v559_v39 = vunpack.c.0.s8 %v279_v14 }
 0x2a9   :  { %3812 = vmatpush.bf16.msra.mxu0 %v2599_v40  ;;  %v2663_v33 = vpack.c.bf16 %v1735_v59, %v1727_v8  ;;  %v1999_v7 = vcvt.s32.f32 %v975_v4  ;;  %v567_v0 = vunpack.c.1.s8 %v279_v14  ;;  %v687_v44 = vunpack.c.0.s8 %v311_v38  ;;  %v271_v14 = vld [vmem:[#allocation2 + $0x38] sm:$0xff] }
 0x2aa   :  { %v2735_v31 = vpack.c.bf16 %v1879_v6, %v1871_v23  ;;  %v2007_v16 = vcvt.s32.f32 %v983_v63  ;;  %v1583_v37 = vcvt.s32.f32 %v559_v39  ;;  %v695_v13 = vunpack.c.1.s8 %v311_v38  ;;  %v303_v38 = vld [vmem:[#allocation2 + $0x138] sm:$0xff] }
 0x2ab   :  { %3825 = vmatpush.bf16.msra.mxu1 %v2663_v33  ;;  %v1591_v19 = vcvt.s32.f32 %v567_v0  ;;  %v1711_v52 = vcvt.s32.f32 %v687_v44  ;;  %v831_v42 = vunpack.c.2.s8 %v343_v30  ;;  %v839_v48 = vunpack.c.3.s8 %v343_v30 }
 0x2ac   :  { %3837 = vmatpush.bf16.msra.mxu2 %v2735_v31  ;;  %v2799_v25 = vpack.c.bf16 %v2007_v16, %v1999_v7  ;;  %v1719_v50 = vcvt.s32.f32 %v695_v13  ;;  %v959_v51 = vunpack.c.2.s8 %v7969_v15  ;;  %v967_v24 = vunpack.c.3.s8 %v7969_v15  ;;  %v7988_v31 = vpop.f32.mrf.mxu0  ;;  %v7990_v16 = vpop.f32.mrf.mxu1 }
 0x2ad   :  { %v2591_v32 = vpack.c.bf16 %v1591_v19, %v1583_v37  ;;  %v1855_v9 = vcvt.s32.f32 %v831_v42  ;;  %v1863_v18 = vcvt.s32.f32 %v839_v48  ;;  %v3584_v12 = vadd.f32 %v7956_v41, %v7967_v58 }
 0x2ae   :  { %3850 = vmatpush.bf16.msra.mxu3 %v2799_v25  ;;  %v2655_v28 = vpack.c.bf16 %v1719_v50, %v1711_v52  ;;  %v1983_v55 = vcvt.s32.f32 %v959_v51  ;;  %v1991_v61 = vcvt.s32.f32 %v967_v24  ;;  %v3917_v36 = vperm.slane %v7978_v49, 4  ;;  %v7993_v52 = vld [vmem:[#allocation2 + $0x4f8] sm:$0xff] }
 0x2af   :  { %3813 = vmatpush.bf16.msra.mxu0 %v2591_v32  ;;  %v2727_v62 = vpack.c.bf16 %v1863_v18, %v1855_v9  ;;  %v3597_v5 = vadd.f32 %v7958_v11, %v3584_v12  ;;  %v543_v47 = vunpack.c.2.s8 %v271_v14  ;;  %v551_v53 = vunpack.c.3.s8 %v271_v14 }
 0x2b0   :  { %3826 = vmatpush.bf16.msra.mxu1 %v2655_v28  ;;  %v2791_v41 = vpack.c.bf16 %v1991_v61, %v1983_v55  ;;  %v671_v58 = vunpack.c.2.s8 %v303_v38  ;;  %v679_v29 = vunpack.c.3.s8 %v303_v38  ;;  %v815_v40 = vunpack.c.0.s8 %v343_v30  ;;  %v7997_v55 = vld [vmem:[#allocation2 + $0x5f8] sm:$0xff] }
 0x2b1   :  { %3838 = vmatpush.bf16.msra.mxu2 %v2727_v62  ;;  %v7982_v8 = vmul.f32 %v3917_v36, %v3597_v5  ;;  %v1567_v59 = vcvt.s32.f32 %v543_v47  ;;  %v1575_v4 = vcvt.s32.f32 %v551_v53  ;;  %v823_v23 = vunpack.c.1.s8 %v343_v30  ;;  %v8000_v47 = vld [vmem:[#allocation2 + $0x238] sm:$0xff] }
 0x2b2   :  { %3851 = vmatpush.bf16.msra.mxu3 %v2791_v41  ;;  %v1695_v6 = vcvt.s32.f32 %v671_v58  ;;  %v1703_v63 = vcvt.s32.f32 %v679_v29  ;;  %v1839_v39 = vcvt.s32.f32 %v815_v40  ;;  %v943_v33 = vunpack.c.0.s8 %v7969_v15 }
 0x2b3   :  { %v3961_v11 = vrot.slane %v7982_v8, 4  ;;  %v4004_v7 = vmul.f32 %v7982_v8, %v7982_v8  ;;  %v2583_v0 = vpack.c.bf16 %v1575_v4, %v1567_v59  ;;  %v1847_v44 = vcvt.s32.f32 %v823_v23  ;;  %v8004_v4 = vld [vmem:[#allocation2 + $0x338] sm:$0xff] }
 0x2b4   :  { %v2647_v37 = vpack.c.bf16 %v1703_v63, %v1695_v6  ;;  %v951_v30 = vunpack.c.1.s8 %v7969_v15  ;;  %v1967_v13 = vcvt.s32.f32 %v943_v33  ;;  %v527_v19 = vunpack.c.0.s8 %v271_v14  ;;  %v3611_v33 = vpop.f32.mrf.mxu0 }
 0x2b5   :  { %v3962_v42 = vadd.f32 %v3961_v11, %v7982_v8  ;;  %v4032_v48 = vrot.slane %v4004_v7, 4  ;;  %3814 = vmatpush.bf16.msra.mxu0 %v2583_v0  ;;  %v2719_v25 = vpack.c.bf16 %v1847_v44, %v1839_v39  ;;  %v535_v50 = vunpack.c.1.s8 %v271_v14  ;;  %v3624_v11 = vpop.f32.mrf.mxu1 }
 0x2b6   :  { %3827 = vmatpush.bf16.msra.mxu1 %v2647_v37  ;;  %v1975_v51 = vcvt.s32.f32 %v951_v30  ;;  %v1551_v24 = vcvt.s32.f32 %v527_v19  ;;  %v655_v32 = vunpack.c.0.s8 %v303_v38  ;;  %v663_v9 = vunpack.c.1.s8 %v303_v38 }
 0x2b7   :  { %v3963_v18 = vrot.slane %v3962_v42, 2  ;;  %v4033_v12 = vadd.f32 %v4032_v48, %v4004_v7  ;;  %3839 = vmatpush.bf16.msra.mxu2 %v2719_v25  ;;  %v1559_v28 = vcvt.s32.f32 %v535_v50  ;;  %v1151_v15 = vunpack.c.2.s8 %v7993_v52 }
 0x2b8   :  { %v2783_v61 = vpack.c.bf16 %v1975_v51, %v1967_v13  ;;  %v1679_v36 = vcvt.s32.f32 %v655_v32  ;;  %v1687_v62 = vcvt.s32.f32 %v663_v9  ;;  %v1159_v5 = vunpack.c.3.s8 %v7993_v52 }
 0x2b9   :  { %v3964_v14 = vadd.f32 %v3963_v18, %v3962_v42  ;;  %v4034_v53 = vrot.slane %v4033_v12, 2  ;;  %v2575_v41 = vpack.c.bf16 %v1559_v28, %v1551_v24  ;;  %v2175_v58 = vcvt.s32.f32 %v1151_v15 }
 0x2ba   :  { %3852 = vmatpush.bf16.msra.mxu3 %v2783_v61  ;;  %v2639_v38 = vpack.c.bf16 %v1687_v62, %v1679_v36  ;;  %v2183_v29 = vcvt.s32.f32 %v1159_v5  ;;  %v1279_v40 = vunpack.c.2.s8 %v7997_v55  ;;  %v1287_v59 = vunpack.c.3.s8 %v7997_v55 }
 0x2bb   :  { %v8007_v23 = vmul.f32 0.5, %v7945_v56  ;;  %v3965_v6 = vrot.slane %v3964_v14, 1  ;;  %v4035_v63 = vadd.f32 %v4034_v53, %v4033_v12  ;;  %3815 = vmatpush.bf16.msra.mxu0 %v2575_v41  ;;  %v799_v39 = vunpack.c.2.s8 %v8000_v47 }
 0x2bc   :  { %3828 = vmatpush.bf16.msra.mxu1 %v2639_v38  ;;  %v2887_v7 = vpack.c.bf16 %v2183_v29, %v2175_v58  ;;  %v2303_v0 = vcvt.s32.f32 %v1279_v40  ;;  %v2311_v44 = vcvt.s32.f32 %v1287_v59  ;;  %v807_v37 = vunpack.c.3.s8 %v8000_v47  ;;  %v519_v40 = vld [vmem:[#allocation2 + $0x7f8] sm:$0xff] }
 0x2bd   :  { %v3966_v30 = vadd.f32 %v3965_v6, %v3964_v14  ;;  %v4036_v13 = vrot.slane %v4035_v63, 1  ;;  %v1823_v19 = vcvt.s32.f32 %v799_v39  ;;  %v927_v42 = vunpack.c.2.s8 %v8004_v4  ;;  %v8025_v14 = vld [vmem:[#allocation2 + $0x6f8] sm:$0xff]  ;;  %v8033_v39 = vpop.f32.mrf.mxu2 }
 0x2be   :  { %v2951_v56 = vpack.c.bf16 %v2311_v44, %v2303_v0  ;;  %v1831_v48 = vcvt.s32.f32 %v807_v37  ;;  %v935_v25 = vunpack.c.3.s8 %v8004_v4  ;;  %v1135_v50 = vunpack.c.0.s8 %v7993_v52  ;;  %3816 = vmatmul.bf16.vlgmr.msra.gmra.mxu0 %v7161_v2  ;;  %v8038_v0 = vld [vmem:[#allocation2 + $0x4b8] sm:$0xff] }
 0x2bf   :  { %3860 = vmatpush.bf16.msrb.mxu0 %v2887_v7  ;;  %v8015_v51 = vmul.f32 %v7518_v26, %v3966_v30  ;;  %v4037_v24 = vadd.f32 %v4036_v13, %v4035_v63  ;;  %v1951_v32 = vcvt.s32.f32 %v927_v42  ;;  %3829 = vmatmul.bf16.vlgmr.msra.gmra.mxu1 %v7170_v20  ;;  %v1143_v9 = vunpack.c.1.s8 %v7993_v52 }
 0x2c0   :  { %3873 = vmatpush.bf16.msrb.mxu1 %v2951_v56  ;;  %v2711_v18 = vpack.c.bf16 %v1831_v48, %v1823_v19  ;;  %v1959_v12 = vcvt.s32.f32 %v935_v25  ;;  %v2159_v28 = vcvt.s32.f32 %v1135_v50  ;;  %v1263_v15 = vunpack.c.0.s8 %v7997_v55  ;;  %v447_v48 = vld [vmem:[#allocation2 + $0x5b8] sm:$0xff] }
 0x2c1   :  { %v4138_v61 = vsub.f32 1.5, %v8007_v23  ;;  %v4060_v36 = vmul.f32 %v4037_v24, %v7518_v26  ;;  %v4068_v62 = vmul.f32 %v8015_v51, %v8015_v51  ;;  %v2167_v5 = vcvt.s32.f32 %v1143_v9 }
 0x2c2   :  { %3840 = vmatpush.bf16.msra.mxu2 %v2711_v18  ;;  %v2775_v2 = vpack.c.bf16 %v1959_v12, %v1951_v32  ;;  %v1271_v20 = vunpack.c.1.s8 %v7997_v55  ;;  %v2287_v52 = vcvt.s32.f32 %v1263_v15  ;;  %v783_v53 = vunpack.c.0.s8 %v8000_v47  ;;  %v8035_v55 = vpop.f32.mrf.mxu3 }
 0x2c3   :  { %v4076_v41 = vsub.f32 %v4060_v36, %v4068_v62  ;;  %v2879_v58 = vpack.c.bf16 %v2167_v5, %v2159_v28  ;;  %v791_v38 = vunpack.c.1.s8 %v8000_v47  ;;  %v911_v29 = vunpack.c.0.s8 %v8004_v4 }
 0x2c4   :  { %3853 = vmatpush.bf16.msra.mxu3 %v2775_v2  ;;  %v2295_v59 = vcvt.s32.f32 %v1271_v20  ;;  %v1807_v23 = vcvt.s32.f32 %v783_v53  ;;  %v919_v6 = vunpack.c.1.s8 %v8004_v4  ;;  %v1407_v63 = vunpack.c.2.s8 %v8025_v14 }
 0x2c5   :  { %v4084_v33 = vmax.f32 %v4076_v41, 0.0  ;;  %3861 = vmatpush.bf16.msrb.mxu0 %v2879_v58  ;;  %v1815_v11 = vcvt.s32.f32 %v791_v38  ;;  %v1935_v7 = vcvt.s32.f32 %v911_v29  ;;  %v1415_v47 = vunpack.c.3.s8 %v8025_v14  ;;  %v8052_v38 = vld [vmem:[#allocation2 + $0x6b8] sm:$0xff]  ;;  %v3637_v29 = vpop.f32.mrf.mxu2 }
 0x2c6   :  { %vm4141_vm11 = vweird.f32 %v7914_v46  ;;  %v2943_v44 = vpack.c.bf16 %v2295_v59, %v2287_v52  ;;  %v1943_v37 = vcvt.s32.f32 %v919_v6  ;;  %v2431_v30 = vcvt.s32.f32 %v1407_v63 }
 0x2c7   :  { %v1535_v4 = vunpack.c.2.s8 %v519_v40  ;;  %v8041_v13 = vadd.f32 1e-05, %v4084_v33  ;;  %v2703_v19 = vpack.c.bf16 %v1815_v11, %v1807_v23  ;;  %v2439_v42 = vcvt.s32.f32 %v1415_v47 }
 0x2c8   :  { %v1543_v56 = vunpack.c.3.s8 %v519_v40  ;;  %3874 = vmatpush.bf16.msrb.mxu1 %v2943_v44  ;;  %v2767_v25 = vpack.c.bf16 %v1943_v37, %v1935_v7  ;;  %v1119_v24 = vunpack.c.2.s8 %v8038_v0  ;;  %v1127_v32 = vunpack.c.3.s8 %v8038_v0 }
 0x2c9   :  { %v2559_v50 = vcvt.s32.f32 %v1535_v4  ;;  %v8046_v9 = vmul.f32 %v7914_v46, %v4138_v61  ;;  %6823 = vrsqrt.f32 %v8041_v13  ;;  %3841 = vmatpush.bf16.msra.mxu2 %v2703_v19  ;;  %v3015_v18 = vpack.c.bf16 %v2439_v42, %v2431_v30  ;;  %v511_v4 = vld [vmem:[#allocation2 + $0x7b8] sm:$0xff] }
 0x2ca   :  { %v2567_v12 = vcvt.s32.f32 %v1543_v56  ;;  %3854 = vmatpush.bf16.msra.mxu3 %v2767_v25  ;;  %v2143_v28 = vcvt.s32.f32 %v1119_v24  ;;  %v2151_v15 = vcvt.s32.f32 %v1127_v32  ;;  %v1247_v36 = vunpack.c.2.s8 %v447_v48  ;;  %v3650_v59 = vpop.f32.mrf.mxu3  ;;  %v407_v19 = vld [vmem:[#allocation2 + $0x478] sm:$0xff] }
 0x2cb   :  { %v1255_v62 = vunpack.c.3.s8 %v447_v48  ;;  %v1391_v2 = vunpack.c.0.s8 %v8025_v14  ;;  %v1399_v20 = vunpack.c.1.s8 %v8025_v14  ;;  %v1519_v52 = vunpack.c.0.s8 %v519_v40 }
 0x2cc   :  { %v3079_v5 = vpack.c.bf16 %v2567_v12, %v2559_v50  ;;  %3842 = vmatmul.bf16.vlgmr.msra.gmra.mxu2 %v7215_v45  ;;  %v2871_v61 = vpack.c.bf16 %v2151_v15, %v2143_v28  ;;  %v2271_v53 = vcvt.s32.f32 %v1247_v36  ;;  %v1527_v58 = vunpack.c.1.s8 %v519_v40 }
 0x2cd   :  { %3886 = vmatpush.bf16.msrb.mxu2 %v3015_v18  ;;  %v2279_v41 = vcvt.s32.f32 %v1255_v62  ;;  %v2415_v23 = vcvt.s32.f32 %v1391_v2  ;;  %v2423_v6 = vcvt.s32.f32 %v1399_v20  ;;  %v2543_v63 = vcvt.s32.f32 %v1519_v52  ;;  %3855 = vmatmul.bf16.vlgmr.msra.gmra.mxu3 %v7225_v1  ;;  %v439_v18 = vld [vmem:[#allocation2 + $0x578] sm:$0xff] }
 0x2ce   :  { %3899 = vmatpush.bf16.msrb.mxu3 %v3079_v5  ;;  %v8056_v33 = vadd.f32 %v7990_v16, %v7988_v31  ;;  %3862 = vmatpush.bf16.msrb.mxu0 %v2871_v61  ;;  %v2551_v14 = vcvt.s32.f32 %v1527_v58  ;;  %v1103_v11 = vunpack.c.0.s8 %v8038_v0  ;;  %v1111_v40 = vunpack.c.1.s8 %v8038_v0  ;;  %v503_v0 = vld [vmem:[#allocation2 + $0x778] sm:$0xff] }
 0x2cf   :  { %v2935_v45 = vpack.c.bf16 %v2279_v41, %v2271_v53  ;;  %v8061_v7 = vpop.eup %6823  ;;  %v3007_v47 = vpack.c.bf16 %v2423_v6, %v2415_v23  ;;  %v1231_v44 = vunpack.c.0.s8 %v447_v48  ;;  %v1239_v37 = vunpack.c.1.s8 %v447_v48 }
 0x2d0   :  { %v1375_v30 = vunpack.c.2.s8 %v8052_v38  ;;  %vm4140_vm12 = vweird.f32 %v7896_v35  ;;  %v4196_v31 = vperm.slane %v7939_v21, 3  ;;  %v3071_v1 = vpack.c.bf16 %v2551_v14, %v2543_v63 }
 0x2d1   :  { %3875 = vmatpush.bf16.msrb.mxu1 %v2935_v45  ;;  %v2127_v16 = vcvt.s32.f32 %v1103_v11  ;;  %vm8068_vm13 = vmor %vm4140_vm12, %vm4141_vm11  ;;  %3887 = vmatpush.bf16.msrb.mxu2 %v3007_v47  ;;  %v2135_v42 = vcvt.s32.f32 %v1111_v40  ;;  %v2255_v56 = vcvt.s32.f32 %v1231_v44  ;;  %v2263_v48 = vcvt.s32.f32 %v1239_v37  ;;  %v471_v37 = vld [vmem:[#allocation2 + $0x678] sm:$0xff] }
 0x2d2   :  { %v1383_v25 = vunpack.c.3.s8 %v8052_v38  ;;  %v4143_v35 = vsel %vm8068_vm13, %v7914_v46, %v8046_v9  ;;  %3900 = vmatpush.bf16.msrb.mxu3 %v3071_v1  ;;  %v2399_v50 = vcvt.s32.f32 %v1375_v30  ;;  %v1503_v24 = vunpack.c.2.s8 %v511_v4 }
 0x2d3   :  { %v1511_v32 = vunpack.c.3.s8 %v511_v4  ;;  %v2863_v12 = vpack.c.bf16 %v2135_v42, %v2127_v16  ;;  %v2927_v28 = vpack.c.bf16 %v2263_v48, %v2255_v56  ;;  %v1087_v36 = vunpack.c.2.s8 %v407_v19 }
 0x2d4   :  { %v2407_v15 = vcvt.s32.f32 %v1383_v25  ;;  %v4091_v62 = vsub.f32 %v7840_v27, %v7870_v54  ;;  %v2527_v5 = vcvt.s32.f32 %v1503_v24  ;;  %v1095_v20 = vunpack.c.3.s8 %v407_v19 }
 0x2d5   :  { %v2535_v2 = vcvt.s32.f32 %v1511_v32  ;;  %3863 = vmatpush.bf16.msrb.mxu0 %v2863_v12  ;;  %3876 = vmatpush.bf16.msrb.mxu1 %v2927_v28  ;;  %v2111_v61 = vcvt.s32.f32 %v1087_v36  ;;  %v1215_v46 = vunpack.c.2.s8 %v439_v18  ;;  %v1223_v9 = vunpack.c.3.s8 %v439_v18  ;;  %v399_v32 = vld [vmem:[#allocation2 + $0x438] sm:$0xff]  ;;  %v8093_v28 = vpop.f32.mrf.mxu0 }
 0x2d6   :  { %v2999_v52 = vpack.c.bf16 %v2407_v15, %v2399_v50  ;;  %v4187_v53 = vmul.f32 %v4143_v35, %v4091_v62  ;;  %v2119_v58 = vcvt.s32.f32 %v1095_v20  ;;  %v1359_v29 = vunpack.c.0.s8 %v8052_v38  ;;  %v431_v12 = vld [vmem:[#allocation2 + $0x538] sm:$0xff] }
 0x2d7   :  { %v3063_v41 = vpack.c.bf16 %v2535_v2, %v2527_v5  ;;  %v2239_v59 = vcvt.s32.f32 %v1215_v46  ;;  %v2247_v23 = vcvt.s32.f32 %v1223_v9  ;;  %v1367_v6 = vunpack.c.1.s8 %v8052_v38 }
 0x2d8   :  { %3888 = vmatpush.bf16.msrb.mxu2 %v2999_v52  ;;  %v1487_v27 = vunpack.c.0.s8 %v511_v4  ;;  %v4145_v54 = vmul.f32 %v8061_v7, %v8041_v13  ;;  %v2855_v63 = vpack.c.bf16 %v2119_v58, %v2111_v61  ;;  %v2383_v45 = vcvt.s32.f32 %v1359_v29 }
 0x2d9   :  { %3901 = vmatpush.bf16.msrb.mxu3 %v3063_v41  ;;  %v1495_v14 = vunpack.c.1.s8 %v511_v4  ;;  %v2919_v11 = vpack.c.bf16 %v2247_v23, %v2239_v59  ;;  %v2391_v40 = vcvt.s32.f32 %v1367_v6  ;;  %v1071_v44 = vunpack.c.0.s8 %v407_v19 }
 0x2da   :  { %v2511_v47 = vcvt.s32.f32 %v1487_v27  ;;  %v8086_v30 = vmul.f32 %v4195_v60, %v7942_v10  ;;  %3864 = vmatpush.bf16.msrb.mxu0 %v2855_v63  ;;  %v1079_v1 = vunpack.c.1.s8 %v407_v19  ;;  %v1199_v16 = vunpack.c.0.s8 %v439_v18 }
 0x2db   :  { %v2519_v38 = vcvt.s32.f32 %v1495_v14  ;;  %v8088_v42 = vmul.f32 %v4196_v31, %v4187_v53  ;;  %3877 = vmatpush.bf16.msrb.mxu1 %v2919_v11  ;;  %v2991_v56 = vpack.c.bf16 %v2391_v40, %v2383_v45  ;;  %v2095_v4 = vcvt.s32.f32 %v1071_v44  ;;  %v8095_v31 = vpop.f32.mrf.mxu1 }
 0x2dc   :  { %v1207_v48 = vunpack.c.1.s8 %v439_v18  ;;  %v2103_v35 = vcvt.s32.f32 %v1079_v1  ;;  %v2223_v50 = vcvt.s32.f32 %v1199_v16  ;;  %v1343_v24 = vunpack.c.2.s8 %v471_v37 }
 0x2dd   :  { %v3055_v25 = vpack.c.bf16 %v2519_v38, %v2511_v47  ;;  %v8091_v21 = vmul.f32 %v8061_v7, %v4145_v54  ;;  %3889 = vmatpush.bf16.msrb.mxu2 %v2991_v56  ;;  %v1351_v10 = vunpack.c.3.s8 %v471_v37  ;;  %v1471_v19 = vunpack.c.2.s8 %v503_v0  ;;  %v4278_v47 = vld [vmem:[#allocation5 + $0x60] sm:$0xff] }
 0x2de   :  { %v2231_v60 = vcvt.s32.f32 %v1207_v48  ;;  %v2847_v15 = vpack.c.bf16 %v2103_v35, %v2095_v4  ;;  %v2367_v18 = vcvt.s32.f32 %v1343_v24  ;;  %v1479_v36 = vunpack.c.3.s8 %v503_v0  ;;  %v4294_v56 = vld [vmem:[#allocation5 + $0xe0] sm:$0xff]  ;;  %v3663_v4 = vpop.f32.mrf.mxu0  ;;  %v463_v24 = vld [vmem:[#allocation2 + $0x638] sm:$0xff] }
 0x2df   :  { %3902 = vmatpush.bf16.msrb.mxu3 %v3055_v25  ;;  %v3636_v62 = vadd.f32 %v8033_v39, %v8056_v33  ;;  %v2375_v2 = vcvt.s32.f32 %v1351_v10  ;;  %v2495_v20 = vcvt.s32.f32 %v1471_v19  ;;  %v1055_v52 = vunpack.c.2.s8 %v399_v32 }
 0x2e0   :  { %v2911_v5 = vpack.c.bf16 %v2231_v60, %v2223_v50  ;;  %3865 = vmatpush.bf16.msrb.mxu0 %v2847_v15  ;;  %v2503_v61 = vcvt.s32.f32 %v1479_v36  ;;  %v1063_v9 = vunpack.c.3.s8 %v399_v32  ;;  %v1183_v53 = vunpack.c.2.s8 %v431_v12 }
 0x2e1   :  { %v8100_v46 = vadd.f32 %v8035_v55, %v3636_v62  ;;  %v2983_v41 = vpack.c.bf16 %v2375_v2, %v2367_v18  ;;  %v2079_v58 = vcvt.s32.f32 %v1055_v52  ;;  %v1191_v29 = vunpack.c.3.s8 %v431_v12 }
 0x2e2   :  { %3878 = vmatpush.bf16.msrb.mxu1 %v2911_v5  ;;  %v1327_v59 = vunpack.c.0.s8 %v471_v37  ;;  %v3047_v23 = vpack.c.bf16 %v2503_v61, %v2495_v20  ;;  %v2087_v6 = vcvt.s32.f32 %v1063_v9  ;;  %v2207_v27 = vcvt.s32.f32 %v1183_v53 }
 0x2e3   :  { %v1335_v39 = vunpack.c.1.s8 %v471_v37  ;;  %3890 = vmatpush.bf16.msrb.mxu2 %v2983_v41  ;;  %v2215_v33 = vcvt.s32.f32 %v1191_v29  ;;  %v1455_v63 = vunpack.c.0.s8 %v503_v0  ;;  %v1463_v45 = vunpack.c.1.s8 %v503_v0  ;;  %v3676_v48 = vpop.f32.mrf.mxu1 }
 0x2e4   :  { %v2351_v54 = vcvt.s32.f32 %v1327_v59  ;;  %3903 = vmatpush.bf16.msrb.mxu3 %v3047_v23  ;;  %v2839_v14 = vpack.c.bf16 %v2087_v6, %v2079_v58  ;;  %v1039_v11 = vunpack.c.0.s8 %v399_v32  ;;  %v1047_v40 = vunpack.c.1.s8 %v399_v32  ;;  %v495_v32 = vld [vmem:[#allocation2 + $0x738] sm:$0xff] }
 0x2e5   :  { %v2359_v55 = vcvt.s32.f32 %v1335_v39  ;;  %v2903_v44 = vpack.c.bf16 %v2215_v33, %v2207_v27  ;;  %v2479_v38 = vcvt.s32.f32 %v1455_v63  ;;  %v2487_v1 = vcvt.s32.f32 %v1463_v45 }
 0x2e6   :  { %v1167_v16 = vunpack.c.0.s8 %v431_v12  ;;  %3866 = vmatpush.bf16.msrb.mxu0 %v2839_v14  ;;  %v2063_v25 = vcvt.s32.f32 %v1039_v11  ;;  %v2071_v35 = vcvt.s32.f32 %v1047_v40  ;;  %v1175_v50 = vunpack.c.1.s8 %v431_v12  ;;  %v8102_v14 = vpop.f32.mrf.mxu2 }
 0x2e7   :  { %v2975_v37 = vpack.c.bf16 %v2359_v55, %v2351_v54  ;;  %3879 = vmatpush.bf16.msrb.mxu1 %v2903_v44  ;;  %v3039_v0 = vpack.c.bf16 %v2487_v1, %v2479_v38  ;;  %v4450_v10 = vunpack.c.2.s8 %v4278_v47  ;;  %v4454_v19 = vunpack.c.3.s8 %v4278_v47  ;;  %v8104_v55 = vpop.f32.mrf.mxu3  ;;  %v4310_v1 = vld [vmem:[#allocation5 + $0x160] sm:$0xff] }
 0x2e8   :  { %v2191_v60 = vcvt.s32.f32 %v1167_v16  ;;  %v2831_v15 = vpack.c.bf16 %v2071_v35, %v2063_v25  ;;  %v2199_v18 = vcvt.s32.f32 %v1175_v50  ;;  %v4514_v36 = vunpack.c.2.s8 %v4294_v56 }
 0x2e9   :  { %3891 = vmatpush.bf16.msrb.mxu2 %v2975_v37  ;;  %v4518_v62 = vunpack.c.3.s8 %v4294_v56  ;;  %3904 = vmatpush.bf16.msrb.mxu3 %v3039_v0  ;;  %v4962_v5 = vcvt.s32.f32 %v4450_v10  ;;  %v4966_v2 = vcvt.s32.f32 %v4454_v19  ;;  %v1311_v20 = vunpack.c.2.s8 %v463_v24  ;;  %v4274_v0 = vld [vmem:[#allocation5 + $0x40] sm:$0xff] }
 0x2ea   :  { %v1319_v52 = vunpack.c.3.s8 %v463_v24  ;;  %3867 = vmatpush.bf16.msrb.mxu0 %v2831_v15  ;;  %v2895_v61 = vpack.c.bf16 %v2199_v18, %v2191_v60  ;;  %v5026_v12 = vcvt.s32.f32 %v4514_v36  ;;  %v1439_v53 = vunpack.c.2.s8 %v495_v32 }
 0x2eb   :  { %v5030_v9 = vcvt.s32.f32 %v4518_v62  ;;  %v5446_v41 = vpack.c.bf16 %v4966_v2, %v4962_v5  ;;  %v2335_v58 = vcvt.s32.f32 %v1311_v20  ;;  %v1447_v59 = vunpack.c.3.s8 %v495_v32 }
 0x2ec   :  { %v2343_v29 = vcvt.s32.f32 %v1319_v52  ;;  %3880 = vmatpush.bf16.msrb.mxu1 %v2895_v61  ;;  %v2463_v6 = vcvt.s32.f32 %v1439_v53  ;;  %v4442_v27 = vunpack.c.0.s8 %v4278_v47  ;;  %v4446_v39 = vunpack.c.1.s8 %v4278_v47 }
 0x2ed   :  { %v5478_v23 = vpack.c.bf16 %v5030_v9, %v5026_v12  ;;  %v2471_v54 = vcvt.s32.f32 %v1447_v59  ;;  %v4506_v63 = vunpack.c.0.s8 %v4294_v56  ;;  %v4510_v45 = vunpack.c.1.s8 %v4294_v56  ;;  %3868 = vmatmul.bf16.vlgmr.msrb.gmra.mxu0 %v7299_v3  ;;  %v4326_v56 = vld [vmem:[#allocation5 + $0x1e0] sm:$0xff] }
 0x2ee   :  { %5674 = vmatpush.bf16.msra.mxu0 %v5446_v41  ;;  %v2967_v33 = vpack.c.bf16 %v2343_v29, %v2335_v58  ;;  %v4954_v11 = vcvt.s32.f32 %v4442_v27  ;;  %v4958_v40 = vcvt.s32.f32 %v4446_v39  ;;  %v1295_v44 = vunpack.c.0.s8 %v463_v24  ;;  %v3689_v29 = vpop.f32.mrf.mxu2 }
 0x2ef   :  { %v1303_v38 = vunpack.c.1.s8 %v463_v24  ;;  %v3031_v16 = vpack.c.bf16 %v2471_v54, %v2463_v6  ;;  %3881 = vmatmul.bf16.vlgmr.msrb.gmra.mxu1 %v7310_v17  ;;  %v5018_v47 = vcvt.s32.f32 %v4506_v63  ;;  %v5022_v4 = vcvt.s32.f32 %v4510_v45  ;;  %v8108_v24 = vld [vmem:[#allocation5 + $0xc0] sm:$0xff]  ;;  %v3702_v59 = vpop.f32.mrf.mxu3 }
 0x2f0   :  { %5687 = vmatpush.bf16.msra.mxu1 %v5478_v23  ;;  %3892 = vmatpush.bf16.msrb.mxu2 %v2967_v33  ;;  %v1423_v48 = vunpack.c.0.s8 %v495_v32  ;;  %v5442_v37 = vpack.c.bf16 %v4958_v40, %v4954_v11  ;;  %v2319_v25 = vcvt.s32.f32 %v1295_v44  ;;  %v1431_v50 = vunpack.c.1.s8 %v495_v32 }
 0x2f1   :  { %v2327_v35 = vcvt.s32.f32 %v1303_v38  ;;  %3905 = vmatpush.bf16.msrb.mxu3 %v3031_v16  ;;  %v5474_v3 = vpack.c.bf16 %v5022_v4, %v5018_v47  ;;  %v4578_v10 = vunpack.c.2.s8 %v4310_v1  ;;  %v4582_v19 = vunpack.c.3.s8 %v4310_v1  ;;  %v4306_v16 = vld [vmem:[#allocation5 + $0x140] sm:$0xff] }
 0x2f2   :  { %v2447_v60 = vcvt.s32.f32 %v1423_v48  ;;  %5675 = vmatpush.bf16.msra.mxu0 %v5442_v37  ;;  %v2455_v18 = vcvt.s32.f32 %v1431_v50  ;;  %v4642_v17 = vunpack.c.2.s8 %v4326_v56  ;;  %v4646_v36 = vunpack.c.3.s8 %v4326_v56  ;;  %v4322_v37 = vld [vmem:[#allocation5 + $0x1c0] sm:$0xff] }
 0x2f3   :  { %v2959_v15 = vpack.c.bf16 %v2327_v35, %v2319_v25  ;;  %v5090_v62 = vcvt.s32.f32 %v4578_v10  ;;  %v5094_v5 = vcvt.s32.f32 %v4582_v19  ;;  %v4434_v2 = vunpack.c.2.s8 %v4274_v0  ;;  %v4270_v50 = vld [vmem:[#allocation5 + $0x20] sm:$0xff] }
 0x2f4   :  { %5688 = vmatpush.bf16.msra.mxu1 %v5474_v3  ;;  %v4438_v20 = vunpack.c.3.s8 %v4274_v0  ;;  %v3023_v32 = vpack.c.bf16 %v2455_v18, %v2447_v60  ;;  %v5154_v52 = vcvt.s32.f32 %v4642_v17  ;;  %v5158_v61 = vcvt.s32.f32 %v4646_v36 }
 0x2f5   :  { %3893 = vmatpush.bf16.msrb.mxu2 %v2959_v15  ;;  %v4498_v12 = vunpack.c.2.s8 %v8108_v24  ;;  %v5510_v9 = vpack.c.bf16 %v5094_v5, %v5090_v62  ;;  %v4946_v53 = vcvt.s32.f32 %v4434_v2  ;;  %v4502_v58 = vunpack.c.3.s8 %v8108_v24  ;;  %v4286_v15 = vld [vmem:[#allocation5 + $0xa0] sm:$0xff] }
 0x2f6   :  { %v4950_v41 = vcvt.s32.f32 %v4438_v20  ;;  %3906 = vmatpush.bf16.msrb.mxu3 %v3023_v32  ;;  %v5542_v23 = vpack.c.bf16 %v5158_v61, %v5154_v52  ;;  %v4570_v27 = vunpack.c.0.s8 %v4310_v1  ;;  %v4574_v39 = vunpack.c.1.s8 %v4310_v1 }
 0x2f7   :  { %v5010_v6 = vcvt.s32.f32 %v4498_v12  ;;  %v5014_v54 = vcvt.s32.f32 %v4502_v58  ;;  %v4634_v63 = vunpack.c.0.s8 %v4326_v56  ;;  %v4638_v45 = vunpack.c.1.s8 %v4326_v56 }
 0x2f8   :  { %v5438_v33 = vpack.c.bf16 %v4950_v41, %v4946_v53  ;;  %3894 = vmatmul.bf16.vlgmr.msrb.gmra.mxu2 %v7362_v34  ;;  %v5082_v11 = vcvt.s32.f32 %v4570_v27  ;;  %v5086_v40 = vcvt.s32.f32 %v4574_v39  ;;  %v3662_v44 = vadd.f32 %v8093_v28, %v8100_v46 }
 0x2f9   :  { %5700 = vmatpush.bf16.msra.mxu2 %v5510_v9  ;;  %v4426_v38 = vunpack.c.0.s8 %v4274_v0  ;;  %3907 = vmatmul.bf16.vlgmr.msrb.gmra.mxu3 %v7369_v43  ;;  %v5470_v47 = vpack.c.bf16 %v5014_v54, %v5010_v6  ;;  %v5146_v1 = vcvt.s32.f32 %v4634_v63  ;;  %v5150_v4 = vcvt.s32.f32 %v4638_v45  ;;  %v4302_v54 = vld [vmem:[#allocation5 + $0x120] sm:$0xff] }
 0x2fa   :  { %5713 = vmatpush.bf16.msra.mxu3 %v5542_v23  ;;  %5676 = vmatpush.bf16.msra.mxu0 %v5438_v33  ;;  %v4430_v48 = vunpack.c.1.s8 %v4274_v0  ;;  %v5506_v25 = vpack.c.bf16 %v5086_v40, %v5082_v11  ;;  %v8117_v56 = vadd.f32 %v8095_v31, %v3662_v44  ;;  %v4490_v35 = vunpack.c.0.s8 %v8108_v24  ;;  %v4318_v44 = vld [vmem:[#allocation5 + $0x1a0] sm:$0xff] }
 0x2fb   :  { %v4938_v34 = vcvt.s32.f32 %v4426_v38  ;;  %5689 = vmatpush.bf16.msra.mxu1 %v5470_v47  ;;  %v5538_v28 = vpack.c.bf16 %v5150_v4, %v5146_v1  ;;  %v4494_v3 = vunpack.c.1.s8 %v8108_v24  ;;  %v4562_v43 = vunpack.c.2.s8 %v4306_v16 }
 0x2fc   :  { %v4942_v46 = vcvt.s32.f32 %v4430_v48  ;;  %v5002_v60 = vcvt.s32.f32 %v4490_v35  ;;  %v4566_v10 = vunpack.c.3.s8 %v4306_v16  ;;  %v4626_v19 = vunpack.c.2.s8 %v4322_v37 }
 0x2fd   :  { %5701 = vmatpush.bf16.msra.mxu2 %v5506_v25  ;;  %v4630_v0 = vunpack.c.3.s8 %v4322_v37  ;;  %v5006_v31 = vcvt.s32.f32 %v4494_v3  ;;  %v5074_v17 = vcvt.s32.f32 %v4562_v43  ;;  %v4418_v36 = vunpack.c.2.s8 %v4270_v50  ;;  %v4266_v3 = vld [vmem:[#allocation5] sm:$0xff] }
 0x2fe   :  { %5714 = vmatpush.bf16.msra.mxu3 %v5538_v28  ;;  %v5434_v18 = vpack.c.bf16 %v4942_v46, %v4938_v34  ;;  %v5078_v62 = vcvt.s32.f32 %v4566_v10  ;;  %v5138_v5 = vcvt.s32.f32 %v4626_v19  ;;  %v4422_v20 = vunpack.c.3.s8 %v4270_v50  ;;  %v4282_v19 = vld [vmem:[#allocation5 + $0x80] sm:$0xff] }
 0x2ff   :  { %v5142_v2 = vcvt.s32.f32 %v4630_v0  ;;  %v5466_v32 = vpack.c.bf16 %v5006_v31, %v5002_v60  ;;  %v4930_v52 = vcvt.s32.f32 %v4418_v36  ;;  %v4482_v24 = vunpack.c.2.s8 %v4286_v15 }
 0x300   :  { %5677 = vmatpush.bf16.msra.mxu0 %v5434_v18  ;;  %v4486_v61 = vunpack.c.3.s8 %v4286_v15  ;;  %v5502_v12 = vpack.c.bf16 %v5078_v62, %v5074_v17  ;;  %v4934_v53 = vcvt.s32.f32 %v4422_v20  ;;  %v4554_v41 = vunpack.c.0.s8 %v4306_v16 }
 0x301   :  { %v5534_v9 = vpack.c.bf16 %v5142_v2, %v5138_v5  ;;  %5690 = vmatpush.bf16.msra.mxu1 %v5466_v32  ;;  %v4994_v58 = vcvt.s32.f32 %v4482_v24  ;;  %v4558_v59 = vunpack.c.1.s8 %v4306_v16  ;;  %v4618_v23 = vunpack.c.0.s8 %v4322_v37 }
 0x302   :  { %v4998_v29 = vcvt.s32.f32 %v4486_v61  ;;  %5702 = vmatpush.bf16.msra.mxu2 %v5502_v12  ;;  %v5430_v6 = vpack.c.bf16 %v4934_v53, %v4930_v52  ;;  %v5066_v27 = vcvt.s32.f32 %v4554_v41  ;;  %v4622_v39 = vunpack.c.1.s8 %v4322_v37 }
 0x303   :  { %5715 = vmatpush.bf16.msra.mxu3 %v5534_v9  ;;  %v4410_v33 = vunpack.c.0.s8 %v4270_v50  ;;  %v5070_v45 = vcvt.s32.f32 %v4558_v59  ;;  %v5130_v11 = vcvt.s32.f32 %v4618_v23  ;;  %v4414_v40 = vunpack.c.1.s8 %v4270_v50 }
 0x304   :  { %v5462_v63 = vpack.c.bf16 %v4998_v29, %v4994_v58  ;;  %5678 = vmatpush.bf16.msra.mxu0 %v5430_v6  ;;  %v5134_v38 = vcvt.s32.f32 %v4622_v39  ;;  %v4474_v1 = vunpack.c.0.s8 %v4286_v15  ;;  %v4478_v4 = vunpack.c.1.s8 %v4286_v15  ;;  %v8130_v39 = vld [vmem:[#allocation5 + $0x260] sm:$0xff] }
 0x305   :  { %v4922_v47 = vcvt.s32.f32 %v4410_v33  ;;  %v5498_v16 = vpack.c.bf16 %v5070_v45, %v5066_v27  ;;  %v4926_v48 = vcvt.s32.f32 %v4414_v40  ;;  %v4546_v25 = vunpack.c.2.s8 %v4302_v54 }
 0x306   :  { %5691 = vmatpush.bf16.msra.mxu1 %v5462_v63  ;;  %v4550_v34 = vunpack.c.3.s8 %v4302_v54  ;;  %v5530_v35 = vpack.c.bf16 %v5134_v38, %v5130_v11  ;;  %v4986_v28 = vcvt.s32.f32 %v4474_v1  ;;  %v4990_v37 = vcvt.s32.f32 %v4478_v4 }
 0x307   :  { %v4610_v46 = vunpack.c.2.s8 %v4318_v44  ;;  %5703 = vmatpush.bf16.msra.mxu2 %v5498_v16  ;;  %v5426_v43 = vpack.c.bf16 %v4926_v48, %v4922_v47  ;;  %v5058_v60 = vcvt.s32.f32 %v4546_v25  ;;  %v4614_v10 = vunpack.c.3.s8 %v4318_v44  ;;  %v8133_v47 = vld [vmem:[#allocation5 + $0x2e0] sm:$0xff] }
 0x308   :  { %v5062_v50 = vcvt.s32.f32 %v4550_v34  ;;  %5716 = vmatpush.bf16.msra.mxu3 %v5530_v35  ;;  %v5458_v0 = vpack.c.bf16 %v4990_v37, %v4986_v28  ;;  %v3688_v15 = vadd.f32 %v8102_v14, %v8117_v56  ;;  %v3918_v31 = vperm.slane %v7978_v49, 5  ;;  %v8137_v37 = vld [vmem:[#allocation5 + $0x100] sm:$0xff] }
 0x309   :  { %v5122_v18 = vcvt.s32.f32 %v4610_v46  ;;  %5679 = vmatpush.bf16.msra.mxu0 %v5426_v43  ;;  %v5126_v36 = vcvt.s32.f32 %v4614_v10  ;;  %v4402_v62 = vunpack.c.2.s8 %v4266_v3  ;;  %v4406_v5 = vunpack.c.3.s8 %v4266_v3 }
 0x30a   :  { %v5494_v17 = vpack.c.bf16 %v5062_v50, %v5058_v60  ;;  %5692 = vmatpush.bf16.msra.mxu1 %v5458_v0  ;;  %v3701_v2 = vadd.f32 %v8104_v55, %v3688_v15  ;;  %v4466_v20 = vunpack.c.2.s8 %v4282_v19  ;;  %v4470_v32 = vunpack.c.3.s8 %v4282_v19 }
 0x30b   :  { %v4538_v52 = vunpack.c.0.s8 %v4302_v54  ;;  %v5526_v24 = vpack.c.bf16 %v5126_v36, %v5122_v18  ;;  %v4914_v61 = vcvt.s32.f32 %v4402_v62  ;;  %v4918_v12 = vcvt.s32.f32 %v4406_v5  ;;  %v8141_v18 = vld [vmem:[#allocation5 + $0x180] sm:$0xff]  ;;  %v8148_v62 = vld [vmem:[%s8706_s5 + $0x10] sm:$0xff] }
 0x30c   :  { %5704 = vmatpush.bf16.msra.mxu2 %v5494_v17  ;;  %v4542_v9 = vunpack.c.1.s8 %v4302_v54  ;;  %v8125_v53 = vmul.f32 %v3918_v31, %v3701_v2  ;;  %v4978_v14 = vcvt.s32.f32 %v4466_v20  ;;  %v4982_v49 = vcvt.s32.f32 %v4470_v32 }
 0x30d   :  { %v5050_v56 = vcvt.s32.f32 %v4538_v52  ;;  %5717 = vmatpush.bf16.msra.mxu3 %v5526_v24  ;;  %v5422_v41 = vpack.c.bf16 %v4918_v12, %v4914_v61  ;;  %v4602_v29 = vunpack.c.0.s8 %v4318_v44  ;;  %v4606_v59 = vunpack.c.1.s8 %v4318_v44 }
 0x30e   :  { %v5054_v58 = vcvt.s32.f32 %v4542_v9  ;;  %v3967_v55 = vrot.slane %v8125_v53, 4  ;;  %v4005_v23 = vmul.f32 %v8125_v53, %v8125_v53  ;;  %v5454_v6 = vpack.c.bf16 %v4982_v49, %v4978_v14 }
 0x30f   :  { %v4394_v27 = vunpack.c.0.s8 %v4266_v3  ;;  %5680 = vmatpush.bf16.msra.mxu0 %v5422_v41  ;;  %v5114_v54 = vcvt.s32.f32 %v4602_v29  ;;  %v5118_v63 = vcvt.s32.f32 %v4606_v59  ;;  %v4398_v45 = vunpack.c.1.s8 %v4266_v3  ;;  %v8156_v41 = vpop.f32.mrf.mxu0 }
 0x310   :  { %v5490_v33 = vpack.c.bf16 %v5054_v58, %v5050_v56  ;;  %v3968_v11 = vadd.f32 %v3967_v55, %v8125_v53  ;;  %v4038_v40 = vrot.slane %v4005_v23, 4  ;;  %5693 = vmatpush.bf16.msra.mxu1 %v5454_v6  ;;  %v4458_v44 = vunpack.c.0.s8 %v4282_v19  ;;  %v8163_v6 = vpop.f32.mrf.mxu3 }
 0x311   :  { %v4906_v38 = vcvt.s32.f32 %v4394_v27  ;;  %v5522_v1 = vpack.c.bf16 %v5118_v63, %v5114_v54  ;;  %v4910_v4 = vcvt.s32.f32 %v4398_v45  ;;  %v4462_v16 = vunpack.c.1.s8 %v4282_v19 }
 0x312   :  { %5705 = vmatpush.bf16.msra.mxu2 %v5490_v33  ;;  %v4706_v48 = vunpack.c.2.s8 %v8130_v39  ;;  %v3969_v25 = vrot.slane %v3968_v11, 2  ;;  %v4039_v34 = vadd.f32 %v4038_v40, %v4005_v23  ;;  %v4970_v35 = vcvt.s32.f32 %v4458_v44  ;;  %v8161_v23 = vpop.f32.mrf.mxu2 }
 0x313   :  { %v4710_v28 = vunpack.c.3.s8 %v8130_v39  ;;  %5718 = vmatpush.bf16.msra.mxu3 %v5522_v1  ;;  %v5418_v46 = vpack.c.bf16 %v4910_v4, %v4906_v38  ;;  %v4974_v3 = vcvt.s32.f32 %v4462_v16  ;;  %v4770_v60 = vunpack.c.2.s8 %v8133_v47 }
 0x314   :  { %v5218_v43 = vcvt.s32.f32 %v4706_v48  ;;  %v3970_v50 = vadd.f32 %v3969_v25, %v3968_v11  ;;  %v4040_v10 = vrot.slane %v4039_v34, 2  ;;  %v4774_v19 = vunpack.c.3.s8 %v8133_v47 }
 0x315   :  { %v5222_v0 = vcvt.s32.f32 %v4710_v28  ;;  %5681 = vmatpush.bf16.msra.mxu0 %v5418_v46  ;;  %v5450_v15 = vpack.c.bf16 %v4974_v3, %v4970_v35  ;;  %v5282_v31 = vcvt.s32.f32 %v4770_v60  ;;  %v4530_v17 = vunpack.c.2.s8 %v8137_v37 }
 0x316   :  { %v4534_v36 = vunpack.c.3.s8 %v8137_v37  ;;  %v8151_v5 = vmul.f32 0.5, %v8091_v21  ;;  %v3971_v2 = vrot.slane %v3970_v50, 1  ;;  %v4041_v20 = vadd.f32 %v4040_v10, %v4039_v34  ;;  %v8158_v21 = vpop.f32.mrf.mxu1 }
 0x317   :  { %v5574_v32 = vpack.c.bf16 %v5222_v0, %v5218_v43  ;;  %5694 = vmatpush.bf16.msra.mxu1 %v5450_v15  ;;  %v5286_v52 = vcvt.s32.f32 %v4774_v19  ;;  %v5042_v24 = vcvt.s32.f32 %v4530_v17  ;;  %v4594_v12 = vunpack.c.2.s8 %v8141_v18  ;;  %v4338_v15 = vld [vmem:[#allocation5 + $0x240] sm:$0xff] }
 0x318   :  { %v5046_v61 = vcvt.s32.f32 %v4534_v36  ;;  %v3972_v9 = vadd.f32 %v3971_v2, %v3970_v50  ;;  %v4042_v14 = vrot.slane %v4041_v20, 1  ;;  %v4598_v49 = vunpack.c.3.s8 %v8141_v18 }
 0x319   :  { %5726 = vmatpush.bf16.msrb.mxu0 %v5574_v32  ;;  %v4218_v56 = vperm.slane %v8148_v62, 0  ;;  %v5606_v58 = vpack.c.bf16 %v5286_v52, %v5282_v31  ;;  %v5106_v59 = vcvt.s32.f32 %v4594_v12  ;;  %v4219_v55 = vperm.slane %v8148_v62, 1  ;;  %v3715_v31 = vpop.f32.mrf.mxu0  ;;  %v4354_v12 = vld [vmem:[#allocation5 + $0x2c0] sm:$0xff] }
 0x31a   :  { %v5486_v29 = vpack.c.bf16 %v5046_v61, %v5042_v24  ;;  %v8166_v27 = vmul.f32 %v7518_v26, %v3972_v9  ;;  %v4043_v33 = vadd.f32 %v4042_v14, %v4041_v20  ;;  %v5110_v54 = vcvt.s32.f32 %v4598_v49  ;;  %v3741_v20 = vpop.f32.mrf.mxu2 }
 0x31b   :  { %v4234_v63 = vadd.f32 %v4218_v56, %v7804_v22  ;;  %5739 = vmatpush.bf16.msrb.mxu1 %v5606_v58  ;;  %v4235_v45 = vadd.f32 %v4219_v55, %v7808_v57  ;;  %v4698_v11 = vunpack.c.0.s8 %v8130_v39  ;;  %v4702_v40 = vunpack.c.1.s8 %v8130_v39 }
 0x31c   :  { %5706 = vmatpush.bf16.msra.mxu2 %v5486_v29  ;;  %v4762_v38 = vunpack.c.0.s8 %v8133_v47  ;;  %v4148_v44 = vsub.f32 1.5, %v8151_v5  ;;  %v4061_v1 = vmul.f32 %v4043_v33, %v7518_v26  ;;  %v4069_v4 = vmul.f32 %v8166_v27, %v8166_v27 }
 0x31d   :  { %v5518_v16 = vpack.c.bf16 %v5110_v54, %v5106_v59  ;;  %v4242_v48 = vmul.f32 0.2, %v4234_v63  ;;  %v4243_v22 = vmul.f32 0.2, %v4235_v45  ;;  %v5210_v25 = vcvt.s32.f32 %v4698_v11 }
 0x31e   :  { %v5214_v34 = vcvt.s32.f32 %v4702_v40  ;;  %v4077_v35 = vsub.f32 %v4061_v1, %v4069_v4  ;;  %v4766_v57 = vunpack.c.1.s8 %v8133_v47  ;;  %v5274_v28 = vcvt.s32.f32 %v4762_v38  ;;  %v3728_v17 = vpop.f32.mrf.mxu1 }
 0x31f   :  { %5719 = vmatpush.bf16.msra.mxu3 %v5518_v16  ;;  %v4522_v39 = vunpack.c.0.s8 %v8137_v37  ;;  %v4250_v46 = vmax.f32 %v4234_v63, %v4242_v48  ;;  %v4251_v3 = vmax.f32 %v4235_v45, %v4243_v22  ;;  %v4526_v60 = vunpack.c.1.s8 %v8137_v37  ;;  %v3754_v37 = vpop.f32.mrf.mxu3  ;;  %v4334_v16 = vld [vmem:[#allocation5 + $0x220] sm:$0xff] }
 0x320   :  { %v5570_v43 = vpack.c.bf16 %v5214_v34, %v5210_v25  ;;  %v4085_v50 = vmax.f32 %v4077_v35, 0.0  ;;  %v5278_v10 = vcvt.s32.f32 %v4766_v57  ;;  %v4586_v19 = vunpack.c.0.s8 %v8141_v18 }
 0x321   :  { %v5034_v0 = vcvt.s32.f32 %v4522_v39  ;;  %vm4151_vm14 = vweird.f32 %v8061_v7  ;;  %v8182_v36 = vpack.c.bf16 %v4250_v46, %v4250_v46  ;;  %v8184_v47 = vpack.c.bf16 %v4251_v3, %v4251_v3  ;;  %v8201_v39 = vpop.f32.mrf.mxu0 }
 0x322   :  { %5727 = vmatpush.bf16.msrb.mxu0 %v5570_v43  ;;  %v5038_v5 = vcvt.s32.f32 %v4526_v60  ;;  %v4590_v2 = vunpack.c.1.s8 %v8141_v18  ;;  %v8187_v32 = vadd.f32 1e-05, %v4085_v50  ;;  %v5602_v52 = vpack.c.bf16 %v5278_v10, %v5274_v28  ;;  %v4350_v28 = vld [vmem:[#allocation5 + $0x2a0] sm:$0xff]  ;;  %v8213_v50 = vld [vmem:[%s8706_s5 + $0x8] sm:$0xff] }
 0x323   :  { %v5098_v24 = vcvt.s32.f32 %v4586_v19  ;;  %v4220_v61 = vperm.slane %v8148_v62, 2  ;;  %5682 = vmatmul.bf16.vlgmr.msra.gmra.mxu0 %v8182_v36  ;;  %5695 = vmatmul.bf16.vlgmr.msra.gmra.mxu1 %v8184_v47  ;;  %v4221_v49 = vperm.slane %v8148_v62, 3  ;;  %v4690_v56 = vunpack.c.2.s8 %v4338_v15 }
 0x324   :  { %v5482_v9 = vpack.c.bf16 %v5038_v5, %v5034_v0  ;;  %v5102_v14 = vcvt.s32.f32 %v4590_v2  ;;  %v8194_v18 = vmul.f32 %v8061_v7, %v4148_v44  ;;  %6825 = vrsqrt.f32 %v8187_v32  ;;  %5740 = vmatpush.bf16.msrb.mxu1 %v5602_v52 }
 0x325   :  { %v4236_v58 = vadd.f32 %v4220_v61, %v8086_v30  ;;  %v4694_v29 = vunpack.c.3.s8 %v4338_v15  ;;  %v4237_v55 = vadd.f32 %v4221_v49, %v8088_v42  ;;  %v5202_v33 = vcvt.s32.f32 %v4690_v56 }
 0x326   :  { %5707 = vmatpush.bf16.msra.mxu2 %v5482_v9  ;;  %v5514_v59 = vpack.c.bf16 %v5102_v14, %v5098_v24  ;;  %v4754_v54 = vunpack.c.2.s8 %v4354_v12  ;;  %v4758_v11 = vunpack.c.3.s8 %v4354_v12  ;;  %v3727_v40 = vadd.f32 %v8158_v21, %v8156_v41  ;;  %v8203_v46 = vpop.f32.mrf.mxu1  ;;  %v4330_v14 = vld [vmem:[#allocation5 + $0x200] sm:$0xff] }
 0x327   :  { %v4244_v63 = vmul.f32 0.2, %v4236_v58  ;;  %v5206_v45 = vcvt.s32.f32 %v4694_v29  ;;  %v4245_v38 = vmul.f32 0.2, %v4237_v55  ;;  %v4682_v1 = vunpack.c.0.s8 %v4338_v15 }
 0x328   :  { %5720 = vmatpush.bf16.msra.mxu3 %v5514_v59  ;;  %v5266_v44 = vcvt.s32.f32 %v4754_v54  ;;  %v4686_v4 = vunpack.c.1.s8 %v4338_v15  ;;  %v5270_v22 = vcvt.s32.f32 %v4758_v11  ;;  %v4746_v25 = vunpack.c.0.s8 %v4354_v12  ;;  %v4346_v59 = vld [vmem:[#allocation5 + $0x280] sm:$0xff] }
 0x329   :  { %v4252_v30 = vmax.f32 %v4236_v58, %v4244_v63  ;;  %v5566_v48 = vpack.c.bf16 %v5206_v45, %v5202_v33  ;;  %v4253_v34 = vmax.f32 %v4237_v55, %v4245_v38  ;;  %v5194_v42 = vcvt.s32.f32 %v4682_v1  ;;  %v3767_v38 = vpop.f32.mrf.mxu0 }
 0x32a   :  { %v5198_v35 = vcvt.s32.f32 %v4686_v4  ;;  %v4750_v57 = vunpack.c.1.s8 %v4354_v12  ;;  %v8205_v41 = vpop.eup %6825  ;;  %v5598_v3 = vpack.c.bf16 %v5270_v22, %v5266_v44  ;;  %v5258_v43 = vcvt.s32.f32 %v4746_v25 }
 0x32b   :  { %v8207_v21 = vpack.c.bf16 %v4252_v30, %v4252_v30  ;;  %5728 = vmatpush.bf16.msrb.mxu0 %v5566_v48  ;;  %v4674_v60 = vunpack.c.2.s8 %v4334_v16  ;;  %vm4150_vm15 = vweird.f32 %v8041_v13  ;;  %v4197_v10 = vperm.slane %v8213_v50, 4 }
 0x32c   :  { %v8216_v0 = vpack.c.bf16 %v4253_v34, %v4253_v34  ;;  %v5562_v19 = vpack.c.bf16 %v5198_v35, %v5194_v42  ;;  %vm8220_vm0 = vmor %vm4150_vm15, %vm4151_vm14  ;;  %5741 = vmatpush.bf16.msrb.mxu1 %v5598_v3  ;;  %v5262_v13 = vcvt.s32.f32 %v4750_v57  ;;  %v4678_v31 = vunpack.c.3.s8 %v4334_v16  ;;  %v4279_v42 = vld [vmem:[#allocation5 + $0x68] sm:$0xff] }
 0x32d   :  { %5708 = vmatmul.bf16.vlgmr.msra.gmra.mxu2 %v8207_v21  ;;  %v5186_v17 = vcvt.s32.f32 %v4674_v60  ;;  %v4738_v5 = vunpack.c.2.s8 %v4350_v28  ;;  %v4153_v2 = vsel %vm8220_vm0, %v8061_v7, %v8194_v18  ;;  %v4742_v20 = vunpack.c.3.s8 %v4350_v28  ;;  %v4295_v3 = vld [vmem:[#allocation5 + $0xe8] sm:$0xff] }
 0x32e   :  { %5721 = vmatmul.bf16.vlgmr.msra.gmra.mxu3 %v8216_v0  ;;  %v4666_v37 = vunpack.c.0.s8 %v4334_v16  ;;  %v4670_v52 = vunpack.c.1.s8 %v4334_v16  ;;  %v5594_v24 = vpack.c.bf16 %v5262_v13, %v5258_v43  ;;  %v5190_v61 = vcvt.s32.f32 %v4678_v31  ;;  %v3780_v44 = vpop.f32.mrf.mxu1  ;;  %v8240_v43 = vpop.f32.mrf.mxu3 }
 0x32f   :  { %5729 = vmatpush.bf16.msrb.mxu0 %v5562_v19  ;;  %v5250_v12 = vcvt.s32.f32 %v4738_v5  ;;  %v4730_v9 = vunpack.c.0.s8 %v4350_v28  ;;  %v4092_v49 = vsub.f32 %v7982_v8, %v8015_v51  ;;  %v5254_v56 = vcvt.s32.f32 %v4742_v20 }
 0x330   :  { %v5178_v58 = vcvt.s32.f32 %v4666_v37  ;;  %v5182_v29 = vcvt.s32.f32 %v4670_v52  ;;  %5742 = vmatpush.bf16.msrb.mxu1 %v5594_v24  ;;  %v5558_v7 = vpack.c.bf16 %v5190_v61, %v5186_v17  ;;  %v4734_v18 = vunpack.c.1.s8 %v4350_v28 }
 0x331   :  { %v5242_v55 = vcvt.s32.f32 %v4730_v9  ;;  %v3740_v33 = vadd.f32 %v8161_v23, %v3727_v40  ;;  %v4188_v54 = vmul.f32 %v4153_v2, %v4092_v49  ;;  %v5590_v63 = vpack.c.bf16 %v5254_v56, %v5250_v12 }
 0x332   :  { %v5554_v45 = vpack.c.bf16 %v5182_v29, %v5178_v58  ;;  %v4658_v11 = vunpack.c.2.s8 %v4330_v14  ;;  %v5246_v1 = vcvt.s32.f32 %v4734_v18  ;;  %v4662_v51 = vunpack.c.3.s8 %v4330_v14 }
 0x333   :  { %5730 = vmatpush.bf16.msrb.mxu0 %v5558_v7  ;;  %v8234_v8 = vadd.f32 %v8163_v6, %v3740_v33  ;;  %v4722_v4 = vunpack.c.2.s8 %v4346_v59  ;;  %v4155_v16 = vmul.f32 %v8205_v41, %v8187_v32  ;;  %v4726_v48 = vunpack.c.3.s8 %v4346_v59  ;;  %v8238_v6 = vpop.f32.mrf.mxu2  ;;  %v4291_v33 = vld [vmem:[#allocation5 + $0xc8] sm:$0xff] }
 0x334   :  { %v5170_v30 = vcvt.s32.f32 %v4658_v11  ;;  %v4650_v22 = vunpack.c.0.s8 %v4330_v14  ;;  %5743 = vmatpush.bf16.msrb.mxu1 %v5590_v63  ;;  %v5586_v23 = vpack.c.bf16 %v5246_v1, %v5242_v55  ;;  %v5174_v40 = vcvt.s32.f32 %v4662_v51 }
 0x335   :  { %v5234_v25 = vcvt.s32.f32 %v4722_v4  ;;  %v4654_v34 = vunpack.c.1.s8 %v4330_v14  ;;  %v5238_v35 = vcvt.s32.f32 %v4726_v48  ;;  %v4714_v28 = vunpack.c.0.s8 %v4346_v59 }
 0x336   :  { %v5162_v57 = vcvt.s32.f32 %v4650_v22  ;;  %v4213_v60 = vmul.f32 %v4197_v10, %v4188_v54  ;;  %v5550_v19 = vpack.c.bf16 %v5174_v40, %v5170_v30  ;;  %v4718_v13 = vunpack.c.1.s8 %v4346_v59  ;;  %v4275_v10 = vld [vmem:[#allocation5 + $0x48] sm:$0xff] }
 0x337   :  { %5731 = vmatpush.bf16.msrb.mxu0 %v5554_v45  ;;  %v5166_v15 = vcvt.s32.f32 %v4654_v34  ;;  %v4156_v31 = vmul.f32 %v8205_v41, %v4155_v16  ;;  %v5226_v17 = vcvt.s32.f32 %v4714_v28  ;;  %v4451_v5 = vunpack.c.2.s8 %v4279_v42  ;;  %v3806_v16 = vpop.f32.mrf.mxu3 }
 0x338   :  { %v4455_v2 = vunpack.c.3.s8 %v4279_v42  ;;  %5744 = vmatpush.bf16.msrb.mxu1 %v5586_v23  ;;  %v5582_v20 = vpack.c.bf16 %v5238_v35, %v5234_v25  ;;  %v5230_v52 = vcvt.s32.f32 %v4718_v13  ;;  %v4515_v24 = vunpack.c.2.s8 %v4295_v3 }
 0x339   :  { %v5546_v37 = vpack.c.bf16 %v5166_v15, %v5162_v57  ;;  %v4963_v61 = vcvt.s32.f32 %v4451_v5  ;;  %v4519_v9 = vunpack.c.3.s8 %v4295_v3  ;;  %v4222_v14 = vperm.slane %v8148_v62, 4 }
 0x33a   :  { %v4967_v12 = vcvt.s32.f32 %v4455_v2  ;;  %v5578_v49 = vpack.c.bf16 %v5230_v52, %v5226_v17  ;;  %v5027_v56 = vcvt.s32.f32 %v4515_v24  ;;  %v4443_v58 = vunpack.c.0.s8 %v4279_v42 }
 0x33b   :  { %5732 = vmatpush.bf16.msrb.mxu0 %v5550_v19  ;;  %v4447_v29 = vunpack.c.1.s8 %v4279_v42  ;;  %v5031_v7 = vcvt.s32.f32 %v4519_v9  ;;  %v4238_v18 = vadd.f32 %v4222_v14, %v4213_v60  ;;  %v4507_v55 = vunpack.c.0.s8 %v4295_v3  ;;  %v3793_v4 = vpop.f32.mrf.mxu2  ;;  %v4271_v60 = vld [vmem:[#allocation5 + $0x28] sm:$0xff] }
 0x33c   :  { %v5447_v59 = vpack.c.bf16 %v4967_v12, %v4963_v61  ;;  %5745 = vmatpush.bf16.msrb.mxu1 %v5582_v20  ;;  %v4955_v54 = vcvt.s32.f32 %v4443_v58  ;;  %v4511_v45 = vunpack.c.1.s8 %v4295_v3  ;;  %v4435_v11 = vunpack.c.2.s8 %v4275_v10  ;;  %v4287_v19 = vld [vmem:[#allocation5 + $0xa8] sm:$0xff] }
 0x33d   :  { %v4959_v63 = vcvt.s32.f32 %v4447_v29  ;;  %v5479_v38 = vpack.c.bf16 %v5031_v7, %v5027_v56  ;;  %v4246_v44 = vmul.f32 0.2, %v4238_v18  ;;  %v5019_v1 = vcvt.s32.f32 %v4507_v55  ;;  %v8254_v55 = vld [vmem:[%s8706_s5 + $0x18] sm:$0xff] }
 0x33e   :  { %v4439_v51 = vunpack.c.3.s8 %v4275_v10  ;;  %v4157_v30 = vmul.f32 0.5, %v4156_v31  ;;  %v5023_v22 = vcvt.s32.f32 %v4511_v45  ;;  %v4499_v23 = vunpack.c.2.s8 %v4291_v33 }
 0x33f   :  { %5733 = vmatpush.bf16.msrb.mxu0 %v5546_v37  ;;  %v5443_v48 = vpack.c.bf16 %v4959_v63, %v4955_v54  ;;  %v4254_v40 = vmax.f32 %v4238_v18, %v4246_v44  ;;  %v4947_v25 = vcvt.s32.f32 %v4435_v11  ;;  %v4503_v34 = vunpack.c.3.s8 %v4291_v33 }
 0x340   :  { %v3766_v42 = vadd.f32 %v8201_v39, %v8234_v8  ;;  %5746 = vmatpush.bf16.msrb.mxu1 %v5578_v49  ;;  %v5475_v35 = vpack.c.bf16 %v5023_v22, %v5019_v1  ;;  %v4951_v57 = vcvt.s32.f32 %v4439_v51  ;;  %v4427_v28 = vunpack.c.0.s8 %v4275_v10 }
 0x341   :  { %v4431_v3 = vunpack.c.1.s8 %v4275_v10  ;;  %v8246_v15 = vpack.c.bf16 %v4254_v40, %v4254_v40  ;;  %v5011_v13 = vcvt.s32.f32 %v4499_v23  ;;  %v5015_v31 = vcvt.s32.f32 %v4503_v34 }
 0x342   :  { %v3779_v17 = vadd.f32 %v8203_v46, %v3766_v42  ;;  %v4939_v5 = vcvt.s32.f32 %v4427_v28  ;;  %v4491_v20 = vunpack.c.0.s8 %v4291_v33  ;;  %v4495_v37 = vunpack.c.1.s8 %v4291_v33 }
 0x343   :  { %5778 = vmatpush.bf16.msra.mxu0 %v5447_v59  ;;  %v4943_v2 = vcvt.s32.f32 %v4431_v3  ;;  %v4419_v39 = vunpack.c.2.s8 %v4271_v60  ;;  %v4423_v8 = vunpack.c.3.s8 %v4271_v60  ;;  %v4483_v52 = vunpack.c.2.s8 %v4287_v19 }
 0x344   :  { %5791 = vmatpush.bf16.msra.mxu1 %v5479_v38  ;;  %5734 = vmatmul.bf16.vlgmr.msrb.gmra.mxu0 %v8246_v15  ;;  %v5439_v24 = vpack.c.bf16 %v4951_v57, %v4947_v25  ;;  %v4487_v61 = vunpack.c.3.s8 %v4287_v19  ;;  %v5471_v12 = vpack.c.bf16 %v5015_v31, %v5011_v13  ;;  %v5003_v9 = vcvt.s32.f32 %v4491_v20  ;;  %v8274_v20 = vpop.f32.mrf.mxu1 }
 0x345   :  { %v5007_v14 = vcvt.s32.f32 %v4495_v37  ;;  %v4158_v10 = vsub.f32 1.5, %v4157_v30  ;;  %v5435_v49 = vpack.c.bf16 %v4943_v2, %v4939_v5  ;;  %v4931_v56 = vcvt.s32.f32 %v4419_v39  ;;  %v4283_v5 = vld [vmem:[#allocation5 + $0x88] sm:$0xff]  ;;  %v8272_v2 = vpop.f32.mrf.mxu0 }
 0x346   :  { %v4935_v46 = vcvt.s32.f32 %v4423_v8  ;;  %v4995_v58 = vcvt.s32.f32 %v4483_v52  ;;  %v3792_v29 = vadd.f32 %v8238_v6, %v3779_v17  ;;  %v4999_v59 = vcvt.s32.f32 %v4487_v61  ;;  %v4374_v17 = vld [vmem:[#allocation5 + $0x360] sm:$0xff] }
 0x347   :  { %5779 = vmatpush.bf16.msra.mxu0 %v5443_v48  ;;  %v4411_v7 = vunpack.c.0.s8 %v4271_v60  ;;  %v4415_v18 = vunpack.c.1.s8 %v4271_v60  ;;  %v3919_v33 = vperm.slane %v8254_v55, 6  ;;  %v5467_v54 = vpack.c.bf16 %v5007_v14, %v5003_v9 }
 0x348   :  { %5792 = vmatpush.bf16.msra.mxu1 %v5475_v35  ;;  %v4475_v63 = vunpack.c.0.s8 %v4287_v19  ;;  %v4479_v45 = vunpack.c.1.s8 %v4287_v19  ;;  %v3805_v11 = vadd.f32 %v8240_v43, %v3792_v29  ;;  %v4159_v38 = vmul.f32 %v8205_v41, %v4158_v10 }
 0x349   :  { %vm4161_vm1 = vweird.f32 %v8205_v41  ;;  %vm4160_vm2 = vweird.f32 %v8187_v32  ;;  %v5431_v44 = vpack.c.bf16 %v4935_v46, %v4931_v56  ;;  %v5463_v1 = vpack.c.bf16 %v4999_v59, %v4995_v58 }
 0x34a   :  { %v8261_v6 = vmul.f32 %v3919_v33, %v3805_v11  ;;  %v4923_v51 = vcvt.s32.f32 %v4411_v7  ;;  %v4927_v4 = vcvt.s32.f32 %v4415_v18  ;;  %vm4162_vm3 = vmor %vm4160_vm2, %vm4161_vm1  ;;  %v4987_v16 = vcvt.s32.f32 %v4475_v63 }
 0x34b   :  { %5780 = vmatpush.bf16.msra.mxu0 %v5439_v24  ;;  %v4991_v30 = vcvt.s32.f32 %v4479_v45  ;;  %v4163_v22 = vsel %vm4162_vm3, %v8205_v41, %v4159_v38  ;;  %v4093_v32 = vsub.f32 %v8125_v53, %v8166_v27  ;;  %v4198_v25 = vperm.slane %v8213_v50, 5  ;;  %v4267_v50 = vld [vmem:[#allocation5 + $0x8] sm:$0xff] }
 0x34c   :  { %5793 = vmatpush.bf16.msra.mxu1 %v5471_v12  ;;  %v3973_v48 = vrot.slane %v8261_v6, 4  ;;  %v4006_v43 = vmul.f32 %v8261_v6, %v8261_v6  ;;  %v5427_v34 = vpack.c.bf16 %v4927_v4, %v4923_v51  ;;  %v4223_v31 = vperm.slane %v8148_v62, 5  ;;  %v4343_v51 = vld [vmem:[#allocation5 + $0x268] sm:$0xff] }
 0x34d   :  { %v4189_v42 = vmul.f32 %v4163_v22, %v4093_v32  ;;  %v5459_v35 = vpack.c.bf16 %v4991_v30, %v4987_v16  ;;  %v4834_v37 = vunpack.c.2.s8 %v4374_v17  ;;  %v4838_v39 = vunpack.c.3.s8 %v4374_v17  ;;  %v3819_v22 = vpop.f32.mrf.mxu0  ;;  %v3832_v32 = vpop.f32.mrf.mxu1 }
 0x34e   :  { %v3974_v23 = vadd.f32 %v3973_v48, %v8261_v6  ;;  %v4044_v40 = vrot.slane %v4006_v43, 4  ;;  %v4403_v8 = vunpack.c.2.s8 %v4267_v50  ;;  %v4407_v52 = vunpack.c.3.s8 %v4267_v50 }
 0x34f   :  { %5781 = vmatpush.bf16.msra.mxu0 %v5435_v49  ;;  %v4214_v19 = vmul.f32 %v4198_v25, %v4189_v42  ;;  %v4467_v9 = vunpack.c.2.s8 %v4283_v5  ;;  %v5346_v14 = vcvt.s32.f32 %v4834_v37  ;;  %v5350_v10 = vcvt.s32.f32 %v4838_v39  ;;  %v8284_v42 = vpop.f32.mrf.mxu2 }
 0x350   :  { %5794 = vmatpush.bf16.msra.mxu1 %v5467_v54  ;;  %v3975_v57 = vrot.slane %v3974_v23, 2  ;;  %v4045_v28 = vadd.f32 %v4044_v40, %v4006_v43  ;;  %v4915_v62 = vcvt.s32.f32 %v4403_v8  ;;  %v4919_v49 = vcvt.s32.f32 %v4407_v52  ;;  %v4359_v43 = vld [vmem:[#allocation5 + $0x2e8] sm:$0xff] }
 0x351   :  { %v4239_v12 = vadd.f32 %v4223_v31, %v4214_v19  ;;  %v5638_v29 = vpack.c.bf16 %v5350_v10, %v5346_v14  ;;  %v4471_v7 = vunpack.c.3.s8 %v4283_v5  ;;  %v4979_v18 = vcvt.s32.f32 %v4467_v9  ;;  %v4370_v19 = vld [vmem:[#allocation5 + $0x340] sm:$0xff] }
 0x352   :  { %v3976_v3 = vadd.f32 %v3975_v57, %v3974_v23  ;;  %v4046_v60 = vrot.slane %v4045_v28, 2  ;;  %v5423_v59 = vpack.c.bf16 %v4919_v49, %v4915_v62  ;;  %v4826_v63 = vunpack.c.0.s8 %v4374_v17  ;;  %v4339_v49 = vld [vmem:[#allocation5 + $0x248] sm:$0xff] }
 0x353   :  { %5782 = vmatpush.bf16.msra.mxu0 %v5431_v44  ;;  %v4247_v58 = vmul.f32 0.2, %v4239_v12  ;;  %v4830_v45 = vunpack.c.1.s8 %v4374_v17  ;;  %5752 = vmatpush.bf16.msrb.mxu2 %v5638_v29  ;;  %v4983_v11 = vcvt.s32.f32 %v4471_v7  ;;  %v4395_v38 = vunpack.c.0.s8 %v4267_v50 }
 0x354   :  { %5795 = vmatpush.bf16.msra.mxu1 %v5463_v1  ;;  %v3977_v41 = vrot.slane %v3976_v3, 1  ;;  %v4047_v13 = vadd.f32 %v4046_v60, %v4045_v28  ;;  %v4399_v44 = vunpack.c.1.s8 %v4267_v50  ;;  %v4459_v1 = vunpack.c.0.s8 %v4283_v5 }
 0x355   :  { %v4255_v54 = vmax.f32 %v4239_v12, %v4247_v58  ;;  %v5338_v30 = vcvt.s32.f32 %v4826_v63  ;;  %v5342_v48 = vcvt.s32.f32 %v4830_v45  ;;  %v5455_v23 = vpack.c.bf16 %v4983_v11, %v4979_v18 }
 0x356   :  { %v3978_v53 = vadd.f32 %v3977_v41, %v3976_v3  ;;  %v4048_v27 = vrot.slane %v4047_v13, 1  ;;  %v4907_v40 = vcvt.s32.f32 %v4395_v38  ;;  %v4911_v25 = vcvt.s32.f32 %v4399_v44 }
 0x357   :  { %5783 = vmatpush.bf16.msra.mxu0 %v5427_v34  ;;  %v8282_v16 = vpack.c.bf16 %v4255_v54, %v4255_v54  ;;  %v4463_v34 = vunpack.c.1.s8 %v4283_v5  ;;  %v5634_v28 = vpack.c.bf16 %v5342_v48, %v5338_v30  ;;  %v4971_v3 = vcvt.s32.f32 %v4459_v1  ;;  %v4355_v54 = vld [vmem:[#allocation5 + $0x2c8] sm:$0xff]  ;;  %v3845_v63 = vpop.f32.mrf.mxu2 }
 0x358   :  { %5796 = vmatpush.bf16.msra.mxu1 %v5459_v35  ;;  %v8277_v24 = vmul.f32 %v7518_v26, %v3978_v53  ;;  %v4049_v61 = vadd.f32 %v4048_v27, %v4047_v13  ;;  %v8286_v35 = vpop.f32.mrf.mxu3  ;;  %v4707_v60 = vunpack.c.2.s8 %v4343_v51  ;;  %v5419_v41 = vpack.c.bf16 %v4911_v25, %v4907_v40 }
 0x359   :  { %5747 = vmatmul.bf16.vlgmr.msrb.gmra.mxu1 %v8282_v16  ;;  %v4975_v13 = vcvt.s32.f32 %v4463_v34  ;;  %v4711_v53 = vunpack.c.3.s8 %v4343_v51  ;;  %v4771_v27 = vunpack.c.2.s8 %v4359_v43  ;;  %5753 = vmatpush.bf16.msrb.mxu2 %v5634_v28  ;;  %v4775_v17 = vunpack.c.3.s8 %v4359_v43 }
 0x35a   :  { %v4062_v56 = vmul.f32 %v4049_v61, %v7518_v26  ;;  %v4070_v46 = vmul.f32 %v8277_v24, %v8277_v24  ;;  %v5219_v31 = vcvt.s32.f32 %v4707_v60  ;;  %v4818_v39 = vunpack.c.2.s8 %v4370_v19 }
 0x35b   :  { %5784 = vmatpush.bf16.msra.mxu0 %v5423_v59  ;;  %v5451_v50 = vpack.c.bf16 %v4975_v13, %v4971_v3  ;;  %v5223_v5 = vcvt.s32.f32 %v4711_v53  ;;  %v5283_v37 = vcvt.s32.f32 %v4771_v27  ;;  %v5287_v8 = vcvt.s32.f32 %v4775_v17 }
 0x35c   :  { %v4078_v33 = vsub.f32 %v4062_v56, %v4070_v46  ;;  %5797 = vmatpush.bf16.msra.mxu1 %v5455_v23  ;;  %v4822_v52 = vunpack.c.3.s8 %v4370_v19  ;;  %v4699_v61 = vunpack.c.0.s8 %v4343_v51  ;;  %v4703_v12 = vunpack.c.1.s8 %v4343_v51 }
 0x35d   :  { %v5575_v9 = vpack.c.bf16 %v5223_v5, %v5219_v31  ;;  %v5330_v14 = vcvt.s32.f32 %v4818_v39  ;;  %v4763_v10 = vunpack.c.0.s8 %v4359_v43  ;;  %v4767_v62 = vunpack.c.1.s8 %v4359_v43  ;;  %v4335_v39 = vld [vmem:[#allocation5 + $0x228] sm:$0xff] }
 0x35e   :  { %v4086_v4 = vmax.f32 %v4078_v33, 0.0  ;;  %v5607_v56 = vpack.c.bf16 %v5287_v8, %v5283_v37  ;;  %v5334_v46 = vcvt.s32.f32 %v4822_v52  ;;  %v5211_v58 = vcvt.s32.f32 %v4699_v61  ;;  %v4351_v52 = vld [vmem:[#allocation5 + $0x2a8] sm:$0xff] }
 0x35f   :  { %5785 = vmatpush.bf16.msra.mxu0 %v5419_v41  ;;  %v5215_v29 = vcvt.s32.f32 %v4703_v12  ;;  %v5275_v59 = vcvt.s32.f32 %v4763_v10  ;;  %v5279_v7 = vcvt.s32.f32 %v4767_v62  ;;  %v4810_v18 = vunpack.c.0.s8 %v4370_v19 }
 0x360   :  { %v8288_v57 = vadd.f32 1e-05, %v4086_v4  ;;  %5798 = vmatpush.bf16.msra.mxu1 %v5451_v50  ;;  %v4814_v33 = vunpack.c.1.s8 %v4370_v19  ;;  %v3858_v45 = vpop.f32.mrf.mxu3  ;;  %v5630_v38 = vpack.c.bf16 %v5334_v46, %v5330_v14  ;;  %v4691_v1 = vunpack.c.2.s8 %v4339_v49  ;;  %v4366_v4 = vld [vmem:[#allocation5 + $0x320] sm:$0xff] }
 0x361   :  { %v5571_v44 = vpack.c.bf16 %v5215_v29, %v5211_v58  ;;  %v4695_v51 = vunpack.c.3.s8 %v4339_v49  ;;  %v5603_v48 = vpack.c.bf16 %v5279_v7, %v5275_v59  ;;  %v5322_v43 = vcvt.s32.f32 %v4810_v18  ;;  %v4362_v46 = vld [vmem:[#allocation5 + $0x300] sm:$0xff] }
 0x362   :  { %6827 = vrsqrt.f32 %v8288_v57  ;;  %5786 = vmatmul.bf16.vlgmr.msra.gmra.mxu0 %v8182_v36  ;;  %5754 = vmatpush.bf16.msrb.mxu2 %v5630_v38  ;;  %v5326_v22 = vcvt.s32.f32 %v4814_v33  ;;  %v5203_v32 = vcvt.s32.f32 %v4691_v1  ;;  %v4755_v40 = vunpack.c.2.s8 %v4355_v54 }
 0x363   :  { %5830 = vmatpush.bf16.msrb.mxu0 %v5575_v9  ;;  %v5207_v23 = vcvt.s32.f32 %v4695_v51  ;;  %v4759_v25 = vunpack.c.3.s8 %v4355_v54  ;;  %v8299_v34 = vadd.f32 %v8274_v20, %v8272_v2  ;;  %v4802_v28 = vunpack.c.2.s8 %v4366_v4 }
 0x364   :  { %5843 = vmatpush.bf16.msrb.mxu1 %v5607_v56  ;;  %v5626_v3 = vpack.c.bf16 %v5326_v22, %v5322_v43  ;;  %v5267_v19 = vcvt.s32.f32 %v4755_v40  ;;  %v4806_v41 = vunpack.c.3.s8 %v4366_v4  ;;  %v4683_v31 = vunpack.c.0.s8 %v4339_v49  ;;  %v4311_v40 = vld [vmem:[#allocation5 + $0x168] sm:$0xff] }
 0x365   :  { %v5567_v60 = vpack.c.bf16 %v5207_v23, %v5203_v32  ;;  %v5271_v53 = vcvt.s32.f32 %v4759_v25  ;;  %v5314_v27 = vcvt.s32.f32 %v4802_v28  ;;  %v4687_v50 = vunpack.c.1.s8 %v4339_v49 }
 0x366   :  { %5755 = vmatpush.bf16.msrb.mxu2 %v5626_v3  ;;  %v5318_v17 = vcvt.s32.f32 %v4806_v41  ;;  %v4747_v5 = vunpack.c.0.s8 %v4355_v54  ;;  %v4751_v37 = vunpack.c.1.s8 %v4355_v54  ;;  %v5195_v20 = vcvt.s32.f32 %v4683_v31 }
 0x367   :  { %5831 = vmatpush.bf16.msrb.mxu0 %v5571_v44  ;;  %v5599_v2 = vpack.c.bf16 %v5271_v53, %v5267_v19  ;;  %v4794_v8 = vunpack.c.0.s8 %v4366_v4  ;;  %v5199_v12 = vcvt.s32.f32 %v4687_v50  ;;  %v4798_v62 = vunpack.c.1.s8 %v4366_v4 }
 0x368   :  { %v8293_v11 = vpop.eup %6827  ;;  %5844 = vmatpush.bf16.msrb.mxu1 %v5603_v48  ;;  %v5622_v61 = vpack.c.bf16 %v5318_v17, %v5314_v27  ;;  %v5259_v9 = vcvt.s32.f32 %v4747_v5  ;;  %v5263_v14 = vcvt.s32.f32 %v4751_v37  ;;  %v4675_v49 = vunpack.c.2.s8 %v4335_v39  ;;  %v4331_v27 = vld [vmem:[#allocation5 + $0x208] sm:$0xff] }
 0x369   :  { %v4165_v30 = vmul.f32 %v8293_v11, %v8288_v57  ;;  %5799 = vmatmul.bf16.vlgmr.msra.gmra.mxu1 %v8184_v47  ;;  %v5306_v56 = vcvt.s32.f32 %v4794_v8  ;;  %v5563_v59 = vpack.c.bf16 %v5199_v12, %v5195_v20  ;;  %v4679_v18 = vunpack.c.3.s8 %v4335_v39  ;;  %v4347_v37 = vld [vmem:[#allocation5 + $0x288] sm:$0xff] }
 0x36a   :  { %v8305_v58 = vpop.f32.mrf.mxu0  ;;  %5756 = vmatpush.bf16.msrb.mxu2 %v5622_v61  ;;  %v5595_v7 = vpack.c.bf16 %v5263_v14, %v5259_v9  ;;  %v4739_v33 = vunpack.c.2.s8 %v4351_v52  ;;  %v5310_v54 = vcvt.s32.f32 %v4798_v62  ;;  %v5187_v63 = vcvt.s32.f32 %v4675_v49 }
 0x36b   :  { %v4166_v13 = vmul.f32 %v8293_v11, %v4165_v30  ;;  %5832 = vmatpush.bf16.msrb.mxu0 %v5567_v60  ;;  %v4743_v45 = vunpack.c.3.s8 %v4351_v52  ;;  %v5191_v38 = vcvt.s32.f32 %v4679_v18  ;;  %v4786_v1 = vunpack.c.2.s8 %v4362_v46 }
 0x36c   :  { %5845 = vmatpush.bf16.msrb.mxu1 %v5599_v2  ;;  %v8307_v29 = vpop.f32.mrf.mxu1  ;;  %v5251_v44 = vcvt.s32.f32 %v4739_v33  ;;  %v5618_v51 = vpack.c.bf16 %v5310_v54, %v5306_v56  ;;  %v4790_v30 = vunpack.c.3.s8 %v4362_v46  ;;  %v4667_v48 = vunpack.c.0.s8 %v4335_v39 }
 0x36d   :  { %v8303_v10 = vmul.f32 0.5, %v4166_v13  ;;  %v5255_v4 = vcvt.s32.f32 %v4743_v45  ;;  %v5559_v22 = vpack.c.bf16 %v5191_v38, %v5187_v63  ;;  %v5298_v32 = vcvt.s32.f32 %v4786_v1 }
 0x36e   :  { %v4671_v23 = vunpack.c.1.s8 %v4335_v39  ;;  %5757 = vmatpush.bf16.msrb.mxu2 %v5618_v51  ;;  %v5302_v28 = vcvt.s32.f32 %v4790_v30  ;;  %v5179_v3 = vcvt.s32.f32 %v4667_v48  ;;  %v4731_v60 = vunpack.c.0.s8 %v4351_v52  ;;  %v4296_v48 = vld [vmem:[#allocation5 + $0xf0] sm:$0xff] }
 0x36f   :  { %5833 = vmatpush.bf16.msrb.mxu0 %v5563_v59  ;;  %v4168_v43 = vsub.f32 1.5, %v8303_v10  ;;  %v5591_v25 = vpack.c.bf16 %v5255_v4, %v5251_v44  ;;  %v4735_v41 = vunpack.c.1.s8 %v4351_v52  ;;  %v3844_v13 = vadd.f32 %v8284_v42, %v8299_v34  ;;  %v4280_v44 = vld [vmem:[#allocation5 + $0x70] sm:$0xff] }
 0x370   :  { %5846 = vmatpush.bf16.msrb.mxu1 %v5595_v7  ;;  %v5183_v19 = vcvt.s32.f32 %v4671_v23  ;;  %v4778_v53 = vunpack.c.0.s8 %v4362_v46  ;;  %v5614_v31 = vpack.c.bf16 %v5302_v28, %v5298_v32  ;;  %v5243_v17 = vcvt.s32.f32 %v4731_v60 }
 0x371   :  { %v4782_v50 = vunpack.c.1.s8 %v4362_v46  ;;  %v4579_v5 = vunpack.c.2.s8 %v4311_v40  ;;  %v5247_v8 = vcvt.s32.f32 %v4735_v41  ;;  %v8313_v61 = vadd.f32 %v8286_v35, %v3844_v13  ;;  %v4307_v41 = vld [vmem:[#allocation5 + $0x148] sm:$0xff] }
 0x372   :  { %v3871_v39 = vpop.f32.mrf.mxu0  ;;  %v5555_v20 = vpack.c.bf16 %v5183_v19, %v5179_v3  ;;  %v5290_v12 = vcvt.s32.f32 %v4778_v53  ;;  %5758 = vmatpush.bf16.msrb.mxu2 %v5614_v31  ;;  %v4583_v9 = vunpack.c.3.s8 %v4311_v40  ;;  %v4659_v34 = vunpack.c.2.s8 %v4331_v27 }
 0x373   :  { %5834 = vmatpush.bf16.msrb.mxu0 %v5559_v22  ;;  %v5294_v52 = vcvt.s32.f32 %v4782_v50  ;;  %v5091_v42 = vcvt.s32.f32 %v4579_v5  ;;  %v5587_v14 = vpack.c.bf16 %v5247_v8, %v5243_v17  ;;  %v4663_v62 = vunpack.c.3.s8 %v4331_v27 }
 0x374   :  { %5847 = vmatpush.bf16.msrb.mxu1 %v5591_v25  ;;  %v3884_v2 = vpop.f32.mrf.mxu1  ;;  %v4723_v56 = vunpack.c.2.s8 %v4347_v37  ;;  %v4727_v49 = vunpack.c.3.s8 %v4347_v37  ;;  %v5095_v59 = vcvt.s32.f32 %v4583_v9  ;;  %v5171_v7 = vcvt.s32.f32 %v4659_v34 }
 0x375   :  { %v5610_v46 = vpack.c.bf16 %v5294_v52, %v5290_v12  ;;  %v4571_v18 = vunpack.c.0.s8 %v4311_v40  ;;  %v5175_v35 = vcvt.s32.f32 %v4663_v62  ;;  %v4575_v38 = vunpack.c.1.s8 %v4311_v40 }
 0x376   :  { %v5235_v63 = vcvt.s32.f32 %v4723_v56  ;;  %v5239_v45 = vcvt.s32.f32 %v4727_v49  ;;  %v5511_v1 = vpack.c.bf16 %v5095_v59, %v5091_v42  ;;  %v4651_v4 = vunpack.c.0.s8 %v4331_v27 }
 0x377   :  { %5835 = vmatpush.bf16.msrb.mxu0 %v5555_v20  ;;  %5759 = vmatpush.bf16.msrb.mxu2 %v5610_v46  ;;  %v5083_v51 = vcvt.s32.f32 %v4571_v18  ;;  %v4655_v30 = vunpack.c.1.s8 %v4331_v27  ;;  %v5551_v22 = vpack.c.bf16 %v5175_v35, %v5171_v7  ;;  %v5087_v23 = vcvt.s32.f32 %v4575_v38  ;;  %v4276_v46 = vld [vmem:[#allocation5 + $0x50] sm:$0xff] }
 0x378   :  { %5848 = vmatpush.bf16.msrb.mxu1 %v5587_v14  ;;  %v5583_v32 = vpack.c.bf16 %v5239_v45, %v5235_v63  ;;  %v4715_v25 = vunpack.c.0.s8 %v4347_v37  ;;  %v5163_v28 = vcvt.s32.f32 %v4651_v4  ;;  %v4719_v60 = vunpack.c.1.s8 %v4347_v37  ;;  %v4292_v63 = vld [vmem:[#allocation5 + $0xd0] sm:$0xff] }
 0x379   :  { %v5167_v3 = vcvt.s32.f32 %v4655_v30  ;;  %v4452_v19 = vunpack.c.2.s8 %v4280_v44  ;;  %v5507_v40 = vpack.c.bf16 %v5087_v23, %v5083_v51  ;;  %v4456_v53 = vunpack.c.3.s8 %v4280_v44 }
 0x37a   :  { %v5227_v13 = vcvt.s32.f32 %v4715_v25  ;;  %v4516_v31 = vunpack.c.2.s8 %v4296_v48  ;;  %v5231_v50 = vcvt.s32.f32 %v4719_v60  ;;  %v4520_v5 = vunpack.c.3.s8 %v4296_v48 }
 0x37b   :  { %v8315_v33 = vpop.f32.mrf.mxu2  ;;  %5804 = vmatpush.bf16.msra.mxu2 %v5511_v1  ;;  %5836 = vmatpush.bf16.msrb.mxu0 %v5551_v22  ;;  %v5547_v17 = vpack.c.bf16 %v5167_v3, %v5163_v28  ;;  %v4964_v27 = vcvt.s32.f32 %v4452_v19  ;;  %v4968_v39 = vcvt.s32.f32 %v4456_v53  ;;  %v4563_v20 = vunpack.c.2.s8 %v4307_v41 }
 0x37c   :  { %v8317_v54 = vpop.f32.mrf.mxu3  ;;  %5849 = vmatpush.bf16.msrb.mxu1 %v5583_v32  ;;  %v5028_v2 = vcvt.s32.f32 %v4516_v31  ;;  %v4567_v8 = vunpack.c.3.s8 %v4307_v41  ;;  %v5579_v12 = vpack.c.bf16 %v5231_v50, %v5227_v13  ;;  %v5032_v52 = vcvt.s32.f32 %v4520_v5  ;;  %v4303_v32 = vld [vmem:[#allocation5 + $0x128] sm:$0xff] }
 0x37d   :  { %v4444_v37 = vunpack.c.0.s8 %v4280_v44  ;;  %v4448_v9 = vunpack.c.1.s8 %v4280_v44  ;;  %v5448_v14 = vpack.c.bf16 %v4968_v39, %v4964_v27  ;;  %v5075_v62 = vcvt.s32.f32 %v4563_v20  ;;  %v4272_v39 = vld [vmem:[#allocation5 + $0x30] sm:$0xff] }
 0x37e   :  { %v5079_v56 = vcvt.s32.f32 %v4567_v8  ;;  %v4508_v49 = vunpack.c.0.s8 %v4296_v48  ;;  %v5480_v59 = vpack.c.bf16 %v5032_v52, %v5028_v2  ;;  %v4512_v35 = vunpack.c.1.s8 %v4296_v48 }
 0x37f   :  { %5805 = vmatpush.bf16.msra.mxu2 %v5507_v40  ;;  %5837 = vmatpush.bf16.msrb.mxu0 %v5547_v17  ;;  %v4956_v7 = vcvt.s32.f32 %v4444_v37  ;;  %v4960_v18 = vcvt.s32.f32 %v4448_v9  ;;  %v4555_v1 = vunpack.c.0.s8 %v4307_v41  ;;  %v4559_v51 = vunpack.c.1.s8 %v4307_v41  ;;  %v4288_v9 = vld [vmem:[#allocation5 + $0xb0] sm:$0xff] }
 0x380   :  { %5850 = vmatpush.bf16.msrb.mxu1 %v5579_v12  ;;  %v5503_v45 = vpack.c.bf16 %v5079_v56, %v5075_v62  ;;  %v5020_v38 = vcvt.s32.f32 %v4508_v49  ;;  %v5024_v4 = vcvt.s32.f32 %v4512_v35  ;;  %v4436_v30 = vunpack.c.2.s8 %v4276_v46  ;;  %v8324_v56 = vld [vmem:[#allocation5 + $0x108] sm:$0xff] }
 0x381   :  { %v5444_v44 = vpack.c.bf16 %v4960_v18, %v4956_v7  ;;  %v4440_v22 = vunpack.c.3.s8 %v4276_v46  ;;  %v5067_v23 = vcvt.s32.f32 %v4555_v1  ;;  %v5071_v25 = vcvt.s32.f32 %v4559_v51 }
 0x382   :  { %5838 = vmatmul.bf16.vlgmr.msrb.gmra.mxu0 %v8246_v15  ;;  %v4500_v48 = vunpack.c.2.s8 %v4292_v63  ;;  %v4504_v28 = vunpack.c.3.s8 %v4292_v63  ;;  %v5476_v3 = vpack.c.bf16 %v5024_v4, %v5020_v38  ;;  %v4948_v60 = vcvt.s32.f32 %v4436_v30 }
 0x383   :  { %v3897_v42 = vpop.f32.mrf.mxu2  ;;  %5882 = vmatpush.bf16.msra.mxu0 %v5448_v14  ;;  %5851 = vmatmul.bf16.vlgmr.msrb.gmra.mxu1 %v8282_v16  ;;  %v4952_v19 = vcvt.s32.f32 %v4440_v22  ;;  %v3870_v41 = vadd.f32 %v8305_v58, %v8313_v61  ;;  %v5499_v40 = vpack.c.bf16 %v5071_v25, %v5067_v23  ;;  %v4547_v31 = vunpack.c.2.s8 %v4303_v32 }
 0x384   :  { %v3910_v34 = vpop.f32.mrf.mxu3  ;;  %5895 = vmatpush.bf16.msra.mxu1 %v5480_v59  ;;  %5806 = vmatpush.bf16.msra.mxu2 %v5503_v45  ;;  %v5012_v13 = vcvt.s32.f32 %v4500_v48  ;;  %v5016_v53 = vcvt.s32.f32 %v4504_v28  ;;  %v4551_v27 = vunpack.c.3.s8 %v4303_v32  ;;  %v4428_v5 = vunpack.c.0.s8 %v4276_v46 }
 0x385   :  { %v5440_v17 = vpack.c.bf16 %v4952_v19, %v4948_v60  ;;  %v3883_v50 = vadd.f32 %v8307_v29, %v3870_v41  ;;  %v5059_v20 = vcvt.s32.f32 %v4547_v31  ;;  %v4432_v8 = vunpack.c.1.s8 %v4276_v46 }
 0x386   :  { %v5472_v2 = vpack.c.bf16 %v5016_v53, %v5012_v13  ;;  %v4492_v12 = vunpack.c.0.s8 %v4292_v63  ;;  %v5063_v52 = vcvt.s32.f32 %v4551_v27  ;;  %v4940_v37 = vcvt.s32.f32 %v4428_v5 }
 0x387   :  { %5883 = vmatpush.bf16.msra.mxu0 %v5444_v44  ;;  %v4496_v58 = vunpack.c.1.s8 %v4292_v63  ;;  %v4539_v61 = vunpack.c.0.s8 %v4303_v32  ;;  %v4944_v42 = vcvt.s32.f32 %v4432_v8  ;;  %v4543_v14 = vunpack.c.1.s8 %v4303_v32 }
 0x388   :  { %5896 = vmatpush.bf16.msra.mxu1 %v5476_v3  ;;  %5807 = vmatpush.bf16.msra.mxu2 %v5499_v40  ;;  %v5004_v34 = vcvt.s32.f32 %v4492_v12  ;;  %v4420_v62 = vunpack.c.2.s8 %v4272_v39  ;;  %v5495_v29 = vpack.c.bf16 %v5063_v52, %v5059_v20  ;;  %v4424_v7 = vunpack.c.3.s8 %v4272_v39 }
 0x389   :  { %v5008_v49 = vcvt.s32.f32 %v4496_v58  ;;  %v5051_v59 = vcvt.s32.f32 %v4539_v61  ;;  %v5436_v18 = vpack.c.bf16 %v4944_v42, %v4940_v37  ;;  %v5055_v46 = vcvt.s32.f32 %v4543_v14 }
 0x38a   :  { %v4932_v35 = vcvt.s32.f32 %v4420_v62  ;;  %v4484_v45 = vunpack.c.2.s8 %v4288_v9  ;;  %v4936_v38 = vcvt.s32.f32 %v4424_v7  ;;  %v4488_v1 = vunpack.c.3.s8 %v4288_v9 }
 0x38b   :  { %5884 = vmatpush.bf16.msra.mxu0 %v5440_v17  ;;  %v5468_v63 = vpack.c.bf16 %v5008_v49, %v5004_v34  ;;  %v4531_v51 = vunpack.c.2.s8 %v8324_v56  ;;  %v5491_v44 = vpack.c.bf16 %v5055_v46, %v5051_v59  ;;  %v4535_v30 = vunpack.c.3.s8 %v8324_v56  ;;  %v4375_v49 = vld [vmem:[#allocation5 + $0x368] sm:$0xff]  ;;  %v8356_v59 = vld [vmem:[%s8706_s5 + $0x10] sm:$0xff] }
 0x38c   :  { %5897 = vmatpush.bf16.msra.mxu1 %v5472_v2  ;;  %5808 = vmatpush.bf16.msra.mxu2 %v5495_v29  ;;  %v4996_v4 = vcvt.s32.f32 %v4484_v45  ;;  %v4412_v22 = vunpack.c.0.s8 %v4272_v39  ;;  %v5432_v32 = vpack.c.bf16 %v4936_v38, %v4932_v35  ;;  %v5000_v23 = vcvt.s32.f32 %v4488_v1 }
 0x38d   :  { %v5043_v25 = vcvt.s32.f32 %v4531_v51  ;;  %v4416_v48 = vunpack.c.1.s8 %v4272_v39  ;;  %v5047_v28 = vcvt.s32.f32 %v4535_v30  ;;  %v4476_v60 = vunpack.c.0.s8 %v4288_v9 }
 0x38e   :  { %v4924_v3 = vcvt.s32.f32 %v4412_v22  ;;  %v4480_v19 = vunpack.c.1.s8 %v4288_v9  ;;  %v5464_v41 = vpack.c.bf16 %v5000_v23, %v4996_v4  ;;  %v3896_v13 = vadd.f32 %v8315_v33, %v3883_v50  ;;  %v8366_v23 = vld [vmem:[#allocation5 + $0x90] sm:$0xff] }
 0x38f   :  { %5885 = vmatpush.bf16.msra.mxu0 %v5436_v18  ;;  %v4928_v40 = vcvt.s32.f32 %v4416_v48  ;;  %v3920_v53 = vperm.slane %v8254_v55, 7  ;;  %v5487_v31 = vpack.c.bf16 %v5047_v28, %v5043_v25  ;;  %v4988_v17 = vcvt.s32.f32 %v4476_v60 }
 0x390   :  { %5898 = vmatpush.bf16.msra.mxu1 %v5468_v63  ;;  %5809 = vmatpush.bf16.msra.mxu2 %v5491_v44  ;;  %v4992_v27 = vcvt.s32.f32 %v4480_v19  ;;  %v3909_v2 = vadd.f32 %v8317_v54, %v3896_v13  ;;  %v4169_v20 = vmul.f32 %v8293_v11, %v4168_v43  ;;  %vm4171_vm4 = vweird.f32 %v8293_v11 }
 0x391   :  { %v5428_v5 = vpack.c.bf16 %v4928_v40, %v4924_v3  ;;  %vm4170_vm5 = vweird.f32 %v8288_v57  ;;  %v4094_v50 = vsub.f32 %v8261_v6, %v8277_v24  ;;  %v8348_v57 = vld [vmem:[%s8706_s5 + $0x8] sm:$0xff]  ;;  %v4523_v29 = vunpack.c.0.s8 %v8324_v56  ;;  %v4390_v24 = vld [vmem:[#allocation5 + $0x3e0] sm:$0xff] }
 0x392   :  { %v5460_v39 = vpack.c.bf16 %v4992_v27, %v4988_v17  ;;  %v8335_v8 = vmul.f32 %v3920_v53, %v3909_v2  ;;  %vm4172_vm6 = vmor %vm4170_vm5, %vm4171_vm4  ;;  %v4199_v58 = vperm.slane %v8348_v57, 6  ;;  %v4527_v6 = vunpack.c.1.s8 %v8324_v56 }
 0x393   :  { %5886 = vmatpush.bf16.msra.mxu0 %v5432_v32  ;;  %v4173_v54 = vsel %vm4172_vm6, %v8293_v11, %v4169_v20  ;;  %v4224_v7 = vperm.slane %v8356_v59, 6  ;;  %v4898_v18 = vunpack.c.2.s8 %v4390_v24  ;;  %v4902_v46 = vunpack.c.3.s8 %v4390_v24  ;;  %v4268_v32 = vld [vmem:[#allocation5 + $0x10] sm:$0xff] }
 0x394   :  { %5899 = vmatpush.bf16.msra.mxu1 %v5464_v41  ;;  %5810 = vmatpush.bf16.msra.mxu2 %v5487_v31  ;;  %v3979_v55 = vrot.slane %v8335_v8, 4  ;;  %v4007_v33 = vmul.f32 %v8335_v8, %v8335_v8  ;;  %v4190_v37 = vmul.f32 %v4173_v54, %v4094_v50  ;;  %v4835_v35 = vunpack.c.2.s8 %v4375_v49 }
 0x395   :  { %v5035_v1 = vcvt.s32.f32 %v4523_v29  ;;  %v5039_v51 = vcvt.s32.f32 %v4527_v6  ;;  %v5410_v4 = vcvt.s32.f32 %v4898_v18  ;;  %v5414_v30 = vcvt.s32.f32 %v4902_v46  ;;  %v4344_v29 = vld [vmem:[#allocation5 + $0x270] sm:$0xff] }
 0x396   :  { %v3980_v10 = vadd.f32 %v3979_v55, %v8335_v8  ;;  %v4050_v43 = vrot.slane %v4007_v33, 4  ;;  %v4215_v34 = vmul.f32 %v4199_v58, %v4190_v37  ;;  %v4839_v22 = vunpack.c.3.s8 %v4375_v49  ;;  %v4360_v18 = vld [vmem:[#allocation5 + $0x2f0] sm:$0xff] }
 0x397   :  { %5887 = vmatpush.bf16.msra.mxu0 %v5428_v5  ;;  %v4200_v28 = vperm.slane %v8348_v57, 7  ;;  %v5483_v3 = vpack.c.bf16 %v5039_v51, %v5035_v1  ;;  %v5670_v19 = vpack.c.bf16 %v5414_v30, %v5410_v4  ;;  %v5347_v41 = vcvt.s32.f32 %v4835_v35  ;;  %v8383_v1 = vld [vmem:[#allocation5 + $0x3c0] sm:$0xff] }
 0x398   :  { %5900 = vmatpush.bf16.msra.mxu1 %v5460_v39  ;;  %v3981_v12 = vrot.slane %v3980_v10, 2  ;;  %v4051_v52 = vadd.f32 %v4050_v43, %v4007_v33  ;;  %v4240_v44 = vadd.f32 %v4224_v7, %v4215_v34  ;;  %v5351_v40 = vcvt.s32.f32 %v4839_v22  ;;  %v8386_v22 = vld [vmem:[#allocation5 + $0x348] sm:$0xff] }
 0x399   :  { %5811 = vmatpush.bf16.msra.mxu2 %v5483_v3  ;;  %v4404_v53 = vunpack.c.2.s8 %v4268_v32  ;;  %v4408_v31 = vunpack.c.3.s8 %v4268_v32  ;;  %v4468_v17 = vunpack.c.2.s8 %v8366_v23  ;;  %5765 = vmatpush.bf16.msrb.mxu3 %v5670_v19  ;;  %v4472_v2 = vunpack.c.3.s8 %v8366_v23 }
 0x39a   :  { %v3982_v61 = vadd.f32 %v3981_v12, %v3980_v10  ;;  %v4052_v9 = vrot.slane %v4051_v52, 2  ;;  %v4248_v60 = vmul.f32 0.2, %v4240_v44  ;;  %v5639_v5 = vpack.c.bf16 %v5351_v40, %v5347_v41 }
 0x39b   :  { %v4890_v39 = vunpack.c.0.s8 %v4390_v24  ;;  %v4916_v55 = vcvt.s32.f32 %v4404_v53  ;;  %v4920_v33 = vcvt.s32.f32 %v4408_v31  ;;  %v4980_v54 = vcvt.s32.f32 %v4468_v17 }
 0x39c   :  { %v3983_v42 = vrot.slane %v3982_v61, 1  ;;  %v4053_v11 = vadd.f32 %v4052_v9, %v4051_v52  ;;  %v4256_v27 = vmax.f32 %v4240_v44, %v4248_v60  ;;  %v4984_v43 = vcvt.s32.f32 %v4472_v2 }
 0x39d   :  { %v4894_v50 = vunpack.c.1.s8 %v4390_v24  ;;  %v5402_v12 = vcvt.s32.f32 %v4890_v39  ;;  %v4827_v9 = vunpack.c.0.s8 %v4375_v49  ;;  %v4464_v44 = vunpack.c.1.s8 %v8366_v23 }
 0x39e   :  { %v3984_v14 = vadd.f32 %v3983_v42, %v3982_v61  ;;  %v4054_v62 = vrot.slane %v4053_v11, 1  ;;  %v8374_v10 = vpack.c.bf16 %v4256_v27, %v4256_v27  ;;  %v5424_v61 = vpack.c.bf16 %v4920_v33, %v4916_v55 }
 0x39f   :  { %v4831_v42 = vunpack.c.1.s8 %v4375_v49  ;;  %v5406_v34 = vcvt.s32.f32 %v4894_v50  ;;  %v5339_v24 = vcvt.s32.f32 %v4827_v9  ;;  %v4708_v4 = vunpack.c.2.s8 %v4344_v29 }
 0x3a0   :  { %v8359_v45 = vpop.f32.mrf.mxu0  ;;  %v8361_v63 = vpop.f32.mrf.mxu1  ;;  %v8364_v38 = vmul.f32 %v7518_v26, %v3984_v14  ;;  %v4055_v56 = vadd.f32 %v4054_v62, %v4053_v11  ;;  %5760 = vmatmul.bf16.vlgmr.msrb.gmra.mxu2 %v8374_v10  ;;  %v5456_v11 = vpack.c.bf16 %v4984_v43, %v4980_v54  ;;  %v4396_v14 = vunpack.c.0.s8 %v4268_v32  ;;  %5888 = vmatpush.bf16.msra.mxu0 %v5424_v61 }
 0x3a1   :  { %v4400_v62 = vunpack.c.1.s8 %v4268_v32  ;;  %5856 = vmatpush.bf16.msrb.mxu2 %v5639_v5  ;;  %v5343_v7 = vcvt.s32.f32 %v4831_v42  ;;  %v5666_v46 = vpack.c.bf16 %v5406_v34, %v5402_v12  ;;  %v4712_v30 = vunpack.c.3.s8 %v4344_v29 }
 0x3a2   :  { %v4063_v25 = vmul.f32 %v4055_v56, %v7518_v26  ;;  %v4071_v48 = vmul.f32 %v8364_v38, %v8364_v38  ;;  %v4095_v6 = vsub.f32 %v8335_v8, %v8364_v38  ;;  %5901 = vmatpush.bf16.msra.mxu1 %v5456_v11  ;;  %v4908_v49 = vcvt.s32.f32 %v4396_v14 }
 0x3a3   :  { %v4912_v35 = vcvt.s32.f32 %v4400_v62  ;;  %v4460_v56 = vunpack.c.0.s8 %v8366_v23  ;;  %v5635_v51 = vpack.c.bf16 %v5343_v7, %v5339_v24  ;;  %5766 = vmatpush.bf16.msrb.mxu3 %v5666_v46  ;;  %v4776_v3 = vunpack.c.3.s8 %v4360_v18  ;;  %v8405_v7 = vld [vmem:[#allocation5 + $0x250] sm:$0xff] }
 0x3a4   :  { %v4079_v13 = vsub.f32 %v4063_v25, %v4071_v48  ;;  %v4772_v48 = vunpack.c.2.s8 %v4360_v18  ;;  %v4976_v60 = vcvt.s32.f32 %v4464_v44  ;;  %v5220_v19 = vcvt.s32.f32 %v4708_v4 }
 0x3a5   :  { %v5420_v32 = vpack.c.bf16 %v4912_v35, %v4908_v49  ;;  %v4972_v25 = vcvt.s32.f32 %v4460_v56  ;;  %5857 = vmatpush.bf16.msrb.mxu2 %v5635_v51  ;;  %v5224_v41 = vcvt.s32.f32 %v4712_v30  ;;  %v4882_v40 = vunpack.c.2.s8 %v8383_v1  ;;  %v4356_v56 = vld [vmem:[#allocation5 + $0x2d0] sm:$0xff] }
 0x3a6   :  { %v4087_v20 = vmax.f32 %v4079_v13, 0.0  ;;  %v5284_v13 = vcvt.s32.f32 %v4772_v48  ;;  %v5288_v53 = vcvt.s32.f32 %v4776_v3  ;;  %v4886_v23 = vunpack.c.3.s8 %v8383_v1 }
 0x3a7   :  { %5889 = vmatpush.bf16.msra.mxu0 %v5420_v32  ;;  %v4819_v31 = vunpack.c.2.s8 %v8386_v22  ;;  %v5452_v2 = vpack.c.bf16 %v4976_v60, %v4972_v25  ;;  %v5576_v39 = vpack.c.bf16 %v5224_v41, %v5220_v19  ;;  %v4823_v55 = vunpack.c.3.s8 %v8386_v22 }
 0x3a8   :  { %v5685_v52 = vpop.f32.mrf.mxu0  ;;  %v5698_v37 = vpop.f32.mrf.mxu1  ;;  %v8376_v58 = vadd.f32 1e-05, %v4087_v20  ;;  %v5394_v20 = vcvt.s32.f32 %v4882_v40  ;;  %v5608_v54 = vpack.c.bf16 %v5288_v53, %v5284_v13  ;;  %v5398_v43 = vcvt.s32.f32 %v4886_v23  ;;  %v4382_v13 = vld [vmem:[#allocation5 + $0x3a0] sm:$0xff] }
 0x3a9   :  { %5902 = vmatpush.bf16.msra.mxu1 %v5452_v2  ;;  %v5331_v50 = vcvt.s32.f32 %v4819_v31  ;;  %v5335_v12 = vcvt.s32.f32 %v4823_v55  ;;  %v4700_v52 = vunpack.c.0.s8 %v4344_v29  ;;  %v4704_v37 = vunpack.c.1.s8 %v4344_v29  ;;  %v4367_v2 = vld [vmem:[#allocation5 + $0x328] sm:$0xff] }
 0x3aa   :  { %6829 = vrsqrt.f32 %v8376_v58  ;;  %vm4180_vm7 = vweird.f32 %v8376_v58  ;;  %5890 = vmatmul.bf16.vlgmr.msra.gmra.mxu0 %v8182_v36  ;;  %v5662_v9 = vpack.c.bf16 %v5398_v43, %v5394_v20  ;;  %v4764_v42 = vunpack.c.0.s8 %v4360_v18 }
 0x3ab   :  { %5934 = vmatpush.bf16.msrb.mxu0 %v5576_v39  ;;  %v4768_v11 = vunpack.c.1.s8 %v4360_v18  ;;  %v5631_v34 = vpack.c.bf16 %v5335_v12, %v5331_v50  ;;  %v5212_v14 = vcvt.s32.f32 %v4700_v52  ;;  %v5216_v62 = vcvt.s32.f32 %v4704_v37 }
 0x3ac   :  { %v4874_v24 = vunpack.c.0.s8 %v8383_v1  ;;  %5903 = vmatmul.bf16.vlgmr.msra.gmra.mxu1 %v8184_v47  ;;  %5767 = vmatpush.bf16.msrb.mxu3 %v5662_v9  ;;  %v5276_v29 = vcvt.s32.f32 %v4764_v42  ;;  %v4878_v35 = vunpack.c.1.s8 %v8383_v1  ;;  %v4811_v18 = vunpack.c.0.s8 %v8386_v22 }
 0x3ad   :  { %5947 = vmatpush.bf16.msrb.mxu1 %v5608_v54  ;;  %v5280_v49 = vcvt.s32.f32 %v4768_v11  ;;  %5858 = vmatpush.bf16.msrb.mxu2 %v5631_v34  ;;  %v5572_v51 = vpack.c.bf16 %v5216_v62, %v5212_v14  ;;  %v4815_v4 = vunpack.c.1.s8 %v8386_v22  ;;  %v4692_v48 = vunpack.c.2.s8 %v8405_v7 }
 0x3ae   :  { %v5386_v44 = vcvt.s32.f32 %v4874_v24  ;;  %v5390_v25 = vcvt.s32.f32 %v4878_v35  ;;  %v5323_v19 = vcvt.s32.f32 %v4811_v18  ;;  %v4696_v1 = vunpack.c.3.s8 %v8405_v7  ;;  %v4336_v24 = vld [vmem:[#allocation5 + $0x230] sm:$0xff] }
 0x3af   :  { %v5604_v32 = vpack.c.bf16 %v5280_v49, %v5276_v29  ;;  %5935 = vmatpush.bf16.msrb.mxu0 %v5572_v51  ;;  %v5327_v41 = vcvt.s32.f32 %v4815_v4  ;;  %v4756_v40 = vunpack.c.2.s8 %v4356_v56  ;;  %v5204_v31 = vcvt.s32.f32 %v4692_v48  ;;  %v4352_v18 = vld [vmem:[#allocation5 + $0x2b0] sm:$0xff] }
 0x3b0   :  { %v8391_v17 = vpop.f32.mrf.mxu2  ;;  %v8395_v5 = vpop.eup %6829  ;;  %v5658_v23 = vpack.c.bf16 %v5390_v25, %v5386_v44  ;;  %v4760_v22 = vunpack.c.3.s8 %v4356_v56  ;;  %5812 = vmatmul.bf16.vlgmr.msra.gmra.mxu2 %v8207_v21  ;;  %v5208_v20 = vcvt.s32.f32 %v4696_v1  ;;  %v4866_v50 = vunpack.c.2.s8 %v4382_v13  ;;  %v4378_v25 = vld [vmem:[#allocation5 + $0x380] sm:$0xff] }
 0x3b1   :  { %v8393_v27 = vpop.f32.mrf.mxu3  ;;  %v4175_v33 = vmul.f32 %v8395_v5, %v8376_v58  ;;  %vm4181_vm8 = vweird.f32 %v8395_v5  ;;  %5948 = vmatpush.bf16.msrb.mxu1 %v5604_v32  ;;  %v5627_v39 = vpack.c.bf16 %v5327_v41, %v5323_v19  ;;  %v5268_v55 = vcvt.s32.f32 %v4756_v40  ;;  %v4363_v19 = vld [vmem:[#allocation5 + $0x308] sm:$0xff] }
 0x3b2   :  { %vm4182_vm9 = vmor %vm4180_vm7, %vm4181_vm8  ;;  %5768 = vmatpush.bf16.msrb.mxu3 %v5658_v23  ;;  %v5272_v43 = vcvt.s32.f32 %v4760_v22  ;;  %v4870_v12 = vunpack.c.3.s8 %v4382_v13  ;;  %v5568_v58 = vpack.c.bf16 %v5208_v20, %v5204_v31  ;;  %v4803_v37 = vunpack.c.2.s8 %v4367_v2 }
 0x3b3   :  { %v4176_v61 = vmul.f32 %v8395_v5, %v4175_v33  ;;  %v8421_v33 = vadd.f32 %v8361_v63, %v8359_v45  ;;  %5859 = vmatpush.bf16.msrb.mxu2 %v5627_v39  ;;  %v5378_v42 = vcvt.s32.f32 %v4866_v50  ;;  %v4684_v45 = vunpack.c.0.s8 %v8405_v7 }
 0x3b4   :  { %v5600_v9 = vpack.c.bf16 %v5272_v43, %v5268_v55  ;;  %v5382_v11 = vcvt.s32.f32 %v4870_v12  ;;  %5936 = vmatpush.bf16.msrb.mxu0 %v5568_v58  ;;  %v4688_v14 = vunpack.c.1.s8 %v8405_v7  ;;  %v4752_v62 = vunpack.c.1.s8 %v4356_v56 }
 0x3b5   :  { %v4177_v46 = vmul.f32 0.5, %v4176_v61  ;;  %v4807_v61 = vunpack.c.3.s8 %v4367_v2  ;;  %v5196_v38 = vcvt.s32.f32 %v4684_v45  ;;  %v4858_v49 = vunpack.c.0.s8 %v4382_v13 }
 0x3b6   :  { %5949 = vmatpush.bf16.msrb.mxu1 %v5600_v9  ;;  %v5654_v8 = vpack.c.bf16 %v5382_v11, %v5378_v42  ;;  %v5200_v29 = vcvt.s32.f32 %v4688_v14  ;;  %v4862_v35 = vunpack.c.1.s8 %v4382_v13  ;;  %v5264_v57 = vcvt.s32.f32 %v4752_v62 }
 0x3b7   :  { %v4178_v30 = vsub.f32 1.5, %v4177_v46  ;;  %v5319_v34 = vcvt.s32.f32 %v4807_v61  ;;  %v4799_v44 = vunpack.c.1.s8 %v4367_v2  ;;  %v4676_v32 = vunpack.c.2.s8 %v4336_v24 }
 0x3b8   :  { %v5711_v3 = vpop.f32.mrf.mxu2  ;;  %5769 = vmatpush.bf16.msrb.mxu3 %v5654_v8  ;;  %v5564_v4 = vpack.c.bf16 %v5200_v29, %v5196_v38  ;;  %v5374_v7 = vcvt.s32.f32 %v4862_v35  ;;  %v4740_v40 = vunpack.c.2.s8 %v4352_v18  ;;  %v4744_v13 = vunpack.c.3.s8 %v4352_v18 }
 0x3b9   :  { %v5724_v60 = vpop.f32.mrf.mxu3  ;;  %v4179_v53 = vmul.f32 %v8395_v5, %v4178_v30  ;;  %v5370_v30 = vcvt.s32.f32 %v4858_v49  ;;  %v5188_v1 = vcvt.s32.f32 %v4676_v32  ;;  %v4850_v31 = vunpack.c.2.s8 %v4378_v25  ;;  %v4312_v49 = vld [vmem:[#allocation5 + $0x170] sm:$0xff] }
 0x3ba   :  { %v4680_v60 = vunpack.c.3.s8 %v4336_v24  ;;  %5937 = vmatpush.bf16.msrb.mxu0 %v5564_v4  ;;  %v4854_v22 = vunpack.c.3.s8 %v4378_v25  ;;  %v5256_v39 = vcvt.s32.f32 %v4744_v13  ;;  %v4787_v20 = vunpack.c.2.s8 %v4363_v19 }
 0x3bb   :  { %v4183_v54 = vsel %vm4182_vm9, %v8395_v5, %v4179_v53  ;;  %v5315_v5 = vcvt.s32.f32 %v4803_v37  ;;  %v5650_v41 = vpack.c.bf16 %v5374_v7, %v5370_v30  ;;  %v4791_v55 = vunpack.c.3.s8 %v4363_v19 }
 0x3bc   :  { %v4191_v52 = vmul.f32 %v4183_v54, %v4095_v6  ;;  %v4748_v6 = vunpack.c.0.s8 %v4356_v56  ;;  %v5311_v56 = vcvt.s32.f32 %v4799_v44  ;;  %v5192_v23 = vcvt.s32.f32 %v4680_v60  ;;  %v4332_v44 = vld [vmem:[#allocation5 + $0x210] sm:$0xff] }
 0x3bd   :  { %v5623_v46 = vpack.c.bf16 %v5319_v34, %v5315_v5  ;;  %5770 = vmatpush.bf16.msrb.mxu3 %v5650_v41  ;;  %v5362_v43 = vcvt.s32.f32 %v4850_v31  ;;  %v5366_v50 = vcvt.s32.f32 %v4854_v22  ;;  %v4668_v12 = vunpack.c.0.s8 %v4336_v24 }
 0x3be   :  { %v8430_v63 = vmul.f32 %v4200_v28, %v4191_v52  ;;  %v5260_v51 = vcvt.s32.f32 %v4748_v6  ;;  %v4795_v28 = vunpack.c.0.s8 %v4367_v2  ;;  %v5252_v2 = vcvt.s32.f32 %v4740_v40  ;;  %v4327_v6 = vld [vmem:[#allocation5 + $0x1e8] sm:$0xff] }
 0x3bf   :  { %5860 = vmatpush.bf16.msrb.mxu2 %v5623_v46  ;;  %v5560_v54 = vpack.c.bf16 %v5192_v23, %v5188_v1  ;;  %v5299_v58 = vcvt.s32.f32 %v4787_v20  ;;  %v5303_v37 = vcvt.s32.f32 %v4791_v55  ;;  %v4672_v61 = vunpack.c.1.s8 %v4336_v24 }
 0x3c0   :  { %v5596_v48 = vpack.c.bf16 %v5264_v57, %v5260_v51  ;;  %v5307_v3 = vcvt.s32.f32 %v4795_v28  ;;  %v5592_v52 = vpack.c.bf16 %v5256_v39, %v5252_v2  ;;  %v5646_v42 = vpack.c.bf16 %v5366_v50, %v5362_v43 }
 0x3c1   :  { %v8433_v9 = vpop.f32.mrf.mxu0  ;;  %5938 = vmatpush.bf16.msrb.mxu0 %v5560_v54  ;;  %v5180_v11 = vcvt.s32.f32 %v4668_v12  ;;  %v4732_v45 = vunpack.c.0.s8 %v4352_v18  ;;  %v4736_v5 = vunpack.c.1.s8 %v4352_v18  ;;  %v5615_v34 = vpack.c.bf16 %v5303_v37, %v5299_v58 }
 0x3c2   :  { %5950 = vmatpush.bf16.msrb.mxu1 %v5596_v48  ;;  %v5619_v53 = vpack.c.bf16 %v5311_v56, %v5307_v3  ;;  %v5184_v14 = vcvt.s32.f32 %v4672_v61  ;;  %v5710_v8 = vadd.f32 %v8391_v17, %v8421_v33  ;;  %v4842_v38 = vunpack.c.0.s8 %v4378_v25  ;;  %5771 = vmatpush.bf16.msrb.mxu3 %v5646_v42  ;;  %v4281_v42 = vld [vmem:[#allocation5 + $0x78] sm:$0xff] }
 0x3c3   :  { %v5244_v62 = vcvt.s32.f32 %v4732_v45  ;;  %v5248_v46 = vcvt.s32.f32 %v4736_v5  ;;  %v4846_v29 = vunpack.c.1.s8 %v4378_v25  ;;  %v4779_v24 = vunpack.c.0.s8 %v4363_v19  ;;  %v4348_v25 = vld [vmem:[#allocation5 + $0x290] sm:$0xff] }
 0x3c4   :  { %5861 = vmatpush.bf16.msrb.mxu2 %v5619_v53  ;;  %v5556_v35 = vpack.c.bf16 %v5184_v14, %v5180_v11  ;;  %v8438_v51 = vadd.f32 %v8393_v27, %v5710_v8  ;;  %v5354_v57 = vcvt.s32.f32 %v4842_v38  ;;  %v4783_v28 = vunpack.c.1.s8 %v4363_v19  ;;  %v4297_v14 = vld [vmem:[#allocation5 + $0xf8] sm:$0xff] }
 0x3c5   :  { %v5588_v18 = vpack.c.bf16 %v5248_v46, %v5244_v62  ;;  %v5358_v4 = vcvt.s32.f32 %v4846_v29  ;;  %v5291_v30 = vcvt.s32.f32 %v4779_v24  ;;  %v4643_v17 = vunpack.c.2.s8 %v4327_v6  ;;  %v4323_v46 = vld [vmem:[#allocation5 + $0x1c8] sm:$0xff] }
 0x3c6   :  { %5951 = vmatpush.bf16.msrb.mxu1 %v5592_v52  ;;  %5939 = vmatpush.bf16.msrb.mxu0 %v5556_v35  ;;  %v5295_v33 = vcvt.s32.f32 %v4783_v28  ;;  %v4647_v7 = vunpack.c.3.s8 %v4327_v6  ;;  %v4580_v32 = vunpack.c.2.s8 %v4312_v49  ;;  %v4584_v48 = vunpack.c.3.s8 %v4312_v49 }
 0x3c7   :  { %v5642_v3 = vpack.c.bf16 %v5358_v4, %v5354_v57  ;;  %v5155_v56 = vcvt.s32.f32 %v4643_v17  ;;  %v4660_v60 = vunpack.c.2.s8 %v4332_v44  ;;  %v4664_v41 = vunpack.c.3.s8 %v4332_v44 }
 0x3c8   :  { %5862 = vmatpush.bf16.msrb.mxu2 %v5615_v34  ;;  %v5611_v27 = vpack.c.bf16 %v5295_v33, %v5291_v30  ;;  %v5159_v1 = vcvt.s32.f32 %v4647_v7  ;;  %v5092_v40 = vcvt.s32.f32 %v4580_v32  ;;  %v5096_v19 = vcvt.s32.f32 %v4584_v48  ;;  %v4308_v30 = vld [vmem:[#allocation5 + $0x150] sm:$0xff] }
 0x3c9   :  { %v5737_v13 = vpop.f32.mrf.mxu0  ;;  %5772 = vmatpush.bf16.msrb.mxu3 %v5642_v3  ;;  %v5172_v53 = vcvt.s32.f32 %v4660_v60  ;;  %v5176_v23 = vcvt.s32.f32 %v4664_v41  ;;  %v4724_v31 = vunpack.c.2.s8 %v4348_v25  ;;  %v4728_v22 = vunpack.c.3.s8 %v4348_v25 }
 0x3ca   :  { %5952 = vmatpush.bf16.msrb.mxu1 %v5588_v18  ;;  %v5543_v2 = vpack.c.bf16 %v5159_v1, %v5155_v56  ;;  %v5512_v39 = vpack.c.bf16 %v5096_v19, %v5092_v40  ;;  %v4635_v20 = vunpack.c.0.s8 %v4327_v6  ;;  %v4639_v55 = vunpack.c.1.s8 %v4327_v6 }
 0x3cb   :  { %v5552_v54 = vpack.c.bf16 %v5176_v23, %v5172_v53  ;;  %v5236_v43 = vcvt.s32.f32 %v4724_v31  ;;  %v5240_v50 = vcvt.s32.f32 %v4728_v22  ;;  %v4572_v12 = vunpack.c.0.s8 %v4312_v49 }
 0x3cc   :  { %5863 = vmatpush.bf16.msrb.mxu2 %v5611_v27  ;;  %v5147_v52 = vcvt.s32.f32 %v4635_v20  ;;  %v5151_v58 = vcvt.s32.f32 %v4639_v55  ;;  %v4576_v37 = vunpack.c.1.s8 %v4312_v49  ;;  %v4652_v61 = vunpack.c.0.s8 %v4332_v44 }
 0x3cd   :  { %5817 = vmatpush.bf16.msra.mxu3 %v5543_v2  ;;  %5940 = vmatpush.bf16.msrb.mxu0 %v5552_v54  ;;  %v5584_v11 = vpack.c.bf16 %v5240_v50, %v5236_v43  ;;  %v5084_v45 = vcvt.s32.f32 %v4572_v12  ;;  %v4656_v5 = vunpack.c.1.s8 %v4332_v44  ;;  %v4716_v34 = vunpack.c.0.s8 %v4348_v25  ;;  %v4277_v54 = vld [vmem:[#allocation5 + $0x58] sm:$0xff] }
 0x3ce   :  { %v5539_v8 = vpack.c.bf16 %v5151_v58, %v5147_v52  ;;  %v5088_v38 = vcvt.s32.f32 %v4576_v37  ;;  %v5164_v6 = vcvt.s32.f32 %v4652_v61  ;;  %v4720_v62 = vunpack.c.1.s8 %v4348_v25  ;;  %v4293_v58 = vld [vmem:[#allocation5 + $0xd8] sm:$0xff] }
 0x3cf   :  { %5864 = vmatmul.bf16.vlgmr.msrb.gmra.mxu2 %v8374_v10  ;;  %5953 = vmatpush.bf16.msrb.mxu1 %v5584_v11  ;;  %v5168_v29 = vcvt.s32.f32 %v4656_v5  ;;  %v5228_v24 = vcvt.s32.f32 %v4716_v34  ;;  %v4453_v35 = vunpack.c.2.s8 %v4281_v42  ;;  %v4457_v49 = vunpack.c.3.s8 %v4281_v42 }
 0x3d0   :  { %5908 = vmatpush.bf16.msra.mxu2 %v5512_v39  ;;  %v5508_v57 = vpack.c.bf16 %v5088_v38, %v5084_v45  ;;  %v5232_v28 = vcvt.s32.f32 %v4720_v62  ;;  %v4517_v18 = vunpack.c.2.s8 %v4297_v14  ;;  %v4521_v4 = vunpack.c.3.s8 %v4297_v14 }
 0x3d1   :  { %5818 = vmatpush.bf16.msra.mxu3 %v5539_v8  ;;  %v5548_v17 = vpack.c.bf16 %v5168_v29, %v5164_v6  ;;  %v4965_v44 = vcvt.s32.f32 %v4453_v35  ;;  %v4969_v33 = vcvt.s32.f32 %v4457_v49  ;;  %v4627_v7 = vunpack.c.2.s8 %v4323_v46  ;;  %v4319_v8 = vld [vmem:[#allocation5 + $0x1a8] sm:$0xff] }
 0x3d2   :  { %v5580_v32 = vpack.c.bf16 %v5232_v28, %v5228_v24  ;;  %v5029_v48 = vcvt.s32.f32 %v4517_v18  ;;  %v5033_v25 = vcvt.s32.f32 %v4521_v4  ;;  %v4631_v3 = vunpack.c.3.s8 %v4323_v46  ;;  %v4304_v24 = vld [vmem:[#allocation5 + $0x130] sm:$0xff] }
 0x3d3   :  { %5941 = vmatpush.bf16.msrb.mxu0 %v5548_v17  ;;  %v5449_v56 = vpack.c.bf16 %v4969_v33, %v4965_v44  ;;  %v5139_v60 = vcvt.s32.f32 %v4627_v7  ;;  %v4564_v41 = vunpack.c.2.s8 %v4308_v30  ;;  %v4568_v27 = vunpack.c.3.s8 %v4308_v30 }
 0x3d4   :  { %5909 = vmatpush.bf16.msra.mxu2 %v5508_v57  ;;  %5954 = vmatpush.bf16.msrb.mxu1 %v5580_v32  ;;  %v5481_v1 = vpack.c.bf16 %v5033_v25, %v5029_v48  ;;  %v5143_v40 = vcvt.s32.f32 %v4631_v3  ;;  %v4445_v19 = vunpack.c.0.s8 %v4281_v42  ;;  %v4449_v13 = vunpack.c.1.s8 %v4281_v42 }
 0x3d5   :  { %v5076_v53 = vcvt.s32.f32 %v4564_v41  ;;  %v5080_v23 = vcvt.s32.f32 %v4568_v27  ;;  %v4509_v31 = vunpack.c.0.s8 %v4297_v14  ;;  %v4513_v22 = vunpack.c.1.s8 %v4297_v14 }
 0x3d6   :  { %5942 = vmatmul.bf16.vlgmr.msrb.gmra.mxu0 %v8246_v15  ;;  %v5535_v2 = vpack.c.bf16 %v5143_v40, %v5139_v60  ;;  %v4957_v39 = vcvt.s32.f32 %v4445_v19  ;;  %v4961_v20 = vcvt.s32.f32 %v4449_v13  ;;  %v4619_v55 = vunpack.c.0.s8 %v4323_v46  ;;  %v4273_v19 = vld [vmem:[#allocation5 + $0x38] sm:$0xff] }
 0x3d7   :  { %5986 = vmatpush.bf16.msra.mxu0 %v5449_v56  ;;  %5955 = vmatmul.bf16.vlgmr.msrb.gmra.mxu1 %v8282_v16  ;;  %v5504_v43 = vpack.c.bf16 %v5080_v23, %v5076_v53  ;;  %v5021_v50 = vcvt.s32.f32 %v4509_v31  ;;  %v5025_v12 = vcvt.s32.f32 %v4513_v22  ;;  %v4623_v52 = vunpack.c.1.s8 %v4323_v46  ;;  %v4289_v22 = vld [vmem:[#allocation5 + $0xb8] sm:$0xff] }
 0x3d8   :  { %5999 = vmatpush.bf16.msra.mxu1 %v5481_v1  ;;  %5819 = vmatpush.bf16.msra.mxu3 %v5535_v2  ;;  %v5445_v37 = vpack.c.bf16 %v4961_v20, %v4957_v39  ;;  %v5131_v61 = vcvt.s32.f32 %v4619_v55  ;;  %v4556_v42 = vunpack.c.0.s8 %v4308_v30  ;;  %v4560_v11 = vunpack.c.1.s8 %v4308_v30 }
 0x3d9   :  { %5910 = vmatpush.bf16.msra.mxu2 %v5504_v43  ;;  %v5477_v45 = vpack.c.bf16 %v5025_v12, %v5021_v50  ;;  %v5135_v5 = vcvt.s32.f32 %v4623_v52  ;;  %v4437_v34 = vunpack.c.2.s8 %v4277_v54  ;;  %v4441_v14 = vunpack.c.3.s8 %v4277_v54  ;;  %v4315_v52 = vld [vmem:[#allocation5 + $0x188] sm:$0xff] }
 0x3da   :  { %v5068_v38 = vcvt.s32.f32 %v4556_v42  ;;  %v5072_v6 = vcvt.s32.f32 %v4560_v11  ;;  %v4501_v62 = vunpack.c.2.s8 %v4293_v58  ;;  %v4505_v29 = vunpack.c.3.s8 %v4293_v58 }
 0x3db   :  { %5987 = vmatpush.bf16.msra.mxu0 %v5445_v37  ;;  %v5531_v46 = vpack.c.bf16 %v5135_v5, %v5131_v61  ;;  %v4949_v35 = vcvt.s32.f32 %v4437_v34  ;;  %v4953_v49 = vcvt.s32.f32 %v4441_v14  ;;  %v8445_v57 = vadd.f32 %v8433_v9, %v8438_v51  ;;  %v8447_v37 = vpop.f32.mrf.mxu1 }
 0x3dc   :  { %6000 = vmatpush.bf16.msra.mxu1 %v5477_v45  ;;  %v5500_v28 = vpack.c.bf16 %v5072_v6, %v5068_v38  ;;  %v5013_v18 = vcvt.s32.f32 %v4501_v62  ;;  %v5017_v4 = vcvt.s32.f32 %v4505_v29  ;;  %v4611_v30 = vunpack.c.2.s8 %v4319_v8  ;;  %v4300_v45 = vld [vmem:[#allocation5 + $0x110] sm:$0xff] }
 0x3dd   :  { %5820 = vmatpush.bf16.msra.mxu3 %v5531_v46  ;;  %v5441_v17 = vpack.c.bf16 %v4953_v49, %v4949_v35  ;;  %v4615_v44 = vunpack.c.3.s8 %v4319_v8  ;;  %v4548_v33 = vunpack.c.2.s8 %v4304_v24  ;;  %v4552_v7 = vunpack.c.3.s8 %v4304_v24 }
 0x3de   :  { %5911 = vmatpush.bf16.msra.mxu2 %v5500_v28  ;;  %v5473_v32 = vpack.c.bf16 %v5017_v4, %v5013_v18  ;;  %v5123_v48 = vcvt.s32.f32 %v4611_v30  ;;  %v4429_v25 = vunpack.c.0.s8 %v4277_v54  ;;  %v4433_v3 = vunpack.c.1.s8 %v4277_v54 }
 0x3df   :  { %5988 = vmatpush.bf16.msra.mxu0 %v5441_v17  ;;  %v5127_v56 = vcvt.s32.f32 %v4615_v44  ;;  %v5060_v60 = vcvt.s32.f32 %v4548_v33  ;;  %v5064_v41 = vcvt.s32.f32 %v4552_v7  ;;  %v4493_v9 = vunpack.c.0.s8 %v4293_v58 }
 0x3e0   :  { %6001 = vmatpush.bf16.msra.mxu1 %v5473_v32  ;;  %v4941_v51 = vcvt.s32.f32 %v4429_v25  ;;  %v4945_v27 = vcvt.s32.f32 %v4433_v3  ;;  %v4497_v1 = vunpack.c.1.s8 %v4293_v58  ;;  %v4603_v40 = vunpack.c.0.s8 %v4319_v8 }
 0x3e1   :  { %v5527_v13 = vpack.c.bf16 %v5127_v56, %v5123_v48  ;;  %v5496_v53 = vpack.c.bf16 %v5064_v41, %v5060_v60  ;;  %v5005_v23 = vcvt.s32.f32 %v4493_v9  ;;  %v4607_v31 = vunpack.c.1.s8 %v4319_v8  ;;  %v4391_v56 = vld [vmem:[#allocation5 + $0x3e8] sm:$0xff]  ;;  %v8449_v60 = vpop.f32.mrf.mxu0 }
 0x3e2   :  { %v5437_v2 = vpack.c.bf16 %v4945_v27, %v4941_v51  ;;  %v5009_v39 = vcvt.s32.f32 %v4497_v1  ;;  %v5115_v20 = vcvt.s32.f32 %v4603_v40  ;;  %v4540_v55 = vunpack.c.0.s8 %v4304_v24 }
 0x3e3   :  { %5821 = vmatpush.bf16.msra.mxu3 %v5527_v13  ;;  %5912 = vmatpush.bf16.msra.mxu2 %v5496_v53  ;;  %v5119_v54 = vcvt.s32.f32 %v4607_v31  ;;  %v4544_v43 = vunpack.c.1.s8 %v4304_v24  ;;  %v4421_v50 = vunpack.c.2.s8 %v4273_v19  ;;  %v4425_v12 = vunpack.c.3.s8 %v4273_v19  ;;  %v5750_v1 = vpop.f32.mrf.mxu1 }
 0x3e4   :  { %5989 = vmatpush.bf16.msra.mxu0 %v5437_v2  ;;  %v5469_v58 = vpack.c.bf16 %v5009_v39, %v5005_v23  ;;  %v5052_v61 = vcvt.s32.f32 %v4540_v55  ;;  %v4485_v42 = vunpack.c.2.s8 %v4289_v22  ;;  %v4489_v11 = vunpack.c.3.s8 %v4289_v22 }
 0x3e5   :  { %v5523_v5 = vpack.c.bf16 %v5119_v54, %v5115_v20  ;;  %v5056_v34 = vcvt.s32.f32 %v4544_v43  ;;  %v4933_v14 = vcvt.s32.f32 %v4421_v50  ;;  %v4937_v8 = vcvt.s32.f32 %v4425_v12  ;;  %v4269_v20 = vld [vmem:[#allocation5 + $0x18] sm:$0xff] }
 0x3e6   :  { %6002 = vmatpush.bf16.msra.mxu1 %v5469_v58  ;;  %v4997_v38 = vcvt.s32.f32 %v4485_v42  ;;  %v5001_v6 = vcvt.s32.f32 %v4489_v11  ;;  %v4595_v62 = vunpack.c.2.s8 %v4315_v52  ;;  %v4599_v29 = vunpack.c.3.s8 %v4315_v52  ;;  %v4285_v12 = vld [vmem:[#allocation5 + $0x98] sm:$0xff] }
 0x3e7   :  { %5822 = vmatpush.bf16.msra.mxu3 %v5523_v5  ;;  %v5492_v24 = vpack.c.bf16 %v5056_v34, %v5052_v61  ;;  %v5433_v46 = vpack.c.bf16 %v4937_v8, %v4933_v14  ;;  %v4532_v35 = vunpack.c.2.s8 %v4300_v45  ;;  %v4536_v49 = vunpack.c.3.s8 %v4300_v45 }
 0x3e8   :  { %v5465_v28 = vpack.c.bf16 %v5001_v6, %v4997_v38  ;;  %v5107_v18 = vcvt.s32.f32 %v4595_v62  ;;  %v5111_v4 = vcvt.s32.f32 %v4599_v29  ;;  %v4413_v30 = vunpack.c.0.s8 %v4273_v19 }
 0x3e9   :  { %5913 = vmatpush.bf16.msra.mxu2 %v5492_v24  ;;  %5990 = vmatpush.bf16.msra.mxu0 %v5433_v46  ;;  %v5044_v17 = vcvt.s32.f32 %v4532_v35  ;;  %v5048_v44 = vcvt.s32.f32 %v4536_v49  ;;  %v4417_v33 = vunpack.c.1.s8 %v4273_v19  ;;  %v4477_v7 = vunpack.c.0.s8 %v4289_v22  ;;  %v4376_v19 = vld [vmem:[#allocation5 + $0x370] sm:$0xff]  ;;  %v5789_v46 = vpop.f32.mrf.mxu0 }
 0x3ea   :  { %6003 = vmatpush.bf16.msra.mxu1 %v5465_v28  ;;  %v5519_v32 = vpack.c.bf16 %v5111_v4, %v5107_v18  ;;  %v4925_v48 = vcvt.s32.f32 %v4413_v30  ;;  %v4481_v25 = vunpack.c.1.s8 %v4289_v22  ;;  %v4587_v3 = vunpack.c.0.s8 %v4315_v52 }
 0x3eb   :  { %v5488_v41 = vpack.c.bf16 %v5048_v44, %v5044_v17  ;;  %v4929_v9 = vcvt.s32.f32 %v4417_v33  ;;  %v4989_v51 = vcvt.s32.f32 %v4477_v7  ;;  %v4591_v27 = vunpack.c.1.s8 %v4315_v52 }
 0x3ec   :  { %5823 = vmatpush.bf16.msra.mxu3 %v5519_v32  ;;  %v4993_v40 = vcvt.s32.f32 %v4481_v25  ;;  %v5099_v13 = vcvt.s32.f32 %v4587_v3  ;;  %v4524_v53 = vunpack.c.0.s8 %v4300_v45  ;;  %v4528_v23 = vunpack.c.1.s8 %v4300_v45 }
 0x3ed   :  { %5914 = vmatpush.bf16.msra.mxu2 %v5488_v41  ;;  %v5429_v31 = vpack.c.bf16 %v4929_v9, %v4925_v48  ;;  %v5103_v2 = vcvt.s32.f32 %v4591_v27  ;;  %v4225_v22 = vperm.slane %v8356_v59, 7  ;;  %v4899_v39 = vunpack.c.2.s8 %v4391_v56  ;;  %v4345_v48 = vld [vmem:[#allocation5 + $0x278] sm:$0xff] }
 0x3ee   :  { %v5461_v55 = vpack.c.bf16 %v4993_v40, %v4989_v51  ;;  %v5036_v54 = vcvt.s32.f32 %v4524_v53  ;;  %v5040_v43 = vcvt.s32.f32 %v4528_v23  ;;  %v4903_v50 = vunpack.c.3.s8 %v4391_v56  ;;  %v4361_v40 = vld [vmem:[#allocation5 + $0x2f8] sm:$0xff] }
 0x3ef   :  { %5991 = vmatpush.bf16.msra.mxu0 %v5429_v31  ;;  %v5515_v52 = vpack.c.bf16 %v5103_v2, %v5099_v13  ;;  %v4241_v58 = vadd.f32 %v4225_v22, %v8430_v63  ;;  %v5411_v61 = vcvt.s32.f32 %v4899_v39  ;;  %v4836_v42 = vunpack.c.2.s8 %v4376_v19  ;;  %v8457_v13 = vpop.f32.mrf.mxu1  ;;  %v4387_v2 = vld [vmem:[#allocation5 + $0x3c8] sm:$0xff] }
 0x3f0   :  { %6004 = vmatpush.bf16.msra.mxu1 %v5461_v55  ;;  %v5484_v11 = vpack.c.bf16 %v5040_v43, %v5036_v54  ;;  %v5415_v45 = vcvt.s32.f32 %v4903_v50  ;;  %v4840_v5 = vunpack.c.3.s8 %v4376_v19  ;;  %v4405_v34 = vunpack.c.2.s8 %v4269_v20  ;;  %v4372_v43 = vld [vmem:[#allocation5 + $0x350] sm:$0xff] }
 0x3f1   :  { %5824 = vmatpush.bf16.msra.mxu3 %v5515_v52  ;;  %v4249_v59 = vmul.f32 0.2, %v4241_v58  ;;  %v5348_v14 = vcvt.s32.f32 %v4836_v42  ;;  %v4409_v8 = vunpack.c.3.s8 %v4269_v20  ;;  %v4469_v38 = vunpack.c.2.s8 %v4285_v12 }
 0x3f2   :  { %5915 = vmatpush.bf16.msra.mxu2 %v5484_v11  ;;  %v5671_v6 = vpack.c.bf16 %v5415_v45, %v5411_v61  ;;  %v5352_v62 = vcvt.s32.f32 %v4840_v5  ;;  %v4917_v29 = vcvt.s32.f32 %v4405_v34  ;;  %v4473_v24 = vunpack.c.3.s8 %v4285_v12 }
 0x3f3   :  { %v4257_v35 = vmax.f32 %v4241_v58, %v4249_v59  ;;  %v4921_v63 = vcvt.s32.f32 %v4409_v8  ;;  %v4981_v49 = vcvt.s32.f32 %v4469_v38  ;;  %v4891_v28 = vunpack.c.0.s8 %v4391_v56 }
 0x3f4   :  { %v5640_v18 = vpack.c.bf16 %v5352_v62, %v5348_v14  ;;  %v4985_v4 = vcvt.s32.f32 %v4473_v24  ;;  %v4895_v30 = vunpack.c.1.s8 %v4391_v56  ;;  %v4828_v17 = vunpack.c.0.s8 %v4376_v19 }
 0x3f5   :  { %v8453_v44 = vpack.c.bf16 %v4257_v35, %v4257_v35  ;;  %v5425_v33 = vpack.c.bf16 %v4921_v63, %v4917_v29  ;;  %5916 = vmatmul.bf16.vlgmr.msra.gmra.mxu2 %v8207_v21  ;;  %v5403_v7 = vcvt.s32.f32 %v4891_v28  ;;  %v4832_v32 = vunpack.c.1.s8 %v4376_v19 }
 0x3f6   :  { %5960 = vmatpush.bf16.msrb.mxu2 %v5640_v18  ;;  %v5457_v25 = vpack.c.bf16 %v4985_v4, %v4981_v49  ;;  %v5407_v3 = vcvt.s32.f32 %v4895_v30  ;;  %v5340_v41 = vcvt.s32.f32 %v4828_v17  ;;  %v4397_v9 = vunpack.c.0.s8 %v4269_v20 }
 0x3f7   :  { %5773 = vmatmul.bf16.vlgmr.msrb.gmra.mxu3 %v8453_v44  ;;  %5992 = vmatpush.bf16.msra.mxu0 %v5425_v33  ;;  %v5344_v51 = vcvt.s32.f32 %v4832_v32  ;;  %v4401_v27 = vunpack.c.1.s8 %v4269_v20  ;;  %v4461_v56 = vunpack.c.0.s8 %v4285_v12  ;;  %v4465_v1 = vunpack.c.1.s8 %v4285_v12  ;;  %v5802_v18 = vpop.f32.mrf.mxu1 }
 0x3f8   :  { %5869 = vmatpush.bf16.msrb.mxu3 %v5671_v6  ;;  %6005 = vmatpush.bf16.msra.mxu1 %v5457_v25  ;;  %v5667_v53 = vpack.c.bf16 %v5407_v3, %v5403_v7  ;;  %v4909_v23 = vcvt.s32.f32 %v4397_v9  ;;  %v4709_v19 = vunpack.c.2.s8 %v4345_v48  ;;  %v4713_v31 = vunpack.c.3.s8 %v4345_v48  ;;  %v4341_v7 = vld [vmem:[#allocation5 + $0x258] sm:$0xff] }
 0x3f9   :  { %v5636_v22 = vpack.c.bf16 %v5344_v51, %v5340_v41  ;;  %v4913_v39 = vcvt.s32.f32 %v4401_v27  ;;  %v4973_v55 = vcvt.s32.f32 %v4461_v56  ;;  %v4977_v54 = vcvt.s32.f32 %v4465_v1  ;;  %v4357_v25 = vld [vmem:[#allocation5 + $0x2d8] sm:$0xff]  ;;  %v4383_v27 = vld [vmem:[#allocation5 + $0x3a8] sm:$0xff] }
 0x3fa   :  { %v5221_v50 = vcvt.s32.f32 %v4709_v19  ;;  %v5225_v52 = vcvt.s32.f32 %v4713_v31  ;;  %v4773_v20 = vunpack.c.2.s8 %v4361_v40  ;;  %v4777_v58 = vunpack.c.3.s8 %v4361_v40  ;;  %v4353_v18 = vld [vmem:[#allocation5 + $0x2b8] sm:$0xff] }
 0x3fb   :  { %5961 = vmatpush.bf16.msrb.mxu2 %v5636_v22  ;;  %v5421_v12 = vpack.c.bf16 %v4913_v39, %v4909_v23  ;;  %v5453_v61 = vpack.c.bf16 %v4977_v54, %v4973_v55  ;;  %v4883_v42 = vunpack.c.2.s8 %v4387_v2  ;;  %v4887_v11 = vunpack.c.3.s8 %v4387_v2 }
 0x3fc   :  { %5870 = vmatpush.bf16.msrb.mxu3 %v5667_v53  ;;  %v5577_v45 = vpack.c.bf16 %v5225_v52, %v5221_v50  ;;  %v5285_v5 = vcvt.s32.f32 %v4773_v20  ;;  %v5289_v34 = vcvt.s32.f32 %v4777_v58  ;;  %v4820_v59 = vunpack.c.2.s8 %v4372_v43  ;;  %v4368_v53 = vld [vmem:[#allocation5 + $0x330] sm:$0xff] }
 0x3fd   :  { %5993 = vmatpush.bf16.msra.mxu0 %v5421_v12  ;;  %6006 = vmatpush.bf16.msra.mxu1 %v5453_v61  ;;  %v5395_v14 = vcvt.s32.f32 %v4883_v42  ;;  %v5399_v8 = vcvt.s32.f32 %v4887_v11  ;;  %v4824_v38 = vunpack.c.3.s8 %v4372_v43  ;;  %v8461_v6 = vadd.f32 %v8447_v37, %v8445_v57 }
 0x3fe   :  { %v5609_v62 = vpack.c.bf16 %v5289_v34, %v5285_v5  ;;  %v5332_v29 = vcvt.s32.f32 %v4820_v59  ;;  %v4701_v24 = vunpack.c.0.s8 %v4345_v48  ;;  %v4705_v46 = vunpack.c.1.s8 %v4345_v48 }
 0x3ff   :  { %v5663_v35 = vpack.c.bf16 %v5399_v8, %v5395_v14  ;;  %v5336_v63 = vcvt.s32.f32 %v4824_v38  ;;  %v4765_v49 = vunpack.c.0.s8 %v4361_v40  ;;  %v4769_v28 = vunpack.c.1.s8 %v4361_v40 }
 0x400   :  { %5994 = vmatmul.bf16.vlgmr.msra.gmra.mxu0 %v8182_v36  ;;  %v5213_v4 = vcvt.s32.f32 %v4701_v24  ;;  %v5217_v30 = vcvt.s32.f32 %v4705_v46  ;;  %v4875_v17 = vunpack.c.0.s8 %v4387_v2  ;;  %v4879_v33 = vunpack.c.1.s8 %v4387_v2  ;;  %6007 = vmatmul.bf16.vlgmr.msra.gmra.mxu1 %v8184_v47  ;;  %v4337_v46 = vld [vmem:[#allocation5 + $0x238] sm:$0xff] }
 0x401   :  { %6038 = vmatpush.bf16.msrb.mxu0 %v5577_v45  ;;  %6051 = vmatpush.bf16.msrb.mxu1 %v5609_v62  ;;  %v5632_v57 = vpack.c.bf16 %v5336_v63, %v5332_v29  ;;  %v5277_v37 = vcvt.s32.f32 %v4765_v49  ;;  %v5281_v32 = vcvt.s32.f32 %v4769_v28  ;;  %v4812_v48 = vunpack.c.0.s8 %v4372_v43 }
 0x402   :  { %5871 = vmatpush.bf16.msrb.mxu3 %v5663_v35  ;;  %v5573_v3 = vpack.c.bf16 %v5217_v30, %v5213_v4  ;;  %v5387_v41 = vcvt.s32.f32 %v4875_v17  ;;  %v5391_v9 = vcvt.s32.f32 %v4879_v33  ;;  %v4816_v51 = vunpack.c.1.s8 %v4372_v43 }
 0x403   :  { %5962 = vmatpush.bf16.msrb.mxu2 %v5632_v57  ;;  %v5605_v36 = vpack.c.bf16 %v5281_v32, %v5277_v37  ;;  %v5324_v56 = vcvt.s32.f32 %v4812_v48  ;;  %v4693_v1 = vunpack.c.2.s8 %v4341_v7  ;;  %v4697_v40 = vunpack.c.3.s8 %v4341_v7  ;;  %v8466_v57 = vpop.f32.mrf.mxu0  ;;  %v8468_v37 = vpop.f32.mrf.mxu1 }
 0x404   :  { %v5659_v23 = vpack.c.bf16 %v5391_v9, %v5387_v41  ;;  %v5328_v47 = vcvt.s32.f32 %v4816_v51  ;;  %v4757_v19 = vunpack.c.2.s8 %v4357_v25  ;;  %v4761_v31 = vunpack.c.3.s8 %v4357_v25  ;;  %v4364_v41 = vld [vmem:[#allocation5 + $0x310] sm:$0xff] }
 0x405   :  { %6039 = vmatpush.bf16.msrb.mxu0 %v5573_v3  ;;  %6052 = vmatpush.bf16.msrb.mxu1 %v5605_v36  ;;  %v5205_v2 = vcvt.s32.f32 %v4693_v1  ;;  %v5209_v22 = vcvt.s32.f32 %v4697_v40  ;;  %v4867_v39 = vunpack.c.2.s8 %v4383_v27  ;;  %v4871_v55 = vunpack.c.3.s8 %v4383_v27 }
 0x406   :  { %5872 = vmatpush.bf16.msrb.mxu3 %v5659_v23  ;;  %v5628_v54 = vpack.c.bf16 %v5328_v47, %v5324_v56  ;;  %v5269_v43 = vcvt.s32.f32 %v4757_v19  ;;  %v5273_v50 = vcvt.s32.f32 %v4761_v31  ;;  %v4804_v52 = vunpack.c.2.s8 %v4368_v53 }
 0x407   :  { %v5569_v20 = vpack.c.bf16 %v5209_v22, %v5205_v2  ;;  %5825 = vmatmul.bf16.vlgmr.msra.gmra.mxu3 %v8216_v0  ;;  %v5379_v58 = vcvt.s32.f32 %v4867_v39  ;;  %v5383_v12 = vcvt.s32.f32 %v4871_v55  ;;  %v4808_v61 = vunpack.c.3.s8 %v4368_v53 }
 0x408   :  { %5963 = vmatpush.bf16.msrb.mxu2 %v5628_v54  ;;  %v5601_v42 = vpack.c.bf16 %v5273_v50, %v5269_v43  ;;  %v5316_v11 = vcvt.s32.f32 %v4804_v52  ;;  %v4685_v45 = vunpack.c.0.s8 %v4341_v7  ;;  %v4689_v5 = vunpack.c.1.s8 %v4341_v7  ;;  %v4379_v7 = vld [vmem:[#allocation5 + $0x388] sm:$0xff] }
 0x409   :  { %6040 = vmatpush.bf16.msrb.mxu0 %v5569_v20  ;;  %v5655_v34 = vpack.c.bf16 %v5383_v12, %v5379_v58  ;;  %v5320_v59 = vcvt.s32.f32 %v4808_v61  ;;  %v4749_v14 = vunpack.c.0.s8 %v4357_v25  ;;  %v4753_v8 = vunpack.c.1.s8 %v4357_v25 }
 0x40a   :  { %6053 = vmatpush.bf16.msrb.mxu1 %v5601_v42  ;;  %v5197_v38 = vcvt.s32.f32 %v4685_v45  ;;  %v5201_v62 = vcvt.s32.f32 %v4689_v5  ;;  %v4859_v29 = vunpack.c.0.s8 %v4383_v27  ;;  %v4863_v24 = vunpack.c.1.s8 %v4383_v27 }
 0x40b   :  { %5873 = vmatpush.bf16.msrb.mxu3 %v5655_v34  ;;  %v5624_v35 = vpack.c.bf16 %v5320_v59, %v5316_v11  ;;  %v5261_v63 = vcvt.s32.f32 %v4749_v14  ;;  %v5265_v49 = vcvt.s32.f32 %v4753_v8  ;;  %v4796_v28 = vunpack.c.0.s8 %v4368_v53  ;;  %v4328_v34 = vld [vmem:[#allocation5 + $0x1f0] sm:$0xff]  ;;  %v5841_v59 = vpop.f32.mrf.mxu0  ;;  %v5854_v14 = vpop.f32.mrf.mxu1 }
 0x40c   :  { %v5565_v4 = vpack.c.bf16 %v5201_v62, %v5197_v38  ;;  %v5371_v30 = vcvt.s32.f32 %v4859_v29  ;;  %v5375_v17 = vcvt.s32.f32 %v4863_v24  ;;  %v4800_v33 = vunpack.c.1.s8 %v4368_v53 }
 0x40d   :  { %5964 = vmatpush.bf16.msrb.mxu2 %v5624_v35  ;;  %v5597_v32 = vpack.c.bf16 %v5265_v49, %v5261_v63  ;;  %v5308_v48 = vcvt.s32.f32 %v4796_v28  ;;  %v4677_v25 = vunpack.c.2.s8 %v4337_v46  ;;  %v4681_v3 = vunpack.c.3.s8 %v4337_v46 }
 0x40e   :  { %6041 = vmatpush.bf16.msrb.mxu0 %v5565_v4  ;;  %v5651_v9 = vpack.c.bf16 %v5375_v17, %v5371_v30  ;;  %v5312_v51 = vcvt.s32.f32 %v4800_v33  ;;  %v4741_v27 = vunpack.c.2.s8 %v4353_v18  ;;  %v4745_v36 = vunpack.c.3.s8 %v4353_v18  ;;  %v4349_v30 = vld [vmem:[#allocation5 + $0x298] sm:$0xff] }
 0x40f   :  { %6054 = vmatpush.bf16.msrb.mxu1 %v5597_v32  ;;  %v5189_v56 = vcvt.s32.f32 %v4677_v25  ;;  %v5193_v1 = vcvt.s32.f32 %v4681_v3  ;;  %v4851_v40 = vunpack.c.2.s8 %v4379_v7  ;;  %v4855_v53 = vunpack.c.3.s8 %v4379_v7 }
 0x410   :  { %5874 = vmatpush.bf16.msrb.mxu3 %v5651_v9  ;;  %v5620_v23 = vpack.c.bf16 %v5312_v51, %v5308_v48  ;;  %v5253_v47 = vcvt.s32.f32 %v4741_v27  ;;  %v5257_v19 = vcvt.s32.f32 %v4745_v36  ;;  %v4788_v31 = vunpack.c.2.s8 %v4364_v41 }
 0x411   :  { %v5561_v2 = vpack.c.bf16 %v5193_v1, %v5189_v56  ;;  %v5363_v22 = vcvt.s32.f32 %v4851_v40  ;;  %v5367_v39 = vcvt.s32.f32 %v4855_v53  ;;  %v4792_v55 = vunpack.c.3.s8 %v4364_v41 }
 0x412   :  { %5965 = vmatpush.bf16.msrb.mxu2 %v5620_v23  ;;  %v5593_v54 = vpack.c.bf16 %v5257_v19, %v5253_v47  ;;  %v5300_v43 = vcvt.s32.f32 %v4788_v31  ;;  %v8472_v50 = vadd.f32 %v8457_v13, %v8449_v60  ;;  %v4669_v52 = vunpack.c.0.s8 %v4337_v46  ;;  %v4313_v13 = vld [vmem:[#allocation5 + $0x178] sm:$0xff] }
 0x413   :  { %6042 = vmatpush.bf16.msrb.mxu0 %v5561_v2  ;;  %v5647_v20 = vpack.c.bf16 %v5367_v39, %v5363_v22  ;;  %v5304_v58 = vcvt.s32.f32 %v4792_v55  ;;  %v4673_v12 = vunpack.c.1.s8 %v4337_v46  ;;  %v4733_v61 = vunpack.c.0.s8 %v4353_v18  ;;  %v4333_v46 = vld [vmem:[#allocation5 + $0x218] sm:$0xff] }
 0x414   :  { %6055 = vmatpush.bf16.msrb.mxu1 %v5593_v54  ;;  %v5181_v42 = vcvt.s32.f32 %v4669_v52  ;;  %v4737_v11 = vunpack.c.1.s8 %v4353_v18  ;;  %v4843_v45 = vunpack.c.0.s8 %v4379_v7  ;;  %v4847_v5 = vunpack.c.1.s8 %v4379_v7 }
 0x415   :  { %5875 = vmatpush.bf16.msrb.mxu3 %v5647_v20  ;;  %v5616_v8 = vpack.c.bf16 %v5304_v58, %v5300_v43  ;;  %v5185_v38 = vcvt.s32.f32 %v4673_v12  ;;  %v5245_v62 = vcvt.s32.f32 %v4733_v61  ;;  %v4780_v60 = vunpack.c.0.s8 %v4364_v41  ;;  %v4324_v58 = vld [vmem:[#allocation5 + $0x1d0] sm:$0xff] }
 0x416   :  { %v5249_v29 = vcvt.s32.f32 %v4737_v11  ;;  %v5355_v24 = vcvt.s32.f32 %v4843_v45  ;;  %v5359_v35 = vcvt.s32.f32 %v4847_v5  ;;  %v4784_v63 = vunpack.c.1.s8 %v4364_v41  ;;  %v4309_v45 = vld [vmem:[#allocation5 + $0x158] sm:$0xff] }
 0x417   :  { %5966 = vmatpush.bf16.msrb.mxu2 %v5616_v8  ;;  %v5557_v49 = vpack.c.bf16 %v5185_v38, %v5181_v42  ;;  %v5292_v28 = vcvt.s32.f32 %v4780_v60  ;;  %v4644_v18 = vunpack.c.2.s8 %v4328_v34  ;;  %v4648_v4 = vunpack.c.3.s8 %v4328_v34 }
 0x418   :  { %v5589_v17 = vpack.c.bf16 %v5249_v29, %v5245_v62  ;;  %v5643_v33 = vpack.c.bf16 %v5359_v35, %v5355_v24  ;;  %v5296_v7 = vcvt.s32.f32 %v4784_v63  ;;  %v4581_v32 = vunpack.c.2.s8 %v4313_v13 }
 0x419   :  { %6043 = vmatpush.bf16.msrb.mxu0 %v5557_v49  ;;  %v5156_v48 = vcvt.s32.f32 %v4644_v18  ;;  %v5160_v25 = vcvt.s32.f32 %v4648_v4  ;;  %v4585_v3 = vunpack.c.3.s8 %v4313_v13  ;;  %v4661_v9 = vunpack.c.2.s8 %v4333_v46  ;;  %v4320_v18 = vld [vmem:[#allocation5 + $0x1b0] sm:$0xff] }
 0x41a   :  { %6056 = vmatpush.bf16.msrb.mxu1 %v5589_v17  ;;  %5876 = vmatpush.bf16.msrb.mxu3 %v5643_v33  ;;  %v5612_v51 = vpack.c.bf16 %v5296_v7, %v5292_v28  ;;  %v5093_v41 = vcvt.s32.f32 %v4581_v32  ;;  %v4665_v27 = vunpack.c.3.s8 %v4333_v46  ;;  %v4725_v36 = vunpack.c.2.s8 %v4349_v30  ;;  %v4305_v7 = vld [vmem:[#allocation5 + $0x138] sm:$0xff] }
 0x41b   :  { %v5544_v56 = vpack.c.bf16 %v5160_v25, %v5156_v48  ;;  %v5097_v1 = vcvt.s32.f32 %v4585_v3  ;;  %v5173_v40 = vcvt.s32.f32 %v4661_v9  ;;  %v4729_v53 = vunpack.c.3.s8 %v4349_v30 }
 0x41c   :  { %5967 = vmatpush.bf16.msrb.mxu2 %v5612_v51  ;;  %v5177_v23 = vcvt.s32.f32 %v4665_v27  ;;  %v5237_v47 = vcvt.s32.f32 %v4725_v36  ;;  %v4636_v19 = vunpack.c.0.s8 %v4328_v34  ;;  %v4640_v31 = vunpack.c.1.s8 %v4328_v34 }
 0x41d   :  { %v5513_v2 = vpack.c.bf16 %v5097_v1, %v5093_v41  ;;  %v5241_v22 = vcvt.s32.f32 %v4729_v53  ;;  %v4573_v39 = vunpack.c.0.s8 %v4313_v13  ;;  %v4577_v55 = vunpack.c.1.s8 %v4313_v13  ;;  %5877 = vmatmul.bf16.vlgmr.msrb.gmra.mxu3 %v8453_v44 }
 0x41e   :  { %5921 = vmatpush.bf16.msra.mxu3 %v5544_v56  ;;  %v5553_v54 = vpack.c.bf16 %v5177_v23, %v5173_v40  ;;  %v5148_v43 = vcvt.s32.f32 %v4636_v19  ;;  %v5152_v52 = vcvt.s32.f32 %v4640_v31  ;;  %v4653_v20 = vunpack.c.0.s8 %v4333_v46  ;;  %v4316_v31 = vld [vmem:[#allocation5 + $0x190] sm:$0xff] }
 0x41f   :  { %v5585_v12 = vpack.c.bf16 %v5241_v22, %v5237_v47  ;;  %v5085_v61 = vcvt.s32.f32 %v4573_v39  ;;  %v5089_v42 = vcvt.s32.f32 %v4577_v55  ;;  %v4657_v11 = vunpack.c.1.s8 %v4333_v46  ;;  %5968 = vmatmul.bf16.vlgmr.msrb.gmra.mxu2 %v8374_v10 }
 0x420   :  { %6012 = vmatpush.bf16.msra.mxu2 %v5513_v2  ;;  %6044 = vmatpush.bf16.msrb.mxu0 %v5553_v54  ;;  %v5540_v5 = vpack.c.bf16 %v5152_v52, %v5148_v43  ;;  %v5165_v34 = vcvt.s32.f32 %v4653_v20  ;;  %v4717_v59 = vunpack.c.0.s8 %v4349_v30  ;;  %v4721_v14 = vunpack.c.1.s8 %v4349_v30  ;;  %v4301_v54 = vld [vmem:[#allocation5 + $0x118] sm:$0xff] }
 0x421   :  { %6057 = vmatpush.bf16.msrb.mxu1 %v5585_v12  ;;  %v5509_v8 = vpack.c.bf16 %v5089_v42, %v5085_v61  ;;  %v5169_v38 = vcvt.s32.f32 %v4657_v11  ;;  %v4628_v62 = vunpack.c.2.s8 %v4324_v58  ;;  %v4632_v60 = vunpack.c.3.s8 %v4324_v58 }
 0x422   :  { %5922 = vmatpush.bf16.msra.mxu3 %v5540_v5  ;;  %v5229_v13 = vcvt.s32.f32 %v4717_v59  ;;  %v5233_v29 = vcvt.s32.f32 %v4721_v14  ;;  %v4565_v24 = vunpack.c.2.s8 %v4309_v45  ;;  %v4569_v35 = vunpack.c.3.s8 %v4309_v45 }
 0x423   :  { %v5549_v63 = vpack.c.bf16 %v5169_v38, %v5165_v34  ;;  %v5140_v46 = vcvt.s32.f32 %v4628_v62  ;;  %v5144_v49 = vcvt.s32.f32 %v4632_v60  ;;  %v4620_v28 = vunpack.c.0.s8 %v4324_v58  ;;  %v8478_v43 = vpop.f32.mrf.mxu2  ;;  %v4392_v62 = vld [vmem:[#allocation5 + $0x3f0] sm:$0xff] }
 0x424   :  { %6013 = vmatpush.bf16.msra.mxu2 %v5509_v8  ;;  %v5581_v4 = vpack.c.bf16 %v5233_v29, %v5229_v13  ;;  %v5077_v17 = vcvt.s32.f32 %v4565_v24  ;;  %v5081_v33 = vcvt.s32.f32 %v4569_v35  ;;  %v4624_v30 = vunpack.c.1.s8 %v4324_v58  ;;  %v4377_v35 = vld [vmem:[#allocation5 + $0x378] sm:$0xff] }
 0x425   :  { %6045 = vmatpush.bf16.msrb.mxu0 %v5549_v63  ;;  %v5536_v32 = vpack.c.bf16 %v5144_v49, %v5140_v46  ;;  %v5132_v48 = vcvt.s32.f32 %v4620_v28  ;;  %v4557_v25 = vunpack.c.0.s8 %v4309_v45  ;;  %v4561_v3 = vunpack.c.1.s8 %v4309_v45 }
 0x426   :  { %6058 = vmatpush.bf16.msrb.mxu1 %v5581_v4  ;;  %v5505_v9 = vpack.c.bf16 %v5081_v33, %v5077_v17  ;;  %v5136_v51 = vcvt.s32.f32 %v4624_v30  ;;  %v4612_v41 = vunpack.c.2.s8 %v4320_v18  ;;  %v4616_v27 = vunpack.c.3.s8 %v4320_v18 }
 0x427   :  { %5923 = vmatpush.bf16.msra.mxu3 %v5536_v32  ;;  %v5069_v36 = vcvt.s32.f32 %v4557_v25  ;;  %v5073_v56 = vcvt.s32.f32 %v4561_v3  ;;  %v4549_v1 = vunpack.c.2.s8 %v4305_v7  ;;  %v4553_v40 = vunpack.c.3.s8 %v4305_v7  ;;  %v8480_v52 = vpop.f32.mrf.mxu0 }
 0x428   :  { %6046 = vmatmul.bf16.vlgmr.msrb.gmra.mxu0 %v8246_v15  ;;  %6014 = vmatpush.bf16.msra.mxu2 %v5505_v9  ;;  %v5532_v53 = vpack.c.bf16 %v5136_v51, %v5132_v48  ;;  %v5124_v23 = vcvt.s32.f32 %v4612_v41  ;;  %v5128_v47 = vcvt.s32.f32 %v4616_v27  ;;  %v4604_v19 = vunpack.c.0.s8 %v4320_v18 }
 0x429   :  { %6059 = vmatmul.bf16.vlgmr.msrb.gmra.mxu1 %v8282_v16  ;;  %v5501_v2 = vpack.c.bf16 %v5073_v56, %v5069_v36  ;;  %v5061_v22 = vcvt.s32.f32 %v4549_v1  ;;  %v5065_v39 = vcvt.s32.f32 %v4553_v40  ;;  %v4608_v55 = vunpack.c.1.s8 %v4320_v18  ;;  %v8482_v61 = vpop.f32.mrf.mxu1 }
 0x42a   :  { %v5528_v20 = vpack.c.bf16 %v5128_v47, %v5124_v23  ;;  %v5116_v58 = vcvt.s32.f32 %v4604_v19  ;;  %v4541_v15 = vunpack.c.0.s8 %v4305_v7  ;;  %v4545_v12 = vunpack.c.1.s8 %v4305_v7  ;;  %v4388_v23 = vld [vmem:[#allocation5 + $0x3d0] sm:$0xff] }
 0x42b   :  { %5924 = vmatpush.bf16.msra.mxu3 %v5532_v53  ;;  %v5497_v42 = vpack.c.bf16 %v5065_v39, %v5061_v22  ;;  %v5120_v11 = vcvt.s32.f32 %v4608_v55  ;;  %v4596_v45 = vunpack.c.2.s8 %v4316_v31  ;;  %v4600_v16 = vunpack.c.3.s8 %v4316_v31  ;;  %v5763_v30 = vpop.f32.mrf.mxu2 }
 0x42c   :  { %6015 = vmatpush.bf16.msra.mxu2 %v5501_v2  ;;  %v5053_v5 = vcvt.s32.f32 %v4541_v15  ;;  %v5057_v34 = vcvt.s32.f32 %v4545_v12  ;;  %v4533_v59 = vunpack.c.2.s8 %v4301_v54  ;;  %v4537_v14 = vunpack.c.3.s8 %v4301_v54 }
 0x42d   :  { %v5108_v8 = vcvt.s32.f32 %v4596_v45  ;;  %v5112_v38 = vcvt.s32.f32 %v4600_v16  ;;  %v4588_v29 = vunpack.c.0.s8 %v4316_v31  ;;  %v4592_v24 = vunpack.c.1.s8 %v4316_v31  ;;  %v4373_v31 = vld [vmem:[#allocation5 + $0x358] sm:$0xff] }
 0x42e   :  { %v5045_v60 = vcvt.s32.f32 %v4533_v59  ;;  %v5049_v13 = vcvt.s32.f32 %v4537_v14  ;;  %v5524_v63 = vpack.c.bf16 %v5120_v11, %v5116_v58  ;;  %v4525_v46 = vunpack.c.0.s8 %v4301_v54 }
 0x42f   :  { %5925 = vmatpush.bf16.msra.mxu3 %v5528_v20  ;;  %v4529_v49 = vunpack.c.1.s8 %v4301_v54  ;;  %v5493_v28 = vpack.c.bf16 %v5057_v34, %v5053_v5  ;;  %v4900_v18 = vunpack.c.2.s8 %v4392_v62  ;;  %v4904_v4 = vunpack.c.3.s8 %v4392_v62  ;;  %v5893_v7 = vpop.f32.mrf.mxu0 }
 0x430   :  { %6016 = vmatpush.bf16.msra.mxu2 %v5497_v42  ;;  %v4837_v17 = vunpack.c.2.s8 %v4377_v35  ;;  %v4841_v33 = vunpack.c.3.s8 %v4377_v35  ;;  %v5520_v32 = vpack.c.bf16 %v5112_v38, %v5108_v8  ;;  %v5489_v48 = vpack.c.bf16 %v5049_v13, %v5045_v60 }
 0x431   :  { %v5100_v25 = vcvt.s32.f32 %v4588_v29  ;;  %v5104_v3 = vcvt.s32.f32 %v4592_v24  ;;  %v5906_v9 = vpop.f32.mrf.mxu1  ;;  %v5037_v51 = vcvt.s32.f32 %v4525_v46  ;;  %v5041_v41 = vcvt.s32.f32 %v4529_v49 }
 0x432   :  { %v5412_v27 = vcvt.s32.f32 %v4900_v18  ;;  %v5416_v36 = vcvt.s32.f32 %v4904_v4  ;;  %v5349_v56 = vcvt.s32.f32 %v4837_v17  ;;  %v5353_v1 = vcvt.s32.f32 %v4841_v33  ;;  %v4380_v9 = vld [vmem:[#allocation5 + $0x390] sm:$0xff] }
 0x433   :  { %5926 = vmatpush.bf16.msra.mxu3 %v5524_v63  ;;  %v4892_v40 = vunpack.c.0.s8 %v4392_v62  ;;  %v4896_v53 = vunpack.c.1.s8 %v4392_v62  ;;  %v4829_v47 = vunpack.c.0.s8 %v4377_v35  ;;  %v4833_v19 = vunpack.c.1.s8 %v4377_v35  ;;  %v5813_v16 = vpop.f32.mrf.mxu2 }
 0x434   :  { %6017 = vmatpush.bf16.msra.mxu2 %v5493_v28  ;;  %v5516_v2 = vpack.c.bf16 %v5104_v3, %v5100_v25  ;;  %v5485_v22 = vpack.c.bf16 %v5041_v41, %v5037_v51  ;;  %v4884_v39 = vunpack.c.2.s8 %v4388_v23  ;;  %v4888_v55 = vunpack.c.3.s8 %v4388_v23  ;;  %v4365_v51 = vld [vmem:[#allocation5 + $0x318] sm:$0xff] }
 0x435   :  { %v5672_v54 = vpack.c.bf16 %v5416_v36, %v5412_v27  ;;  %v5641_v20 = vpack.c.bf16 %v5353_v1, %v5349_v56  ;;  %v5404_v58 = vcvt.s32.f32 %v4892_v40  ;;  %v5408_v15 = vcvt.s32.f32 %v4896_v53 }
 0x436   :  { %v5341_v12 = vcvt.s32.f32 %v4829_v47  ;;  %v5345_v42 = vcvt.s32.f32 %v4833_v19  ;;  %v4821_v11 = vunpack.c.2.s8 %v4373_v31  ;;  %v4825_v45 = vunpack.c.3.s8 %v4373_v31 }
 0x437   :  { %5927 = vmatpush.bf16.msra.mxu3 %v5520_v32  ;;  %v8486_v5 = vadd.f32 %v8478_v43, %v8461_v6  ;;  %v8490_v34 = vadd.f32 %v8482_v61, %v8480_v52  ;;  %v5396_v59 = vcvt.s32.f32 %v4884_v39  ;;  %v5400_v14 = vcvt.s32.f32 %v4888_v55  ;;  %v4384_v6 = vld [vmem:[#allocation5 + $0x3b0] sm:$0xff]  ;;  %v4369_v43 = vld [vmem:[#allocation5 + $0x338] sm:$0xff] }
 0x438   :  { %6018 = vmatpush.bf16.msra.mxu2 %v5489_v48  ;;  %v4876_v8 = vunpack.c.0.s8 %v4388_v23  ;;  %v4880_v38 = vunpack.c.1.s8 %v4388_v23  ;;  %v5668_v62 = vpack.c.bf16 %v5408_v15, %v5404_v58  ;;  %v4813_v60 = vunpack.c.0.s8 %v4373_v31 }
 0x439   :  { %v4817_v13 = vunpack.c.1.s8 %v4373_v31  ;;  %v5637_v29 = vpack.c.bf16 %v5345_v42, %v5341_v12  ;;  %v5333_v24 = vcvt.s32.f32 %v4821_v11  ;;  %v5337_v35 = vcvt.s32.f32 %v4825_v45 }
 0x43a   :  { %v5664_v52 = vpack.c.bf16 %v5400_v14, %v5396_v59  ;;  %v5388_v61 = vcvt.s32.f32 %v4876_v8  ;;  %v5392_v63 = vcvt.s32.f32 %v4880_v38  ;;  %v5325_v46 = vcvt.s32.f32 %v4813_v60 }
 0x43b   :  { %5928 = vmatpush.bf16.msra.mxu3 %v5516_v2  ;;  %v5329_v49 = vcvt.s32.f32 %v4817_v13  ;;  %v4868_v28 = vunpack.c.2.s8 %v4384_v6  ;;  %v4872_v18 = vunpack.c.3.s8 %v4384_v6  ;;  %v5633_v4 = vpack.c.bf16 %v5337_v35, %v5333_v24  ;;  %v5815_v30 = vpop.f32.mrf.mxu2 }
 0x43c   :  { %6019 = vmatpush.bf16.msra.mxu2 %v5485_v22  ;;  %v4805_v17 = vunpack.c.2.s8 %v4369_v43  ;;  %v4809_v33 = vunpack.c.3.s8 %v4369_v43  ;;  %v4860_v7 = vunpack.c.0.s8 %v4384_v6  ;;  %v4864_v32 = vunpack.c.1.s8 %v4384_v6 }
 0x43d   :  { %v5660_v48 = vpack.c.bf16 %v5392_v63, %v5388_v61  ;;  %v5629_v25 = vpack.c.bf16 %v5329_v49, %v5325_v46  ;;  %v5380_v3 = vcvt.s32.f32 %v4868_v28  ;;  %v4797_v36 = vunpack.c.0.s8 %v4369_v43  ;;  %v4325_v63 = vld [vmem:[#allocation5 + $0x1d8] sm:$0xff] }
 0x43e   :  { %5929 = vmatmul.bf16.vlgmr.msra.gmra.mxu3 %v8216_v0  ;;  %v5317_v41 = vcvt.s32.f32 %v4805_v17  ;;  %v5321_v27 = vcvt.s32.f32 %v4809_v33  ;;  %v4801_v56 = vunpack.c.1.s8 %v4369_v43  ;;  %v5372_v1 = vcvt.s32.f32 %v4860_v7 }
 0x43f   :  { %5973 = vmatpush.bf16.msrb.mxu3 %v5672_v54  ;;  %6020 = vmatmul.bf16.vlgmr.msra.gmra.mxu2 %v8207_v21  ;;  %v5384_v21 = vcvt.s32.f32 %v4872_v18  ;;  %v5376_v40 = vcvt.s32.f32 %v4864_v32  ;;  %v8495_v53 = vadd.f32 %v5813_v16, %v8472_v50  ;;  %v4852_v23 = vunpack.c.2.s8 %v4380_v9 }
 0x440   :  { %6064 = vmatpush.bf16.msrb.mxu2 %v5641_v20  ;;  %v4856_v47 = vunpack.c.3.s8 %v4380_v9  ;;  %v4789_v19 = vunpack.c.2.s8 %v4365_v51  ;;  %v4793_v2 = vunpack.c.3.s8 %v4365_v51  ;;  %v5625_v22 = vpack.c.bf16 %v5321_v27, %v5317_v41  ;;  %v4329_v20 = vld [vmem:[#allocation5 + $0x1f8] sm:$0xff] }
 0x441   :  { %v5656_v31 = vpack.c.bf16 %v5384_v21, %v5380_v3  ;;  %v5309_v39 = vcvt.s32.f32 %v4797_v36  ;;  %v5313_v55 = vcvt.s32.f32 %v4801_v56  ;;  %v5652_v54 = vpack.c.bf16 %v5376_v40, %v5372_v1 }
 0x442   :  { %v5364_v58 = vcvt.s32.f32 %v4852_v23  ;;  %v5368_v15 = vcvt.s32.f32 %v4856_v47  ;;  %v5301_v12 = vcvt.s32.f32 %v4789_v19  ;;  %v4844_v42 = vunpack.c.0.s8 %v4380_v9 }
 0x443   :  { %5974 = vmatpush.bf16.msrb.mxu3 %v5668_v62  ;;  %v5305_v11 = vcvt.s32.f32 %v4793_v2  ;;  %v4848_v50 = vunpack.c.1.s8 %v4380_v9  ;;  %v4781_v45 = vunpack.c.0.s8 %v4365_v51  ;;  %v4785_v16 = vunpack.c.1.s8 %v4365_v51  ;;  %v4321_v51 = vld [vmem:[#allocation5 + $0x1b8] sm:$0xff] }
 0x444   :  { %6065 = vmatpush.bf16.msrb.mxu2 %v5637_v29  ;;  %v5621_v59 = vpack.c.bf16 %v5313_v55, %v5309_v39  ;;  %v4645_v14 = vunpack.c.2.s8 %v4329_v20  ;;  %v4649_v8 = vunpack.c.3.s8 %v4329_v20  ;;  %v5648_v38 = vpack.c.bf16 %v5368_v15, %v5364_v58  ;;  %v4317_v39 = vld [vmem:[#allocation5 + $0x198] sm:$0xff] }
 0x445   :  { %v5356_v62 = vcvt.s32.f32 %v4844_v42  ;;  %v5617_v60 = vpack.c.bf16 %v5305_v11, %v5301_v12  ;;  %v5360_v13 = vcvt.s32.f32 %v4848_v50  ;;  %v5293_v29 = vcvt.s32.f32 %v4781_v45  ;;  %v4393_v15 = vld [vmem:[#allocation5 + $0x3f8] sm:$0xff] }
 0x446   :  { %v5297_v24 = vcvt.s32.f32 %v4785_v16  ;;  %v5157_v6 = vcvt.s32.f32 %v4645_v14  ;;  %v5161_v43 = vcvt.s32.f32 %v4649_v8  ;;  %v4641_v61 = vunpack.c.1.s8 %v4329_v20 }
 0x447   :  { %5975 = vmatpush.bf16.msrb.mxu3 %v5664_v52  ;;  %v4637_v52 = vunpack.c.0.s8 %v4329_v20  ;;  %v5644_v49 = vpack.c.bf16 %v5360_v13, %v5356_v62  ;;  %v4629_v18 = vunpack.c.2.s8 %v4325_v63  ;;  %v4633_v7 = vunpack.c.3.s8 %v4325_v63 }
 0x448   :  { %6066 = vmatpush.bf16.msrb.mxu2 %v5633_v4  ;;  %v5613_v28 = vpack.c.bf16 %v5297_v24, %v5293_v29  ;;  %v5545_v17 = vpack.c.bf16 %v5161_v43, %v5157_v6  ;;  %v5153_v30 = vcvt.s32.f32 %v4641_v61  ;;  %v4621_v32 = vunpack.c.0.s8 %v4325_v63  ;;  %v4389_v24 = vld [vmem:[#allocation5 + $0x3d8] sm:$0xff] }
 0x449   :  { %v5149_v33 = vcvt.s32.f32 %v4637_v52  ;;  %v5141_v3 = vcvt.s32.f32 %v4629_v18  ;;  %v5145_v21 = vcvt.s32.f32 %v4633_v7  ;;  %v4625_v9 = vunpack.c.1.s8 %v4325_v63  ;;  %v8508_v7 = vld [vmem:[%s8706_s5 + $0x28] sm:$0xf] }
 0x44a   :  { %v4613_v27 = vunpack.c.2.s8 %v4321_v51  ;;  %v5133_v1 = vcvt.s32.f32 %v4621_v32  ;;  %v4617_v23 = vunpack.c.3.s8 %v4321_v51  ;;  %v4605_v2 = vunpack.c.0.s8 %v4321_v51 }
 0x44b   :  { %5976 = vmatpush.bf16.msrb.mxu3 %v5660_v48  ;;  %v5537_v56 = vpack.c.bf16 %v5145_v21, %v5141_v3  ;;  %v5137_v40 = vcvt.s32.f32 %v4625_v9  ;;  %v4597_v55 = vunpack.c.2.s8 %v4317_v39  ;;  %v4589_v50 = vunpack.c.0.s8 %v4317_v39 }
 0x44c   :  { %6067 = vmatpush.bf16.msrb.mxu2 %v5629_v25  ;;  %v5541_v25 = vpack.c.bf16 %v5153_v30, %v5149_v33  ;;  %v5125_v47 = vcvt.s32.f32 %v4613_v27  ;;  %v5117_v58 = vcvt.s32.f32 %v4605_v2  ;;  %v4593_v45 = vunpack.c.1.s8 %v4317_v39 }
 0x44d   :  { %v5533_v19 = vpack.c.bf16 %v5137_v40, %v5133_v1  ;;  %v5109_v12 = vcvt.s32.f32 %v4597_v55  ;;  %v4901_v16 = vunpack.c.2.s8 %v4393_v15  ;;  %v5101_v8 = vcvt.s32.f32 %v4589_v50 }
 0x44e   :  { %v4893_v62 = vunpack.c.0.s8 %v4393_v15  ;;  %v4885_v63 = vunpack.c.2.s8 %v4389_v24  ;;  %v4877_v33 = vunpack.c.0.s8 %v4389_v24  ;;  %v4881_v30 = vunpack.c.1.s8 %v4389_v24 }
 0x44f   :  { %5977 = vmatpush.bf16.msrb.mxu3 %v5656_v31  ;;  %v5129_v31 = vcvt.s32.f32 %v4617_v23  ;;  %v5413_v13 = vcvt.s32.f32 %v4901_v16  ;;  %v6091_v32 = vperm.slane %v8508_v7, 0  ;;  %vm6576_vm6 = vcmask 64512  }
 0x450   :  { %6068 = vmatpush.bf16.msrb.mxu2 %v5625_v22  ;;  %v4609_v22 = vunpack.c.1.s8 %v4321_v51  ;;  %v5405_v43 = vcvt.s32.f32 %v4893_v62  ;;  %v5397_v18 = vcvt.s32.f32 %v4885_v63  ;;  %v5393_v3 = vcvt.s32.f32 %v4881_v30 }
 0x451   :  { %v5529_v20 = vpack.c.bf16 %v5129_v31, %v5125_v47 }
 0x452   :  { %v8497_v35 = vpop.f32.mrf.mxu2 }
 0x453   :  { %5978 = vmatpush.bf16.msrb.mxu3 %v5652_v54  ;;  %v8499_v46 = vpop.f32.mrf.mxu0  ;;  %v4601_v54 = vunpack.c.3.s8 %v4317_v39 }
 0x454   :  { %6069 = vmatpush.bf16.msrb.mxu2 %v5621_v59  ;;  %v8501_v4 = vpop.f32.mrf.mxu1  ;;  %v4905_v59 = vunpack.c.3.s8 %v4393_v15 }
 0x455   :  { %v5113_v42 = vcvt.s32.f32 %v4601_v54  ;;  %v4385_v54 = vld [vmem:[#allocation5 + $0x3b8] sm:$0xff] }
 0x456   :  { %v5417_v29 = vcvt.s32.f32 %v4905_v59 }
 0x457   :  { %5979 = vmatpush.bf16.msrb.mxu3 %v5648_v38  ;;  %v5521_v14 = vpack.c.bf16 %v5113_v42, %v5109_v12  ;;  %v5105_v38 = vcvt.s32.f32 %v4593_v45  ;;  %v4873_v12 = vunpack.c.3.s8 %v4385_v54 }
 0x458   :  { %6070 = vmatpush.bf16.msrb.mxu2 %v5617_v60  ;;  %v4897_v60 = vunpack.c.1.s8 %v4393_v15  ;;  %v5673_v61 = vpack.c.bf16 %v5417_v29, %v5413_v13  ;;  %v4869_v15 = vunpack.c.2.s8 %v4385_v54 }
 0x459   :  { %v5517_v6 = vpack.c.bf16 %v5105_v38, %v5101_v8  ;;  %v6778_v8 = vld [vmem:[%s8705_s4 + $0x30] sm:$0xff]  ;;  %v5385_v62 = vcvt.s32.f32 %v4873_v12 }
 0x45a   :  { %v5867_v48 = vpop.f32.mrf.mxu2  ;;  %v5409_v52 = vcvt.s32.f32 %v4897_v60  ;;  %v5381_v38 = vcvt.s32.f32 %v4869_v15 }
 0x45b   :  { %5980 = vmatpush.bf16.msrb.mxu3 %v5644_v49  ;;  %v5945_v41 = vpop.f32.mrf.mxu0  ;;  %v4889_v49 = vunpack.c.3.s8 %v4389_v24 }
 0x45c   :  { %6071 = vmatpush.bf16.msrb.mxu2 %v5613_v28  ;;  %v5958_v36 = vpop.f32.mrf.mxu1  ;;  %v5669_v28 = vpack.c.bf16 %v5409_v52, %v5405_v43  ;;  %v5657_v43 = vpack.c.bf16 %v5385_v62, %v5381_v38 }
 0x45e   :  { %5981 = vmatmul.bf16.vlgmr.msrb.gmra.mxu3 %v8453_v44 }
 0x45f   :  { %6025 = vmatpush.bf16.msra.mxu3 %v5545_v17  ;;  %6072 = vmatmul.bf16.vlgmr.msrb.gmra.mxu2 %v8374_v10  ;;  %v5121_v10 = vcvt.s32.f32 %v4609_v22  ;;  %v5401_v17 = vcvt.s32.f32 %v4889_v49 }
 0x461   :  { %v5525_v11 = vpack.c.bf16 %v5121_v10, %v5117_v58  ;;  %v5665_v48 = vpack.c.bf16 %v5401_v17, %v5397_v18  ;;  %v6779_v58 = vld [vmem:[%s8705_s4 + $0x38] sm:$0xff] }
 0x462   :  { %6524 = vmatpush.bf16.msra.mxu0 %v6779_v58 }
 0x463   :  { %6026 = vmatpush.bf16.msra.mxu3 %v5541_v25  ;;  %v5389_v25 = vcvt.s32.f32 %v4877_v33 }
 0x465   :  { %v5661_v41 = vpack.c.bf16 %v5393_v3, %v5389_v25 }
 0x466   :  { %6525 = vmatpush.bf16.msra.mxu0 %v6778_v8 }
 0x467   :  { %6027 = vmatpush.bf16.msra.mxu3 %v5537_v56 }
 0x46b   :  { %6028 = vmatpush.bf16.msra.mxu3 %v5533_v19 }
 0x46f   :  { %6029 = vmatpush.bf16.msra.mxu3 %v5529_v20  ;;  %v4381_v20 = vld [vmem:[#allocation5 + $0x398] sm:$0xff] }
 0x470   :  { %v4853_v13 = vunpack.c.2.s8 %v4381_v20  ;;  %v4857_v52 = vunpack.c.3.s8 %v4381_v20  ;;  %v4845_v18 = vunpack.c.0.s8 %v4381_v20  ;;  %v4849_v17 = vunpack.c.1.s8 %v4381_v20 }
 0x473   :  { %6030 = vmatpush.bf16.msra.mxu3 %v5525_v11  ;;  %v4861_v11 = vunpack.c.0.s8 %v4385_v54 }
 0x475   :  { %v5373_v60 = vcvt.s32.f32 %v4861_v11 }
 0x477   :  { %6031 = vmatpush.bf16.msra.mxu3 %v5521_v14  ;;  %v4865_v14 = vunpack.c.1.s8 %v4385_v54 }
 0x478   :  { %v5917_v42 = vpop.f32.mrf.mxu2 }
 0x479   :  { %v8528_v59 = vadd.f32 %v5917_v42, %v8490_v34 }
 0x47a   :  { %v5774_v21 = vpop.f32.mrf.mxu3 }
 0x47b   :  { %6032 = vmatpush.bf16.msra.mxu3 %v5517_v6  ;;  %v5775_v9 = vadd.f32 %v5774_v21, %v8486_v5  ;;  %v5377_v6 = vcvt.s32.f32 %v4865_v14 }
 0x47d   :  { %v8513_v51 = vmul.f32 %v6091_v32, %v5775_v9  ;;  %v5995_v39 = vpop.f32.mrf.mxu0  ;;  %v6008_v55 = vpop.f32.mrf.mxu1  ;;  %v5653_v49 = vpack.c.bf16 %v5377_v6, %v5373_v60 }
 0x47e   :  { %6033 = vmatmul.bf16.vlgmr.msra.gmra.mxu3 %v8216_v0  ;;  %v8522_v10 = vadd.f32 %v6008_v55, %v5995_v39 }
 0x47f   :  { %6077 = vmatpush.bf16.msrb.mxu3 %v5673_v61  ;;  %v6103_v27 = vrot.slane %v8513_v51, 4  ;;  %v6131_v36 = vmul.f32 %v8513_v51, %v8513_v51  ;;  %v5365_v61 = vcvt.s32.f32 %v4853_v13 }
 0x480   :  { %v5919_v25 = vpop.f32.mrf.mxu2 }
 0x481   :  { %v6104_v0 = vadd.f32 %v6103_v27, %v8513_v51  ;;  %v6135_v56 = vrot.slane %v6131_v36, 4  ;;  %v5357_v27 = vcvt.s32.f32 %v4845_v18  ;;  %v6775_v18 = vld [vmem:[%s8705_s4 + $0x18] sm:$0xff] }
 0x482   :  { %v5776_v1 = vpop.f32.mrf.mxu3 }
 0x483   :  { %6078 = vmatpush.bf16.msrb.mxu3 %v5669_v28  ;;  %v6105_v40 = vrot.slane %v6104_v0, 2  ;;  %v6136_v23 = vadd.f32 %v6135_v56, %v6131_v36  ;;  %v5369_v28 = vcvt.s32.f32 %v4857_v52  ;;  %v6776_v52 = vld [vmem:[%s8705_s4 + $0x20] sm:$0xff] }
 0x485   :  { %v6106_v47 = vadd.f32 %v6105_v40, %v6104_v0  ;;  %v6137_v19 = vrot.slane %v6136_v23, 2  ;;  %v5997_v30 = vpop.f32.mrf.mxu0  ;;  %v6010_v32 = vpop.f32.mrf.mxu1 }
 0x486   :  { %v6785_v30 = vld [vmem:[%s8705_s4 + $0x68] sm:$0xff] }
 0x487   :  { %6079 = vmatpush.bf16.msrb.mxu3 %v5665_v48  ;;  %v6107_v31 = vrot.slane %v6106_v47, 1  ;;  %v6138_v5 = vadd.f32 %v6137_v19, %v6136_v23 }
 0x489   :  { %v6108_v2 = vadd.f32 %v6107_v31, %v6106_v47  ;;  %v6139_v22 = vrot.slane %v6138_v5, 1 }
 0x48a   :  { %v5826_v50 = vpop.f32.mrf.mxu3 }
 0x48b   :  { %6080 = vmatpush.bf16.msrb.mxu3 %v5661_v41  ;;  %v8525_v45 = vmul.f32 %v6108_v2, %v7518_v26  ;;  %v6140_v16 = vadd.f32 %v6139_v22, %v6138_v5  ;;  %v5827_v63 = vadd.f32 %v5826_v50, %v8495_v53  ;;  %v5649_v41 = vpack.c.bf16 %v5369_v28, %v5365_v61 }
 0x48c   :  { %v5361_v53 = vcvt.s32.f32 %v4849_v17 }
 0x48d   :  { %v6159_v29 = vmul.f32 %v6140_v16, %v7518_v26  ;;  %v6163_v24 = vmul.f32 %v8525_v45, %v8525_v45  ;;  %v5840_v48 = vadd.f32 %v8466_v57, %v5827_v63  ;;  %v6092_v57 = vperm.slane %v8508_v7, 1  ;;  %v8557_v16 = vld [vmem:[%s8706_s5 + $0x20] sm:$0xf]  ;;  %v6786_v63 = vld [vmem:[%s8705_s4 + $0x70] sm:$0xff] }
 0x48e   :  { %v5645_v0 = vpack.c.bf16 %v5361_v53, %v5357_v27  ;;  %v6175_v60 = vsub.f32 %v8513_v51, %v8525_v45  ;;  %v6787_v51 = vld [vmem:[%s8705_s4 + $0x78] sm:$0xff] }
 0x48f   :  { %v6167_v34 = vsub.f32 %v6159_v29, %v6163_v24  ;;  %6081 = vmatpush.bf16.msrb.mxu3 %v5657_v43  ;;  %v5853_v9 = vadd.f32 %v8468_v37, %v5840_v48  ;;  %v6777_v24 = vld [vmem:[%s8705_s4 + $0x28] sm:$0xff]  ;;  %v6228_v43 = vperm.slane %v8557_v16, 0  ;;  %6537 = vmatpush.bf16.msra.mxu1 %v6787_v51  ;;  %v6774_v48 = vld [vmem:[%s8705_s4 + $0x10] sm:$0xff]  ;;  %v6783_v27 = vld [vmem:[%s8705_s4 + $0x58] sm:$0xff] }
 0x490   :  { %6526 = vmatpush.bf16.msra.mxu0 %v6777_v24 }
 0x491   :  { %v6171_v33 = vmax.f32 %v6167_v34, 0.0  ;;  %v5866_v36 = vadd.f32 %v8497_v35, %v5853_v9  ;;  %v8571_v34 = vld [vmem:[%s8706_s5 + $0x24] sm:$0xf]  ;;  %v6773_v9 = vld [vmem:[%s8705_s4 + $0x8] sm:$0xff] }
 0x492   :  { %v5828_v3 = vpop.f32.mrf.mxu3  ;;  %v6241_v28 = vperm.slane %v8571_v34, 0 }
 0x493   :  { %v6179_v21 = vadd.f32 1e-05, %v6171_v33  ;;  %6082 = vmatpush.bf16.msrb.mxu3 %v5653_v49  ;;  %6538 = vmatpush.bf16.msra.mxu1 %v6786_v63  ;;  %v6784_v3 = vld [vmem:[%s8705_s4 + $0x60] sm:$0xff] }
 0x494   :  { %6527 = vmatpush.bf16.msra.mxu0 %v6776_v52 }
 0x495   :  { %6831 = vrsqrt.f32 %v6179_v21  ;;  %vm6189_vm11 = vweird.f32 %v6179_v21 }
 0x497   :  { %6083 = vmatpush.bf16.msrb.mxu3 %v5649_v41  ;;  %6539 = vmatpush.bf16.msra.mxu1 %v6785_v30 }
 0x498   :  { %6528 = vmatpush.bf16.msra.mxu0 %v6775_v18 }
 0x49b   :  { %v6832_v56 = vpop.eup %6831  ;;  %6084 = vmatpush.bf16.msrb.mxu3 %v5645_v0  ;;  %6540 = vmatpush.bf16.msra.mxu1 %v6784_v3  ;;  %v6772_v0 = vld [vmem:[%s8705_s4] sm:$0xff] }
 0x49c   :  { %v6184_v1 = vmul.f32 %v6832_v56, %v6179_v21  ;;  %vm6190_vm10 = vweird.f32 %v6832_v56  ;;  %6529 = vmatpush.bf16.msra.mxu0 %v6774_v48 }
 0x49d   :  { %vm6191_vm12 = vmor %vm6189_vm11, %vm6190_vm10 }
 0x49e   :  { %v6185_v40 = vmul.f32 %v6832_v56, %v6184_v1  ;;  %6085 = vmatmul.bf16.vlgmr.msrb.gmra.mxu3 %v8453_v44 }
 0x49f   :  { %6541 = vmatpush.bf16.msra.mxu1 %v6783_v27 }
 0x4a0   :  { %v5878_v23 = vpop.f32.mrf.mxu3  ;;  %v6186_v47 = vmul.f32 0.5, %v6185_v40  ;;  %6530 = vmatpush.bf16.msra.mxu0 %v6773_v9 }
 0x4a1   :  { %v5879_v37 = vadd.f32 %v5878_v23, %v5866_v36 }
 0x4a2   :  { %v8542_v19 = vpop.f32.mrf.mxu2  ;;  %v6187_v35 = vsub.f32 1.5, %v6186_v47  ;;  %v6781_v47 = vld [vmem:[%s8705_s4 + $0x48] sm:$0xff] }
 0x4a3   :  { %v8544_v31 = vmul.f32 %v6092_v57, %v5879_v37  ;;  %v6782_v57 = vld [vmem:[%s8705_s4 + $0x50] sm:$0xff] }
 0x4a4   :  { %v6188_v20 = vmul.f32 %v6832_v56, %v6187_v35  ;;  %6531 = vmatpush.bf16.msra.mxu0 %v6772_v0  ;;  %6542 = vmatpush.bf16.msra.mxu1 %v6782_v57  ;;  %v6791_v57 = vld [vmem:[%s8705_s4 + $0x98] sm:$0xff] }
 0x4a5   :  { %v8546_v5 = vpop.f32.mrf.mxu0  ;;  %v6109_v22 = vrot.slane %v8544_v31, 4  ;;  %v6132_v39 = vmul.f32 %v8544_v31, %v8544_v31 }
 0x4a6   :  { %v8548_v2 = vpop.f32.mrf.mxu1  ;;  %v6192_v14 = vsel %vm6191_vm12, %v6832_v56, %v6188_v20 }
 0x4a7   :  { %v6110_v44 = vadd.f32 %v6109_v22, %v8544_v31  ;;  %v6141_v55 = vrot.slane %v6132_v39, 4  ;;  %v6223_v6 = vmul.f32 %v6192_v14, %v6175_v60 }
 0x4a8   :  { %v5880_v54 = vpop.f32.mrf.mxu3  ;;  %6543 = vmatpush.bf16.msra.mxu1 %v6781_v47  ;;  %v6790_v47 = vld [vmem:[%s8705_s4 + $0x90] sm:$0xff] }
 0x4a9   :  { %v6111_v58 = vrot.slane %v6110_v44, 2  ;;  %v6142_v15 = vadd.f32 %v6141_v55, %v6132_v39  ;;  %v6236_v49 = vmul.f32 %v6228_v43, %v6223_v6 }
 0x4aa   :  { %v5971_v12 = vpop.f32.mrf.mxu2 }
 0x4ab   :  { %v6112_v42 = vadd.f32 %v6111_v58, %v6110_v44  ;;  %v6143_v11 = vrot.slane %v6142_v15, 2  ;;  %v6249_v32 = vadd.f32 %v6241_v28, %v6236_v49 }
 0x4ad   :  { %v6049_v50 = vpop.f32.mrf.mxu0  ;;  %v6113_v8 = vrot.slane %v6112_v42, 1  ;;  %v6144_v38 = vadd.f32 %v6143_v11, %v6142_v15  ;;  %v6253_v21 = vmul.f32 0.2, %v6249_v32 }
 0x4ae   :  { %v6062_v62 = vpop.f32.mrf.mxu1 }
 0x4af   :  { %v6114_v13 = vadd.f32 %v6113_v8, %v6112_v42  ;;  %v6145_v29 = vrot.slane %v6144_v38, 1  ;;  %v6257_v53 = vmax.f32 %v6249_v32, %v6253_v21  ;;  %v6093_v42 = vperm.slane %v8508_v7, 2  ;;  %v6794_v32 = vld [vmem:[%s8705_s4 + $0xb0] sm:$0xff] }
 0x4b1   :  { %v8577_v45 = vmul.f32 %v6114_v13, %v7518_v26  ;;  %v6146_v61 = vadd.f32 %v6145_v29, %v6144_v38  ;;  %v6261_v23 = vpack.c.bf16 %v6257_v53, %v6257_v53  ;;  %v6229_v29 = vperm.slane %v8557_v16, 1 }
 0x4b3   :  { %v6160_v17 = vmul.f32 %v6146_v61, %v7518_v26  ;;  %v6164_v33 = vmul.f32 %v8577_v45, %v8577_v45  ;;  %6532 = vmatmul.bf16.vlgmr.msra.gmra.mxu0 %v6261_v23 }
 0x4b5   :  { %v6168_v25 = vsub.f32 %v6160_v17, %v6164_v33  ;;  %v6242_v17 = vperm.slane %v8571_v34, 1 }
 0x4b7   :  { %v6172_v41 = vmax.f32 %v6168_v25, 0.0 }
 0x4b9   :  { %v6180_v1 = vadd.f32 1e-05, %v6172_v41  ;;  %v6793_v41 = vld [vmem:[%s8705_s4 + $0xa8] sm:$0xff] }
 0x4bb   :  { %6833 = vrsqrt.f32 %v6180_v1  ;;  %vm6199_vm14 = vweird.f32 %v6180_v1 }
 0x4c1   :  { %v5930_v36 = vpop.f32.mrf.mxu3  ;;  %v6834_v22 = vpop.eup %6833 }
 0x4c2   :  { %v6021_v56 = vpop.f32.mrf.mxu2  ;;  %v6194_v39 = vmul.f32 %v6834_v22, %v6180_v1  ;;  %v5931_v44 = vadd.f32 %v5930_v36, %v8528_v59  ;;  %vm6200_vm13 = vweird.f32 %v6834_v22 }
 0x4c3   :  { %v8608_v40 = vadd.f32 %v6021_v56, %v8522_v10  ;;  %v6780_v10 = vld [vmem:[%s8705_s4 + $0x40] sm:$0xff]  ;;  %vm6201_vm15 = vmor %vm6199_vm14, %vm6200_vm13 }
 0x4c4   :  { %6544 = vmatpush.bf16.msra.mxu1 %v6780_v10  ;;  %v6195_v55 = vmul.f32 %v6834_v22, %v6194_v39  ;;  %v5944_v54 = vadd.f32 %v8499_v46, %v5931_v44  ;;  %v6792_v56 = vld [vmem:[%s8705_s4 + $0xa0] sm:$0xff] }
 0x4c6   :  { %v6196_v20 = vmul.f32 0.5, %v6195_v55  ;;  %v5957_v58 = vadd.f32 %v8501_v4, %v5944_v54  ;;  %v6176_v4 = vsub.f32 %v8544_v31, %v8577_v45  ;;  %v6795_v31 = vld [vmem:[%s8705_s4 + $0xb8] sm:$0xff]  ;;  %v6788_v55 = vld [vmem:[%s8705_s4 + $0x80] sm:$0xff] }
 0x4c7   :  { %6550 = vmatpush.bf16.msra.mxu2 %v6795_v31 }
 0x4c8   :  { %v6197_v15 = vsub.f32 1.5, %v6196_v20  ;;  %v5970_v12 = vadd.f32 %v8542_v19, %v5957_v58  ;;  %v6230_v58 = vperm.slane %v8557_v16, 2 }
 0x4c9   :  { %v5932_v37 = vpop.f32.mrf.mxu3 }
 0x4ca   :  { %v6023_v35 = vpop.f32.mrf.mxu2  ;;  %v6198_v14 = vmul.f32 %v6834_v22, %v6197_v15 }
 0x4cb   :  { %6551 = vmatpush.bf16.msra.mxu2 %v6794_v32 }
 0x4cc   :  { %v6202_v38 = vsel %vm6201_vm15, %v6834_v22, %v6198_v14  ;;  %v6789_v22 = vld [vmem:[%s8705_s4 + $0x88] sm:$0xff] }
 0x4cd   :  { %v6224_v13 = vmul.f32 %v6202_v38, %v6176_v4 }
 0x4cf   :  { %v6237_v51 = vmul.f32 %v6229_v29, %v6224_v13  ;;  %6552 = vmatpush.bf16.msra.mxu2 %v6793_v41  ;;  %v6798_v41 = vld [vmem:[%s8705_s4 + $0xd0] sm:$0xff] }
 0x4d1   :  { %v6250_v30 = vadd.f32 %v6242_v17, %v6237_v51 }
 0x4d3   :  { %v6254_v3 = vmul.f32 0.2, %v6250_v30  ;;  %6553 = vmatpush.bf16.msra.mxu2 %v6792_v56 }
 0x4d5   :  { %v6258_v9 = vmax.f32 %v6250_v30, %v6254_v3 }
 0x4d7   :  { %v6262_v53 = vpack.c.bf16 %v6258_v9, %v6258_v9  ;;  %6554 = vmatpush.bf16.msra.mxu2 %v6791_v57  ;;  %v6796_v57 = vld [vmem:[%s8705_s4 + $0xc0] sm:$0xff] }
 0x4d9   :  { %6545 = vmatmul.bf16.vlgmr.msra.gmra.mxu1 %v6262_v53 }
 0x4db   :  { %6555 = vmatpush.bf16.msra.mxu2 %v6790_v47 }
 0x4df   :  { %6556 = vmatpush.bf16.msra.mxu2 %v6789_v22 }
 0x4e1   :  { %v5982_v11 = vpop.f32.mrf.mxu3 }
 0x4e2   :  { %v5983_v50 = vadd.f32 %v5982_v11, %v5970_v12  ;;  %v6073_v18 = vpop.f32.mrf.mxu2 }
 0x4e3   :  { %6557 = vmatpush.bf16.msra.mxu2 %v6788_v55 }
 0x4e4   :  { %v8624_v8 = vmul.f32 %v6093_v42, %v5983_v50  ;;  %v6243_v42 = vperm.slane %v8571_v34, 2 }
 0x4e6   :  { %v6115_v59 = vrot.slane %v8624_v8, 4  ;;  %v6133_v46 = vmul.f32 %v8624_v8, %v8624_v8 }
 0x4e8   :  { %v6116_v19 = vadd.f32 %v6115_v59, %v8624_v8  ;;  %v6147_v62 = vrot.slane %v6133_v46, 4 }
 0x4e9   :  { %v5984_v60 = vpop.f32.mrf.mxu3 }
 0x4ea   :  { %v6117_v24 = vrot.slane %v6116_v19, 2  ;;  %v6148_v6 = vadd.f32 %v6147_v62, %v6133_v46  ;;  %v6075_v36 = vpop.f32.mrf.mxu2  ;;  %v6094_v62 = vperm.slane %v8508_v7, 3  ;;  %v6803_v7 = vld [vmem:[%s8705_s4 + $0xf8] sm:$0xff] }
 0x4eb   :  { %6563 = vmatpush.bf16.msra.mxu3 %v6803_v7 }
 0x4ec   :  { %v6118_v43 = vadd.f32 %v6117_v24, %v6116_v19  ;;  %v6149_v52 = vrot.slane %v6148_v6, 2 }
 0x4ee   :  { %v6119_v61 = vrot.slane %v6118_v43, 1  ;;  %v6150_v63 = vadd.f32 %v6149_v52, %v6148_v6 }
 0x4f0   :  { %v6120_v49 = vadd.f32 %v6119_v61, %v6118_v43  ;;  %v6151_v28 = vrot.slane %v6150_v63, 1 }
 0x4f2   :  { %v6129_v45 = vmul.f32 %v6120_v49, %v7518_v26  ;;  %v6152_v33 = vadd.f32 %v6151_v28, %v6150_v63 }
 0x4f4   :  { %v6161_v48 = vmul.f32 %v6152_v33, %v7518_v26  ;;  %v6165_v25 = vmul.f32 %v6129_v45, %v6129_v45  ;;  %v6177_v20 = vsub.f32 %v8624_v8, %v6129_v45  ;;  %v6802_v45 = vld [vmem:[%s8705_s4 + $0xf0] sm:$0xff] }
 0x4f5   :  { %6564 = vmatpush.bf16.msra.mxu3 %v6802_v45 }
 0x4f6   :  { %v6169_v21 = vsub.f32 %v6161_v48, %v6165_v25  ;;  %v6801_v48 = vld [vmem:[%s8705_s4 + $0xe8] sm:$0xff] }
 0x4f8   :  { %v6173_v27 = vmax.f32 %v6169_v21, 0.0  ;;  %v6800_v21 = vld [vmem:[%s8705_s4 + $0xe0] sm:$0xff] }
 0x4f9   :  { %6565 = vmatpush.bf16.msra.mxu3 %v6801_v48 }
 0x4fa   :  { %v6181_v0 = vadd.f32 1e-05, %v6173_v27 }
 0x4fc   :  { %6835 = vrsqrt.f32 %v6181_v0  ;;  %vm6209_vm1 = vweird.f32 %v6181_v0 }
 0x4fd   :  { %6566 = vmatpush.bf16.msra.mxu3 %v6800_v21 }
 0x501   :  { %v6034_v1 = vpop.f32.mrf.mxu3 }
 0x502   :  { %v6836_v23 = vpop.eup %6835  ;;  %v6035_v46 = vadd.f32 %v6034_v1, %v8608_v40 }
 0x503   :  { %v6204_v37 = vmul.f32 %v6836_v23, %v6181_v0  ;;  %vm6210_vm0 = vweird.f32 %v6836_v23  ;;  %v6797_v0 = vld [vmem:[%s8705_s4 + $0xc8] sm:$0xff] }
 0x504   :  { %vm6211_vm2 = vmor %vm6209_vm1, %vm6210_vm0  ;;  %v6048_v4 = vadd.f32 %v8546_v5, %v6035_v46 }
 0x505   :  { %v6205_v35 = vmul.f32 %v6836_v23, %v6204_v37  ;;  %v6231_v37 = vperm.slane %v8557_v16, 3 }
 0x506   :  { %v6061_v8 = vadd.f32 %v8548_v2, %v6048_v4 }
 0x507   :  { %v6206_v39 = vmul.f32 0.5, %v6205_v35 }
 0x508   :  { %v6074_v19 = vadd.f32 %v6073_v18, %v6061_v8 }
 0x509   :  { %v6036_v10 = vpop.f32.mrf.mxu3  ;;  %v6207_v44 = vsub.f32 1.5, %v6206_v39  ;;  %v6244_v39 = vperm.slane %v8571_v34, 3 }
 0x50b   :  { %v6208_v54 = vmul.f32 %v6836_v23, %v6207_v44 }
 0x50d   :  { %v6212_v15 = vsel %vm6211_vm2, %v6836_v23, %v6208_v54 }
 0x50e   :  { %v6225_v12 = vmul.f32 %v6212_v15, %v6177_v20  ;;  %v6812_v15 = vld [vmem:[%s8706_s5 + $0x2c] ss:$0 sm:$0xff] }
 0x510   :  { %v6238_v11 = vmul.f32 %v6230_v58, %v6225_v12 }
 0x512   :  { %v6251_v50 = vadd.f32 %v6243_v42, %v6238_v11 }
 0x514   :  { %v6255_v14 = vmul.f32 0.2, %v6251_v50 }
 0x516   :  { %v6259_v59 = vmax.f32 %v6251_v50, %v6255_v14 }
 0x518   :  { %v6263_v38 = vpack.c.bf16 %v6259_v59, %v6259_v59 }
 0x51a   :  { %6558 = vmatmul.bf16.vlgmr.msra.gmra.mxu2 %v6263_v38 }
 0x521   :  { %v6086_v60 = vpop.f32.mrf.mxu3 }
 0x522   :  { %v6087_v13 = vadd.f32 %v6086_v60, %v6074_v19 }
 0x524   :  { %v6102_v29 = vmul.f32 %v6094_v62, %v6087_v13 }
 0x526   :  { %v6121_v24 = vrot.slane %v6102_v29, 4  ;;  %v6134_v6 = vmul.f32 %v6102_v29, %v6102_v29 }
 0x528   :  { %v6122_v43 = vadd.f32 %v6121_v24, %v6102_v29  ;;  %v6153_v52 = vrot.slane %v6134_v6, 4 }
 0x529   :  { %v6088_v51 = vpop.f32.mrf.mxu3 }
 0x52a   :  { %v6123_v61 = vrot.slane %v6122_v43, 2  ;;  %v6154_v63 = vadd.f32 %v6153_v52, %v6134_v6 }
 0x52c   :  { %v6124_v40 = vadd.f32 %v6123_v61, %v6122_v43  ;;  %v6155_v49 = vrot.slane %v6154_v63, 2 }
 0x52e   :  { %v6125_v28 = vrot.slane %v6124_v40, 1  ;;  %v6156_v17 = vadd.f32 %v6155_v49, %v6154_v63 }
 0x530   :  { %v6126_v5 = vadd.f32 %v6125_v28, %v6124_v40  ;;  %v6157_v31 = vrot.slane %v6156_v17, 1  ;;  %v6533_v36 = vpop.f32.mrf.mxu0 }
 0x531   :  { %v6534_v12 = vadd.f32 %v6812_v15, %v6533_v36 }
 0x532   :  { %v6130_v2 = vmul.f32 %v6126_v5, %v7518_v26  ;;  %v6158_v18 = vadd.f32 %v6157_v31, %v6156_v17 }
 0x534   :  { %v6162_v33 = vmul.f32 %v6158_v18, %v7518_v26  ;;  %v6166_v30 = vmul.f32 %v6130_v2, %v6130_v2  ;;  %v6799_v26 = vld [vmem:[%s8705_s4 + $0xd8] sm:$0xff]  ;;  %v6178_v47 = vsub.f32 %v6102_v29, %v6130_v2 }
 0x535   :  { %6567 = vmatpush.bf16.msra.mxu3 %v6799_v26 }
 0x536   :  { %v6170_v32 = vsub.f32 %v6162_v33, %v6166_v30 }
 0x538   :  { %v6174_v25 = vmax.f32 %v6170_v32, 0.0  ;;  %v6535_v10 = vpop.f32.mrf.mxu0 }
 0x539   :  { %6568 = vmatpush.bf16.msra.mxu3 %v6798_v41 }
 0x53a   :  { %v6182_v3 = vadd.f32 1e-05, %v6174_v25 }
 0x53c   :  { %6837 = vrsqrt.f32 %v6182_v3  ;;  %vm6219_vm4 = vweird.f32 %v6182_v3 }
 0x53d   :  { %6569 = vmatpush.bf16.msra.mxu3 %v6797_v0 }
 0x541   :  { %6570 = vmatpush.bf16.msra.mxu3 %v6796_v57 }
 0x542   :  { %v6838_v9 = vpop.eup %6837 }
 0x543   :  { %v6214_v27 = vmul.f32 %v6838_v9, %v6182_v3  ;;  %vm6220_vm3 = vweird.f32 %v6838_v9 }
 0x544   :  { %vm6221_vm5 = vmor %vm6219_vm4, %vm6220_vm3 }
 0x545   :  { %v6215_v53 = vmul.f32 %v6838_v9, %v6214_v27 }
 0x547   :  { %v6216_v56 = vmul.f32 0.5, %v6215_v53 }
 0x549   :  { %v6217_v1 = vsub.f32 1.5, %v6216_v56 }
 0x54b   :  { %v6218_v23 = vmul.f32 %v6838_v9, %v6217_v1 }
 0x54d   :  { %v6222_v35 = vsel %vm6221_vm5, %v6838_v9, %v6218_v23 }
 0x54e   :  { %v6226_v22 = vmul.f32 %v6222_v35, %v6178_v47 }
 0x550   :  { %v6239_v44 = vmul.f32 %v6231_v37, %v6226_v22 }
 0x552   :  { %v6252_v55 = vadd.f32 %v6244_v39, %v6239_v44 }
 0x554   :  { %v6256_v54 = vmul.f32 0.2, %v6252_v55 }
 0x556   :  { %v6260_v20 = vmax.f32 %v6252_v55, %v6256_v54  ;;  %v6546_v42 = vpop.f32.mrf.mxu1 }
 0x557   :  { %v6547_v11 = vadd.f32 %v6546_v42, %v6534_v12 }
 0x558   :  { %v6264_v58 = vpack.c.bf16 %v6260_v20, %v6260_v20 }
 0x55a   :  { %6571 = vmatmul.bf16.vlgmr.msra.gmra.mxu3 %v6264_v58 }
 0x55e   :  { %v6548_v16 = vpop.f32.mrf.mxu1 }
 0x59d   :  { %v6559_v50 = vpop.f32.mrf.mxu2 }
 0x59e   :  { %v6560_v14 = vadd.f32 %v6559_v50, %v6547_v11 }
 0x5a5   :  { %v6561_v59 = vpop.f32.mrf.mxu2 }
 0x5dd   :  { %v6572_v34 = vpop.f32.mrf.mxu3 }
 0x5de   :  { %v6573_v46 = vadd.f32 %v6572_v34, %v6560_v14 }
 0x5e0   :  { %6577 = vst.msk [vmem:[#allocation7] sm:$0xff] %vm6576_vm6, %v6573_v46 }
 0x5e1   :  { %6588 = dma.vmem_to_hbm [thread:$0]  %s6584_s25, 128, %s6586_s28, [#allocation4]  }
 0x5e5   :  { %v6574_v38 = vpop.f32.mrf.mxu3 }
 0x5e6   :  { %6922 = dma.done.wait [#allocation4], 128  }
 0x5e7   :  { %6923 = vsyncadd [#allocation4], 4294967168 }
 0x5e8   :  { %6593 = vsyncpa [#allocation3], 1 }
 0x5e9   :  { %6594 = vsyncpa [#allocation6], 1 }
 0x5ea   :  { %6595 = vsyncpa [#allocation4], 1 }

</bundles_post_ra>
